<compile_context>
chip_gen: v5e
topology: v5e:2x2
jax: 0.10.0
libtpu: 0.0.40
codegen_flags: <defaults>
</compile_context>

<pallas_src>
import functools

import jax
import jax.numpy as jnp
from jax.experimental import pallas as pl
from jax.experimental.pallas import tpu as pltpu

NUM_CLASSES = 4


# ---------------------------------------------------------------------------
# Pallas kernel 1: fused matmul + bias + optional ReLU (MXU hot path for the
# conv / conv-transpose / linear layers, applied to im2col'd activations).
# ---------------------------------------------------------------------------
def _mm_bias_act_kernel(a_ref, w_ref, b_ref, o_ref, *, relu):
    acc = jnp.dot(a_ref[...], w_ref[...], preferred_element_type=jnp.float32)
    acc = acc + b_ref[...]
    if relu:
        acc = jnp.maximum(acc, 0.0)
    o_ref[...] = acc.astype(o_ref.dtype)


def _pick_tile(dim, prefs):
    for p in prefs:
        if p <= dim and dim % p == 0:
            return p
    return dim  # fall back to the full dimension (always legal)


def matmul_bias_act(a, w, b, relu=False):
    """(M, K) @ (K, N) + b, optional fused ReLU. K kept whole (small here)."""
    M, K = a.shape
    K2, N = w.shape
    assert K == K2
    b2 = jnp.asarray(b, jnp.float32).reshape(1, N)
    tm = _pick_tile(M, (2048, 1024, 512, 256, 128, 64, 32, 16, 8))
    tn = _pick_tile(N, (2048, 1024, 512, 256, 128))
    grid = (M // tm, N // tn)
    kernel = functools.partial(_mm_bias_act_kernel, relu=relu)
    return pl.pallas_call(
        kernel,
        out_shape=jax.ShapeDtypeStruct((M, N), jnp.float32),
        grid_spec=pltpu.PrefetchScalarGridSpec(
            num_scalar_prefetch=0,
            grid=grid,
            in_specs=[
                pl.BlockSpec((tm, K), lambda i, j: (i, 0)),
                pl.BlockSpec((K, tn), lambda i, j: (0, j)),
                pl.BlockSpec((1, tn), lambda i, j: (0, j)),
            ],
            out_specs=pl.BlockSpec((tm, tn), lambda i, j: (i, j)),
        ),
        compiler_params=pltpu.CompilerParams(
            dimension_semantics=("parallel", "parallel")),
    )(jnp.asarray(a, jnp.float32), jnp.asarray(w, jnp.float32), b2)


# ---------------------------------------------------------------------------
# Pallas kernel 2: 2x2 max pool, single HBM input (window dims pre-split by a
# free reshape in glue; the reduction runs in-kernel).
# ---------------------------------------------------------------------------
def _maxpool_kernel(x_ref, o_ref):
    v = x_ref[...]                                     # (B, H/2, 2, W/2, 2, C)
    o_ref[...] = jnp.maximum(
        jnp.maximum(v[:, :, 0, :, 0, :], v[:, :, 0, :, 1, :]),
        jnp.maximum(v[:, :, 1, :, 0, :], v[:, :, 1, :, 1, :]))


def maxpool2x2(x):
    # x: (B, H, W, C) NHWC -> (B, H//2, W//2, C)
    B, H, W, C = x.shape
    x6 = x.reshape(B, H // 2, 2, W // 2, 2, C)         # free reshape (no copy)
    return pl.pallas_call(
        _maxpool_kernel,
        out_shape=jax.ShapeDtypeStruct((B, H // 2, W // 2, C), x.dtype),
    )(x6)


# ---------------------------------------------------------------------------
# Pallas kernel 3: fused Upsample(bilinear, align_corners) + ConvT(64->4) tail.
# One (256, 32) @ (32, 256) matmul per (batch, class); output blocks are the
# final NCHW (256, 256) planes (lane-dense stores, no big intermediates).
# ---------------------------------------------------------------------------
def _upsample_convT_kernel(u_ref, g_ref, o_ref):
    o_ref[...] = jnp.dot(u_ref[...], g_ref[...],
                         preferred_element_type=jnp.float32)


def fused_upsample_convT(uh_aug, g_aug):
    B, CO, K, OW = g_aug.shape
    OH = uh_aug.shape[0]
    return pl.pallas_call(
        _upsample_convT_kernel,
        out_shape=jax.ShapeDtypeStruct((B, CO, OH, OW), jnp.float32),
        grid_spec=pltpu.PrefetchScalarGridSpec(
            num_scalar_prefetch=0,
            grid=(B, CO),
            in_specs=[
                pl.BlockSpec((OH, K), lambda b, co: (0, 0)),
                pl.BlockSpec((None, None, K, OW), lambda b, co: (b, co, 0, 0)),
            ],
            out_specs=pl.BlockSpec((None, None, OH, OW),
                                   lambda b, co: (b, co, 0, 0)),
        ),
        compiler_params=pltpu.CompilerParams(
            dimension_semantics=("parallel", "parallel")),
    )(uh_aug, g_aug)


# ---------------------------------------------------------------------------
# JAX glue: im2col, weight re-layouts, bilinear interpolation matrices, and
# the (tiny) folding of the upsample+conv tail into matmul operands.
# ---------------------------------------------------------------------------
def im2col_3x3(x):
    """x: (B, H, W, C) -> (B*H*W, 9*C); taps ordered (ky, kx) outer, C inner."""
    B, H, W, C = x.shape
    xp = jnp.pad(x, ((0, 0), (1, 1), (1, 1), (0, 0)))
    cols = [xp[:, ky:ky + H, kx:kx + W, :] for ky in range(3) for kx in range(3)]
    return jnp.concatenate(cols, axis=-1).reshape(B * H * W, 9 * C)


def conv_w_to_mat(w):
    """torch Conv2d weight (Cout, Cin, 3, 3) -> (9*Cin, Cout) matching im2col."""
    return jnp.transpose(w, (2, 3, 1, 0)).reshape(-1, w.shape[0])


def convT_w_to_mat(w):
    """torch ConvTranspose2d weight (Cin, Cout, 3, 3) -> equivalent conv matrix.

    ConvTranspose2d(k=3, s=1, p=1) == Conv2d with the kernel flipped spatially
    and in/out channels swapped, padding=1.
    """
    wf = w[:, :, ::-1, ::-1]
    return jnp.transpose(wf, (2, 3, 0, 1)).reshape(-1, w.shape[1])


def bilinear_matrix(out_size, in_size):
    """Interpolation matrix for bilinear upsampling, align_corners=True."""
    src = jnp.arange(out_size, dtype=jnp.float32) * (in_size - 1) / (out_size - 1)
    p0 = jnp.clip(jnp.floor(src).astype(jnp.int32), 0, in_size - 2)
    frac = src - p0.astype(jnp.float32)
    rows = jnp.arange(out_size)
    u = jnp.zeros((out_size, in_size), jnp.float32)
    u = u.at[rows, p0].add(1.0 - frac)
    u = u.at[rows, p0 + 1].add(frac)
    return u


def shifted_interp_matrix(out_size, in_size):
    """[Upad[d : d+out] for d=0,1,2] concatenated -> (out, 3*in).

    Upad is the interpolation matrix with an all-zero row prepended/appended,
    which implements the 3x3 conv's zero padding at the fine resolution:
    column (d*in + h) of the result is Upad[i + d, h].
    """
    u = bilinear_matrix(out_size, in_size)
    z = jnp.zeros((1, in_size), jnp.float32)
    up = jnp.concatenate([z, u, z], axis=0)                 # (out+2, in)
    return jnp.concatenate([up[d:d + out_size] for d in range(3)], axis=1)


def build_tail_operands(d1, t2_w, t2_b, out_h, out_w):
    """Fold Upsample(align_corners) + ConvT(k3,s1,p1) into one matmul per (b, co).

    out[b,co,i,j] = sum_{dy,dx,c,h,w} Wc[dy,dx,c,co] * Uh_pad[i+dy,h]
                    * Uw_pad[j+dx,w] * d1[b,h,w,c] + bias[co]
                  = sum_k Uh_aug[i,k] * G_aug[b,co,k,j]
    Everything here is tiny (<100 KB / ~3 MFLOP); the big (out_h x out_w)
    expansion happens inside the Pallas kernel.
    """
    B, Hin, Win, Cin = d1.shape
    CO = t2_w.shape[1]
    # equivalent 3x3 conv weight of the ConvTranspose: flip + swap in/out
    wc = jnp.transpose(t2_w[:, :, ::-1, ::-1], (2, 3, 0, 1))   # (3,3,Cin,CO)

    uh = shifted_interp_matrix(out_h, Hin)                     # (out_h, 3*Hin)
    uw = shifted_interp_matrix(out_w, Win).reshape(out_w, 3, Win)

    # contract channels, then the (dx, w) column factor
    e = jnp.einsum('bhwc,yxcf->bhwyxf', d1, wc)                # (B,Hin,Win,3,3,CO)
    g = jnp.einsum('jxw,bhwyxf->bfyhj', uw, e)                 # (B,CO,3,Hin,out_w)
    g = g.reshape(B, CO, 3 * Hin, out_w)

    # fold bias in as an extra contraction row; zero-pad K up to a multiple of 8
    k_raw = 3 * Hin + 1
    k_tot = ((k_raw + 7) // 8) * 8
    k_pad = k_tot - k_raw
    uh_aug = jnp.concatenate(
        [uh, jnp.ones((out_h, 1), jnp.float32),
         jnp.zeros((out_h, k_pad), jnp.float32)], axis=1)      # (out_h, k_tot)
    g_aug = jnp.concatenate(
        [g,
         jnp.broadcast_to(t2_b.astype(jnp.float32)[None, :, None, None],
                          (B, CO, 1, out_w)),
         jnp.zeros((B, CO, k_pad, out_w), jnp.float32)], axis=2)  # (B,CO,k_tot,out_w)
    return uh_aug, g_aug


# ---------------------------------------------------------------------------
# Parameters (deterministic synthetic init, PyTorch layouts)
# ---------------------------------------------------------------------------
def init_params(key, clip_feature_dim=512, num_classes=NUM_CLASSES):
    ks = jax.random.split(key, 10)

    def u(k, shape, scale):
        return jax.random.uniform(k, shape, jnp.float32, -1.0, 1.0) * scale

    return {
        "fc_w": u(ks[0], (256, clip_feature_dim), 0.02),   # Linear: (out, in)
        "fc_b": u(ks[1], (256,), 0.02),
        "c1_w": u(ks[2], (64, 4, 3, 3), 0.10),             # Conv2d: (out, in, kh, kw)
        "c1_b": u(ks[3], (64,), 0.10),
        "c2_w": u(ks[4], (128, 64, 3, 3), 0.05),
        "c2_b": u(ks[5], (128,), 0.05),
        "t1_w": u(ks[6], (384, 64, 3, 3), 0.02),           # ConvT: (in, out, kh, kw)
        "t1_b": u(ks[7], (64,), 0.02),
        "t2_w": u(ks[8], (64, num_classes, 3, 3), 0.05),
        "t2_b": u(ks[9], (num_classes,), 0.05),
    }


# ---------------------------------------------------------------------------
# Forward pass (matches SegmentationDecoder.forward)
# ---------------------------------------------------------------------------
def segmentation_decoder_forward(params, image_nchw, clip_features):
    B = image_nchw.shape[0]
    x = jnp.transpose(image_nchw, (0, 2, 3, 1)).astype(jnp.float32)  # NCHW -> NHWC
    _, H, W, _ = x.shape
    H2, W2 = H // 2, W // 2

    # encoder: Conv2d(4->64) + ReLU
    h1 = matmul_bias_act(im2col_3x3(x), conv_w_to_mat(params["c1_w"]),
                         params["c1_b"], relu=True).reshape(B, H, W, 64)
    # MaxPool2d(2)
    h1p = maxpool2x2(h1)
    # Conv2d(64->128) + ReLU
    h2 = matmul_bias_act(im2col_3x3(h1p), conv_w_to_mat(params["c2_w"]),
                         params["c2_b"], relu=True).reshape(B, H2, W2, 128)

    # clip_fc: Linear(512->256), broadcast over spatial dims
    clip = matmul_bias_act(clip_features.astype(jnp.float32),
                           params["fc_w"].T, params["fc_b"])          # (B, 256)
    clip_map = jnp.broadcast_to(clip[:, None, None, :], (B, H2, W2, 256))

    # channel concat (cnn first, clip second) == torch.cat(dim=1) in NCHW
    fusion = jnp.concatenate([h2, clip_map], axis=-1)                 # (B,H2,W2,384)

    # decoder: ConvTranspose2d(384->64, k3 s1 p1) + ReLU
    d1 = matmul_bias_act(im2col_3x3(fusion), convT_w_to_mat(params["t1_w"]),
                         params["t1_b"], relu=True).reshape(B, H2, W2, 64)

    # Upsample(size=(256,256), bilinear, align_corners=True)
    # + ConvTranspose2d(64->num_classes, k3 s1 p1): fused Pallas tail kernel,
    # writes the NCHW result directly.
    uh_aug, g_aug = build_tail_operands(d1, params["t2_w"], params["t2_b"],
                                        256, 256)
    return fused_upsample_convT(uh_aug, g_aug)          # (B, NUM_CLASSES, 256, 256)


# ---------------------------------------------------------------------------
if __name__ == "__main__":
    key = jax.random.PRNGKey(0)
    kp, ki, kc = jax.random.split(key, 3)
    params = init_params(kp)

    image = jax.random.normal(ki, (2, 4, 16, 16), jnp.float32)        # NCHW
    clip_feats = jax.random.normal(kc, (2, 512), jnp.float32)

    fwd = jax.jit(segmentation_decoder_forward)
    out = fwd(params, image, clip_feats)
    out = jax.block_until_ready(out)

    assert out.shape == (2, NUM_CLASSES, 256, 256), out.shape
    assert out.dtype == jnp.float32
    print("KERNEL_OK")
</pallas_src>

<mosaic_0001>
module attributes {stable_mosaic.version = 11 : i64} {
  func.func @_maxpool_kernel(%arg0: memref<2x8x2x8x2x64xf32, #tpu.memory_space<vmem>>, %arg1: memref<2x8x8x64xf32, #tpu.memory_space<vmem>>) attributes {dimension_semantics = [], scalar_prefetch = 0 : i64, scratch_operands = 0 : i64, tpu.core_type = #tpu.core_type<tc>} {
    %c0 = arith.constant 0 : index
    %c0_0 = arith.constant 0 : index
    %c0_1 = arith.constant 0 : index
    %c0_2 = arith.constant 0 : index
    %c0_3 = arith.constant 0 : index
    %c0_4 = arith.constant 0 : index
    %0 = vector.load %arg0[%c0, %c0_0, %c0_1, %c0_2, %c0_3, %c0_4] : memref<2x8x2x8x2x64xf32, #tpu.memory_space<vmem>>, vector<2x8x2x8x2x64xf32>
    %1 = vector.extract_strided_slice %0 {offsets = [0, 0, 0, 0, 0, 0], sizes = [2, 8, 1, 8, 1, 64], strides = [1, 1, 1, 1, 1, 1]} : vector<2x8x2x8x2x64xf32> to vector<2x8x1x8x1x64xf32>
    %2 = vector.shape_cast %1 : vector<2x8x1x8x1x64xf32> to vector<2x8x8x64xf32>
    %3 = vector.extract_strided_slice %0 {offsets = [0, 0, 0, 0, 1, 0], sizes = [2, 8, 1, 8, 1, 64], strides = [1, 1, 1, 1, 1, 1]} : vector<2x8x2x8x2x64xf32> to vector<2x8x1x8x1x64xf32>
    %4 = vector.shape_cast %3 : vector<2x8x1x8x1x64xf32> to vector<2x8x8x64xf32>
    %5 = arith.maximumf %2, %4 : vector<2x8x8x64xf32>
    %6 = vector.extract_strided_slice %0 {offsets = [0, 0, 1, 0, 0, 0], sizes = [2, 8, 1, 8, 1, 64], strides = [1, 1, 1, 1, 1, 1]} : vector<2x8x2x8x2x64xf32> to vector<2x8x1x8x1x64xf32>
    %7 = vector.shape_cast %6 : vector<2x8x1x8x1x64xf32> to vector<2x8x8x64xf32>
    %8 = vector.extract_strided_slice %0 {offsets = [0, 0, 1, 0, 1, 0], sizes = [2, 8, 1, 8, 1, 64], strides = [1, 1, 1, 1, 1, 1]} : vector<2x8x2x8x2x64xf32> to vector<2x8x1x8x1x64xf32>
    %9 = vector.shape_cast %8 : vector<2x8x1x8x1x64xf32> to vector<2x8x8x64xf32>
    %10 = arith.maximumf %7, %9 : vector<2x8x8x64xf32>
    %11 = arith.maximumf %5, %10 : vector<2x8x8x64xf32>
    %c0_5 = arith.constant 0 : index
    %c0_6 = arith.constant 0 : index
    %c0_7 = arith.constant 0 : index
    %c0_8 = arith.constant 0 : index
    %12 = vector.load %arg1[%c0_5, %c0_6, %c0_7, %c0_8] : memref<2x8x8x64xf32, #tpu.memory_space<vmem>>, vector<2x8x8x64xf32>
    tpu.vector_store %arg1[%c0_5, %c0_6, %c0_7, %c0_8], %11 {strides = array<i32>} : memref<2x8x8x64xf32, #tpu.memory_space<vmem>>, vector<2x8x8x64xf32>,
    return
  }
}

module attributes {stable_mosaic.version = 11 : i64} {
  func.func @_mm_bias_act_kernel(%arg0: i32, %arg1: i32, %arg2: memref<512x36xf32, #tpu.memory_space<vmem>>, %arg3: memref<36x64xf32, #tpu.memory_space<vmem>>, %arg4: memref<1x64xf32, #tpu.memory_space<vmem>>, %arg5: memref<512x64xf32, #tpu.memory_space<vmem>>) attributes {dimension_semantics = [#tpu.dimension_semantics<parallel>, #tpu.dimension_semantics<parallel>], iteration_bounds = array<i64: 1, 1>, scalar_prefetch = 0 : i64, scratch_operands = 0 : i64, tpu.core_type = #tpu.core_type<tc>, window_params = [{transform_indices = @transform_0, window_bounds = array<i64: 512, 36>}, {transform_indices = @transform_1, window_bounds = array<i64: 36, 64>}, {transform_indices = @transform_2, window_bounds = array<i64: 1, 64>}, {transform_indices = @transform_3, window_bounds = array<i64: 512, 64>}]} {
    %c0 = arith.constant 0 : index
    %c0_0 = arith.constant 0 : index
    %0 = vector.load %arg2[%c0, %c0_0] : memref<512x36xf32, #tpu.memory_space<vmem>>, vector<512x36xf32>
    %c0_1 = arith.constant 0 : index
    %c0_2 = arith.constant 0 : index
    %1 = vector.load %arg3[%c0_1, %c0_2] : memref<36x64xf32, #tpu.memory_space<vmem>>, vector<36x64xf32>
    %cst = arith.constant dense<0.000000e+00> : vector<512x64xf32>
    %2 = tpu.matmul %0, %1, %cst {dimension_numbers = #tpu.dot_dimension_numbers<[1], [0], [0], [1], [0, 0, 1, 1], [], []>} : vector<512x36xf32>, vector<36x64xf32>, vector<512x64xf32> -> vector<512x64xf32>
    %c0_3 = arith.constant 0 : index
    %c0_4 = arith.constant 0 : index
    %3 = vector.load %arg4[%c0_3, %c0_4] : memref<1x64xf32, #tpu.memory_space<vmem>>, vector<1x64xf32>
    %4 = vector.broadcast %3 : vector<1x64xf32> to vector<512x64xf32>
    %5 = arith.addf %2, %4 : vector<512x64xf32>
    %cst_5 = arith.constant 0.000000e+00 : f32
    %6 = vector.broadcast %cst_5 : f32 to vector<512x64xf32>
    %7 = arith.maximumf %5, %6 : vector<512x64xf32>
    %c0_6 = arith.constant 0 : index
    %c0_7 = arith.constant 0 : index
    %8 = vector.load %arg5[%c0_6, %c0_7] : memref<512x64xf32, #tpu.memory_space<vmem>>, vector<512x64xf32>
    tpu.vector_store %arg5[%c0_6, %c0_7], %7 {strides = array<i32>} : memref<512x64xf32, #tpu.memory_space<vmem>>, vector<512x64xf32>,
    return
  }
  func.func @transform_0(%arg0: i32, %arg1: i32) -> (i32, i32) {
    %c0_i32 = arith.constant 0 : i32
    %c0_i32_0 = arith.constant 0 : i32
    return %arg0, %c0_i32 : i32, i32
  }
  func.func @transform_1(%arg0: i32, %arg1: i32) -> (i32, i32) {
    %c0_i32 = arith.constant 0 : i32
    %c0_i32_0 = arith.constant 0 : i32
    return %c0_i32, %arg1 : i32, i32
  }
  func.func @transform_2(%arg0: i32, %arg1: i32) -> (i32, i32) {
    %c0_i32 = arith.constant 0 : i32
    %c0_i32_0 = arith.constant 0 : i32
    return %c0_i32, %arg1 : i32, i32
  }
  func.func @transform_3(%arg0: i32, %arg1: i32) -> (i32, i32) {
    %c0_i32 = arith.constant 0 : i32
    return %arg0, %arg1 : i32, i32
  }
}

module attributes {stable_mosaic.version = 11 : i64} {
  func.func @_mm_bias_act_kernel(%arg0: i32, %arg1: i32, %arg2: memref<128x576xf32, #tpu.memory_space<vmem>>, %arg3: memref<576x128xf32, #tpu.memory_space<vmem>>, %arg4: memref<1x128xf32, #tpu.memory_space<vmem>>, %arg5: memref<128x128xf32, #tpu.memory_space<vmem>>) attributes {dimension_semantics = [#tpu.dimension_semantics<parallel>, #tpu.dimension_semantics<parallel>], iteration_bounds = array<i64: 1, 1>, scalar_prefetch = 0 : i64, scratch_operands = 0 : i64, tpu.core_type = #tpu.core_type<tc>, window_params = [{transform_indices = @transform_0, window_bounds = array<i64: 128, 576>}, {transform_indices = @transform_1, window_bounds = array<i64: 576, 128>}, {transform_indices = @transform_2, window_bounds = array<i64: 1, 128>}, {transform_indices = @transform_3, window_bounds = array<i64: 128, 128>}]} {
    %c0 = arith.constant 0 : index
    %c0_0 = arith.constant 0 : index
    %0 = vector.load %arg2[%c0, %c0_0] : memref<128x576xf32, #tpu.memory_space<vmem>>, vector<128x576xf32>
    %c0_1 = arith.constant 0 : index
    %c0_2 = arith.constant 0 : index
    %1 = vector.load %arg3[%c0_1, %c0_2] : memref<576x128xf32, #tpu.memory_space<vmem>>, vector<576x128xf32>
    %cst = arith.constant dense<0.000000e+00> : vector<128x128xf32>
    %2 = tpu.matmul %0, %1, %cst {dimension_numbers = #tpu.dot_dimension_numbers<[1], [0], [0], [1], [0, 0, 1, 1], [], []>} : vector<128x576xf32>, vector<576x128xf32>, vector<128x128xf32> -> vector<128x128xf32>
    %c0_3 = arith.constant 0 : index
    %c0_4 = arith.constant 0 : index
    %3 = vector.load %arg4[%c0_3, %c0_4] : memref<1x128xf32, #tpu.memory_space<vmem>>, vector<1x128xf32>
    %4 = vector.broadcast %3 : vector<1x128xf32> to vector<128x128xf32>
    %5 = arith.addf %2, %4 : vector<128x128xf32>
    %cst_5 = arith.constant 0.000000e+00 : f32
    %6 = vector.broadcast %cst_5 : f32 to vector<128x128xf32>
    %7 = arith.maximumf %5, %6 : vector<128x128xf32>
    %c0_6 = arith.constant 0 : index
    %c0_7 = arith.constant 0 : index
    %8 = vector.load %arg5[%c0_6, %c0_7] : memref<128x128xf32, #tpu.memory_space<vmem>>, vector<128x128xf32>
    tpu.vector_store %arg5[%c0_6, %c0_7], %7 {strides = array<i32>} : memref<128x128xf32, #tpu.memory_space<vmem>>, vector<128x128xf32>,
    return
  }
  func.func @transform_0(%arg0: i32, %arg1: i32) -> (i32, i32) {
    %c0_i32 = arith.constant 0 : i32
    %c0_i32_0 = arith.constant 0 : i32
    return %arg0, %c0_i32 : i32, i32
  }
  func.func @transform_1(%arg0: i32, %arg1: i32) -> (i32, i32) {
    %c0_i32 = arith.constant 0 : i32
    %c0_i32_0 = arith.constant 0 : i32
    return %c0_i32, %arg1 : i32, i32
  }
  func.func @transform_2(%arg0: i32, %arg1: i32) -> (i32, i32) {
    %c0_i32 = arith.constant 0 : i32
    %c0_i32_0 = arith.constant 0 : i32
    return %c0_i32, %arg1 : i32, i32
  }
  func.func @transform_3(%arg0: i32, %arg1: i32) -> (i32, i32) {
    %c0_i32 = arith.constant 0 : i32
    return %arg0, %arg1 : i32, i32
  }
}

module attributes {stable_mosaic.version = 11 : i64} {
  func.func @_mm_bias_act_kernel(%arg0: i32, %arg1: i32, %arg2: memref<2x512xf32, #tpu.memory_space<vmem>>, %arg3: memref<512x256xf32, #tpu.memory_space<vmem>>, %arg4: memref<1x256xf32, #tpu.memory_space<vmem>>, %arg5: memref<2x256xf32, #tpu.memory_space<vmem>>) attributes {dimension_semantics = [#tpu.dimension_semantics<parallel>, #tpu.dimension_semantics<parallel>], iteration_bounds = array<i64: 1, 1>, scalar_prefetch = 0 : i64, scratch_operands = 0 : i64, tpu.core_type = #tpu.core_type<tc>, window_params = [{transform_indices = @transform_0, window_bounds = array<i64: 2, 512>}, {transform_indices = @transform_1, window_bounds = array<i64: 512, 256>}, {transform_indices = @transform_2, window_bounds = array<i64: 1, 256>}, {transform_indices = @transform_3, window_bounds = array<i64: 2, 256>}]} {
    %c0 = arith.constant 0 : index
    %c0_0 = arith.constant 0 : index
    %0 = vector.load %arg2[%c0, %c0_0] : memref<2x512xf32, #tpu.memory_space<vmem>>, vector<2x512xf32>
    %c0_1 = arith.constant 0 : index
    %c0_2 = arith.constant 0 : index
    %1 = vector.load %arg3[%c0_1, %c0_2] : memref<512x256xf32, #tpu.memory_space<vmem>>, vector<512x256xf32>
    %cst = arith.constant dense<0.000000e+00> : vector<2x256xf32>
    %2 = tpu.matmul %0, %1, %cst {dimension_numbers = #tpu.dot_dimension_numbers<[1], [0], [0], [1], [0, 0, 1, 1], [], []>} : vector<2x512xf32>, vector<512x256xf32>, vector<2x256xf32> -> vector<2x256xf32>
    %c0_3 = arith.constant 0 : index
    %c0_4 = arith.constant 0 : index
    %3 = vector.load %arg4[%c0_3, %c0_4] : memref<1x256xf32, #tpu.memory_space<vmem>>, vector<1x256xf32>
    %4 = vector.broadcast %3 : vector<1x256xf32> to vector<2x256xf32>
    %5 = arith.addf %2, %4 : vector<2x256xf32>
    %c0_5 = arith.constant 0 : index
    %c0_6 = arith.constant 0 : index
    %6 = vector.load %arg5[%c0_5, %c0_6] : memref<2x256xf32, #tpu.memory_space<vmem>>, vector<2x256xf32>
    tpu.vector_store %arg5[%c0_5, %c0_6], %5 {strides = array<i32>} : memref<2x256xf32, #tpu.memory_space<vmem>>, vector<2x256xf32>,
    return
  }
  func.func @transform_0(%arg0: i32, %arg1: i32) -> (i32, i32) {
    %c0_i32 = arith.constant 0 : i32
    %c0_i32_0 = arith.constant 0 : i32
    return %arg0, %c0_i32 : i32, i32
  }
  func.func @transform_1(%arg0: i32, %arg1: i32) -> (i32, i32) {
    %c0_i32 = arith.constant 0 : i32
    %c0_i32_0 = arith.constant 0 : i32
    return %c0_i32, %arg1 : i32, i32
  }
  func.func @transform_2(%arg0: i32, %arg1: i32) -> (i32, i32) {
    %c0_i32 = arith.constant 0 : i32
    %c0_i32_0 = arith.constant 0 : i32
    return %c0_i32, %arg1 : i32, i32
  }
  func.func @transform_3(%arg0: i32, %arg1: i32) -> (i32, i32) {
    %c0_i32 = arith.constant 0 : i32
    return %arg0, %arg1 : i32, i32
  }
}

module attributes {stable_mosaic.version = 11 : i64} {
  func.func @_mm_bias_act_kernel(%arg0: i32, %arg1: i32, %arg2: memref<128x3456xf32, #tpu.memory_space<vmem>>, %arg3: memref<3456x64xf32, #tpu.memory_space<vmem>>, %arg4: memref<1x64xf32, #tpu.memory_space<vmem>>, %arg5: memref<128x64xf32, #tpu.memory_space<vmem>>) attributes {dimension_semantics = [#tpu.dimension_semantics<parallel>, #tpu.dimension_semantics<parallel>], iteration_bounds = array<i64: 1, 1>, scalar_prefetch = 0 : i64, scratch_operands = 0 : i64, tpu.core_type = #tpu.core_type<tc>, window_params = [{transform_indices = @transform_0, window_bounds = array<i64: 128, 3456>}, {transform_indices = @transform_1, window_bounds = array<i64: 3456, 64>}, {transform_indices = @transform_2, window_bounds = array<i64: 1, 64>}, {transform_indices = @transform_3, window_bounds = array<i64: 128, 64>}]} {
    %c0 = arith.constant 0 : index
    %c0_0 = arith.constant 0 : index
    %0 = vector.load %arg2[%c0, %c0_0] : memref<128x3456xf32, #tpu.memory_space<vmem>>, vector<128x3456xf32>
    %c0_1 = arith.constant 0 : index
    %c0_2 = arith.constant 0 : index
    %1 = vector.load %arg3[%c0_1, %c0_2] : memref<3456x64xf32, #tpu.memory_space<vmem>>, vector<3456x64xf32>
    %cst = arith.constant dense<0.000000e+00> : vector<128x64xf32>
    %2 = tpu.matmul %0, %1, %cst {dimension_numbers = #tpu.dot_dimension_numbers<[1], [0], [0], [1], [0, 0, 1, 1], [], []>} : vector<128x3456xf32>, vector<3456x64xf32>, vector<128x64xf32> -> vector<128x64xf32>
    %c0_3 = arith.constant 0 : index
    %c0_4 = arith.constant 0 : index
    %3 = vector.load %arg4[%c0_3, %c0_4] : memref<1x64xf32, #tpu.memory_space<vmem>>, vector<1x64xf32>
    %4 = vector.broadcast %3 : vector<1x64xf32> to vector<128x64xf32>
    %5 = arith.addf %2, %4 : vector<128x64xf32>
    %cst_5 = arith.constant 0.000000e+00 : f32
    %6 = vector.broadcast %cst_5 : f32 to vector<128x64xf32>
    %7 = arith.maximumf %5, %6 : vector<128x64xf32>
    %c0_6 = arith.constant 0 : index
    %c0_7 = arith.constant 0 : index
    %8 = vector.load %arg5[%c0_6, %c0_7] : memref<128x64xf32, #tpu.memory_space<vmem>>, vector<128x64xf32>
    tpu.vector_store %arg5[%c0_6, %c0_7], %7 {strides = array<i32>} : memref<128x64xf32, #tpu.memory_space<vmem>>, vector<128x64xf32>,
    return
  }
  func.func @transform_0(%arg0: i32, %arg1: i32) -> (i32, i32) {
    %c0_i32 = arith.constant 0 : i32
    %c0_i32_0 = arith.constant 0 : i32
    return %arg0, %c0_i32 : i32, i32
  }
  func.func @transform_1(%arg0: i32, %arg1: i32) -> (i32, i32) {
    %c0_i32 = arith.constant 0 : i32
    %c0_i32_0 = arith.constant 0 : i32
    return %c0_i32, %arg1 : i32, i32
  }
  func.func @transform_2(%arg0: i32, %arg1: i32) -> (i32, i32) {
    %c0_i32 = arith.constant 0 : i32
    %c0_i32_0 = arith.constant 0 : i32
    return %c0_i32, %arg1 : i32, i32
  }
  func.func @transform_3(%arg0: i32, %arg1: i32) -> (i32, i32) {
    %c0_i32 = arith.constant 0 : i32
    return %arg0, %arg1 : i32, i32
  }
}

module attributes {stable_mosaic.version = 11 : i64} {
  func.func @_upsample_convT_kernel(%arg0: i32, %arg1: i32, %arg2: memref<256x32xf32, #tpu.memory_space<vmem>>, %arg3: memref<1x1x32x256xf32, #tpu.memory_space<vmem>>, %arg4: memref<1x1x256x256xf32, #tpu.memory_space<vmem>>) attributes {dimension_semantics = [#tpu.dimension_semantics<parallel>, #tpu.dimension_semantics<parallel>], iteration_bounds = array<i64: 2, 4>, scalar_prefetch = 0 : i64, scratch_operands = 0 : i64, tpu.core_type = #tpu.core_type<tc>, window_params = [{pipeline_mode = #tpu.pipeline_mode<synchronous>, transform_indices = @transform_0, window_bounds = array<i64: 256, 32>}, {transform_indices = @transform_1, window_bounds = array<i64: 1, 1, 32, 256>}, {transform_indices = @transform_2, window_bounds = array<i64: 1, 1, 256, 256>}]} {
    %c0 = arith.constant 0 : index
    %c0_0 = arith.constant 0 : index
    %0 = vector.load %arg2[%c0, %c0_0] : memref<256x32xf32, #tpu.memory_space<vmem>>, vector<256x32xf32>
    %c0_1 = arith.constant 0 : index
    %c0_2 = arith.constant 0 : index
    %c0_3 = arith.constant 0 : index
    %c0_4 = arith.constant 0 : index
    %1 = vector.load %arg3[%c0_1, %c0_2, %c0_3, %c0_4] : memref<1x1x32x256xf32, #tpu.memory_space<vmem>>, vector<1x1x32x256xf32>
    %2 = vector.shape_cast %1 : vector<1x1x32x256xf32> to vector<32x256xf32>
    %cst = arith.constant dense<0.000000e+00> : vector<256x256xf32>
    %3 = tpu.matmul %0, %2, %cst {dimension_numbers = #tpu.dot_dimension_numbers<[1], [0], [0], [1], [0, 0, 1, 1], [], []>} : vector<256x32xf32>, vector<32x256xf32>, vector<256x256xf32> -> vector<256x256xf32>
    %c0_5 = arith.constant 0 : index
    %c0_6 = arith.constant 0 : index
    %c0_7 = arith.constant 0 : index
    %c0_8 = arith.constant 0 : index
    %4 = vector.load %arg4[%c0_5, %c0_6, %c0_7, %c0_8] : memref<1x1x256x256xf32, #tpu.memory_space<vmem>>, vector<1x1x256x256xf32>
    %5 = vector.shape_cast %4 : vector<1x1x256x256xf32> to vector<256x256xf32>
    %6 = vector.shape_cast %3 : vector<256x256xf32> to vector<1x1x256x256xf32>
    tpu.vector_store %arg4[%c0_5, %c0_6, %c0_7, %c0_8], %6 {strides = array<i32>} : memref<1x1x256x256xf32, #tpu.memory_space<vmem>>, vector<1x1x256x256xf32>,
    return
  }
  func.func @transform_0(%arg0: i32, %arg1: i32) -> (i32, i32) {
    %c0_i32 = arith.constant 0 : i32
    %c0_i32_0 = arith.constant 0 : i32
    %c0_i32_1 = arith.constant 0 : i32
    return %c0_i32, %c0_i32_0 : i32, i32
  }
  func.func @transform_1(%arg0: i32, %arg1: i32) -> (i32, i32, i32, i32) {
    %c0_i32 = arith.constant 0 : i32
    %c0_i32_0 = arith.constant 0 : i32
    %c0_i32_1 = arith.constant 0 : i32
    return %arg0, %arg1, %c0_i32, %c0_i32_0 : i32, i32, i32, i32
  }
  func.func @transform_2(%arg0: i32, %arg1: i32) -> (i32, i32, i32, i32) {
    %c0_i32 = arith.constant 0 : i32
    %c0_i32_0 = arith.constant 0 : i32
    %c0_i32_1 = arith.constant 0 : i32
    return %arg0, %arg1, %c0_i32, %c0_i32_0 : i32, i32, i32, i32
  }
}

</mosaic_0001>

<bundles_post_ra>
// kernel: segmentation_decoder_forward.6
= control target key start
LH: loop header
LB: loop body
LE: loop exit
PB: predicated region body
PF: predicated region fallthrough
CT: control target
= control target key end

     0   :  { %vm280_vm0 = vcmask 1043456   ;;  %vm87_vm1 = vcmask 293888   ;;  %vm557_vm2 = vcmask 523264   ;;  %s1323_s1 = inlined_call_operand.vmem [shape: f32[36,64], index: 1, kind: input, shape index: {}]   ;;  %s1324_s0 = inlined_call_operand.vmem [shape: f32[512,36], index: 0, kind: input, shape index: {}]   ;;  %s1325_s2 = inlined_call_operand.vmem [shape: f32[1,64], index: 2, kind: input, shape index: {}]   ;;  %s1326_s3 = inlined_call_operand.vmem [shape: f32[512,64], index: 3, kind: output, shape index: {}]  }
   0x1   :  { %v82_v0 = vld [vmem:[%s1323_s1 + $0x20] sm:$0xf]  ;;  %v81_v1 = vld [vmem:[%s1323_s1 + $0x18] sm:$0xff]  ;;  %v80_v2 = vld [vmem:[%s1323_s1 + $0x10] sm:$0xff] }
   0x2   :  { %692 = vmatpush.msk.msra.mxu2 %vm280_vm0, %v82_v0  ;;  %693 = vmatpush.msk.msra.mxu3 %vm280_vm0, %v82_v0  ;;  %v79_v3 = vld [vmem:[%s1323_s1 + $0x8] sm:$0xff]  ;;  %v78_v4 = vld [vmem:[%s1323_s1] sm:$0xff]  ;;  %v48_v13 = vld [vmem:[%s1324_s0 + $0x110] sm:$0xff] }
   0x3   :  { %626 = vmatpush.msk.msra.mxu0 %vm280_vm0, %v82_v0  ;;  %691 = vmatpush.msk.msra.mxu1 %vm280_vm0, %v82_v0  ;;  %v46_v5 = vld [vmem:[%s1324_s0 + $0x100] sm:$0xff]  ;;  %v47_v9 = vld [vmem:[%s1324_s0 + $0x108] sm:$0xff]  ;;  %v64_v14 = vld [vmem:[%s1324_s0 + $0x190] sm:$0xff] }
   0x4   :  { %695 = vmatpush.msra.mxu2 %v81_v1  ;;  %696 = vmatpush.msra.mxu3 %v81_v1  ;;  %v62_v6 = vld [vmem:[%s1324_s0 + $0x180] sm:$0xff]  ;;  %v63_v10 = vld [vmem:[%s1324_s0 + $0x188] sm:$0xff]  ;;  %v16_v15 = vld [vmem:[%s1324_s0 + $0x10] sm:$0xff] }
   0x5   :  { %296 = vmatpush.msra.mxu0 %v81_v1  ;;  %694 = vmatpush.msra.mxu1 %v81_v1  ;;  %v14_v7 = vld [vmem:[%s1324_s0] sm:$0xff]  ;;  %v15_v11 = vld [vmem:[%s1324_s0 + $0x8] sm:$0xff]  ;;  %v32_v16 = vld [vmem:[%s1324_s0 + $0x90] sm:$0xff] }
   0x6   :  { %698 = vmatpush.msra.mxu2 %v80_v2  ;;  %699 = vmatpush.msra.mxu3 %v80_v2  ;;  %v30_v8 = vld [vmem:[%s1324_s0 + $0x80] sm:$0xff]  ;;  %v31_v12 = vld [vmem:[%s1324_s0 + $0x88] sm:$0xff]  ;;  %v49_v17 = vld [vmem:[%s1324_s0 + $0x118] sm:$0xff] }
   0x7   :  { %297 = vmatpush.msra.mxu0 %v80_v2  ;;  %697 = vmatpush.msra.mxu1 %v80_v2  ;;  %v65_v18 = vld [vmem:[%s1324_s0 + $0x198] sm:$0xff]  ;;  %v50_v21 = vld [vmem:[%s1324_s0 + $0x120] sm:$0xff]  ;;  %v51_v25 = vld [vmem:[%s1324_s0 + $0x128] sm:$0xff] }
   0x8   :  { %701 = vmatpush.msra.mxu2 %v79_v3  ;;  %702 = vmatpush.msra.mxu3 %v79_v3  ;;  %v17_v19 = vld [vmem:[%s1324_s0 + $0x18] sm:$0xff]  ;;  %v66_v22 = vld [vmem:[%s1324_s0 + $0x1a0] sm:$0xff]  ;;  %v67_v26 = vld [vmem:[%s1324_s0 + $0x1a8] sm:$0xff] }
   0x9   :  { %298 = vmatpush.msra.mxu0 %v79_v3  ;;  %700 = vmatpush.msra.mxu1 %v79_v3  ;;  %v33_v20 = vld [vmem:[%s1324_s0 + $0x98] sm:$0xff]  ;;  %v18_v23 = vld [vmem:[%s1324_s0 + $0x20] sm:$0xff]  ;;  %v19_v27 = vld [vmem:[%s1324_s0 + $0x28] sm:$0xff] }
   0xa   :  { %704 = vmatpush.msra.mxu2 %v78_v4  ;;  %705 = vmatpush.msra.mxu3 %v78_v4  ;;  %v34_v24 = vld [vmem:[%s1324_s0 + $0xa0] sm:$0xff]  ;;  %v35_v28 = vld [vmem:[%s1324_s0 + $0xa8] sm:$0xff]  ;;  %v52_v29 = vld [vmem:[%s1324_s0 + $0x130] sm:$0xff] }
   0xb   :  { %659 = vmatmul.msk.f32.vlgmr.msra.gmra.mxu2 %vm87_vm1, %v46_v5  ;;  %675 = vmatmul.msk.f32.vlgmr.msra.gmra.mxu3 %vm87_vm1, %v62_v6  ;;  %v68_v30 = vld [vmem:[%s1324_s0 + $0x1b0] sm:$0xff]  ;;  %v53_v33 = vld [vmem:[%s1324_s0 + $0x138] sm:$0xff]  ;;  %v54_v37 = vld [vmem:[%s1324_s0 + $0x140] sm:$0xff] }
   0xc   :  { %299 = vmatpush.msra.mxu0 %v78_v4  ;;  %703 = vmatpush.msra.mxu1 %v78_v4  ;;  %v20_v31 = vld [vmem:[%s1324_s0 + $0x30] sm:$0xff]  ;;  %v69_v34 = vld [vmem:[%s1324_s0 + $0x1b8] sm:$0xff]  ;;  %v70_v38 = vld [vmem:[%s1324_s0 + $0x1c0] sm:$0xff] }
   0xd   :  { %627 = vmatmul.msk.f32.vlgmr.msra.gmra.mxu0 %vm87_vm1, %v14_v7  ;;  %643 = vmatmul.msk.f32.vlgmr.msra.gmra.mxu1 %vm87_vm1, %v30_v8  ;;  %v36_v32 = vld [vmem:[%s1324_s0 + $0xb0] sm:$0xff]  ;;  %v21_v35 = vld [vmem:[%s1324_s0 + $0x38] sm:$0xff]  ;;  %v22_v39 = vld [vmem:[%s1324_s0 + $0x40] sm:$0xff] }
   0xe   :  { %v37_v36 = vld [vmem:[%s1324_s0 + $0xb8] sm:$0xff]  ;;  %v38_v40 = vld [vmem:[%s1324_s0 + $0xc0] sm:$0xff]  ;;  %v55_v41 = vld [vmem:[%s1324_s0 + $0x148] sm:$0xff] }
   0xf   :  { %v71_v42 = vld [vmem:[%s1324_s0 + $0x1c8] sm:$0xff]  ;;  %v56_v45 = vld [vmem:[%s1324_s0 + $0x150] sm:$0xff]  ;;  %v57_v49 = vld [vmem:[%s1324_s0 + $0x158] sm:$0xff] }
  0x10   :  { %v23_v43 = vld [vmem:[%s1324_s0 + $0x48] sm:$0xff]  ;;  %v72_v46 = vld [vmem:[%s1324_s0 + $0x1d0] sm:$0xff]  ;;  %v73_v50 = vld [vmem:[%s1324_s0 + $0x1d8] sm:$0xff] }
  0x11   :  { %v39_v44 = vld [vmem:[%s1324_s0 + $0xc8] sm:$0xff]  ;;  %v24_v47 = vld [vmem:[%s1324_s0 + $0x50] sm:$0xff]  ;;  %v25_v51 = vld [vmem:[%s1324_s0 + $0x58] sm:$0xff] }
  0x12   :  { %v40_v48 = vld [vmem:[%s1324_s0 + $0xd0] sm:$0xff]  ;;  %v41_v52 = vld [vmem:[%s1324_s0 + $0xd8] sm:$0xff]  ;;  %v58_v53 = vld [vmem:[%s1324_s0 + $0x160] sm:$0xff] }
  0x13   :  { %660 = vmatmul.msk.f32.gmra.mxu2 %vm87_vm1, %v47_v9  ;;  %676 = vmatmul.msk.f32.gmra.mxu3 %vm87_vm1, %v63_v10  ;;  %v74_v54 = vld [vmem:[%s1324_s0 + $0x1e0] sm:$0xff]  ;;  %v59_v57 = vld [vmem:[%s1324_s0 + $0x168] sm:$0xff]  ;;  %v60_v61 = vld [vmem:[%s1324_s0 + $0x170] sm:$0xff] }
  0x14   :  { %v26_v55 = vld [vmem:[%s1324_s0 + $0x60] sm:$0xff]  ;;  %v75_v58 = vld [vmem:[%s1324_s0 + $0x1e8] sm:$0xff]  ;;  %v76_v62 = vld [vmem:[%s1324_s0 + $0x1f0] sm:$0xff] }
  0x15   :  { %628 = vmatmul.msk.f32.gmra.mxu0 %vm87_vm1, %v15_v11  ;;  %644 = vmatmul.msk.f32.gmra.mxu1 %vm87_vm1, %v31_v12  ;;  %v42_v56 = vld [vmem:[%s1324_s0 + $0xe0] sm:$0xff]  ;;  %v27_v59 = vld [vmem:[%s1324_s0 + $0x68] sm:$0xff]  ;;  %v28_v63 = vld [vmem:[%s1324_s0 + $0x70] sm:$0xff] }
  0x16   :  { %v43_v60 = vld [vmem:[%s1324_s0 + $0xe8] sm:$0xff]  ;;  %v44_v0 = vld [vmem:[%s1324_s0 + $0xf0] sm:$0xff]  ;;  %v61_v1 = vld [vmem:[%s1324_s0 + $0x178] sm:$0xff] }
  0x17   :  { %v77_v2 = vld [vmem:[%s1324_s0 + $0x1f8] sm:$0xff]  ;;  %v1001_v5 = vld [vmem:[%s1325_s2] ss:$0 sm:$0xff] }
  0x18   :  { %v29_v3 = vld [vmem:[%s1324_s0 + $0x78] sm:$0xff] }
  0x19   :  { %v45_v4 = vld [vmem:[%s1324_s0 + $0xf8] sm:$0xff] }
  0x1b   :  { %661 = vmatmul.msk.f32.gmra.mxu2 %vm87_vm1, %v48_v13  ;;  %677 = vmatmul.msk.f32.gmra.mxu3 %vm87_vm1, %v64_v14 }
  0x1d   :  { %629 = vmatmul.msk.f32.gmra.mxu0 %vm87_vm1, %v16_v15  ;;  %645 = vmatmul.msk.f32.gmra.mxu1 %vm87_vm1, %v32_v16 }
  0x23   :  { %662 = vmatmul.msk.f32.gmra.mxu2 %vm87_vm1, %v49_v17  ;;  %678 = vmatmul.msk.f32.gmra.mxu3 %vm87_vm1, %v65_v18 }
  0x25   :  { %630 = vmatmul.msk.f32.gmra.mxu0 %vm87_vm1, %v17_v19  ;;  %646 = vmatmul.msk.f32.gmra.mxu1 %vm87_vm1, %v33_v20 }
  0x2b   :  { %663 = vmatmul.msk.f32.gmra.mxu2 %vm87_vm1, %v50_v21  ;;  %679 = vmatmul.msk.f32.gmra.mxu3 %vm87_vm1, %v66_v22 }
  0x2d   :  { %631 = vmatmul.msk.f32.gmra.mxu0 %vm87_vm1, %v18_v23  ;;  %647 = vmatmul.msk.f32.gmra.mxu1 %vm87_vm1, %v34_v24 }
  0x33   :  { %664 = vmatmul.msk.f32.gmra.mxu2 %vm87_vm1, %v51_v25  ;;  %680 = vmatmul.msk.f32.gmra.mxu3 %vm87_vm1, %v67_v26 }
  0x35   :  { %632 = vmatmul.msk.f32.gmra.mxu0 %vm87_vm1, %v19_v27  ;;  %648 = vmatmul.msk.f32.gmra.mxu1 %vm87_vm1, %v35_v28 }
  0x3b   :  { %665 = vmatmul.msk.f32.gmra.mxu2 %vm87_vm1, %v52_v29  ;;  %681 = vmatmul.msk.f32.gmra.mxu3 %vm87_vm1, %v68_v30 }
  0x3d   :  { %633 = vmatmul.msk.f32.gmra.mxu0 %vm87_vm1, %v20_v31  ;;  %649 = vmatmul.msk.f32.gmra.mxu1 %vm87_vm1, %v36_v32 }
  0x43   :  { %666 = vmatmul.msk.f32.gmra.mxu2 %vm87_vm1, %v53_v33  ;;  %682 = vmatmul.msk.f32.gmra.mxu3 %vm87_vm1, %v69_v34 }
  0x45   :  { %634 = vmatmul.msk.f32.gmra.mxu0 %vm87_vm1, %v21_v35  ;;  %650 = vmatmul.msk.f32.gmra.mxu1 %vm87_vm1, %v37_v36 }
  0x4b   :  { %667 = vmatmul.msk.f32.gmra.mxu2 %vm87_vm1, %v54_v37  ;;  %683 = vmatmul.msk.f32.gmra.mxu3 %vm87_vm1, %v70_v38 }
  0x4d   :  { %635 = vmatmul.msk.f32.gmra.mxu0 %vm87_vm1, %v22_v39  ;;  %651 = vmatmul.msk.f32.gmra.mxu1 %vm87_vm1, %v38_v40 }
  0x53   :  { %668 = vmatmul.msk.f32.gmra.mxu2 %vm87_vm1, %v55_v41  ;;  %684 = vmatmul.msk.f32.gmra.mxu3 %vm87_vm1, %v71_v42 }
  0x55   :  { %636 = vmatmul.msk.f32.gmra.mxu0 %vm87_vm1, %v23_v43  ;;  %652 = vmatmul.msk.f32.gmra.mxu1 %vm87_vm1, %v39_v44 }
  0x5b   :  { %669 = vmatmul.msk.f32.gmra.mxu2 %vm87_vm1, %v56_v45  ;;  %685 = vmatmul.msk.f32.gmra.mxu3 %vm87_vm1, %v72_v46 }
  0x5d   :  { %637 = vmatmul.msk.f32.gmra.mxu0 %vm87_vm1, %v24_v47  ;;  %653 = vmatmul.msk.f32.gmra.mxu1 %vm87_vm1, %v40_v48 }
  0x63   :  { %670 = vmatmul.msk.f32.gmra.mxu2 %vm87_vm1, %v57_v49  ;;  %686 = vmatmul.msk.f32.gmra.mxu3 %vm87_vm1, %v73_v50 }
  0x65   :  { %638 = vmatmul.msk.f32.gmra.mxu0 %vm87_vm1, %v25_v51  ;;  %654 = vmatmul.msk.f32.gmra.mxu1 %vm87_vm1, %v41_v52 }
  0x6b   :  { %671 = vmatmul.msk.f32.gmra.mxu2 %vm87_vm1, %v58_v53  ;;  %687 = vmatmul.msk.f32.gmra.mxu3 %vm87_vm1, %v74_v54 }
  0x6d   :  { %639 = vmatmul.msk.f32.gmra.mxu0 %vm87_vm1, %v26_v55  ;;  %655 = vmatmul.msk.f32.gmra.mxu1 %vm87_vm1, %v42_v56 }
  0x73   :  { %672 = vmatmul.msk.f32.gmra.mxu2 %vm87_vm1, %v59_v57  ;;  %688 = vmatmul.msk.f32.gmra.mxu3 %vm87_vm1, %v75_v58 }
  0x75   :  { %640 = vmatmul.msk.f32.gmra.mxu0 %vm87_vm1, %v27_v59  ;;  %656 = vmatmul.msk.f32.gmra.mxu1 %vm87_vm1, %v43_v60 }
  0x7b   :  { %673 = vmatmul.msk.f32.gmra.mxu2 %vm87_vm1, %v60_v61  ;;  %689 = vmatmul.msk.f32.gmra.mxu3 %vm87_vm1, %v76_v62 }
  0x7d   :  { %641 = vmatmul.msk.f32.gmra.mxu0 %vm87_vm1, %v28_v63  ;;  %657 = vmatmul.msk.f32.gmra.mxu1 %vm87_vm1, %v44_v0 }
  0x83   :  { %674 = vmatmul.msk.f32.gmra.mxu2 %vm87_vm1, %v61_v1  ;;  %690 = vmatmul.msk.f32.gmra.mxu3 %vm87_vm1, %v77_v2 }
  0x85   :  { %642 = vmatmul.msk.f32.gmra.mxu0 %vm87_vm1, %v29_v3  ;;  %658 = vmatmul.msk.f32.gmra.mxu1 %vm87_vm1, %v45_v4 }
  0x8a   :  { %v301_v6 = vpop.f32.mrf.mxu0  ;;  %v349_v7 = vpop.f32.mrf.mxu1 }
  0x8b   :  { %v302_v8 = vadd.f32 %v1001_v5, %v301_v6  ;;  %v350_v9 = vadd.f32 %v1001_v5, %v349_v7 }
  0x8d   :  { %v493_v10 = vmax.f32 %v302_v8, 0.0  ;;  %v509_v11 = vmax.f32 %v350_v9, 0.0 }
  0x8e   :  { %v397_v12 = vpop.f32.mrf.mxu2  ;;  %v445_v13 = vpop.f32.mrf.mxu3 }
  0x8f   :  { %558 = vst.msk [vmem:[%s1326_s3] sm:$0xff] %vm557_vm2, %v493_v10  ;;  %v398_v14 = vadd.f32 %v1001_v5, %v397_v12  ;;  %v446_v15 = vadd.f32 %v1001_v5, %v445_v13 }
  0x90   :  { %574 = vst.msk [vmem:[%s1326_s3 + $0x80] sm:$0xff] %vm557_vm2, %v509_v11 }
  0x91   :  { %v525_v16 = vmax.f32 %v398_v14, 0.0  ;;  %v541_v17 = vmax.f32 %v446_v15, 0.0 }
  0x92   :  { %v304_v18 = vpop.f32.mrf.mxu0  ;;  %v352_v19 = vpop.f32.mrf.mxu1 }
  0x93   :  { %590 = vst.msk [vmem:[%s1326_s3 + $0x100] sm:$0xff] %vm557_vm2, %v525_v16  ;;  %v305_v20 = vadd.f32 %v1001_v5, %v304_v18  ;;  %v353_v21 = vadd.f32 %v1001_v5, %v352_v19 }
  0x94   :  { %606 = vst.msk [vmem:[%s1326_s3 + $0x180] sm:$0xff] %vm557_vm2, %v541_v17 }
  0x95   :  { %v494_v22 = vmax.f32 %v305_v20, 0.0  ;;  %v510_v23 = vmax.f32 %v353_v21, 0.0 }
  0x96   :  { %v400_v24 = vpop.f32.mrf.mxu2  ;;  %v448_v25 = vpop.f32.mrf.mxu3 }
  0x97   :  { %559 = vst.msk [vmem:[%s1326_s3 + $0x8] sm:$0xff] %vm557_vm2, %v494_v22  ;;  %v401_v26 = vadd.f32 %v1001_v5, %v400_v24  ;;  %v449_v27 = vadd.f32 %v1001_v5, %v448_v25 }
  0x98   :  { %575 = vst.msk [vmem:[%s1326_s3 + $0x88] sm:$0xff] %vm557_vm2, %v510_v23 }
  0x99   :  { %v526_v28 = vmax.f32 %v401_v26, 0.0  ;;  %v542_v29 = vmax.f32 %v449_v27, 0.0 }
  0x9a   :  { %v307_v30 = vpop.f32.mrf.mxu0  ;;  %v355_v31 = vpop.f32.mrf.mxu1 }
  0x9b   :  { %591 = vst.msk [vmem:[%s1326_s3 + $0x108] sm:$0xff] %vm557_vm2, %v526_v28  ;;  %v308_v32 = vadd.f32 %v1001_v5, %v307_v30  ;;  %v356_v33 = vadd.f32 %v1001_v5, %v355_v31 }
  0x9c   :  { %607 = vst.msk [vmem:[%s1326_s3 + $0x188] sm:$0xff] %vm557_vm2, %v542_v29 }
  0x9d   :  { %v495_v34 = vmax.f32 %v308_v32, 0.0  ;;  %v511_v35 = vmax.f32 %v356_v33, 0.0 }
  0x9e   :  { %v403_v36 = vpop.f32.mrf.mxu2  ;;  %v451_v37 = vpop.f32.mrf.mxu3 }
  0x9f   :  { %560 = vst.msk [vmem:[%s1326_s3 + $0x10] sm:$0xff] %vm557_vm2, %v495_v34  ;;  %v404_v38 = vadd.f32 %v1001_v5, %v403_v36  ;;  %v452_v39 = vadd.f32 %v1001_v5, %v451_v37 }
  0xa0   :  { %576 = vst.msk [vmem:[%s1326_s3 + $0x90] sm:$0xff] %vm557_vm2, %v511_v35 }
  0xa1   :  { %v527_v40 = vmax.f32 %v404_v38, 0.0  ;;  %v543_v41 = vmax.f32 %v452_v39, 0.0 }
  0xa2   :  { %v310_v42 = vpop.f32.mrf.mxu0  ;;  %v358_v43 = vpop.f32.mrf.mxu1 }
  0xa3   :  { %592 = vst.msk [vmem:[%s1326_s3 + $0x110] sm:$0xff] %vm557_vm2, %v527_v40  ;;  %v311_v44 = vadd.f32 %v1001_v5, %v310_v42  ;;  %v359_v45 = vadd.f32 %v1001_v5, %v358_v43 }
  0xa4   :  { %608 = vst.msk [vmem:[%s1326_s3 + $0x190] sm:$0xff] %vm557_vm2, %v543_v41 }
  0xa5   :  { %v496_v46 = vmax.f32 %v311_v44, 0.0  ;;  %v512_v47 = vmax.f32 %v359_v45, 0.0 }
  0xa6   :  { %v406_v48 = vpop.f32.mrf.mxu2  ;;  %v454_v49 = vpop.f32.mrf.mxu3 }
  0xa7   :  { %561 = vst.msk [vmem:[%s1326_s3 + $0x18] sm:$0xff] %vm557_vm2, %v496_v46  ;;  %v407_v50 = vadd.f32 %v1001_v5, %v406_v48  ;;  %v455_v51 = vadd.f32 %v1001_v5, %v454_v49 }
  0xa8   :  { %577 = vst.msk [vmem:[%s1326_s3 + $0x98] sm:$0xff] %vm557_vm2, %v512_v47 }
  0xa9   :  { %v528_v52 = vmax.f32 %v407_v50, 0.0  ;;  %v544_v53 = vmax.f32 %v455_v51, 0.0 }
  0xaa   :  { %v313_v54 = vpop.f32.mrf.mxu0  ;;  %v361_v55 = vpop.f32.mrf.mxu1 }
  0xab   :  { %593 = vst.msk [vmem:[%s1326_s3 + $0x118] sm:$0xff] %vm557_vm2, %v528_v52  ;;  %v314_v56 = vadd.f32 %v1001_v5, %v313_v54  ;;  %v362_v57 = vadd.f32 %v1001_v5, %v361_v55 }
  0xac   :  { %609 = vst.msk [vmem:[%s1326_s3 + $0x198] sm:$0xff] %vm557_vm2, %v544_v53 }
  0xad   :  { %v497_v58 = vmax.f32 %v314_v56, 0.0  ;;  %v513_v59 = vmax.f32 %v362_v57, 0.0 }
  0xae   :  { %v409_v60 = vpop.f32.mrf.mxu2  ;;  %v457_v61 = vpop.f32.mrf.mxu3 }
  0xaf   :  { %562 = vst.msk [vmem:[%s1326_s3 + $0x20] sm:$0xff] %vm557_vm2, %v497_v58  ;;  %v410_v62 = vadd.f32 %v1001_v5, %v409_v60  ;;  %v458_v63 = vadd.f32 %v1001_v5, %v457_v61 }
  0xb0   :  { %578 = vst.msk [vmem:[%s1326_s3 + $0xa0] sm:$0xff] %vm557_vm2, %v513_v59 }
  0xb1   :  { %v529_v0 = vmax.f32 %v410_v62, 0.0  ;;  %v545_v1 = vmax.f32 %v458_v63, 0.0 }
  0xb2   :  { %v316_v2 = vpop.f32.mrf.mxu0  ;;  %v364_v3 = vpop.f32.mrf.mxu1 }
  0xb3   :  { %594 = vst.msk [vmem:[%s1326_s3 + $0x120] sm:$0xff] %vm557_vm2, %v529_v0  ;;  %v317_v4 = vadd.f32 %v1001_v5, %v316_v2  ;;  %v365_v6 = vadd.f32 %v1001_v5, %v364_v3 }
  0xb4   :  { %610 = vst.msk [vmem:[%s1326_s3 + $0x1a0] sm:$0xff] %vm557_vm2, %v545_v1 }
  0xb5   :  { %v498_v7 = vmax.f32 %v317_v4, 0.0  ;;  %v514_v8 = vmax.f32 %v365_v6, 0.0 }
  0xb6   :  { %v412_v9 = vpop.f32.mrf.mxu2  ;;  %v460_v10 = vpop.f32.mrf.mxu3 }
  0xb7   :  { %563 = vst.msk [vmem:[%s1326_s3 + $0x28] sm:$0xff] %vm557_vm2, %v498_v7  ;;  %v413_v11 = vadd.f32 %v1001_v5, %v412_v9  ;;  %v461_v12 = vadd.f32 %v1001_v5, %v460_v10 }
  0xb8   :  { %579 = vst.msk [vmem:[%s1326_s3 + $0xa8] sm:$0xff] %vm557_vm2, %v514_v8 }
  0xb9   :  { %v530_v13 = vmax.f32 %v413_v11, 0.0  ;;  %v546_v14 = vmax.f32 %v461_v12, 0.0 }
  0xba   :  { %v319_v15 = vpop.f32.mrf.mxu0  ;;  %v367_v16 = vpop.f32.mrf.mxu1 }
  0xbb   :  { %595 = vst.msk [vmem:[%s1326_s3 + $0x128] sm:$0xff] %vm557_vm2, %v530_v13  ;;  %v320_v17 = vadd.f32 %v1001_v5, %v319_v15  ;;  %v368_v18 = vadd.f32 %v1001_v5, %v367_v16 }
  0xbc   :  { %611 = vst.msk [vmem:[%s1326_s3 + $0x1a8] sm:$0xff] %vm557_vm2, %v546_v14 }
  0xbd   :  { %v499_v19 = vmax.f32 %v320_v17, 0.0  ;;  %v515_v20 = vmax.f32 %v368_v18, 0.0 }
  0xbe   :  { %v415_v21 = vpop.f32.mrf.mxu2  ;;  %v463_v22 = vpop.f32.mrf.mxu3 }
  0xbf   :  { %564 = vst.msk [vmem:[%s1326_s3 + $0x30] sm:$0xff] %vm557_vm2, %v499_v19  ;;  %v416_v23 = vadd.f32 %v1001_v5, %v415_v21  ;;  %v464_v24 = vadd.f32 %v1001_v5, %v463_v22 }
  0xc0   :  { %580 = vst.msk [vmem:[%s1326_s3 + $0xb0] sm:$0xff] %vm557_vm2, %v515_v20 }
  0xc1   :  { %v531_v25 = vmax.f32 %v416_v23, 0.0  ;;  %v547_v26 = vmax.f32 %v464_v24, 0.0 }
  0xc2   :  { %v322_v27 = vpop.f32.mrf.mxu0  ;;  %v370_v28 = vpop.f32.mrf.mxu1 }
  0xc3   :  { %596 = vst.msk [vmem:[%s1326_s3 + $0x130] sm:$0xff] %vm557_vm2, %v531_v25  ;;  %v323_v29 = vadd.f32 %v1001_v5, %v322_v27  ;;  %v371_v30 = vadd.f32 %v1001_v5, %v370_v28 }
  0xc4   :  { %612 = vst.msk [vmem:[%s1326_s3 + $0x1b0] sm:$0xff] %vm557_vm2, %v547_v26 }
  0xc5   :  { %v500_v31 = vmax.f32 %v323_v29, 0.0  ;;  %v516_v32 = vmax.f32 %v371_v30, 0.0 }
  0xc6   :  { %v418_v33 = vpop.f32.mrf.mxu2  ;;  %v466_v34 = vpop.f32.mrf.mxu3 }
  0xc7   :  { %565 = vst.msk [vmem:[%s1326_s3 + $0x38] sm:$0xff] %vm557_vm2, %v500_v31  ;;  %v419_v35 = vadd.f32 %v1001_v5, %v418_v33  ;;  %v467_v36 = vadd.f32 %v1001_v5, %v466_v34 }
  0xc8   :  { %581 = vst.msk [vmem:[%s1326_s3 + $0xb8] sm:$0xff] %vm557_vm2, %v516_v32 }
  0xc9   :  { %v532_v37 = vmax.f32 %v419_v35, 0.0  ;;  %v548_v38 = vmax.f32 %v467_v36, 0.0 }
  0xca   :  { %v325_v39 = vpop.f32.mrf.mxu0  ;;  %v373_v40 = vpop.f32.mrf.mxu1 }
  0xcb   :  { %597 = vst.msk [vmem:[%s1326_s3 + $0x138] sm:$0xff] %vm557_vm2, %v532_v37  ;;  %v326_v41 = vadd.f32 %v1001_v5, %v325_v39  ;;  %v374_v42 = vadd.f32 %v1001_v5, %v373_v40 }
  0xcc   :  { %613 = vst.msk [vmem:[%s1326_s3 + $0x1b8] sm:$0xff] %vm557_vm2, %v548_v38 }
  0xcd   :  { %v501_v43 = vmax.f32 %v326_v41, 0.0  ;;  %v517_v44 = vmax.f32 %v374_v42, 0.0 }
  0xce   :  { %v421_v45 = vpop.f32.mrf.mxu2  ;;  %v469_v46 = vpop.f32.mrf.mxu3 }
  0xcf   :  { %566 = vst.msk [vmem:[%s1326_s3 + $0x40] sm:$0xff] %vm557_vm2, %v501_v43  ;;  %v422_v47 = vadd.f32 %v1001_v5, %v421_v45  ;;  %v470_v48 = vadd.f32 %v1001_v5, %v469_v46 }
  0xd0   :  { %582 = vst.msk [vmem:[%s1326_s3 + $0xc0] sm:$0xff] %vm557_vm2, %v517_v44 }
  0xd1   :  { %v533_v49 = vmax.f32 %v422_v47, 0.0  ;;  %v549_v50 = vmax.f32 %v470_v48, 0.0 }
  0xd2   :  { %v328_v51 = vpop.f32.mrf.mxu0  ;;  %v376_v52 = vpop.f32.mrf.mxu1 }
  0xd3   :  { %598 = vst.msk [vmem:[%s1326_s3 + $0x140] sm:$0xff] %vm557_vm2, %v533_v49  ;;  %v329_v53 = vadd.f32 %v1001_v5, %v328_v51  ;;  %v377_v54 = vadd.f32 %v1001_v5, %v376_v52 }
  0xd4   :  { %614 = vst.msk [vmem:[%s1326_s3 + $0x1c0] sm:$0xff] %vm557_vm2, %v549_v50 }
  0xd5   :  { %v502_v55 = vmax.f32 %v329_v53, 0.0  ;;  %v518_v56 = vmax.f32 %v377_v54, 0.0 }
  0xd6   :  { %v424_v57 = vpop.f32.mrf.mxu2  ;;  %v472_v58 = vpop.f32.mrf.mxu3 }
  0xd7   :  { %567 = vst.msk [vmem:[%s1326_s3 + $0x48] sm:$0xff] %vm557_vm2, %v502_v55  ;;  %v425_v59 = vadd.f32 %v1001_v5, %v424_v57  ;;  %v473_v60 = vadd.f32 %v1001_v5, %v472_v58 }
  0xd8   :  { %583 = vst.msk [vmem:[%s1326_s3 + $0xc8] sm:$0xff] %vm557_vm2, %v518_v56 }
  0xd9   :  { %v534_v61 = vmax.f32 %v425_v59, 0.0  ;;  %v550_v62 = vmax.f32 %v473_v60, 0.0 }
  0xda   :  { %v331_v63 = vpop.f32.mrf.mxu0  ;;  %v379_v0 = vpop.f32.mrf.mxu1 }
  0xdb   :  { %599 = vst.msk [vmem:[%s1326_s3 + $0x148] sm:$0xff] %vm557_vm2, %v534_v61  ;;  %v332_v1 = vadd.f32 %v1001_v5, %v331_v63  ;;  %v380_v2 = vadd.f32 %v1001_v5, %v379_v0 }
  0xdc   :  { %615 = vst.msk [vmem:[%s1326_s3 + $0x1c8] sm:$0xff] %vm557_vm2, %v550_v62 }
  0xdd   :  { %v503_v3 = vmax.f32 %v332_v1, 0.0  ;;  %v519_v4 = vmax.f32 %v380_v2, 0.0 }
  0xde   :  { %v427_v6 = vpop.f32.mrf.mxu2  ;;  %v475_v7 = vpop.f32.mrf.mxu3 }
  0xdf   :  { %568 = vst.msk [vmem:[%s1326_s3 + $0x50] sm:$0xff] %vm557_vm2, %v503_v3  ;;  %v428_v8 = vadd.f32 %v1001_v5, %v427_v6  ;;  %v476_v9 = vadd.f32 %v1001_v5, %v475_v7 }
  0xe0   :  { %584 = vst.msk [vmem:[%s1326_s3 + $0xd0] sm:$0xff] %vm557_vm2, %v519_v4 }
  0xe1   :  { %v535_v10 = vmax.f32 %v428_v8, 0.0  ;;  %v551_v11 = vmax.f32 %v476_v9, 0.0 }
  0xe2   :  { %v334_v12 = vpop.f32.mrf.mxu0  ;;  %v382_v13 = vpop.f32.mrf.mxu1 }
  0xe3   :  { %600 = vst.msk [vmem:[%s1326_s3 + $0x150] sm:$0xff] %vm557_vm2, %v535_v10  ;;  %v335_v14 = vadd.f32 %v1001_v5, %v334_v12  ;;  %v383_v15 = vadd.f32 %v1001_v5, %v382_v13 }
  0xe4   :  { %616 = vst.msk [vmem:[%s1326_s3 + $0x1d0] sm:$0xff] %vm557_vm2, %v551_v11 }
  0xe5   :  { %v504_v16 = vmax.f32 %v335_v14, 0.0  ;;  %v520_v17 = vmax.f32 %v383_v15, 0.0 }
  0xe6   :  { %v430_v18 = vpop.f32.mrf.mxu2  ;;  %v478_v19 = vpop.f32.mrf.mxu3 }
  0xe7   :  { %569 = vst.msk [vmem:[%s1326_s3 + $0x58] sm:$0xff] %vm557_vm2, %v504_v16  ;;  %v431_v20 = vadd.f32 %v1001_v5, %v430_v18  ;;  %v479_v21 = vadd.f32 %v1001_v5, %v478_v19 }
  0xe8   :  { %585 = vst.msk [vmem:[%s1326_s3 + $0xd8] sm:$0xff] %vm557_vm2, %v520_v17 }
  0xe9   :  { %v536_v22 = vmax.f32 %v431_v20, 0.0  ;;  %v552_v23 = vmax.f32 %v479_v21, 0.0 }
  0xea   :  { %v337_v24 = vpop.f32.mrf.mxu0  ;;  %v385_v25 = vpop.f32.mrf.mxu1 }
  0xeb   :  { %601 = vst.msk [vmem:[%s1326_s3 + $0x158] sm:$0xff] %vm557_vm2, %v536_v22  ;;  %v338_v26 = vadd.f32 %v1001_v5, %v337_v24  ;;  %v386_v27 = vadd.f32 %v1001_v5, %v385_v25 }
  0xec   :  { %617 = vst.msk [vmem:[%s1326_s3 + $0x1d8] sm:$0xff] %vm557_vm2, %v552_v23 }
  0xed   :  { %v505_v28 = vmax.f32 %v338_v26, 0.0  ;;  %v521_v29 = vmax.f32 %v386_v27, 0.0 }
  0xee   :  { %v433_v30 = vpop.f32.mrf.mxu2  ;;  %v481_v31 = vpop.f32.mrf.mxu3 }
  0xef   :  { %570 = vst.msk [vmem:[%s1326_s3 + $0x60] sm:$0xff] %vm557_vm2, %v505_v28  ;;  %v434_v32 = vadd.f32 %v1001_v5, %v433_v30  ;;  %v482_v33 = vadd.f32 %v1001_v5, %v481_v31 }
  0xf0   :  { %586 = vst.msk [vmem:[%s1326_s3 + $0xe0] sm:$0xff] %vm557_vm2, %v521_v29 }
  0xf1   :  { %v537_v34 = vmax.f32 %v434_v32, 0.0  ;;  %v553_v35 = vmax.f32 %v482_v33, 0.0 }
  0xf2   :  { %v340_v36 = vpop.f32.mrf.mxu0  ;;  %v388_v37 = vpop.f32.mrf.mxu1 }
  0xf3   :  { %602 = vst.msk [vmem:[%s1326_s3 + $0x160] sm:$0xff] %vm557_vm2, %v537_v34  ;;  %v341_v38 = vadd.f32 %v1001_v5, %v340_v36  ;;  %v389_v39 = vadd.f32 %v1001_v5, %v388_v37 }
  0xf4   :  { %618 = vst.msk [vmem:[%s1326_s3 + $0x1e0] sm:$0xff] %vm557_vm2, %v553_v35 }
  0xf5   :  { %v506_v40 = vmax.f32 %v341_v38, 0.0  ;;  %v522_v41 = vmax.f32 %v389_v39, 0.0 }
  0xf6   :  { %v436_v42 = vpop.f32.mrf.mxu2  ;;  %v484_v43 = vpop.f32.mrf.mxu3 }
  0xf7   :  { %571 = vst.msk [vmem:[%s1326_s3 + $0x68] sm:$0xff] %vm557_vm2, %v506_v40  ;;  %v437_v44 = vadd.f32 %v1001_v5, %v436_v42  ;;  %v485_v45 = vadd.f32 %v1001_v5, %v484_v43 }
  0xf8   :  { %587 = vst.msk [vmem:[%s1326_s3 + $0xe8] sm:$0xff] %vm557_vm2, %v522_v41 }
  0xf9   :  { %v538_v46 = vmax.f32 %v437_v44, 0.0  ;;  %v554_v47 = vmax.f32 %v485_v45, 0.0 }
  0xfa   :  { %v343_v48 = vpop.f32.mrf.mxu0  ;;  %v391_v49 = vpop.f32.mrf.mxu1 }
  0xfb   :  { %603 = vst.msk [vmem:[%s1326_s3 + $0x168] sm:$0xff] %vm557_vm2, %v538_v46  ;;  %v344_v50 = vadd.f32 %v1001_v5, %v343_v48  ;;  %v392_v51 = vadd.f32 %v1001_v5, %v391_v49 }
  0xfc   :  { %619 = vst.msk [vmem:[%s1326_s3 + $0x1e8] sm:$0xff] %vm557_vm2, %v554_v47 }
  0xfd   :  { %v507_v52 = vmax.f32 %v344_v50, 0.0  ;;  %v523_v53 = vmax.f32 %v392_v51, 0.0 }
  0xfe   :  { %v439_v54 = vpop.f32.mrf.mxu2  ;;  %v487_v55 = vpop.f32.mrf.mxu3 }
  0xff   :  { %572 = vst.msk [vmem:[%s1326_s3 + $0x70] sm:$0xff] %vm557_vm2, %v507_v52  ;;  %v440_v56 = vadd.f32 %v1001_v5, %v439_v54  ;;  %v488_v57 = vadd.f32 %v1001_v5, %v487_v55 }
 0x100   :  { %588 = vst.msk [vmem:[%s1326_s3 + $0xf0] sm:$0xff] %vm557_vm2, %v523_v53 }
 0x101   :  { %v539_v58 = vmax.f32 %v440_v56, 0.0  ;;  %v555_v59 = vmax.f32 %v488_v57, 0.0 }
 0x102   :  { %v346_v60 = vpop.f32.mrf.mxu0  ;;  %v394_v61 = vpop.f32.mrf.mxu1 }
 0x103   :  { %604 = vst.msk [vmem:[%s1326_s3 + $0x170] sm:$0xff] %vm557_vm2, %v539_v58  ;;  %v347_v62 = vadd.f32 %v1001_v5, %v346_v60  ;;  %v395_v63 = vadd.f32 %v1001_v5, %v394_v61 }
 0x104   :  { %620 = vst.msk [vmem:[%s1326_s3 + $0x1f0] sm:$0xff] %vm557_vm2, %v555_v59 }
 0x105   :  { %v508_v0 = vmax.f32 %v347_v62, 0.0  ;;  %v524_v1 = vmax.f32 %v395_v63, 0.0 }
 0x106   :  { %v442_v2 = vpop.f32.mrf.mxu2  ;;  %v490_v3 = vpop.f32.mrf.mxu3 }
 0x107   :  { %573 = vst.msk [vmem:[%s1326_s3 + $0x78] sm:$0xff] %vm557_vm2, %v508_v0  ;;  %v443_v4 = vadd.f32 %v1001_v5, %v442_v2  ;;  %v491_v6 = vadd.f32 %v1001_v5, %v490_v3 }
 0x108   :  { %589 = vst.msk [vmem:[%s1326_s3 + $0xf8] sm:$0xff] %vm557_vm2, %v524_v1 }
 0x109   :  { %v540_v7 = vmax.f32 %v443_v4, 0.0  ;;  %v556_v8 = vmax.f32 %v491_v6, 0.0 }
 0x10b   :  { %605 = vst.msk [vmem:[%s1326_s3 + $0x178] sm:$0xff] %vm557_vm2, %v540_v7 }
 0x10c   :  { %621 = vst.msk [vmem:[%s1326_s3 + $0x1f8] sm:$0xff] %vm557_vm2, %v556_v8 }

// kernel: segmentation_decoder_forward.8
= control target key start
LH: loop header
LB: loop body
LE: loop exit
PB: predicated region body
PF: predicated region fallthrough
CT: control target
= control target key end

     0   :  { %vm170_vm0 = vcmask 523264   ;;  %s1242_s1 = inlined_call_operand.vmem [shape: f32[576,128], index: 1, kind: input, shape index: {}]   ;;  %s1243_s0 = inlined_call_operand.vmem [shape: f32[128,576], index: 0, kind: input, shape index: {}]   ;;  %s1244_s2 = inlined_call_operand.vmem [shape: f32[1,128], index: 2, kind: input, shape index: {}]   ;;  %s1245_s3 = inlined_call_operand.vmem [shape: f32[128,128], index: 3, kind: output, shape index: {}]  }
   0x1   :  { %v109_v0 = vld [vmem:[%s1242_s1 + $0x78] sm:$0xff]  ;;  %v108_v1 = vld [vmem:[%s1242_s1 + $0x70] sm:$0xff]  ;;  %v107_v2 = vld [vmem:[%s1242_s1 + $0x68] sm:$0xff] }
   0x2   :  { %596 = vmatpush.msra.mxu1 %v109_v0  ;;  %597 = vmatpush.msra.mxu2 %v109_v0  ;;  %v106_v3 = vld [vmem:[%s1242_s1 + $0x60] sm:$0xff]  ;;  %v105_v4 = vld [vmem:[%s1242_s1 + $0x58] sm:$0xff]  ;;  %v104_v5 = vld [vmem:[%s1242_s1 + $0x50] sm:$0xff] }
   0x3   :  { %598 = vmatpush.msra.mxu3 %v109_v0  ;;  %219 = vmatpush.msra.mxu0 %v109_v0  ;;  %v103_v6 = vld [vmem:[%s1242_s1 + $0x48] sm:$0xff]  ;;  %v102_v7 = vld [vmem:[%s1242_s1 + $0x40] sm:$0xff]  ;;  %v101_v8 = vld [vmem:[%s1242_s1 + $0x38] sm:$0xff] }
   0x4   :  { %599 = vmatpush.msra.mxu1 %v108_v1  ;;  %600 = vmatpush.msra.mxu2 %v108_v1  ;;  %v100_v9 = vld [vmem:[%s1242_s1 + $0x30] sm:$0xff]  ;;  %v99_v10 = vld [vmem:[%s1242_s1 + $0x28] sm:$0xff]  ;;  %v98_v11 = vld [vmem:[%s1242_s1 + $0x20] sm:$0xff] }
   0x5   :  { %601 = vmatpush.msra.mxu3 %v108_v1  ;;  %220 = vmatpush.msra.mxu0 %v108_v1  ;;  %v97_v12 = vld [vmem:[%s1242_s1 + $0x18] sm:$0xff]  ;;  %v96_v13 = vld [vmem:[%s1242_s1 + $0x10] sm:$0xff]  ;;  %v95_v14 = vld [vmem:[%s1242_s1 + $0x8] sm:$0xff] }
   0x6   :  { %602 = vmatpush.msra.mxu1 %v107_v2  ;;  %603 = vmatpush.msra.mxu2 %v107_v2  ;;  %v94_v15 = vld [vmem:[%s1242_s1] sm:$0xff]  ;;  %v141_v18 = vld [vmem:[%s1242_s1 + $0x178] sm:$0xff]  ;;  %v140_v21 = vld [vmem:[%s1242_s1 + $0x170] sm:$0xff] }
   0x7   :  { %604 = vmatpush.msra.mxu3 %v107_v2  ;;  %221 = vmatpush.msra.mxu0 %v107_v2  ;;  %v34_v16 = vld [vmem:[%s1243_s0 + $0xa0] sm:$0xff]  ;;  %v125_v19 = vld [vmem:[%s1242_s1 + $0xf8] sm:$0xff]  ;;  %v124_v23 = vld [vmem:[%s1242_s1 + $0xf0] sm:$0xff] }
   0x8   :  { %605 = vmatpush.msra.mxu1 %v106_v3  ;;  %606 = vmatpush.msra.mxu2 %v106_v3  ;;  %v54_v17 = vld [vmem:[%s1243_s0 + $0x140] sm:$0xff]  ;;  %v157_v22 = vld [vmem:[%s1242_s1 + $0x1f8] sm:$0xff]  ;;  %v139_v24 = vld [vmem:[%s1242_s1 + $0x168] sm:$0xff] }
   0x9   :  { %607 = vmatpush.msra.mxu3 %v106_v3  ;;  %222 = vmatpush.msra.mxu0 %v106_v3  ;;  %v74_v20 = vld [vmem:[%s1243_s0 + $0x1e0] sm:$0xff]  ;;  %v156_v25 = vld [vmem:[%s1242_s1 + $0x1f0] sm:$0xff]  ;;  %v123_v26 = vld [vmem:[%s1242_s1 + $0xe8] sm:$0xff] }
   0xa   :  { %608 = vmatpush.msra.mxu1 %v105_v4  ;;  %609 = vmatpush.msra.mxu2 %v105_v4  ;;  %v14_v27 = vld [vmem:[%s1243_s0] sm:$0xff]  ;;  %v155_v29 = vld [vmem:[%s1242_s1 + $0x1e8] sm:$0xff]  ;;  %v137_v33 = vld [vmem:[%s1242_s1 + $0x158] sm:$0xff] }
   0xb   :  { %610 = vmatpush.msra.mxu3 %v105_v4  ;;  %223 = vmatpush.msra.mxu0 %v105_v4  ;;  %v138_v28 = vld [vmem:[%s1242_s1 + $0x160] sm:$0xff]  ;;  %v59_v31 = vld [vmem:[%s1243_s0 + $0x168] sm:$0xff]  ;;  %v121_v35 = vld [vmem:[%s1242_s1 + $0xd8] sm:$0xff] }
   0xc   :  { %611 = vmatpush.msra.mxu1 %v104_v5  ;;  %612 = vmatpush.msra.mxu2 %v104_v5  ;;  %v122_v30 = vld [vmem:[%s1242_s1 + $0xe0] sm:$0xff]  ;;  %v39_v32 = vld [vmem:[%s1243_s0 + $0xc8] sm:$0xff]  ;;  %v136_v37 = vld [vmem:[%s1242_s1 + $0x150] sm:$0xff] }
   0xd   :  { %613 = vmatpush.msra.mxu3 %v104_v5  ;;  %224 = vmatpush.msra.mxu0 %v104_v5  ;;  %v154_v34 = vld [vmem:[%s1242_s1 + $0x1e0] sm:$0xff]  ;;  %v79_v36 = vld [vmem:[%s1243_s0 + $0x208] sm:$0xff]  ;;  %v153_v38 = vld [vmem:[%s1242_s1 + $0x1d8] sm:$0xff] }
   0xe   :  { %614 = vmatpush.msra.mxu1 %v103_v6  ;;  %615 = vmatpush.msra.mxu2 %v103_v6  ;;  %v165_v39 = vld [vmem:[%s1242_s1 + $0x238] sm:$0xff]  ;;  %v120_v40 = vld [vmem:[%s1242_s1 + $0xd0] sm:$0xff]  ;;  %v135_v41 = vld [vmem:[%s1242_s1 + $0x148] sm:$0xff] }
   0xf   :  { %616 = vmatpush.msra.mxu3 %v103_v6  ;;  %225 = vmatpush.msra.mxu0 %v103_v6  ;;  %v152_v42 = vld [vmem:[%s1242_s1 + $0x1d0] sm:$0xff]  ;;  %v119_v44 = vld [vmem:[%s1242_s1 + $0xc8] sm:$0xff]  ;;  %v134_v45 = vld [vmem:[%s1242_s1 + $0x140] sm:$0xff] }
  0x10   :  { %617 = vmatpush.msra.mxu1 %v102_v7  ;;  %618 = vmatpush.msra.mxu2 %v102_v7  ;;  %v164_v43 = vld [vmem:[%s1242_s1 + $0x230] sm:$0xff]  ;;  %v151_v46 = vld [vmem:[%s1242_s1 + $0x1c8] sm:$0xff]  ;;  %v118_v48 = vld [vmem:[%s1242_s1 + $0xc0] sm:$0xff] }
  0x11   :  { %619 = vmatpush.msra.mxu3 %v102_v7  ;;  %226 = vmatpush.msra.mxu0 %v102_v7  ;;  %v64_v47 = vld [vmem:[%s1243_s0 + $0x190] sm:$0xff]  ;;  %v133_v49 = vld [vmem:[%s1242_s1 + $0x138] sm:$0xff]  ;;  %v150_v51 = vld [vmem:[%s1242_s1 + $0x1c0] sm:$0xff] }
  0x12   :  { %620 = vmatpush.msra.mxu1 %v101_v8  ;;  %621 = vmatpush.msra.mxu2 %v101_v8  ;;  %v44_v50 = vld [vmem:[%s1243_s0 + $0xf0] sm:$0xff]  ;;  %v117_v52 = vld [vmem:[%s1242_s1 + $0xb8] sm:$0xff]  ;;  %v19_v53 = vld [vmem:[%s1243_s0 + $0x28] sm:$0xff] }
  0x13   :  { %622 = vmatpush.msra.mxu3 %v101_v8  ;;  %227 = vmatpush.msra.mxu0 %v101_v8  ;;  %v84_v54 = vld [vmem:[%s1243_s0 + $0x230] sm:$0xff]  ;;  %v149_v56 = vld [vmem:[%s1242_s1 + $0x1b8] sm:$0xff]  ;;  %v163_v57 = vld [vmem:[%s1242_s1 + $0x228] sm:$0xff] }
  0x14   :  { %623 = vmatpush.msra.mxu1 %v100_v9  ;;  %624 = vmatpush.msra.mxu2 %v100_v9  ;;  %v132_v55 = vld [vmem:[%s1242_s1 + $0x130] sm:$0xff]  ;;  %v131_v59 = vld [vmem:[%s1242_s1 + $0x128] sm:$0xff]  ;;  %v162_v61 = vld [vmem:[%s1242_s1 + $0x220] sm:$0xff] }
  0x15   :  { %625 = vmatpush.msra.mxu3 %v100_v9  ;;  %228 = vmatpush.msra.mxu0 %v100_v9  ;;  %v116_v58 = vld [vmem:[%s1242_s1 + $0xb0] sm:$0xff]  ;;  %v115_v62 = vld [vmem:[%s1242_s1 + $0xa8] sm:$0xff]  ;;  %v130_v63 = vld [vmem:[%s1242_s1 + $0x120] sm:$0xff] }
  0x16   :  { %626 = vmatpush.msra.mxu1 %v99_v10  ;;  %627 = vmatpush.msra.mxu2 %v99_v10  ;;  %v148_v60 = vld [vmem:[%s1242_s1 + $0x1b0] sm:$0xff]  ;;  %v147_v0 = vld [vmem:[%s1242_s1 + $0x1a8] sm:$0xff]  ;;  %v69_v1 = vld [vmem:[%s1243_s0 + $0x1b8] sm:$0xff] }
  0x17   :  { %628 = vmatpush.msra.mxu3 %v99_v10  ;;  %229 = vmatpush.msra.mxu0 %v99_v10  ;;  %v114_v2 = vld [vmem:[%s1242_s1 + $0xa0] sm:$0xff]  ;;  %v129_v3 = vld [vmem:[%s1242_s1 + $0x118] sm:$0xff]  ;;  %v24_v7 = vld [vmem:[%s1243_s0 + $0x50] sm:$0xff] }
  0x18   :  { %629 = vmatpush.msra.mxu1 %v98_v11  ;;  %630 = vmatpush.msra.mxu2 %v98_v11  ;;  %v49_v4 = vld [vmem:[%s1243_s0 + $0x118] sm:$0xff]  ;;  %v146_v5 = vld [vmem:[%s1242_s1 + $0x1a0] sm:$0xff]  ;;  %v128_v9 = vld [vmem:[%s1242_s1 + $0x110] sm:$0xff] }
  0x19   :  { %631 = vmatpush.msra.mxu3 %v98_v11  ;;  %230 = vmatpush.msra.mxu0 %v98_v11  ;;  %v113_v6 = vld [vmem:[%s1242_s1 + $0x98] sm:$0xff] }
  0x1a   :  { %632 = vmatpush.msra.mxu1 %v97_v12  ;;  %633 = vmatpush.msra.mxu2 %v97_v12  ;;  %v89_v8 = vld [vmem:[%s1243_s0 + $0x258] sm:$0xff] }
  0x1b   :  { %634 = vmatpush.msra.mxu3 %v97_v12  ;;  %231 = vmatpush.msra.mxu0 %v97_v12  ;;  %v145_v10 = vld [vmem:[%s1242_s1 + $0x198] sm:$0xff]  ;;  %v112_v12 = vld [vmem:[%s1242_s1 + $0x90] sm:$0xff] }
  0x1c   :  { %635 = vmatpush.msra.mxu1 %v96_v13  ;;  %636 = vmatpush.msra.mxu2 %v96_v13  ;;  %v161_v11 = vld [vmem:[%s1242_s1 + $0x218] sm:$0xff] }
  0x1d   :  { %637 = vmatpush.msra.mxu3 %v96_v13  ;;  %232 = vmatpush.msra.mxu0 %v96_v13  ;;  %v127_v13 = vld [vmem:[%s1242_s1 + $0x108] sm:$0xff] }
  0x1e   :  { %638 = vmatpush.msra.mxu1 %v95_v14  ;;  %639 = vmatpush.msra.mxu2 %v95_v14 }
  0x1f   :  { %640 = vmatpush.msra.mxu3 %v95_v14  ;;  %233 = vmatpush.msra.mxu0 %v95_v14  ;;  %v144_v14 = vld [vmem:[%s1242_s1 + $0x190] sm:$0xff] }
  0x20   :  { %641 = vmatpush.msra.mxu1 %v94_v15  ;;  %642 = vmatpush.msra.mxu2 %v94_v15 }
  0x21   :  { %247 = vmatmul.f32.vlgmr.msra.gmra.mxu1 %v34_v16  ;;  %259 = vmatmul.f32.vlgmr.msra.gmra.mxu2 %v54_v17  ;;  %v111_v16 = vld [vmem:[%s1242_s1 + $0x88] sm:$0xff]  ;;  %v126_v17 = vld [vmem:[%s1242_s1 + $0x100] sm:$0xff] }
  0x22   :  { %349 = vmatpush.msrb.mxu2 %v141_v18  ;;  %643 = vmatpush.msra.mxu3 %v94_v15  ;;  %v143_v18 = vld [vmem:[%s1242_s1 + $0x188] sm:$0xff] }
  0x23   :  { %284 = vmatpush.msrb.mxu1 %v125_v19  ;;  %271 = vmatmul.f32.vlgmr.msra.gmra.mxu3 %v74_v20  ;;  %v16_v19 = vld [vmem:[%s1243_s0 + $0x10] sm:$0xff]  ;;  %v110_v20 = vld [vmem:[%s1242_s1 + $0x80] sm:$0xff] }
  0x24   :  { %350 = vmatpush.msrb.mxu2 %v140_v21  ;;  %414 = vmatpush.msrb.mxu3 %v157_v22  ;;  %v159_v21 = vld [vmem:[%s1242_s1 + $0x208] sm:$0xff] }
  0x25   :  { %285 = vmatpush.msrb.mxu1 %v124_v23  ;;  %234 = vmatpush.msra.mxu0 %v94_v15  ;;  %v160_v15 = vld [vmem:[%s1242_s1 + $0x210] sm:$0xff]  ;;  %v15_v22 = vld [vmem:[%s1243_s0 + $0x8] sm:$0xff]  ;;  %v142_v23 = vld [vmem:[%s1242_s1 + $0x180] sm:$0xff] }
  0x26   :  { %351 = vmatpush.msrb.mxu2 %v139_v24  ;;  %415 = vmatpush.msrb.mxu3 %v156_v25  ;;  %v29_v24 = vld [vmem:[%s1243_s0 + $0x78] sm:$0xff] }
  0x27   :  { %286 = vmatpush.msrb.mxu1 %v123_v26  ;;  %235 = vmatmul.f32.vlgmr.msra.gmra.mxu0 %v14_v27  ;;  %v17_v25 = vld [vmem:[%s1243_s0 + $0x18] sm:$0xff]  ;;  %v158_v26 = vld [vmem:[%s1242_s1 + $0x200] sm:$0xff] }
  0x28   :  { %352 = vmatpush.msrb.mxu2 %v138_v28  ;;  %416 = vmatpush.msrb.mxu3 %v155_v29  ;;  %v21_v27 = vld [vmem:[%s1243_s0 + $0x38] sm:$0xff]  ;;  %v20_v28 = vld [vmem:[%s1243_s0 + $0x30] sm:$0xff]  ;;  %v22_v29 = vld [vmem:[%s1243_s0 + $0x40] sm:$0xff] }
  0x29   :  { %287 = vmatpush.msrb.mxu1 %v122_v30  ;;  %262 = vmatmul.f32.gmra.mxu2 %v59_v31  ;;  %v18_v30 = vld [vmem:[%s1243_s0 + $0x20] sm:$0xff] }
  0x2a   :  { %250 = vmatmul.f32.gmra.mxu1 %v39_v32  ;;  %353 = vmatpush.msrb.mxu2 %v137_v33  ;;  %v26_v31 = vld [vmem:[%s1243_s0 + $0x60] sm:$0xff]  ;;  %v25_v32 = vld [vmem:[%s1243_s0 + $0x58] sm:$0xff]  ;;  %v27_v33 = vld [vmem:[%s1243_s0 + $0x68] sm:$0xff] }
  0x2b   :  { %417 = vmatpush.msrb.mxu3 %v154_v34  ;;  %288 = vmatpush.msrb.mxu1 %v121_v35  ;;  %v23_v34 = vld [vmem:[%s1243_s0 + $0x48] sm:$0xff] }
  0x2c   :  { %274 = vmatmul.f32.gmra.mxu3 %v79_v36  ;;  %354 = vmatpush.msrb.mxu2 %v136_v37  ;;  %v31_v35 = vld [vmem:[%s1243_s0 + $0x88] sm:$0xff]  ;;  %v30_v36 = vld [vmem:[%s1243_s0 + $0x80] sm:$0xff]  ;;  %v32_v37 = vld [vmem:[%s1243_s0 + $0x90] sm:$0xff] }
  0x2d   :  { %418 = vmatpush.msrb.mxu3 %v153_v38  ;;  %487 = vmatpush.msrb.mxu0 %v165_v39  ;;  %v28_v38 = vld [vmem:[%s1243_s0 + $0x70] sm:$0xff] }
  0x2e   :  { %289 = vmatpush.msrb.mxu1 %v120_v40  ;;  %355 = vmatpush.msrb.mxu2 %v135_v41  ;;  %v36_v39 = vld [vmem:[%s1243_s0 + $0xb0] sm:$0xff]  ;;  %v35_v40 = vld [vmem:[%s1243_s0 + $0xa8] sm:$0xff]  ;;  %v37_v41 = vld [vmem:[%s1243_s0 + $0xb8] sm:$0xff] }
  0x2f   :  { %419 = vmatpush.msrb.mxu3 %v152_v42  ;;  %488 = vmatpush.msrb.mxu0 %v164_v43  ;;  %v33_v42 = vld [vmem:[%s1243_s0 + $0x98] sm:$0xff] }
  0x30   :  { %290 = vmatpush.msrb.mxu1 %v119_v44  ;;  %356 = vmatpush.msrb.mxu2 %v134_v45  ;;  %v41_v43 = vld [vmem:[%s1243_s0 + $0xd8] sm:$0xff]  ;;  %v40_v44 = vld [vmem:[%s1243_s0 + $0xd0] sm:$0xff]  ;;  %v42_v45 = vld [vmem:[%s1243_s0 + $0xe0] sm:$0xff] }
  0x31   :  { %420 = vmatpush.msrb.mxu3 %v151_v46  ;;  %265 = vmatmul.f32.gmra.mxu2 %v64_v47  ;;  %v38_v46 = vld [vmem:[%s1243_s0 + $0xc0] sm:$0xff] }
  0x32   :  { %291 = vmatpush.msrb.mxu1 %v118_v48  ;;  %357 = vmatpush.msrb.mxu2 %v133_v49  ;;  %v46_v47 = vld [vmem:[%s1243_s0 + $0x100] sm:$0xff]  ;;  %v45_v48 = vld [vmem:[%s1243_s0 + $0xf8] sm:$0xff]  ;;  %v47_v49 = vld [vmem:[%s1243_s0 + $0x108] sm:$0xff] }
  0x33   :  { %253 = vmatmul.f32.gmra.mxu1 %v44_v50  ;;  %421 = vmatpush.msrb.mxu3 %v150_v51  ;;  %v43_v50 = vld [vmem:[%s1243_s0 + $0xe8] sm:$0xff] }
  0x34   :  { %292 = vmatpush.msrb.mxu1 %v117_v52  ;;  %238 = vmatmul.f32.gmra.mxu0 %v19_v53  ;;  %v51_v51 = vld [vmem:[%s1243_s0 + $0x128] sm:$0xff]  ;;  %v50_v52 = vld [vmem:[%s1243_s0 + $0x120] sm:$0xff]  ;;  %v52_v53 = vld [vmem:[%s1243_s0 + $0x130] sm:$0xff] }
  0x35   :  { %277 = vmatmul.f32.gmra.mxu3 %v84_v54  ;;  %358 = vmatpush.msrb.mxu2 %v132_v55  ;;  %v48_v54 = vld [vmem:[%s1243_s0 + $0x110] sm:$0xff] }
  0x36   :  { %422 = vmatpush.msrb.mxu3 %v149_v56  ;;  %489 = vmatpush.msrb.mxu0 %v163_v57  ;;  %v56_v55 = vld [vmem:[%s1243_s0 + $0x150] sm:$0xff]  ;;  %v55_v56 = vld [vmem:[%s1243_s0 + $0x148] sm:$0xff]  ;;  %v57_v57 = vld [vmem:[%s1243_s0 + $0x158] sm:$0xff] }
  0x37   :  { %293 = vmatpush.msrb.mxu1 %v116_v58  ;;  %359 = vmatpush.msrb.mxu2 %v131_v59  ;;  %v53_v58 = vld [vmem:[%s1243_s0 + $0x138] sm:$0xff] }
  0x38   :  { %423 = vmatpush.msrb.mxu3 %v148_v60  ;;  %490 = vmatpush.msrb.mxu0 %v162_v61  ;;  %v61_v59 = vld [vmem:[%s1243_s0 + $0x178] sm:$0xff]  ;;  %v60_v60 = vld [vmem:[%s1243_s0 + $0x170] sm:$0xff]  ;;  %v62_v61 = vld [vmem:[%s1243_s0 + $0x180] sm:$0xff] }
  0x39   :  { %294 = vmatpush.msrb.mxu1 %v115_v62  ;;  %360 = vmatpush.msrb.mxu2 %v130_v63  ;;  %v58_v62 = vld [vmem:[%s1243_s0 + $0x160] sm:$0xff] }
  0x3a   :  { %424 = vmatpush.msrb.mxu3 %v147_v0  ;;  %268 = vmatmul.f32.gmra.mxu2 %v69_v1  ;;  %v66_v63 = vld [vmem:[%s1243_s0 + $0x1a0] sm:$0xff]  ;;  %v65_v0 = vld [vmem:[%s1243_s0 + $0x198] sm:$0xff]  ;;  %v67_v1 = vld [vmem:[%s1243_s0 + $0x1a8] sm:$0xff] }
  0x3b   :  { %295 = vmatpush.msrb.mxu1 %v114_v2  ;;  %361 = vmatpush.msrb.mxu2 %v129_v3  ;;  %v63_v2 = vld [vmem:[%s1243_s0 + $0x188] sm:$0xff] }
  0x3c   :  { %256 = vmatmul.f32.gmra.mxu1 %v49_v4  ;;  %425 = vmatpush.msrb.mxu3 %v146_v5  ;;  %v71_v3 = vld [vmem:[%s1243_s0 + $0x1c8] sm:$0xff]  ;;  %v70_v4 = vld [vmem:[%s1243_s0 + $0x1c0] sm:$0xff]  ;;  %v72_v5 = vld [vmem:[%s1243_s0 + $0x1d0] sm:$0xff] }
  0x3d   :  { %296 = vmatpush.msrb.mxu1 %v113_v6  ;;  %241 = vmatmul.f32.gmra.mxu0 %v24_v7  ;;  %v68_v6 = vld [vmem:[%s1243_s0 + $0x1b0] sm:$0xff] }
  0x3e   :  { %280 = vmatmul.f32.gmra.mxu3 %v89_v8  ;;  %362 = vmatpush.msrb.mxu2 %v128_v9  ;;  %v76_v8 = vld [vmem:[%s1243_s0 + $0x1f0] sm:$0xff]  ;;  %v75_v9 = vld [vmem:[%s1243_s0 + $0x1e8] sm:$0xff] }
  0x3f   :  { %426 = vmatpush.msrb.mxu3 %v145_v10  ;;  %491 = vmatpush.msrb.mxu0 %v161_v11  ;;  %v1092_v10 = vld [vmem:[%s1244_s2] ss:$0 sm:$0xff]  ;;  %v77_v11 = vld [vmem:[%s1243_s0 + $0x1f8] sm:$0xff] }
  0x40   :  { %297 = vmatpush.msrb.mxu1 %v112_v12  ;;  %363 = vmatpush.msrb.mxu2 %v127_v13  ;;  %v73_v12 = vld [vmem:[%s1243_s0 + $0x1d8] sm:$0xff] }
  0x41   :  { %427 = vmatpush.msrb.mxu3 %v144_v14  ;;  %492 = vmatpush.msrb.mxu0 %v160_v15 }
  0x42   :  { %298 = vmatpush.msrb.mxu1 %v111_v16  ;;  %364 = vmatpush.msrb.mxu2 %v126_v17 }
  0x43   :  { %428 = vmatpush.msrb.mxu3 %v143_v18  ;;  %365 = vmatmul.f32.vlgmr.msrb.gmra.mxu2 %v16_v19  ;;  %v81_v19 = vld [vmem:[%s1243_s0 + $0x218] sm:$0xff] }
  0x44   :  { %299 = vmatpush.msrb.mxu1 %v110_v20  ;;  %493 = vmatpush.msrb.mxu0 %v159_v21  ;;  %v80_v20 = vld [vmem:[%s1243_s0 + $0x210] sm:$0xff]  ;;  %v82_v21 = vld [vmem:[%s1243_s0 + $0x220] sm:$0xff] }
  0x45   :  { %300 = vmatmul.f32.vlgmr.msrb.gmra.mxu1 %v15_v22  ;;  %429 = vmatpush.msrb.mxu3 %v142_v23  ;;  %v78_v22 = vld [vmem:[%s1243_s0 + $0x200] sm:$0xff] }
  0x46   :  { %244 = vmatmul.f32.gmra.mxu0 %v29_v24  ;;  %430 = vmatmul.f32.vlgmr.msrb.gmra.mxu3 %v17_v25 }
  0x47   :  { %494 = vmatpush.msrb.mxu0 %v158_v26 }
  0x4b   :  { %368 = vmatmul.f32.gmra.mxu2 %v21_v27 }
  0x4d   :  { %303 = vmatmul.f32.gmra.mxu1 %v20_v28  ;;  %v86_v28 = vld [vmem:[%s1243_s0 + $0x240] sm:$0xff] }
  0x4e   :  { %433 = vmatmul.f32.gmra.mxu3 %v22_v29  ;;  %580 = vmatmul.msk.f32.vlgmr.msrb.gmra.mxu0 %vm170_vm0, %v18_v30  ;;  %v85_v30 = vld [vmem:[%s1243_s0 + $0x238] sm:$0xff] }
  0x53   :  { %371 = vmatmul.f32.gmra.mxu2 %v26_v31  ;;  %v87_v31 = vld [vmem:[%s1243_s0 + $0x248] sm:$0xff] }
  0x55   :  { %306 = vmatmul.f32.gmra.mxu1 %v25_v32  ;;  %v83_v32 = vld [vmem:[%s1243_s0 + $0x228] sm:$0xff] }
  0x56   :  { %436 = vmatmul.f32.gmra.mxu3 %v27_v33  ;;  %581 = vmatmul.msk.f32.gmra.mxu0 %vm170_vm0, %v23_v34 }
  0x5b   :  { %374 = vmatmul.f32.gmra.mxu2 %v31_v35 }
  0x5d   :  { %309 = vmatmul.f32.gmra.mxu1 %v30_v36  ;;  %v91_v36 = vld [vmem:[%s1243_s0 + $0x268] sm:$0xff] }
  0x5e   :  { %439 = vmatmul.f32.gmra.mxu3 %v32_v37  ;;  %582 = vmatmul.msk.f32.gmra.mxu0 %vm170_vm0, %v28_v38 }
  0x63   :  { %377 = vmatmul.f32.gmra.mxu2 %v36_v39 }
  0x65   :  { %312 = vmatmul.f32.gmra.mxu1 %v35_v40  ;;  %v90_v40 = vld [vmem:[%s1243_s0 + $0x260] sm:$0xff] }
  0x66   :  { %442 = vmatmul.f32.gmra.mxu3 %v37_v41  ;;  %583 = vmatmul.msk.f32.gmra.mxu0 %vm170_vm0, %v33_v42  ;;  %v92_v41 = vld [vmem:[%s1243_s0 + $0x270] sm:$0xff] }
  0x67   :  { %v88_v42 = vld [vmem:[%s1243_s0 + $0x250] sm:$0xff] }
  0x6b   :  { %380 = vmatmul.f32.gmra.mxu2 %v41_v43 }
  0x6d   :  { %315 = vmatmul.f32.gmra.mxu1 %v40_v44 }
  0x6e   :  { %445 = vmatmul.f32.gmra.mxu3 %v42_v45  ;;  %584 = vmatmul.msk.f32.gmra.mxu0 %vm170_vm0, %v38_v46 }
  0x73   :  { %383 = vmatmul.f32.gmra.mxu2 %v46_v47 }
  0x75   :  { %318 = vmatmul.f32.gmra.mxu1 %v45_v48 }
  0x76   :  { %448 = vmatmul.f32.gmra.mxu3 %v47_v49  ;;  %585 = vmatmul.msk.f32.gmra.mxu0 %vm170_vm0, %v43_v50  ;;  %v93_v50 = vld [vmem:[%s1243_s0 + $0x278] sm:$0xff] }
  0x7b   :  { %386 = vmatmul.f32.gmra.mxu2 %v51_v51 }
  0x7d   :  { %321 = vmatmul.f32.gmra.mxu1 %v50_v52 }
  0x7e   :  { %451 = vmatmul.f32.gmra.mxu3 %v52_v53  ;;  %586 = vmatmul.msk.f32.gmra.mxu0 %vm170_vm0, %v48_v54 }
  0x83   :  { %389 = vmatmul.f32.gmra.mxu2 %v56_v55 }
  0x85   :  { %324 = vmatmul.f32.gmra.mxu1 %v55_v56 }
  0x86   :  { %454 = vmatmul.f32.gmra.mxu3 %v57_v57  ;;  %587 = vmatmul.msk.f32.gmra.mxu0 %vm170_vm0, %v53_v58 }
  0x8b   :  { %392 = vmatmul.f32.gmra.mxu2 %v61_v59 }
  0x8d   :  { %327 = vmatmul.f32.gmra.mxu1 %v60_v60 }
  0x8e   :  { %457 = vmatmul.f32.gmra.mxu3 %v62_v61  ;;  %588 = vmatmul.msk.f32.gmra.mxu0 %vm170_vm0, %v58_v62 }
  0x93   :  { %395 = vmatmul.f32.gmra.mxu2 %v66_v63 }
  0x95   :  { %330 = vmatmul.f32.gmra.mxu1 %v65_v0 }
  0x96   :  { %460 = vmatmul.f32.gmra.mxu3 %v67_v1  ;;  %589 = vmatmul.msk.f32.gmra.mxu0 %vm170_vm0, %v63_v2 }
  0x9b   :  { %398 = vmatmul.f32.gmra.mxu2 %v71_v3 }
  0x9d   :  { %333 = vmatmul.f32.gmra.mxu1 %v70_v4 }
  0x9e   :  { %463 = vmatmul.f32.gmra.mxu3 %v72_v5  ;;  %590 = vmatmul.msk.f32.gmra.mxu0 %vm170_vm0, %v68_v6  ;;  %v1081_v7 = vpop.f32.mrf.mxu1 }
  0xa3   :  { %401 = vmatmul.f32.gmra.mxu2 %v76_v8 }
  0xa4   :  { %v260_v13 = vpop.f32.mrf.mxu2  ;;  %v236_v18 = vpop.f32.mrf.mxu0 }
  0xa5   :  { %336 = vmatmul.f32.gmra.mxu1 %v75_v9  ;;  %v1101_v14 = vadd.f32 %v1092_v10, %v260_v13  ;;  %v237_v48 = vadd.f32 %v1092_v10, %v236_v18 }
  0xa6   :  { %466 = vmatmul.f32.gmra.mxu3 %v77_v11  ;;  %591 = vmatmul.msk.f32.gmra.mxu0 %vm170_vm0, %v73_v12  ;;  %v272_v15 = vpop.f32.mrf.mxu3 }
  0xa7   :  { %v1104_v16 = vpop.f32.mrf.mxu1  ;;  %v1107_v17 = vadd.f32 %v1092_v10, %v272_v15 }
  0xab   :  { %404 = vmatmul.f32.gmra.mxu2 %v81_v19 }
  0xac   :  { %v263_v23 = vpop.f32.mrf.mxu2 }
  0xad   :  { %339 = vmatmul.f32.gmra.mxu1 %v80_v20  ;;  %v1122_v24 = vadd.f32 %v1092_v10, %v263_v23 }
  0xae   :  { %469 = vmatmul.f32.gmra.mxu3 %v82_v21  ;;  %592 = vmatmul.msk.f32.gmra.mxu0 %vm170_vm0, %v78_v22 }
  0xaf   :  { %v275_v25 = vpop.f32.mrf.mxu3 }
  0xb0   :  { %v1125_v26 = vpop.f32.mrf.mxu1  ;;  %v1128_v27 = vadd.f32 %v1092_v10, %v275_v25 }
  0xb1   :  { %v239_v29 = vpop.f32.mrf.mxu0 }
  0xb2   :  { %v240_v57 = vadd.f32 %v1092_v10, %v239_v29 }
  0xb3   :  { %407 = vmatmul.f32.gmra.mxu2 %v86_v28 }
  0xb4   :  { %v266_v33 = vpop.f32.mrf.mxu2 }
  0xb5   :  { %342 = vmatmul.f32.gmra.mxu1 %v85_v30  ;;  %v1143_v34 = vadd.f32 %v1092_v10, %v266_v33 }
  0xb6   :  { %472 = vmatmul.f32.gmra.mxu3 %v87_v31  ;;  %593 = vmatmul.msk.f32.gmra.mxu0 %vm170_vm0, %v83_v32  ;;  %v249_v31 = vadd.f32 %v1092_v10, %v1081_v7 }
  0xb8   :  { %v278_v35 = vpop.f32.mrf.mxu3 }
  0xb9   :  { %v1149_v37 = vpop.f32.mrf.mxu1  ;;  %v1152_v38 = vadd.f32 %v1092_v10, %v278_v35 }
  0xba   :  { %v242_v39 = vpop.f32.mrf.mxu0 }
  0xbb   :  { %410 = vmatmul.f32.gmra.mxu2 %v91_v36  ;;  %v243_v3 = vadd.f32 %v1092_v10, %v242_v39 }
  0xbd   :  { %345 = vmatmul.f32.gmra.mxu1 %v90_v40  ;;  %v269_v43 = vpop.f32.mrf.mxu2 }
  0xbe   :  { %475 = vmatmul.f32.gmra.mxu3 %v92_v41  ;;  %594 = vmatmul.msk.f32.gmra.mxu0 %vm170_vm0, %v88_v42  ;;  %v1165_v44 = vadd.f32 %v1092_v10, %v269_v43 }
  0xc1   :  { %v281_v45 = vpop.f32.mrf.mxu3 }
  0xc2   :  { %v1168_v46 = vadd.f32 %v1092_v10, %v281_v45  ;;  %v301_v47 = vpop.f32.mrf.mxu1  ;;  %v252_v45 = vadd.f32 %v1092_v10, %v1104_v16 }
  0xc3   :  { %v245_v49 = vpop.f32.mrf.mxu0  ;;  %v302_v51 = vadd.f32 %v301_v47, %v237_v48 }
  0xc4   :  { %v246_v18 = vadd.f32 %v1092_v10, %v245_v49 }
  0xc6   :  { %595 = vmatmul.msk.f32.gmra.mxu0 %vm170_vm0, %v93_v50  ;;  %v366_v52 = vpop.f32.mrf.mxu2 }
  0xc7   :  { %v367_v53 = vadd.f32 %v366_v52, %v302_v51 }
  0xc9   :  { %v431_v54 = vpop.f32.mrf.mxu3 }
  0xca   :  { %v304_v55 = vpop.f32.mrf.mxu1  ;;  %v432_v56 = vadd.f32 %v431_v54, %v367_v53 }
  0xcb   :  { %v496_v58 = vpop.f32.mrf.mxu0  ;;  %v305_v60 = vadd.f32 %v304_v55, %v240_v57  ;;  %v255_v55 = vadd.f32 %v1092_v10, %v1125_v26 }
  0xcc   :  { %v497_v59 = vadd.f32 %v496_v58, %v432_v56 }
  0xce   :  { %v544_v61 = vmax.f32 %v497_v59, 0.0  ;;  %v369_v62 = vpop.f32.mrf.mxu2 }
  0xcf   :  { %v370_v63 = vadd.f32 %v369_v62, %v305_v60 }
  0xd0   :  { %560 = vst [vmem:[%s1245_s3] sm:$0xff] %v544_v61 }
  0xd1   :  { %v434_v0 = vpop.f32.mrf.mxu3 }
  0xd2   :  { %v307_v1 = vpop.f32.mrf.mxu1  ;;  %v435_v2 = vadd.f32 %v434_v0, %v370_v63  ;;  %v258_v0 = vadd.f32 %v1092_v10, %v1149_v37 }
  0xd3   :  { %v499_v4 = vpop.f32.mrf.mxu0  ;;  %v308_v6 = vadd.f32 %v307_v1, %v243_v3 }
  0xd4   :  { %v500_v5 = vadd.f32 %v499_v4, %v435_v2 }
  0xd6   :  { %v545_v8 = vmax.f32 %v500_v5, 0.0  ;;  %v372_v9 = vpop.f32.mrf.mxu2 }
  0xd7   :  { %v373_v11 = vadd.f32 %v372_v9, %v308_v6 }
  0xd8   :  { %561 = vst [vmem:[%s1245_s3 + $0x8] sm:$0xff] %v545_v8 }
  0xd9   :  { %v437_v12 = vpop.f32.mrf.mxu3 }
  0xda   :  { %v310_v13 = vpop.f32.mrf.mxu1  ;;  %v438_v15 = vadd.f32 %v437_v12, %v373_v11 }
  0xdb   :  { %v502_v19 = vpop.f32.mrf.mxu0  ;;  %v311_v21 = vadd.f32 %v310_v13, %v246_v18 }
  0xdc   :  { %v503_v20 = vadd.f32 %v502_v19, %v438_v15 }
  0xde   :  { %v546_v22 = vmax.f32 %v503_v20, 0.0  ;;  %v375_v23 = vpop.f32.mrf.mxu2 }
  0xdf   :  { %v376_v25 = vadd.f32 %v375_v23, %v311_v21 }
  0xe0   :  { %562 = vst [vmem:[%s1245_s3 + $0x10] sm:$0xff] %v546_v22 }
  0xe1   :  { %v440_v28 = vpop.f32.mrf.mxu3 }
  0xe2   :  { %v313_v29 = vpop.f32.mrf.mxu1  ;;  %v441_v30 = vadd.f32 %v440_v28, %v376_v25 }
  0xe3   :  { %v505_v32 = vpop.f32.mrf.mxu0  ;;  %v314_v35 = vadd.f32 %v313_v29, %v249_v31 }
  0xe4   :  { %v506_v33 = vadd.f32 %v505_v32, %v441_v30 }
  0xe6   :  { %v547_v36 = vmax.f32 %v506_v33, 0.0  ;;  %v378_v39 = vpop.f32.mrf.mxu2 }
  0xe7   :  { %v379_v40 = vadd.f32 %v378_v39, %v314_v35 }
  0xe8   :  { %563 = vst [vmem:[%s1245_s3 + $0x18] sm:$0xff] %v547_v36 }
  0xe9   :  { %v443_v41 = vpop.f32.mrf.mxu3 }
  0xea   :  { %v316_v42 = vpop.f32.mrf.mxu1  ;;  %v444_v43 = vadd.f32 %v443_v41, %v379_v40 }
  0xeb   :  { %v508_v47 = vpop.f32.mrf.mxu0  ;;  %v317_v49 = vadd.f32 %v316_v42, %v252_v45 }
  0xec   :  { %v509_v48 = vadd.f32 %v508_v47, %v444_v43 }
  0xee   :  { %v548_v7 = vmax.f32 %v509_v48, 0.0  ;;  %v381_v50 = vpop.f32.mrf.mxu2 }
  0xef   :  { %v382_v51 = vadd.f32 %v381_v50, %v317_v49 }
  0xf0   :  { %564 = vst [vmem:[%s1245_s3 + $0x20] sm:$0xff] %v548_v7 }
  0xf1   :  { %v446_v52 = vpop.f32.mrf.mxu3 }
  0xf2   :  { %v319_v53 = vpop.f32.mrf.mxu1  ;;  %v447_v54 = vadd.f32 %v446_v52, %v382_v51 }
  0xf3   :  { %v511_v56 = vpop.f32.mrf.mxu0  ;;  %v320_v58 = vadd.f32 %v319_v53, %v255_v55 }
  0xf4   :  { %v512_v57 = vadd.f32 %v511_v56, %v447_v54 }
  0xf6   :  { %v549_v16 = vmax.f32 %v512_v57, 0.0  ;;  %v384_v59 = vpop.f32.mrf.mxu2 }
  0xf7   :  { %v385_v60 = vadd.f32 %v384_v59, %v320_v58 }
  0xf8   :  { %565 = vst [vmem:[%s1245_s3 + $0x28] sm:$0xff] %v549_v16 }
  0xf9   :  { %v449_v61 = vpop.f32.mrf.mxu3 }
  0xfa   :  { %v322_v62 = vpop.f32.mrf.mxu1  ;;  %v450_v63 = vadd.f32 %v449_v61, %v385_v60 }
  0xfb   :  { %v514_v1 = vpop.f32.mrf.mxu0  ;;  %v323_v3 = vadd.f32 %v322_v62, %v258_v0 }
  0xfc   :  { %v515_v2 = vadd.f32 %v514_v1, %v450_v63 }
  0xfe   :  { %v550_v26 = vmax.f32 %v515_v2, 0.0  ;;  %v387_v4 = vpop.f32.mrf.mxu2 }
  0xff   :  { %v388_v5 = vadd.f32 %v387_v4, %v323_v3 }
 0x100   :  { %566 = vst [vmem:[%s1245_s3 + $0x30] sm:$0xff] %v550_v26 }
 0x101   :  { %v452_v6 = vpop.f32.mrf.mxu3 }
 0x102   :  { %v325_v8 = vpop.f32.mrf.mxu1  ;;  %v453_v9 = vadd.f32 %v452_v6, %v388_v5 }
 0x103   :  { %v517_v11 = vpop.f32.mrf.mxu0  ;;  %v326_v13 = vadd.f32 %v325_v8, %v1101_v14 }
 0x104   :  { %v518_v12 = vadd.f32 %v517_v11, %v453_v9 }
 0x106   :  { %v551_v15 = vmax.f32 %v518_v12, 0.0  ;;  %v390_v18 = vpop.f32.mrf.mxu2 }
 0x107   :  { %v391_v10 = vadd.f32 %v390_v18, %v326_v13 }
 0x108   :  { %567 = vst [vmem:[%s1245_s3 + $0x38] sm:$0xff] %v551_v15 }
 0x109   :  { %v455_v37 = vpop.f32.mrf.mxu3 }
 0x10a   :  { %v328_v19 = vpop.f32.mrf.mxu1  ;;  %v456_v20 = vadd.f32 %v455_v37, %v391_v10 }
 0x10b   :  { %v520_v21 = vpop.f32.mrf.mxu0  ;;  %v329_v23 = vadd.f32 %v328_v19, %v1122_v24 }
 0x10c   :  { %v521_v22 = vadd.f32 %v520_v21, %v456_v20 }
 0x10e   :  { %v552_v25 = vmax.f32 %v521_v22, 0.0  ;;  %v393_v28 = vpop.f32.mrf.mxu2 }
 0x10f   :  { %v394_v29 = vadd.f32 %v393_v28, %v329_v23 }
 0x110   :  { %568 = vst [vmem:[%s1245_s3 + $0x40] sm:$0xff] %v552_v25 }
 0x111   :  { %v458_v14 = vpop.f32.mrf.mxu3 }
 0x112   :  { %v331_v30 = vpop.f32.mrf.mxu1  ;;  %v459_v31 = vadd.f32 %v458_v14, %v394_v29 }
 0x113   :  { %v523_v32 = vpop.f32.mrf.mxu0  ;;  %v332_v35 = vadd.f32 %v331_v30, %v1143_v34 }
 0x114   :  { %v524_v33 = vadd.f32 %v523_v32, %v459_v31 }
 0x116   :  { %v553_v36 = vmax.f32 %v524_v33, 0.0  ;;  %v396_v39 = vpop.f32.mrf.mxu2 }
 0x117   :  { %v397_v40 = vadd.f32 %v396_v39, %v332_v35 }
 0x118   :  { %569 = vst [vmem:[%s1245_s3 + $0x48] sm:$0xff] %v553_v36 }
 0x119   :  { %v461_v24 = vpop.f32.mrf.mxu3 }
 0x11a   :  { %v334_v41 = vpop.f32.mrf.mxu1  ;;  %v462_v42 = vadd.f32 %v461_v24, %v397_v40 }
 0x11b   :  { %v526_v43 = vpop.f32.mrf.mxu0  ;;  %v335_v47 = vadd.f32 %v334_v41, %v1165_v44 }
 0x11c   :  { %v527_v45 = vadd.f32 %v526_v43, %v462_v42 }
 0x11e   :  { %v554_v48 = vmax.f32 %v527_v45, 0.0  ;;  %v399_v49 = vpop.f32.mrf.mxu2 }
 0x11f   :  { %v400_v7 = vadd.f32 %v399_v49, %v335_v47 }
 0x120   :  { %570 = vst [vmem:[%s1245_s3 + $0x50] sm:$0xff] %v554_v48 }
 0x121   :  { %v464_v34 = vpop.f32.mrf.mxu3 }
 0x122   :  { %v337_v50 = vpop.f32.mrf.mxu1  ;;  %v465_v51 = vadd.f32 %v464_v34, %v400_v7 }
 0x123   :  { %v529_v52 = vpop.f32.mrf.mxu0  ;;  %v338_v54 = vadd.f32 %v337_v50, %v1107_v17 }
 0x124   :  { %v530_v53 = vadd.f32 %v529_v52, %v465_v51 }
 0x126   :  { %v555_v55 = vmax.f32 %v530_v53, 0.0  ;;  %v402_v56 = vpop.f32.mrf.mxu2 }
 0x127   :  { %v403_v57 = vadd.f32 %v402_v56, %v338_v54 }
 0x128   :  { %571 = vst [vmem:[%s1245_s3 + $0x58] sm:$0xff] %v555_v55 }
 0x129   :  { %v467_v44 = vpop.f32.mrf.mxu3 }
 0x12a   :  { %v340_v58 = vpop.f32.mrf.mxu1  ;;  %v468_v16 = vadd.f32 %v467_v44, %v403_v57 }
 0x12b   :  { %v532_v59 = vpop.f32.mrf.mxu0  ;;  %v341_v61 = vadd.f32 %v340_v58, %v1128_v27 }
 0x12c   :  { %v533_v60 = vadd.f32 %v532_v59, %v468_v16 }
 0x12e   :  { %v556_v62 = vmax.f32 %v533_v60, 0.0  ;;  %v405_v63 = vpop.f32.mrf.mxu2 }
 0x12f   :  { %v406_v0 = vadd.f32 %v405_v63, %v341_v61 }
 0x130   :  { %572 = vst [vmem:[%s1245_s3 + $0x60] sm:$0xff] %v556_v62 }
 0x131   :  { %v470_v17 = vpop.f32.mrf.mxu3 }
 0x132   :  { %v343_v1 = vpop.f32.mrf.mxu1  ;;  %v471_v2 = vadd.f32 %v470_v17, %v406_v0 }
 0x133   :  { %v535_v3 = vpop.f32.mrf.mxu0  ;;  %v344_v4 = vadd.f32 %v343_v1, %v1152_v38 }
 0x134   :  { %v536_v26 = vadd.f32 %v535_v3, %v471_v2 }
 0x136   :  { %v557_v5 = vmax.f32 %v536_v26, 0.0  ;;  %v408_v6 = vpop.f32.mrf.mxu2 }
 0x137   :  { %v409_v8 = vadd.f32 %v408_v6, %v344_v4 }
 0x138   :  { %573 = vst [vmem:[%s1245_s3 + $0x68] sm:$0xff] %v557_v5 }
 0x139   :  { %v473_v27 = vpop.f32.mrf.mxu3 }
 0x13a   :  { %v346_v9 = vpop.f32.mrf.mxu1  ;;  %v474_v11 = vadd.f32 %v473_v27, %v409_v8 }
 0x13b   :  { %v538_v12 = vpop.f32.mrf.mxu0  ;;  %v347_v15 = vadd.f32 %v346_v9, %v1168_v46 }
 0x13c   :  { %v539_v13 = vadd.f32 %v538_v12, %v474_v11 }
 0x13e   :  { %v558_v18 = vmax.f32 %v539_v13, 0.0  ;;  %v411_v10 = vpop.f32.mrf.mxu2 }
 0x13f   :  { %v412_v37 = vadd.f32 %v411_v10, %v347_v15 }
 0x140   :  { %574 = vst [vmem:[%s1245_s3 + $0x70] sm:$0xff] %v558_v18 }
 0x141   :  { %v476_v38 = vpop.f32.mrf.mxu3 }
 0x142   :  { %v477_v19 = vadd.f32 %v476_v38, %v412_v37 }
 0x143   :  { %v541_v20 = vpop.f32.mrf.mxu0 }
 0x144   :  { %v542_v21 = vadd.f32 %v541_v20, %v477_v19 }
 0x146   :  { %v559_v22 = vmax.f32 %v542_v21, 0.0 }
 0x148   :  { %575 = vst [vmem:[%s1245_s3 + $0x78] sm:$0xff] %v559_v22 }

// kernel: segmentation_decoder_forward.7
= control target key start
LH: loop header
LB: loop body
LE: loop exit
PB: predicated region body
PF: predicated region fallthrough
CT: control target
= control target key end

     0   :  { %vm1545_vm0 = vcmask 1041409   ;;  %vm1548_vm1 = vcmask 1042434   ;;  %vm1551_vm2 = vcmask 1043459   ;;  %vm1554_vm3 = vcmask 1044484   ;;  %s5484_s0 = inlined_call_operand.vmem [shape: f32[2,8,2,8,2,64], index: 0, kind: input, shape index: {}]   ;;  %s5485_s1 = inlined_call_operand.vmem [shape: f32[2,8,8,64], index: 1, kind: output, shape index: {}]  }
   0x1   :  { %v1825_v0 = vld [vmem:[%s5484_s0] sm:$0x3]  ;;  %v1830_v1 = vld [vmem:[%s5484_s0 + $0x2] sm:$0x3]  ;;  %v1835_v2 = vld [vmem:[%s5484_s0 + $0x4] sm:$0x3] }
   0x2   :  { %v1840_v3 = vld [vmem:[%s5484_s0 + $0x6] sm:$0x3]  ;;  %v1845_v4 = vld [vmem:[%s5484_s0 + $0x8] sm:$0x3]  ;;  %v1850_v5 = vld [vmem:[%s5484_s0 + $0xa] sm:$0x3] }
   0x3   :  { %v1855_v6 = vld [vmem:[%s5484_s0 + $0xc] sm:$0x3]  ;;  %v1860_v7 = vld [vmem:[%s5484_s0 + $0xe] sm:$0x3]  ;;  %v1865_v8 = vld [vmem:[%s5484_s0 + $0x20] sm:$0x3] }
   0x4   :  { %v1870_v9 = vld [vmem:[%s5484_s0 + $0x22] sm:$0x3]  ;;  %v1875_v10 = vld [vmem:[%s5484_s0 + $0x24] sm:$0x3]  ;;  %v1880_v11 = vld [vmem:[%s5484_s0 + $0x26] sm:$0x3] }
   0x5   :  { %v1885_v12 = vld [vmem:[%s5484_s0 + $0x28] sm:$0x3]  ;;  %v1890_v13 = vld [vmem:[%s5484_s0 + $0x2a] sm:$0x3]  ;;  %v1895_v14 = vld [vmem:[%s5484_s0 + $0x2c] sm:$0x3] }
   0x6   :  { %v1900_v15 = vld [vmem:[%s5484_s0 + $0x2e] sm:$0x3]  ;;  %v1905_v16 = vld [vmem:[%s5484_s0 + $0x40] sm:$0x3]  ;;  %v1910_v17 = vld [vmem:[%s5484_s0 + $0x42] sm:$0x3] }
   0x7   :  { %v1915_v18 = vld [vmem:[%s5484_s0 + $0x44] sm:$0x3]  ;;  %v1920_v19 = vld [vmem:[%s5484_s0 + $0x46] sm:$0x3]  ;;  %v1925_v20 = vld [vmem:[%s5484_s0 + $0x48] sm:$0x3] }
   0x8   :  { %v1931_v22 = vld [vmem:[%s5484_s0 + $0x4a] sm:$0x3]  ;;  %v1936_v23 = vld [vmem:[%s5484_s0 + $0x4c] sm:$0x3]  ;;  %v1941_v24 = vld [vmem:[%s5484_s0 + $0x4e] sm:$0x3] }
   0x9   :  { %v1946_v25 = vld [vmem:[%s5484_s0 + $0x60] sm:$0x3]  ;;  %v1955_v30 = vld [vmem:[%s5484_s0 + $0x62] sm:$0x3]  ;;  %v1960_v31 = vld [vmem:[%s5484_s0 + $0x64] sm:$0x3] }
   0xa   :  { %v1965_v32 = vld [vmem:[%s5484_s0 + $0x66] sm:$0x3]  ;;  %v1970_v33 = vld [vmem:[%s5484_s0 + $0x68] sm:$0x3]  ;;  %v1979_v38 = vld [vmem:[%s5484_s0 + $0x6a] sm:$0x3] }
   0xb   :  { %v1984_v39 = vld [vmem:[%s5484_s0 + $0x6c] sm:$0x3]  ;;  %v1989_v40 = vld [vmem:[%s5484_s0 + $0x6e] sm:$0x3]  ;;  %v1994_v41 = vld [vmem:[%s5484_s0 + $0x80] sm:$0x3] }
   0xc   :  { %6018 = vst [vmem:[#allocation2_spill] sm:$0xff] %v1989_v40  ;;  %v2003_v46 = vld [vmem:[%s5484_s0 + $0x82] sm:$0x3]  ;;  %v2008_v47 = vld [vmem:[%s5484_s0 + $0x84] sm:$0x3]  ;;  %v6096_v40 = vrot.slane %v1835_v2, 1 }
   0xd   :  { %6019 = vst [vmem:[#allocation3_spill] sm:$0xff] %v1994_v41  ;;  %v2013_v48 = vld [vmem:[%s5484_s0 + $0x86] sm:$0x3]  ;;  %v2018_v49 = vld [vmem:[%s5484_s0 + $0x88] sm:$0x3]  ;;  %vm1557_vm4 = vcmask 1045509  }
   0xe   :  { %6020 = vst [vmem:[#allocation4_spill] sm:$0xff] %v2003_v46  ;;  %v2027_v54 = vld [vmem:[%s5484_s0 + $0x8a] sm:$0x3]  ;;  %v2032_v55 = vld [vmem:[%s5484_s0 + $0x8c] sm:$0x3]  ;;  %v2603_v41 = vmax.f32 %v1835_v2, %v6096_v40  ;;  %v6106_v40 = vrot.slane %v1860_v7, 1 }
   0xf   :  { %6021 = vst [vmem:[#allocation5_spill] sm:$0xff] %v2008_v47  ;;  %v2037_v56 = vld [vmem:[%s5484_s0 + $0x8e] sm:$0x3]  ;;  %v2042_v57 = vld [vmem:[%s5484_s0 + $0xa0] sm:$0x3]  ;;  %vm1560_vm5 = vcmask 1046534  }
  0x10   :  { %6022 = vst [vmem:[#allocation6_spill] sm:$0xff] %v2013_v48  ;;  %v2051_v62 = vld [vmem:[%s5484_s0 + $0xa2] sm:$0x3]  ;;  %v2056_v63 = vld [vmem:[%s5484_s0 + $0xa4] sm:$0x3]  ;;  %vm1563_vm6 = vcmask 1047559  }
  0x11   :  { %6023 = vst [vmem:[#allocation7_spill] sm:$0xff] %v2018_v49  ;;  %v2061_v58 = vld [vmem:[%s5484_s0 + $0xa6] sm:$0x3]  ;;  %v2066_v60 = vld [vmem:[%s5484_s0 + $0xa8] sm:$0x3]  ;;  %vm1791_vm7 = vcmask 523264  }
  0x12   :  { %6024 = vst [vmem:[#allocation8_spill] sm:$0xff] %v2027_v54  ;;  %v2075_v51 = vld [vmem:[%s5484_s0 + $0xaa] sm:$0x3]  ;;  %v2080_v50 = vld [vmem:[%s5484_s0 + $0xac] sm:$0x3] }
  0x13   :  { %6025 = vst [vmem:[#allocation9_spill] sm:$0xff] %v2032_v55  ;;  %v2085_v61 = vld [vmem:[%s5484_s0 + $0xae] sm:$0x3]  ;;  %v2090_v53 = vld [vmem:[%s5484_s0 + $0xc0] sm:$0x3] }
  0x14   :  { %6026 = vst [vmem:[#allocation10_spill] sm:$0xff] %v2037_v56  ;;  %v2099_v43 = vld [vmem:[%s5484_s0 + $0xc2] sm:$0x3]  ;;  %v2104_v42 = vld [vmem:[%s5484_s0 + $0xc4] sm:$0x3] }
  0x15   :  { %6027 = vst [vmem:[#allocation11_spill] sm:$0xff] %v2042_v57  ;;  %v2109_v52 = vld [vmem:[%s5484_s0 + $0xc6] sm:$0x3]  ;;  %v2114_v45 = vld [vmem:[%s5484_s0 + $0xc8] sm:$0x3] }
  0x16   :  { %6028 = vst [vmem:[#allocation12_spill] sm:$0xff] %v2051_v62  ;;  %v2123_v35 = vld [vmem:[%s5484_s0 + $0xca] sm:$0x3]  ;;  %v2128_v34 = vld [vmem:[%s5484_s0 + $0xcc] sm:$0x3] }
  0x17   :  { %6029 = vst [vmem:[#allocation13_spill] sm:$0xff] %v2056_v63  ;;  %v2133_v44 = vld [vmem:[%s5484_s0 + $0xce] sm:$0x3]  ;;  %v2138_v37 = vld [vmem:[%s5484_s0 + $0xe0] sm:$0x3] }
  0x18   :  { %6030 = vst [vmem:[#allocation14_spill] sm:$0xff] %v2061_v58  ;;  %v2147_v27 = vld [vmem:[%s5484_s0 + $0xe2] sm:$0x3]  ;;  %v2152_v26 = vld [vmem:[%s5484_s0 + $0xe4] sm:$0x3] }
  0x19   :  { %6031 = vst [vmem:[#allocation15_spill] sm:$0xff] %v2066_v60  ;;  %v2157_v36 = vld [vmem:[%s5484_s0 + $0xe6] sm:$0x3]  ;;  %v2162_v29 = vld [vmem:[%s5484_s0 + $0xe8] sm:$0x3] }
  0x1a   :  { %6032 = vst [vmem:[#allocation16_spill] sm:$0xff] %v2075_v51  ;;  %v2171_v48 = vld [vmem:[%s5484_s0 + $0xea] sm:$0x3]  ;;  %v2176_v47 = vld [vmem:[%s5484_s0 + $0xec] sm:$0x3] }
  0x1b   :  { %6033 = vst [vmem:[#allocation17_spill] sm:$0xff] %v2080_v50  ;;  %v2181_v28 = vld [vmem:[%s5484_s0 + $0xee] sm:$0x3]  ;;  %v2186_v21 = vld [vmem:[%s5484_s0 + $0x100] sm:$0x3] }
  0x1c   :  { %6034 = vst [vmem:[#allocation18_spill] sm:$0xff] %v2085_v61  ;;  %v2195_v55 = vld [vmem:[%s5484_s0 + $0x102] sm:$0x3]  ;;  %v2200_v54 = vld [vmem:[%s5484_s0 + $0x104] sm:$0x3] }
  0x1d   :  { %6035 = vst [vmem:[#allocation19_spill] sm:$0xff] %v2090_v53  ;;  %v2205_v49 = vld [vmem:[%s5484_s0 + $0x106] sm:$0x3]  ;;  %v2210_v57 = vld [vmem:[%s5484_s0 + $0x108] sm:$0x3] }
  0x1e   :  { %6036 = vst [vmem:[#allocation20_spill] sm:$0xff] %v2099_v43  ;;  %v2219_v63 = vld [vmem:[%s5484_s0 + $0x10a] sm:$0x3]  ;;  %v2224_v62 = vld [vmem:[%s5484_s0 + $0x10c] sm:$0x3] }
  0x1f   :  { %6037 = vst [vmem:[#allocation21_spill] sm:$0xff] %v2104_v42  ;;  %v2229_v56 = vld [vmem:[%s5484_s0 + $0x10e] sm:$0x3]  ;;  %v2234_v60 = vld [vmem:[%s5484_s0 + $0x120] sm:$0x3] }
  0x20   :  { %6038 = vst [vmem:[#allocation22_spill] sm:$0xff] %v2109_v52  ;;  %v2243_v50 = vld [vmem:[%s5484_s0 + $0x122] sm:$0x3]  ;;  %v2248_v51 = vld [vmem:[%s5484_s0 + $0x124] sm:$0x3] }
  0x21   :  { %6039 = vst [vmem:[#allocation23_spill] sm:$0xff] %v2114_v45  ;;  %v2253_v58 = vld [vmem:[%s5484_s0 + $0x126] sm:$0x3]  ;;  %v2258_v53 = vld [vmem:[%s5484_s0 + $0x128] sm:$0x3] }
  0x22   :  { %6040 = vst [vmem:[#allocation24_spill] sm:$0xff] %v2123_v35  ;;  %v2267_v42 = vld [vmem:[%s5484_s0 + $0x12a] sm:$0x3]  ;;  %v2272_v43 = vld [vmem:[%s5484_s0 + $0x12c] sm:$0x3] }
  0x23   :  { %6041 = vst [vmem:[#allocation25_spill] sm:$0xff] %v2128_v34  ;;  %v2277_v61 = vld [vmem:[%s5484_s0 + $0x12e] sm:$0x3]  ;;  %v2282_v45 = vld [vmem:[%s5484_s0 + $0x140] sm:$0x3] }
  0x24   :  { %6042 = vst [vmem:[#allocation26_spill] sm:$0xff] %v2133_v44  ;;  %v2291_v34 = vld [vmem:[%s5484_s0 + $0x142] sm:$0x3]  ;;  %v2296_v35 = vld [vmem:[%s5484_s0 + $0x144] sm:$0x3] }
  0x25   :  { %6043 = vst [vmem:[#allocation27_spill] sm:$0xff] %v2138_v37  ;;  %v2301_v52 = vld [vmem:[%s5484_s0 + $0x146] sm:$0x3]  ;;  %v2306_v37 = vld [vmem:[%s5484_s0 + $0x148] sm:$0x3] }
  0x26   :  { %6044 = vst [vmem:[#allocation28_spill] sm:$0xff] %v2147_v27  ;;  %v2320_v27 = vld [vmem:[%s5484_s0 + $0x14c] sm:$0x3]  ;;  %v2325_v44 = vld [vmem:[%s5484_s0 + $0x14e] sm:$0x3] }
  0x27   :  { %6045 = vst [vmem:[#allocation29_spill] sm:$0xff] %v2152_v26  ;;  %v2315_v26 = vld [vmem:[%s5484_s0 + $0x14a] sm:$0x3]  ;;  %v2564_v59 = vld [vmem:[%s5484_s0 + $0x1ec] sm:$0x3] }
  0x28   :  { %6046 = vst [vmem:[#allocation30_spill] sm:$0xff] %v2157_v36  ;;  %v2349_v36 = vld [vmem:[%s5484_s0 + $0x166] sm:$0x3]  ;;  %v2573_v46 = vld [vmem:[%s5484_s0 + $0x1ee] sm:$0x3] }
  0x29   :  { %6047 = vst [vmem:[#allocation31_spill] sm:$0xff] %v2162_v29  ;;  %v2330_v29 = vld [vmem:[%s5484_s0 + $0x160] sm:$0x3] }
  0x2a   :  { %6048 = vst [vmem:[#allocation32_spill] sm:$0xff] %v2171_v48  ;;  %v2344_v48 = vld [vmem:[%s5484_s0 + $0x164] sm:$0x3] }
  0x2b   :  { %6049 = vst [vmem:[#allocation33_spill] sm:$0xff] %v2176_v47  ;;  %v2339_v47 = vld [vmem:[%s5484_s0 + $0x162] sm:$0x3] }
  0x2c   :  { %6050 = vst [vmem:[#allocation34_spill] sm:$0xff] %v2181_v28  ;;  %v2373_v28 = vld [vmem:[%s5484_s0 + $0x16e] sm:$0x3] }
  0x2d   :  { %6051 = vst [vmem:[#allocation35_spill] sm:$0xff] %v2186_v21  ;;  %v2354_v21 = vld [vmem:[%s5484_s0 + $0x168] sm:$0x3] }
  0x2e   :  { %6052 = vst [vmem:[#allocation36_spill] sm:$0xff] %v2195_v55  ;;  %v2368_v55 = vld [vmem:[%s5484_s0 + $0x16c] sm:$0x3] }
  0x2f   :  { %6053 = vst [vmem:[#allocation37_spill] sm:$0xff] %v2200_v54  ;;  %v2363_v54 = vld [vmem:[%s5484_s0 + $0x16a] sm:$0x3] }
  0x30   :  { %6054 = vst [vmem:[#allocation38_spill] sm:$0xff] %v2205_v49  ;;  %v2397_v49 = vld [vmem:[%s5484_s0 + $0x186] sm:$0x3] }
  0x31   :  { %6055 = vst [vmem:[#allocation39_spill] sm:$0xff] %v2210_v57  ;;  %v2378_v57 = vld [vmem:[%s5484_s0 + $0x180] sm:$0x3] }
  0x32   :  { %6056 = vst [vmem:[#allocation40_spill] sm:$0xff] %v2219_v63  ;;  %v2392_v63 = vld [vmem:[%s5484_s0 + $0x184] sm:$0x3] }
  0x33   :  { %6057 = vst [vmem:[#allocation41_spill] sm:$0xff] %v2224_v62  ;;  %v2387_v62 = vld [vmem:[%s5484_s0 + $0x182] sm:$0x3] }
  0x34   :  { %6058 = vst [vmem:[#allocation42_spill] sm:$0xff] %v2229_v56  ;;  %v2421_v56 = vld [vmem:[%s5484_s0 + $0x18e] sm:$0x3] }
  0x35   :  { %6059 = vst [vmem:[#allocation43_spill] sm:$0xff] %v2234_v60  ;;  %v2402_v60 = vld [vmem:[%s5484_s0 + $0x188] sm:$0x3] }
  0x36   :  { %6060 = vst [vmem:[#allocation44_spill] sm:$0xff] %v2243_v50  ;;  %v2416_v50 = vld [vmem:[%s5484_s0 + $0x18c] sm:$0x3] }
  0x37   :  { %6061 = vst [vmem:[#allocation45_spill] sm:$0xff] %v2248_v51  ;;  %v2411_v51 = vld [vmem:[%s5484_s0 + $0x18a] sm:$0x3] }
  0x38   :  { %6062 = vst [vmem:[#allocation46_spill] sm:$0xff] %v2253_v58  ;;  %v2445_v58 = vld [vmem:[%s5484_s0 + $0x1a6] sm:$0x3] }
  0x39   :  { %6063 = vst [vmem:[#allocation47_spill] sm:$0xff] %v2258_v53  ;;  %v2426_v53 = vld [vmem:[%s5484_s0 + $0x1a0] sm:$0x3] }
  0x3a   :  { %6064 = vst [vmem:[#allocation48_spill] sm:$0xff] %v2267_v42  ;;  %v2440_v42 = vld [vmem:[%s5484_s0 + $0x1a4] sm:$0x3] }
  0x3b   :  { %6065 = vst [vmem:[#allocation49_spill] sm:$0xff] %v2272_v43  ;;  %v2435_v43 = vld [vmem:[%s5484_s0 + $0x1a2] sm:$0x3] }
  0x3c   :  { %6066 = vst [vmem:[#allocation50_spill] sm:$0xff] %v2277_v61  ;;  %v2469_v61 = vld [vmem:[%s5484_s0 + $0x1ae] sm:$0x3] }
  0x3d   :  { %6067 = vst [vmem:[#allocation51_spill] sm:$0xff] %v2282_v45  ;;  %v2450_v45 = vld [vmem:[%s5484_s0 + $0x1a8] sm:$0x3] }
  0x3e   :  { %6068 = vst [vmem:[#allocation52_spill] sm:$0xff] %v2291_v34  ;;  %v2464_v34 = vld [vmem:[%s5484_s0 + $0x1ac] sm:$0x3] }
  0x3f   :  { %6069 = vst [vmem:[#allocation53_spill] sm:$0xff] %v2296_v35  ;;  %v2459_v35 = vld [vmem:[%s5484_s0 + $0x1aa] sm:$0x3] }
  0x40   :  { %6070 = vst [vmem:[#allocation54_spill] sm:$0xff] %v2301_v52  ;;  %v2493_v52 = vld [vmem:[%s5484_s0 + $0x1c6] sm:$0x3] }
  0x41   :  { %6071 = vst [vmem:[#allocation55_spill] sm:$0xff] %v2306_v37  ;;  %v2474_v37 = vld [vmem:[%s5484_s0 + $0x1c0] sm:$0x3] }
  0x42   :  { %6072 = vst [vmem:[#allocation56_spill] sm:$0xff] %v2315_v26  ;;  %v2488_v26 = vld [vmem:[%s5484_s0 + $0x1c4] sm:$0x3] }
  0x43   :  { %6073 = vst [vmem:[#allocation57_spill] sm:$0xff] %v2320_v27  ;;  %v2483_v27 = vld [vmem:[%s5484_s0 + $0x1c2] sm:$0x3] }
  0x44   :  { %6074 = vst [vmem:[#allocation58_spill] sm:$0xff] %v2325_v44  ;;  %v2517_v44 = vld [vmem:[%s5484_s0 + $0x1ce] sm:$0x3] }
  0x45   :  { %6075 = vst [vmem:[#allocation59_spill] sm:$0xff] %v2330_v29  ;;  %v2498_v29 = vld [vmem:[%s5484_s0 + $0x1c8] sm:$0x3] }
  0x46   :  { %6076 = vst [vmem:[#allocation60_spill] sm:$0xff] %v2339_v47  ;;  %v2512_v47 = vld [vmem:[%s5484_s0 + $0x1cc] sm:$0x3] }
  0x47   :  { %6077 = vst [vmem:[#allocation61_spill] sm:$0xff] %v2344_v48  ;;  %v2507_v48 = vld [vmem:[%s5484_s0 + $0x1ca] sm:$0x3] }
  0x48   :  { %6078 = vst [vmem:[#allocation62_spill] sm:$0xff] %v2349_v36  ;;  %v2541_v36 = vld [vmem:[%s5484_s0 + $0x1e6] sm:$0x3] }
  0x49   :  { %6079 = vst [vmem:[#allocation63_spill] sm:$0xff] %v2354_v21  ;;  %v2522_v21 = vld [vmem:[%s5484_s0 + $0x1e0] sm:$0x3] }
  0x4a   :  { %6080 = vst [vmem:[#allocation64_spill] sm:$0xff] %v2363_v54  ;;  %v2536_v54 = vld [vmem:[%s5484_s0 + $0x1e4] sm:$0x3] }
  0x4b   :  { %6081 = vst [vmem:[#allocation65_spill] sm:$0xff] %v2368_v55  ;;  %v2531_v55 = vld [vmem:[%s5484_s0 + $0x1e2] sm:$0x3] }
  0x4c   :  { %6082 = vst [vmem:[#allocation66_spill] sm:$0xff] %v2373_v28 }
  0x4d   :  { %6083 = vst [vmem:[#allocation67_spill] sm:$0xff] %v2378_v57  ;;  %v2546_v57 = vld [vmem:[%s5484_s0 + $0x1e8] sm:$0x3] }
  0x4e   :  { %6084 = vst [vmem:[#allocation68_spill] sm:$0xff] %v2387_v62  ;;  %v6098_v62 = vrot.slane %v1840_v3, 1 }
  0x4f   :  { %6085 = vst [vmem:[#allocation69_spill] sm:$0xff] %v2392_v63  ;;  %v2555_v63 = vld [vmem:[%s5484_s0 + $0x1ea] sm:$0x3] }
  0x50   :  { %6086 = vst [vmem:[#allocation70_spill] sm:$0xff] %v2397_v49  ;;  %v6100_v49 = vrot.slane %v1845_v4, 1 }
  0x51   :  { %6087 = vst [vmem:[#allocation71_spill] sm:$0xff] %v2402_v60  ;;  %v6092_v60 = vrot.slane %v1825_v0, 1 }
  0x52   :  { %6088 = vst [vmem:[#allocation72_spill] sm:$0xff] %v2426_v53  ;;  %v6094_v53 = vrot.slane %v1830_v1, 1 }
  0x53   :  { %6089 = vst [vmem:[#allocation73_spill] sm:$0xff] %v2450_v45  ;;  %v2593_v28 = vmax.f32 %v1825_v0, %v6092_v60  ;;  %v2608_v45 = vmax.f32 %v1840_v3, %v6098_v62  ;;  %v2613_v0 = vmax.f32 %v1845_v4, %v6100_v49  ;;  %v6102_v60 = vrot.slane %v1850_v5, 1 }
  0x54   :  { %6090 = vst [vmem:[#allocation74_spill] sm:$0xff] %v2469_v61  ;;  %v2628_v3 = vmax.f32 %v1860_v7, %v6106_v40  ;;  %v6108_v62 = vrot.slane %v1865_v8, 1  ;;  %v6110_v49 = vrot.slane %v1870_v9, 1  ;;  %v6116_v40 = vrot.slane %v1885_v12, 1 }
  0x55   :  { %6091 = vst [vmem:[#allocation75_spill] sm:$0xff] %v2474_v37  ;;  %v2598_v37 = vmax.f32 %v1830_v1, %v6094_v53  ;;  %v2618_v1 = vmax.f32 %v1850_v5, %v6102_v60  ;;  %v6104_v53 = vrot.slane %v1855_v6, 1  ;;  %v6112_v60 = vrot.slane %v1875_v10, 1 }
  0x56   :  { %6093 = vst [vmem:[#allocation76_spill] sm:$0xff] %v2593_v28  ;;  %v2633_v4 = vmax.f32 %v1865_v8, %v6108_v62  ;;  %v2638_v5 = vmax.f32 %v1870_v9, %v6110_v49  ;;  %v2653_v8 = vmax.f32 %v1885_v12, %v6116_v40  ;;  %v6118_v62 = vrot.slane %v1890_v13, 1  ;;  %v3594_v28 = vld [vmem:[%s5484_s0 + $0x110] sm:$0x3] }
  0x57   :  { %6095 = vst [vmem:[#allocation77_spill] sm:$0xff] %v2598_v37  ;;  %v2623_v2 = vmax.f32 %v1855_v6, %v6104_v53  ;;  %v2643_v6 = vmax.f32 %v1875_v10, %v6112_v60  ;;  %v6114_v53 = vrot.slane %v1880_v11, 1  ;;  %v6120_v49 = vrot.slane %v1895_v14, 1  ;;  %v3560_v37 = vld [vmem:[%s5484_s0 + $0xf4] sm:$0x3] }
  0x58   :  { %6097 = vst [vmem:[#allocation78_spill] sm:$0xff] %v2603_v41  ;;  %v2658_v9 = vmax.f32 %v1890_v13, %v6118_v62  ;;  %v6122_v60 = vrot.slane %v1900_v15, 1  ;;  %v6126_v40 = vrot.slane %v1910_v17, 1  ;;  %v6128_v62 = vrot.slane %v1915_v18, 1  ;;  %v3555_v41 = vld [vmem:[%s5484_s0 + $0xf2] sm:$0x3] }
  0x59   :  { %6099 = vst [vmem:[#allocation79_spill] sm:$0xff] %v2608_v45  ;;  %v2648_v7 = vmax.f32 %v1880_v11, %v6114_v53  ;;  %v2663_v10 = vmax.f32 %v1895_v14, %v6120_v49  ;;  %v6124_v53 = vrot.slane %v1905_v16, 1  ;;  %v6130_v49 = vrot.slane %v1920_v19, 1  ;;  %v3589_v45 = vld [vmem:[%s5484_s0 + $0xfe] sm:$0x3] }
  0x5a   :  { %6101 = vst [vmem:[#allocation80_spill] sm:$0xff] %v2613_v0  ;;  %v2668_v11 = vmax.f32 %v1900_v15, %v6122_v60  ;;  %v2678_v13 = vmax.f32 %v1910_v17, %v6126_v40  ;;  %v2683_v14 = vmax.f32 %v1915_v18, %v6128_v62  ;;  %v6132_v60 = vrot.slane %v1925_v20, 1  ;;  %v3570_v0 = vld [vmem:[%s5484_s0 + $0xf8] sm:$0x3] }
  0x5b   :  { %6103 = vst [vmem:[#allocation81_spill] sm:$0xff] %v2618_v1  ;;  %v2673_v12 = vmax.f32 %v1905_v16, %v6124_v53  ;;  %v2688_v15 = vmax.f32 %v1920_v19, %v6130_v49  ;;  %v6134_v53 = vrot.slane %v1931_v22, 1  ;;  %v6136_v40 = vrot.slane %v1936_v23, 1  ;;  %v3536_v1 = vld [vmem:[%s5484_s0 + $0xdc] sm:$0x3] }
  0x5c   :  { %6105 = vst [vmem:[#allocation82_spill] sm:$0xff] %v2623_v2  ;;  %v2693_v16 = vmax.f32 %v1925_v20, %v6132_v60  ;;  %v6138_v62 = vrot.slane %v1941_v24, 1  ;;  %v6140_v49 = vrot.slane %v1946_v25, 1  ;;  %v6142_v60 = vrot.slane %v1955_v30, 1  ;;  %v3531_v2 = vld [vmem:[%s5484_s0 + $0xda] sm:$0x3] }
  0x5d   :  { %6107 = vst [vmem:[#allocation83_spill] sm:$0xff] %v2628_v3  ;;  %v2698_v17 = vmax.f32 %v1931_v22, %v6134_v53  ;;  %v2703_v18 = vmax.f32 %v1936_v23, %v6136_v40  ;;  %v6144_v53 = vrot.slane %v1960_v31, 1  ;;  %v6146_v40 = vrot.slane %v1965_v32, 1  ;;  %v3565_v3 = vld [vmem:[%s5484_s0 + $0xf6] sm:$0x3] }
  0x5e   :  { %6109 = vst [vmem:[#allocation84_spill] sm:$0xff] %v2633_v4  ;;  %v2708_v19 = vmax.f32 %v1941_v24, %v6138_v62  ;;  %v2713_v20 = vmax.f32 %v1946_v25, %v6140_v49  ;;  %v2718_v22 = vmax.f32 %v1955_v30, %v6142_v60  ;;  %v6148_v62 = vrot.slane %v1970_v33, 1  ;;  %v3546_v4 = vld [vmem:[%s5484_s0 + $0xf0] sm:$0x3] }
  0x5f   :  { %6111 = vst [vmem:[#allocation85_spill] sm:$0xff] %v2638_v5  ;;  %v2723_v23 = vmax.f32 %v1960_v31, %v6144_v53  ;;  %v2728_v24 = vmax.f32 %v1965_v32, %v6146_v40  ;;  %v6150_v49 = vrot.slane %v1979_v38, 1  ;;  %v6152_v60 = vrot.slane %v1984_v39, 1  ;;  %v6154_v53 = vld [vmem:[#allocation2_spill] sm:$0xff]  ;;  %v6157_v40 = vld [vmem:[#allocation3_spill] sm:$0xff] }
  0x60   :  { %6113 = vst [vmem:[#allocation86_spill] sm:$0xff] %v2643_v6  ;;  %v2733_v25 = vmax.f32 %v1970_v33, %v6148_v62  ;;  %v6155_v61 = vrot.slane %v6154_v53, 1  ;;  %v6160_v62 = vld [vmem:[#allocation4_spill] sm:$0xff] }
  0x61   :  { %6115 = vst [vmem:[#allocation87_spill] sm:$0xff] %v2648_v7  ;;  %v2738_v30 = vmax.f32 %v1979_v38, %v6150_v49  ;;  %v2743_v31 = vmax.f32 %v1984_v39, %v6152_v60  ;;  %v6163_v49 = vld [vmem:[#allocation5_spill] sm:$0xff]  ;;  %v6166_v60 = vld [vmem:[#allocation6_spill] sm:$0xff]  ;;  %v3507_v6 = vld [vmem:[%s5484_s0 + $0xd2] sm:$0x3] }
  0x62   :  { %6117 = vst [vmem:[#allocation88_spill] sm:$0xff] %v2653_v8  ;;  %v2748_v32 = vmax.f32 %v6154_v53, %v6155_v61  ;;  %v6169_v53 = vld [vmem:[#allocation7_spill] sm:$0xff]  ;;  %v3512_v5 = vld [vmem:[%s5484_s0 + $0xd4] sm:$0x3]  ;;  %v3522_v8 = vld [vmem:[%s5484_s0 + $0xd8] sm:$0x3] }
  0x63   :  { %6119 = vst [vmem:[#allocation89_spill] sm:$0xff] %v2658_v9  ;;  %v3488_v9 = vld [vmem:[%s5484_s0 + $0xbc] sm:$0x3]  ;;  %v3541_v7 = vld [vmem:[%s5484_s0 + $0xde] sm:$0x3] }
  0x64   :  { %6121 = vst [vmem:[#allocation90_spill] sm:$0xff] %v2663_v10  ;;  %v3483_v10 = vld [vmem:[%s5484_s0 + $0xba] sm:$0x3] }
  0x65   :  { %6123 = vst [vmem:[#allocation91_spill] sm:$0xff] %v2668_v11  ;;  %v3517_v11 = vld [vmem:[%s5484_s0 + $0xd6] sm:$0x3] }
  0x66   :  { %6125 = vst [vmem:[#allocation92_spill] sm:$0xff] %v2673_v12  ;;  %v3498_v12 = vld [vmem:[%s5484_s0 + $0xd0] sm:$0x3] }
  0x67   :  { %6127 = vst [vmem:[#allocation93_spill] sm:$0xff] %v2678_v13  ;;  %v3464_v13 = vld [vmem:[%s5484_s0 + $0xb4] sm:$0x3] }
  0x68   :  { %6129 = vst [vmem:[#allocation94_spill] sm:$0xff] %v2683_v14  ;;  %v3459_v14 = vld [vmem:[%s5484_s0 + $0xb2] sm:$0x3] }
  0x69   :  { %6131 = vst [vmem:[#allocation95_spill] sm:$0xff] %v2688_v15  ;;  %v3493_v15 = vld [vmem:[%s5484_s0 + $0xbe] sm:$0x3] }
  0x6a   :  { %6133 = vst [vmem:[#allocation96_spill] sm:$0xff] %v2693_v16  ;;  %v3474_v16 = vld [vmem:[%s5484_s0 + $0xb8] sm:$0x3] }
  0x6b   :  { %6135 = vst [vmem:[#allocation97_spill] sm:$0xff] %v2698_v17  ;;  %v3440_v17 = vld [vmem:[%s5484_s0 + $0x9c] sm:$0x3] }
  0x6c   :  { %6137 = vst [vmem:[#allocation98_spill] sm:$0xff] %v2703_v18  ;;  %v3435_v18 = vld [vmem:[%s5484_s0 + $0x9a] sm:$0x3] }
  0x6d   :  { %6139 = vst [vmem:[#allocation99_spill] sm:$0xff] %v2708_v19  ;;  %v3469_v19 = vld [vmem:[%s5484_s0 + $0xb6] sm:$0x3] }
  0x6e   :  { %6141 = vst [vmem:[#allocation100_spill] sm:$0xff] %v2713_v20  ;;  %v3450_v20 = vld [vmem:[%s5484_s0 + $0xb0] sm:$0x3] }
  0x6f   :  { %6143 = vst [vmem:[#allocation101_spill] sm:$0xff] %v2718_v22  ;;  %v3416_v22 = vld [vmem:[%s5484_s0 + $0x94] sm:$0x3] }
  0x70   :  { %6145 = vst [vmem:[#allocation102_spill] sm:$0xff] %v2723_v23  ;;  %v3411_v23 = vld [vmem:[%s5484_s0 + $0x92] sm:$0x3] }
  0x71   :  { %6147 = vst [vmem:[#allocation103_spill] sm:$0xff] %v2728_v24  ;;  %v6158_v24 = vrot.slane %v6157_v40, 1 }
  0x72   :  { %6149 = vst [vmem:[#allocation104_spill] sm:$0xff] %v2733_v25  ;;  %v6161_v25 = vrot.slane %v6160_v62, 1 }
  0x73   :  { %6151 = vst [vmem:[#allocation105_spill] sm:$0xff] %v2738_v30  ;;  %v2753_v33 = vmax.f32 %v6157_v40, %v6158_v24  ;;  %v6164_v30 = vrot.slane %v6163_v49, 1  ;;  %v6172_v40 = vld [vmem:[#allocation8_spill] sm:$0xff] }
  0x74   :  { %6153 = vst [vmem:[#allocation106_spill] sm:$0xff] %v2743_v31  ;;  %v2758_v38 = vmax.f32 %v6160_v62, %v6161_v25  ;;  %v6167_v31 = vrot.slane %v6166_v60, 1  ;;  %v6175_v62 = vld [vmem:[#allocation9_spill] sm:$0xff] }
  0x75   :  { %6156 = vst [vmem:[#allocation2_spill] sm:$0xff] %v2748_v32  ;;  %v2763_v39 = vmax.f32 %v6163_v49, %v6164_v30  ;;  %v6170_v32 = vrot.slane %v6169_v53, 1  ;;  %v6178_v49 = vld [vmem:[#allocation10_spill] sm:$0xff] }
  0x76   :  { %6159 = vst [vmem:[#allocation3_spill] sm:$0xff] %v2753_v33  ;;  %v2768_v61 = vmax.f32 %v6166_v60, %v6167_v31  ;;  %v6173_v33 = vrot.slane %v6172_v40, 1  ;;  %v6181_v60 = vld [vmem:[#allocation11_spill] sm:$0xff] }
  0x77   :  { %6162 = vst [vmem:[#allocation4_spill] sm:$0xff] %v2758_v38  ;;  %v2773_v24 = vmax.f32 %v6169_v53, %v6170_v32  ;;  %v6176_v38 = vrot.slane %v6175_v62, 1  ;;  %v6184_v53 = vld [vmem:[#allocation12_spill] sm:$0xff] }
  0x78   :  { %6165 = vst [vmem:[#allocation5_spill] sm:$0xff] %v2763_v39  ;;  %v2778_v25 = vmax.f32 %v6172_v40, %v6173_v33  ;;  %v6179_v39 = vrot.slane %v6178_v49, 1  ;;  %v6187_v40 = vld [vmem:[#allocation13_spill] sm:$0xff] }
  0x79   :  { %6168 = vst [vmem:[#allocation6_spill] sm:$0xff] %v2768_v61  ;;  %v2783_v30 = vmax.f32 %v6175_v62, %v6176_v38  ;;  %v6182_v61 = vrot.slane %v6181_v60, 1  ;;  %v6190_v62 = vld [vmem:[#allocation14_spill] sm:$0xff] }
  0x7a   :  { %6171 = vst [vmem:[#allocation7_spill] sm:$0xff] %v2773_v24  ;;  %v2788_v31 = vmax.f32 %v6178_v49, %v6179_v39  ;;  %v6185_v24 = vrot.slane %v6184_v53, 1  ;;  %v6193_v49 = vld [vmem:[#allocation15_spill] sm:$0xff] }
  0x7b   :  { %6174 = vst [vmem:[#allocation8_spill] sm:$0xff] %v2778_v25  ;;  %v2793_v32 = vmax.f32 %v6181_v60, %v6182_v61  ;;  %v6188_v25 = vrot.slane %v6187_v40, 1  ;;  %v6196_v60 = vld [vmem:[#allocation16_spill] sm:$0xff] }
  0x7c   :  { %6177 = vst [vmem:[#allocation9_spill] sm:$0xff] %v2783_v30  ;;  %v2798_v33 = vmax.f32 %v6184_v53, %v6185_v24  ;;  %v6191_v30 = vrot.slane %v6190_v62, 1  ;;  %v6199_v53 = vld [vmem:[#allocation17_spill] sm:$0xff] }
  0x7d   :  { %6180 = vst [vmem:[#allocation10_spill] sm:$0xff] %v2788_v31  ;;  %v2803_v38 = vmax.f32 %v6187_v40, %v6188_v25  ;;  %v6194_v31 = vrot.slane %v6193_v49, 1  ;;  %v6202_v40 = vld [vmem:[#allocation18_spill] sm:$0xff] }
  0x7e   :  { %6183 = vst [vmem:[#allocation11_spill] sm:$0xff] %v2793_v32  ;;  %v2808_v39 = vmax.f32 %v6190_v62, %v6191_v30  ;;  %v6197_v32 = vrot.slane %v6196_v60, 1  ;;  %v6205_v62 = vld [vmem:[#allocation19_spill] sm:$0xff] }
  0x7f   :  { %6186 = vst [vmem:[#allocation12_spill] sm:$0xff] %v2798_v33  ;;  %v2813_v61 = vmax.f32 %v6193_v49, %v6194_v31  ;;  %v6200_v33 = vrot.slane %v6199_v53, 1  ;;  %v6208_v49 = vld [vmem:[#allocation20_spill] sm:$0xff] }
  0x80   :  { %6189 = vst [vmem:[#allocation13_spill] sm:$0xff] %v2803_v38  ;;  %v2818_v24 = vmax.f32 %v6196_v60, %v6197_v32  ;;  %v6203_v38 = vrot.slane %v6202_v40, 1  ;;  %v6211_v60 = vld [vmem:[#allocation21_spill] sm:$0xff] }
  0x81   :  { %6192 = vst [vmem:[#allocation14_spill] sm:$0xff] %v2808_v39  ;;  %v2823_v25 = vmax.f32 %v6199_v53, %v6200_v33  ;;  %v6206_v39 = vrot.slane %v6205_v62, 1  ;;  %v6214_v53 = vld [vmem:[#allocation22_spill] sm:$0xff] }
  0x82   :  { %6195 = vst [vmem:[#allocation15_spill] sm:$0xff] %v2813_v61  ;;  %v2828_v30 = vmax.f32 %v6202_v40, %v6203_v38  ;;  %v6209_v61 = vrot.slane %v6208_v49, 1  ;;  %v6217_v40 = vld [vmem:[#allocation23_spill] sm:$0xff] }
  0x83   :  { %6198 = vst [vmem:[#allocation16_spill] sm:$0xff] %v2818_v24  ;;  %v2833_v31 = vmax.f32 %v6205_v62, %v6206_v39  ;;  %v6212_v24 = vrot.slane %v6211_v60, 1  ;;  %v6220_v62 = vld [vmem:[#allocation24_spill] sm:$0xff] }
  0x84   :  { %6201 = vst [vmem:[#allocation17_spill] sm:$0xff] %v2823_v25  ;;  %v2838_v32 = vmax.f32 %v6208_v49, %v6209_v61  ;;  %v6215_v25 = vrot.slane %v6214_v53, 1  ;;  %v6223_v49 = vld [vmem:[#allocation25_spill] sm:$0xff] }
  0x85   :  { %6204 = vst [vmem:[#allocation18_spill] sm:$0xff] %v2828_v30  ;;  %v2843_v33 = vmax.f32 %v6211_v60, %v6212_v24  ;;  %v6218_v30 = vrot.slane %v6217_v40, 1  ;;  %v6226_v60 = vld [vmem:[#allocation26_spill] sm:$0xff] }
  0x86   :  { %6207 = vst [vmem:[#allocation19_spill] sm:$0xff] %v2833_v31  ;;  %v2848_v38 = vmax.f32 %v6214_v53, %v6215_v25  ;;  %v6221_v31 = vrot.slane %v6220_v62, 1  ;;  %v6229_v53 = vld [vmem:[#allocation27_spill] sm:$0xff] }
  0x87   :  { %6210 = vst [vmem:[#allocation20_spill] sm:$0xff] %v2838_v32  ;;  %v2853_v39 = vmax.f32 %v6217_v40, %v6218_v30  ;;  %v6224_v32 = vrot.slane %v6223_v49, 1  ;;  %v6232_v40 = vld [vmem:[#allocation28_spill] sm:$0xff] }
  0x88   :  { %6213 = vst [vmem:[#allocation21_spill] sm:$0xff] %v2843_v33  ;;  %v2858_v61 = vmax.f32 %v6220_v62, %v6221_v31  ;;  %v6227_v33 = vrot.slane %v6226_v60, 1  ;;  %v6235_v62 = vld [vmem:[#allocation29_spill] sm:$0xff] }
  0x89   :  { %6216 = vst [vmem:[#allocation22_spill] sm:$0xff] %v2848_v38  ;;  %v2863_v24 = vmax.f32 %v6223_v49, %v6224_v32  ;;  %v6230_v38 = vrot.slane %v6229_v53, 1  ;;  %v6238_v49 = vld [vmem:[#allocation30_spill] sm:$0xff] }
  0x8a   :  { %6219 = vst [vmem:[#allocation23_spill] sm:$0xff] %v2853_v39  ;;  %v2868_v25 = vmax.f32 %v6226_v60, %v6227_v33  ;;  %v6233_v39 = vrot.slane %v6232_v40, 1  ;;  %v6241_v60 = vld [vmem:[#allocation31_spill] sm:$0xff] }
  0x8b   :  { %6222 = vst [vmem:[#allocation24_spill] sm:$0xff] %v2858_v61  ;;  %v2873_v30 = vmax.f32 %v6229_v53, %v6230_v38  ;;  %v6236_v61 = vrot.slane %v6235_v62, 1  ;;  %v6244_v53 = vld [vmem:[#allocation32_spill] sm:$0xff] }
  0x8c   :  { %6225 = vst [vmem:[#allocation25_spill] sm:$0xff] %v2863_v24  ;;  %v2878_v31 = vmax.f32 %v6232_v40, %v6233_v39  ;;  %v6239_v24 = vrot.slane %v6238_v49, 1  ;;  %v6247_v40 = vld [vmem:[#allocation33_spill] sm:$0xff] }
  0x8d   :  { %6228 = vst [vmem:[#allocation26_spill] sm:$0xff] %v2868_v25  ;;  %v2883_v32 = vmax.f32 %v6235_v62, %v6236_v61  ;;  %v6242_v25 = vrot.slane %v6241_v60, 1  ;;  %v6250_v62 = vld [vmem:[#allocation34_spill] sm:$0xff] }
  0x8e   :  { %6231 = vst [vmem:[#allocation27_spill] sm:$0xff] %v2873_v30  ;;  %v2888_v33 = vmax.f32 %v6238_v49, %v6239_v24  ;;  %v6245_v30 = vrot.slane %v6244_v53, 1  ;;  %v6253_v49 = vld [vmem:[#allocation35_spill] sm:$0xff] }
  0x8f   :  { %6234 = vst [vmem:[#allocation28_spill] sm:$0xff] %v2878_v31  ;;  %v2893_v38 = vmax.f32 %v6241_v60, %v6242_v25  ;;  %v6248_v31 = vrot.slane %v6247_v40, 1  ;;  %v6256_v60 = vld [vmem:[#allocation36_spill] sm:$0xff] }
  0x90   :  { %6237 = vst [vmem:[#allocation29_spill] sm:$0xff] %v2883_v32  ;;  %v2898_v39 = vmax.f32 %v6244_v53, %v6245_v30  ;;  %v6251_v32 = vrot.slane %v6250_v62, 1  ;;  %v6259_v53 = vld [vmem:[#allocation37_spill] sm:$0xff] }
  0x91   :  { %6240 = vst [vmem:[#allocation30_spill] sm:$0xff] %v2888_v33  ;;  %v2903_v61 = vmax.f32 %v6247_v40, %v6248_v31  ;;  %v6254_v33 = vrot.slane %v6253_v49, 1  ;;  %v6262_v40 = vld [vmem:[#allocation38_spill] sm:$0xff] }
  0x92   :  { %6243 = vst [vmem:[#allocation31_spill] sm:$0xff] %v2893_v38  ;;  %v2908_v24 = vmax.f32 %v6250_v62, %v6251_v32  ;;  %v6257_v38 = vrot.slane %v6256_v60, 1  ;;  %v6265_v62 = vld [vmem:[#allocation39_spill] sm:$0xff] }
  0x93   :  { %6246 = vst [vmem:[#allocation32_spill] sm:$0xff] %v2898_v39  ;;  %v2913_v25 = vmax.f32 %v6253_v49, %v6254_v33  ;;  %v6260_v39 = vrot.slane %v6259_v53, 1  ;;  %v6268_v49 = vld [vmem:[#allocation40_spill] sm:$0xff] }
  0x94   :  { %6249 = vst [vmem:[#allocation33_spill] sm:$0xff] %v2903_v61  ;;  %v2918_v30 = vmax.f32 %v6256_v60, %v6257_v38  ;;  %v6263_v61 = vrot.slane %v6262_v40, 1  ;;  %v6271_v60 = vld [vmem:[#allocation41_spill] sm:$0xff] }
  0x95   :  { %6252 = vst [vmem:[#allocation34_spill] sm:$0xff] %v2908_v24  ;;  %v2923_v31 = vmax.f32 %v6259_v53, %v6260_v39  ;;  %v6266_v24 = vrot.slane %v6265_v62, 1  ;;  %v6274_v53 = vld [vmem:[#allocation42_spill] sm:$0xff] }
  0x96   :  { %6255 = vst [vmem:[#allocation35_spill] sm:$0xff] %v2913_v25  ;;  %v2928_v32 = vmax.f32 %v6262_v40, %v6263_v61  ;;  %v6269_v25 = vrot.slane %v6268_v49, 1  ;;  %v6277_v40 = vld [vmem:[#allocation43_spill] sm:$0xff] }
  0x97   :  { %6258 = vst [vmem:[#allocation36_spill] sm:$0xff] %v2918_v30  ;;  %v2933_v33 = vmax.f32 %v6265_v62, %v6266_v24  ;;  %v6272_v30 = vrot.slane %v6271_v60, 1  ;;  %v6280_v62 = vld [vmem:[#allocation44_spill] sm:$0xff] }
  0x98   :  { %6261 = vst [vmem:[#allocation37_spill] sm:$0xff] %v2923_v31  ;;  %v2938_v38 = vmax.f32 %v6268_v49, %v6269_v25  ;;  %v6275_v31 = vrot.slane %v6274_v53, 1  ;;  %v6283_v49 = vld [vmem:[#allocation45_spill] sm:$0xff] }
  0x99   :  { %6264 = vst [vmem:[#allocation38_spill] sm:$0xff] %v2928_v32  ;;  %v2943_v39 = vmax.f32 %v6271_v60, %v6272_v30  ;;  %v6278_v32 = vrot.slane %v6277_v40, 1  ;;  %v6286_v60 = vld [vmem:[#allocation46_spill] sm:$0xff] }
  0x9a   :  { %6267 = vst [vmem:[#allocation39_spill] sm:$0xff] %v2933_v33  ;;  %v2948_v61 = vmax.f32 %v6274_v53, %v6275_v31  ;;  %v6281_v33 = vrot.slane %v6280_v62, 1  ;;  %v6289_v53 = vld [vmem:[#allocation47_spill] sm:$0xff] }
  0x9b   :  { %6270 = vst [vmem:[#allocation40_spill] sm:$0xff] %v2938_v38  ;;  %v2953_v24 = vmax.f32 %v6277_v40, %v6278_v32  ;;  %v6284_v38 = vrot.slane %v6283_v49, 1  ;;  %v6292_v40 = vld [vmem:[#allocation48_spill] sm:$0xff] }
  0x9c   :  { %6273 = vst [vmem:[#allocation41_spill] sm:$0xff] %v2943_v39  ;;  %v2958_v25 = vmax.f32 %v6280_v62, %v6281_v33  ;;  %v6287_v39 = vrot.slane %v6286_v60, 1  ;;  %v6295_v62 = vld [vmem:[#allocation49_spill] sm:$0xff] }
  0x9d   :  { %6276 = vst [vmem:[#allocation42_spill] sm:$0xff] %v2948_v61  ;;  %v2963_v30 = vmax.f32 %v6283_v49, %v6284_v38  ;;  %v6290_v61 = vrot.slane %v6289_v53, 1  ;;  %v6298_v49 = vld [vmem:[#allocation50_spill] sm:$0xff] }
  0x9e   :  { %6279 = vst [vmem:[#allocation43_spill] sm:$0xff] %v2953_v24  ;;  %v2968_v31 = vmax.f32 %v6286_v60, %v6287_v39  ;;  %v6293_v24 = vrot.slane %v6292_v40, 1  ;;  %v6301_v60 = vld [vmem:[#allocation51_spill] sm:$0xff] }
  0x9f   :  { %6282 = vst [vmem:[#allocation44_spill] sm:$0xff] %v2958_v25  ;;  %v2973_v32 = vmax.f32 %v6289_v53, %v6290_v61  ;;  %v6296_v25 = vrot.slane %v6295_v62, 1  ;;  %v6304_v53 = vld [vmem:[#allocation52_spill] sm:$0xff] }
  0xa0   :  { %6285 = vst [vmem:[#allocation45_spill] sm:$0xff] %v2963_v30  ;;  %v2978_v33 = vmax.f32 %v6292_v40, %v6293_v24  ;;  %v6299_v30 = vrot.slane %v6298_v49, 1  ;;  %v6307_v40 = vld [vmem:[#allocation53_spill] sm:$0xff] }
  0xa1   :  { %6288 = vst [vmem:[#allocation46_spill] sm:$0xff] %v2968_v31  ;;  %v2983_v38 = vmax.f32 %v6295_v62, %v6296_v25  ;;  %v6302_v31 = vrot.slane %v6301_v60, 1  ;;  %v6310_v62 = vld [vmem:[#allocation54_spill] sm:$0xff] }
  0xa2   :  { %6291 = vst [vmem:[#allocation47_spill] sm:$0xff] %v2973_v32  ;;  %v2988_v39 = vmax.f32 %v6298_v49, %v6299_v30  ;;  %v6305_v32 = vrot.slane %v6304_v53, 1  ;;  %v6313_v49 = vld [vmem:[#allocation55_spill] sm:$0xff] }
  0xa3   :  { %6294 = vst [vmem:[#allocation48_spill] sm:$0xff] %v2978_v33  ;;  %v2993_v61 = vmax.f32 %v6301_v60, %v6302_v31  ;;  %v6308_v33 = vrot.slane %v6307_v40, 1  ;;  %v6316_v60 = vld [vmem:[#allocation56_spill] sm:$0xff] }
  0xa4   :  { %6297 = vst [vmem:[#allocation49_spill] sm:$0xff] %v2983_v38  ;;  %v2998_v24 = vmax.f32 %v6304_v53, %v6305_v32  ;;  %v6311_v38 = vrot.slane %v6310_v62, 1  ;;  %v6319_v53 = vld [vmem:[#allocation57_spill] sm:$0xff] }
  0xa5   :  { %6300 = vst [vmem:[#allocation50_spill] sm:$0xff] %v2988_v39  ;;  %v3003_v25 = vmax.f32 %v6307_v40, %v6308_v33  ;;  %v6314_v39 = vrot.slane %v6313_v49, 1  ;;  %v6322_v40 = vld [vmem:[#allocation58_spill] sm:$0xff] }
  0xa6   :  { %6303 = vst [vmem:[#allocation51_spill] sm:$0xff] %v2993_v61  ;;  %v3008_v30 = vmax.f32 %v6310_v62, %v6311_v38  ;;  %v6317_v61 = vrot.slane %v6316_v60, 1  ;;  %v6325_v62 = vld [vmem:[#allocation59_spill] sm:$0xff] }
  0xa7   :  { %6306 = vst [vmem:[#allocation52_spill] sm:$0xff] %v2998_v24  ;;  %v3013_v31 = vmax.f32 %v6313_v49, %v6314_v39  ;;  %v6320_v24 = vrot.slane %v6319_v53, 1  ;;  %v6328_v49 = vld [vmem:[#allocation60_spill] sm:$0xff] }
  0xa8   :  { %6309 = vst [vmem:[#allocation53_spill] sm:$0xff] %v3003_v25  ;;  %v3018_v32 = vmax.f32 %v6316_v60, %v6317_v61  ;;  %v6323_v25 = vrot.slane %v6322_v40, 1  ;;  %v6331_v60 = vld [vmem:[#allocation61_spill] sm:$0xff] }
  0xa9   :  { %6312 = vst [vmem:[#allocation54_spill] sm:$0xff] %v3008_v30  ;;  %v3023_v33 = vmax.f32 %v6319_v53, %v6320_v24  ;;  %v6326_v30 = vrot.slane %v6325_v62, 1  ;;  %v6334_v53 = vld [vmem:[#allocation62_spill] sm:$0xff] }
  0xaa   :  { %6315 = vst [vmem:[#allocation55_spill] sm:$0xff] %v3013_v31  ;;  %v3028_v38 = vmax.f32 %v6322_v40, %v6323_v25  ;;  %v6329_v31 = vrot.slane %v6328_v49, 1  ;;  %v6337_v40 = vld [vmem:[#allocation63_spill] sm:$0xff] }
  0xab   :  { %6318 = vst [vmem:[#allocation56_spill] sm:$0xff] %v3018_v32  ;;  %v3033_v39 = vmax.f32 %v6325_v62, %v6326_v30  ;;  %v6332_v32 = vrot.slane %v6331_v60, 1  ;;  %v6340_v62 = vld [vmem:[#allocation64_spill] sm:$0xff] }
  0xac   :  { %6321 = vst [vmem:[#allocation57_spill] sm:$0xff] %v3023_v33  ;;  %v3038_v61 = vmax.f32 %v6328_v49, %v6329_v31  ;;  %v6335_v33 = vrot.slane %v6334_v53, 1  ;;  %v6343_v49 = vld [vmem:[#allocation65_spill] sm:$0xff] }
  0xad   :  { %6324 = vst [vmem:[#allocation58_spill] sm:$0xff] %v3028_v38  ;;  %v3043_v24 = vmax.f32 %v6331_v60, %v6332_v32  ;;  %v6338_v38 = vrot.slane %v6337_v40, 1  ;;  %v6346_v60 = vld [vmem:[#allocation66_spill] sm:$0xff] }
  0xae   :  { %6327 = vst [vmem:[#allocation59_spill] sm:$0xff] %v3033_v39  ;;  %v3048_v25 = vmax.f32 %v6334_v53, %v6335_v33  ;;  %v6341_v39 = vrot.slane %v6340_v62, 1  ;;  %v6349_v53 = vld [vmem:[#allocation67_spill] sm:$0xff] }
  0xaf   :  { %6330 = vst [vmem:[#allocation60_spill] sm:$0xff] %v3038_v61  ;;  %v3053_v30 = vmax.f32 %v6337_v40, %v6338_v38  ;;  %v6344_v61 = vrot.slane %v6343_v49, 1  ;;  %v6352_v40 = vld [vmem:[#allocation68_spill] sm:$0xff] }
  0xb0   :  { %6333 = vst [vmem:[#allocation61_spill] sm:$0xff] %v3043_v24  ;;  %v3058_v31 = vmax.f32 %v6340_v62, %v6341_v39  ;;  %v6347_v24 = vrot.slane %v6346_v60, 1  ;;  %v6355_v62 = vld [vmem:[#allocation69_spill] sm:$0xff] }
  0xb1   :  { %6336 = vst [vmem:[#allocation62_spill] sm:$0xff] %v3048_v25  ;;  %v3063_v32 = vmax.f32 %v6343_v49, %v6344_v61  ;;  %v6350_v25 = vrot.slane %v6349_v53, 1  ;;  %v6358_v49 = vld [vmem:[#allocation70_spill] sm:$0xff] }
  0xb2   :  { %6339 = vst [vmem:[#allocation63_spill] sm:$0xff] %v3053_v30  ;;  %v3068_v33 = vmax.f32 %v6346_v60, %v6347_v24  ;;  %v6353_v30 = vrot.slane %v6352_v40, 1  ;;  %v6361_v60 = vld [vmem:[#allocation71_spill] sm:$0xff] }
  0xb3   :  { %6342 = vst [vmem:[#allocation64_spill] sm:$0xff] %v3058_v31  ;;  %v3073_v38 = vmax.f32 %v6349_v53, %v6350_v25  ;;  %v6356_v31 = vrot.slane %v6355_v62, 1  ;;  %v6364_v53 = vrot.slane %v2411_v51, 1 }
  0xb4   :  { %6345 = vst [vmem:[#allocation65_spill] sm:$0xff] %v3063_v32  ;;  %v3078_v39 = vmax.f32 %v6352_v40, %v6353_v30  ;;  %v6359_v32 = vrot.slane %v6358_v49, 1  ;;  %v6366_v40 = vrot.slane %v2416_v50, 1 }
  0xb5   :  { %6348 = vst [vmem:[#allocation66_spill] sm:$0xff] %v3068_v33  ;;  %v3083_v61 = vmax.f32 %v6355_v62, %v6356_v31  ;;  %v6362_v33 = vrot.slane %v6361_v60, 1  ;;  %v3098_v30 = vmax.f32 %v2411_v51, %v6364_v53  ;;  %v6368_v62 = vrot.slane %v2421_v56, 1  ;;  %v3118_v51 = vld [vmem:[%s5484_s0 + $0x10] sm:$0x3] }
  0xb6   :  { %6351 = vst [vmem:[#allocation67_spill] sm:$0xff] %v3073_v38  ;;  %v3088_v24 = vmax.f32 %v6358_v49, %v6359_v32  ;;  %v3103_v31 = vmax.f32 %v2416_v50, %v6366_v40  ;;  %v6370_v49 = vld [vmem:[#allocation72_spill] sm:$0xff]  ;;  %v6375_v53 = vrot.slane %v2440_v42, 1  ;;  %v6377_v40 = vrot.slane %v2445_v58, 1  ;;  %v3445_v38 = vld [vmem:[%s5484_s0 + $0x9e] sm:$0x3] }
  0xb7   :  { %6354 = vst [vmem:[#allocation68_spill] sm:$0xff] %v3078_v39  ;;  %v3093_v25 = vmax.f32 %v6361_v60, %v6362_v33  ;;  %v3108_v32 = vmax.f32 %v2421_v56, %v6368_v62  ;;  %v6373_v60 = vrot.slane %v2435_v43, 1  ;;  %v6379_v62 = vld [vmem:[#allocation73_spill] sm:$0xff] }
  0xb8   :  { %6357 = vst [vmem:[#allocation69_spill] sm:$0xff] %v3083_v61  ;;  %v3128_v56 = vmax.f32 %v2440_v42, %v6375_v53  ;;  %v3148_v42 = vld [vmem:[%s5484_s0 + $0x14] sm:$0x3]  ;;  %v6382_v53 = vrot.slane %v2459_v35, 1  ;;  %v3392_v61 = vld [vmem:[%s5484_s0 + $0x7c] sm:$0x3] }
  0xb9   :  { %6360 = vst [vmem:[#allocation70_spill] sm:$0xff] %v3088_v24  ;;  %v6371_v24 = vrot.slane %v6370_v49, 1  ;;  %v3123_v50 = vmax.f32 %v2435_v43, %v6373_v60  ;;  %v3143_v43 = vld [vmem:[%s5484_s0 + $0x12] sm:$0x3]  ;;  %v3158_v60 = vld [vmem:[%s5484_s0 + $0x18] sm:$0x3] }
  0xba   :  { %6363 = vst [vmem:[#allocation71_spill] sm:$0xff] %v3093_v25  ;;  %v3387_v25 = vld [vmem:[%s5484_s0 + $0x7a] sm:$0x3]  ;;  %v3426_v39 = vld [vmem:[%s5484_s0 + $0x98] sm:$0x3] }
  0xbb   :  { %6365 = vst [vmem:[#allocation107_spill] sm:$0xff] %v3098_v30  ;;  %v3113_v33 = vmax.f32 %v6370_v49, %v6371_v24  ;;  %v3133_v24 = vmax.f32 %v2445_v58, %v6377_v40  ;;  %v6380_v49 = vrot.slane %v6379_v62, 1  ;;  %v3153_v58 = vld [vmem:[%s5484_s0 + $0x16] sm:$0x3]  ;;  %v3163_v40 = vmax.f32 %v2459_v35, %v6382_v53  ;;  %v3183_v35 = vld [vmem:[%s5484_s0 + $0x1a] sm:$0x3] }
  0xbc   :  { %6367 = vst [vmem:[#allocation108_spill] sm:$0xff] %v3103_v31  ;;  %v6394_v53 = vrot.slane %v2488_v26, 1  ;;  %v3421_v30 = vld [vmem:[%s5484_s0 + $0x96] sm:$0x3] }
  0xbd   :  { %6369 = vst [vmem:[#allocation109_spill] sm:$0xff] %v3108_v32 }
  0xbe   :  { %6372 = vst [vmem:[#allocation72_spill] sm:$0xff] %v3113_v33  ;;  %v3138_v33 = vmax.f32 %v6379_v62, %v6380_v49  ;;  %v6384_v62 = vrot.slane %v2464_v34, 1 }
  0xbf   :  { %6374 = vst [vmem:[#allocation110_spill] sm:$0xff] %v3123_v50  ;;  %v6389_v50 = vld [vmem:[#allocation75_spill] sm:$0xff] }
  0xc0   :  { %6376 = vst [vmem:[#allocation111_spill] sm:$0xff] %v3128_v56  ;;  %v3168_v49 = vmax.f32 %v2464_v34, %v6384_v62  ;;  %v6390_v32 = vrot.slane %v6389_v50, 1  ;;  %v3188_v34 = vld [vmem:[%s5484_s0 + $0x1c] sm:$0x3]  ;;  %v3208_v62 = vmax.f32 %v2488_v26, %v6394_v53  ;;  %v3228_v26 = vld [vmem:[%s5484_s0 + $0x34] sm:$0x3] }
  0xc1   :  { %6378 = vst [vmem:[#allocation112_spill] sm:$0xff] %v3133_v24 }
  0xc2   :  { %6381 = vst [vmem:[#allocation73_spill] sm:$0xff] %v3138_v33  ;;  %v6386_v33 = vld [vmem:[#allocation74_spill] sm:$0xff]  ;;  %v3178_v31 = vmax.f32 %v6389_v50, %v6390_v32  ;;  %v3198_v32 = vld [vmem:[%s5484_s0 + $0x30] sm:$0x3]  ;;  %v6392_v50 = vrot.slane %v2483_v27, 1 }
  0xc3   :  { %6383 = vst [vmem:[#allocation113_spill] sm:$0xff] %v3163_v40  ;;  %v6387_v24 = vrot.slane %v6386_v33, 1 }
  0xc4   :  { %6385 = vst [vmem:[#allocation114_spill] sm:$0xff] %v3168_v49  ;;  %v6398_v49 = vrot.slane %v2498_v29, 1 }
  0xc5   :  { %v3173_v56 = vmax.f32 %v6386_v33, %v6387_v24  ;;  %6391 = vst [vmem:[#allocation75_spill] sm:$0xff] %v3178_v31  ;;  %v3193_v33 = vld [vmem:[%s5484_s0 + $0x1e] sm:$0x3]  ;;  %v3203_v24 = vmax.f32 %v2483_v27, %v6392_v50  ;;  %v6396_v31 = vrot.slane %v2493_v52, 1  ;;  %v3223_v27 = vld [vmem:[%s5484_s0 + $0x32] sm:$0x3] }
  0xc6   :  { %6395 = vst [vmem:[#allocation116_spill] sm:$0xff] %v3208_v62  ;;  %v3218_v40 = vmax.f32 %v2498_v29, %v6398_v49  ;;  %v3238_v29 = vld [vmem:[%s5484_s0 + $0x38] sm:$0x3]  ;;  %v6402_v50 = vrot.slane %v2512_v47, 1  ;;  %v6406_v62 = vrot.slane %v2522_v21, 1 }
  0xc7   :  { %6388 = vst [vmem:[#allocation74_spill] sm:$0xff] %v3173_v56  ;;  %v3213_v56 = vmax.f32 %v2493_v52, %v6396_v31  ;;  %v3233_v52 = vld [vmem:[%s5484_s0 + $0x36] sm:$0x3]  ;;  %v6400_v31 = vrot.slane %v2507_v48, 1 }
  0xc8   :  { %6393 = vst [vmem:[#allocation115_spill] sm:$0xff] %v3203_v24  ;;  %v3248_v53 = vmax.f32 %v2512_v47, %v6402_v50  ;;  %v3258_v24 = vmax.f32 %v2522_v21, %v6406_v62  ;;  %v3268_v47 = vld [vmem:[%s5484_s0 + $0x3c] sm:$0x3]  ;;  %v3278_v21 = vld [vmem:[%s5484_s0 + $0x50] sm:$0x3] }
  0xc9   :  { %6397 = vst [vmem:[#allocation117_spill] sm:$0xff] %v3213_v56  ;;  %v3243_v49 = vmax.f32 %v2507_v48, %v6400_v31  ;;  %v3263_v48 = vld [vmem:[%s5484_s0 + $0x3a] sm:$0x3]  ;;  %v6410_v31 = vrot.slane %v2536_v54, 1 }
  0xca   :  { %6399 = vst [vmem:[#allocation118_spill] sm:$0xff] %v3218_v40  ;;  %v6404_v40 = vrot.slane %v2517_v44, 1 }
  0xcb   :  { %6401 = vst [vmem:[#allocation119_spill] sm:$0xff] %v3243_v49  ;;  %v3288_v50 = vmax.f32 %v2536_v54, %v6410_v31  ;;  %v3308_v54 = vld [vmem:[%s5484_s0 + $0x54] sm:$0x3] }
  0xcc   :  { %6403 = vst [vmem:[#allocation120_spill] sm:$0xff] %v3248_v53  ;;  %v3253_v56 = vmax.f32 %v2517_v44, %v6404_v40  ;;  %v3273_v44 = vld [vmem:[%s5484_s0 + $0x3e] sm:$0x3]  ;;  %v6408_v40 = vrot.slane %v2531_v55, 1  ;;  %v6414_v53 = vrot.slane %v2546_v57, 1 }
  0xcd   :  { %6407 = vst [vmem:[#allocation122_spill] sm:$0xff] %v3258_v24  ;;  %v6412_v24 = vrot.slane %v2541_v36, 1 }
  0xce   :  { %6405 = vst [vmem:[#allocation121_spill] sm:$0xff] %v3253_v56  ;;  %v3283_v62 = vmax.f32 %v2531_v55, %v6408_v40  ;;  %v3298_v49 = vmax.f32 %v2546_v57, %v6414_v53  ;;  %v3303_v55 = vld [vmem:[%s5484_s0 + $0x52] sm:$0x3]  ;;  %v3318_v57 = vld [vmem:[%s5484_s0 + $0x58] sm:$0x3]  ;;  %v6418_v40 = vrot.slane %v2564_v59, 1 }
  0xcf   :  { %6411 = vst [vmem:[#allocation124_spill] sm:$0xff] %v3288_v50  ;;  %v3293_v56 = vmax.f32 %v2541_v36, %v6412_v24  ;;  %v3313_v36 = vld [vmem:[%s5484_s0 + $0x56] sm:$0x3]  ;;  %v6416_v24 = vrot.slane %v2555_v63, 1  ;;  %v3397_v50 = vld [vmem:[%s5484_s0 + $0x7e] sm:$0x3] }
  0xd0   :  { %6409 = vst [vmem:[#allocation123_spill] sm:$0xff] %v3283_v62  ;;  %v3328_v31 = vmax.f32 %v2564_v59, %v6418_v40  ;;  %v3339_v62 = vld [vmem:[%s5484_s0 + $0x5a] sm:$0x3]  ;;  %v3349_v59 = vld [vmem:[%s5484_s0 + $0x5e] sm:$0x3] }
  0xd1   :  { %6413 = vst [vmem:[#allocation125_spill] sm:$0xff] %v3293_v56  ;;  %v3323_v53 = vmax.f32 %v2555_v63, %v6416_v24  ;;  %v3344_v63 = vld [vmem:[%s5484_s0 + $0x5c] sm:$0x3]  ;;  %v3378_v40 = vld [vmem:[%s5484_s0 + $0x78] sm:$0x3] }
  0xd2   :  { %6415 = vst [vmem:[#allocation126_spill] sm:$0xff] %v3298_v49  ;;  %v6420_v49 = vrot.slane %v2573_v46, 1  ;;  %v3972_v24 = vld [vmem:[%s5484_s0 + $0x1fc] sm:$0x3] }
  0xd3   :  { %6417 = vst [vmem:[#allocation127_spill] sm:$0xff] %v3323_v53  ;;  %v3402_v53 = vld [vmem:[%s5484_s0 + $0x90] sm:$0x3] }
  0xd4   :  { %6419 = vst [vmem:[#allocation128_spill] sm:$0xff] %v3328_v31  ;;  %v3333_v56 = vmax.f32 %v2573_v46, %v6420_v49  ;;  %v3354_v46 = vld [vmem:[%s5484_s0 + $0x70] sm:$0x3]  ;;  %v3368_v31 = vld [vmem:[%s5484_s0 + $0x74] sm:$0x3] }
  0xd5   :  { %v3373_v49 = vld [vmem:[%s5484_s0 + $0x76] sm:$0x3]  ;;  %6422 = vst [vmem:[#allocation130_spill] sm:$0xff] %v3397_v50  ;;  %v6498_v50 = vrot.slane %v3148_v42, 1 }
  0xd6   :  { %6421 = vst [vmem:[#allocation129_spill] sm:$0xff] %v3333_v56  ;;  %v3363_v56 = vld [vmem:[%s5484_s0 + $0x72] sm:$0x3] }
  0xd7   :  { %6423 = vst [vmem:[#allocation131_spill] sm:$0xff] %v3402_v53  ;;  %v4011_v53 = vmax.f32 %v3148_v42, %v6498_v50  ;;  %v6506_v50 = vrot.slane %v3193_v33, 1 }
  0xd8   :  { %6424 = vst [vmem:[#allocation132_spill] sm:$0xff] %v3411_v23  ;;  %v3981_v23 = vld [vmem:[%s5484_s0 + $0x1fe] sm:$0x3] }
  0xd9   :  { %6425 = vst [vmem:[#allocation133_spill] sm:$0xff] %v3416_v22  ;;  %v3584_v22 = vld [vmem:[%s5484_s0 + $0xfc] sm:$0x3] }
  0xda   :  { %6426 = vst [vmem:[#allocation134_spill] sm:$0xff] %v3421_v30  ;;  %v3579_v30 = vld [vmem:[%s5484_s0 + $0xfa] sm:$0x3] }
  0xdb   :  { %6427 = vst [vmem:[#allocation135_spill] sm:$0xff] %v3426_v39  ;;  %v3613_v39 = vld [vmem:[%s5484_s0 + $0x116] sm:$0x3] }
  0xdc   :  { %6428 = vst [vmem:[#allocation136_spill] sm:$0xff] %v3435_v18  ;;  %v3608_v18 = vld [vmem:[%s5484_s0 + $0x114] sm:$0x3] }
  0xdd   :  { %6429 = vst [vmem:[#allocation137_spill] sm:$0xff] %v3440_v17  ;;  %v3603_v17 = vld [vmem:[%s5484_s0 + $0x112] sm:$0x3] }
  0xde   :  { %6430 = vst [vmem:[#allocation138_spill] sm:$0xff] %v3445_v38  ;;  %v3637_v38 = vld [vmem:[%s5484_s0 + $0x11e] sm:$0x3] }
  0xdf   :  { %6431 = vst [vmem:[#allocation139_spill] sm:$0xff] %v3450_v20  ;;  %v3618_v20 = vld [vmem:[%s5484_s0 + $0x118] sm:$0x3] }
  0xe0   :  { %6432 = vst [vmem:[#allocation140_spill] sm:$0xff] %v3459_v14  ;;  %v3632_v14 = vld [vmem:[%s5484_s0 + $0x11c] sm:$0x3] }
  0xe1   :  { %6433 = vst [vmem:[#allocation141_spill] sm:$0xff] %v3464_v13  ;;  %v3627_v13 = vld [vmem:[%s5484_s0 + $0x11a] sm:$0x3] }
  0xe2   :  { %6434 = vst [vmem:[#allocation142_spill] sm:$0xff] %v3469_v19  ;;  %v3661_v19 = vld [vmem:[%s5484_s0 + $0x136] sm:$0x3] }
  0xe3   :  { %6435 = vst [vmem:[#allocation143_spill] sm:$0xff] %v3474_v16  ;;  %v3642_v16 = vld [vmem:[%s5484_s0 + $0x130] sm:$0x3] }
  0xe4   :  { %6436 = vst [vmem:[#allocation144_spill] sm:$0xff] %v3483_v10  ;;  %v3656_v10 = vld [vmem:[%s5484_s0 + $0x134] sm:$0x3] }
  0xe5   :  { %6437 = vst [vmem:[#allocation145_spill] sm:$0xff] %v3488_v9  ;;  %v3651_v9 = vld [vmem:[%s5484_s0 + $0x132] sm:$0x3] }
  0xe6   :  { %6438 = vst [vmem:[#allocation146_spill] sm:$0xff] %v3493_v15  ;;  %v3685_v15 = vld [vmem:[%s5484_s0 + $0x13e] sm:$0x3] }
  0xe7   :  { %6439 = vst [vmem:[#allocation147_spill] sm:$0xff] %v3498_v12  ;;  %v3666_v12 = vld [vmem:[%s5484_s0 + $0x138] sm:$0x3] }
  0xe8   :  { %6440 = vst [vmem:[#allocation148_spill] sm:$0xff] %v3507_v6  ;;  %v3680_v6 = vld [vmem:[%s5484_s0 + $0x13c] sm:$0x3] }
  0xe9   :  { %6441 = vst [vmem:[#allocation149_spill] sm:$0xff] %v3512_v5  ;;  %v3675_v5 = vld [vmem:[%s5484_s0 + $0x13a] sm:$0x3] }
  0xea   :  { %6442 = vst [vmem:[#allocation150_spill] sm:$0xff] %v3517_v11  ;;  %v3709_v11 = vld [vmem:[%s5484_s0 + $0x156] sm:$0x3] }
  0xeb   :  { %6443 = vst [vmem:[#allocation151_spill] sm:$0xff] %v3522_v8  ;;  %v3690_v8 = vld [vmem:[%s5484_s0 + $0x150] sm:$0x3] }
  0xec   :  { %6444 = vst [vmem:[#allocation152_spill] sm:$0xff] %v3531_v2  ;;  %v3704_v2 = vld [vmem:[%s5484_s0 + $0x154] sm:$0x3] }
  0xed   :  { %6445 = vst [vmem:[#allocation153_spill] sm:$0xff] %v3536_v1  ;;  %v3699_v1 = vld [vmem:[%s5484_s0 + $0x152] sm:$0x3] }
  0xee   :  { %6446 = vst [vmem:[#allocation154_spill] sm:$0xff] %v3541_v7  ;;  %v3733_v7 = vld [vmem:[%s5484_s0 + $0x15e] sm:$0x3] }
  0xef   :  { %6447 = vst [vmem:[#allocation155_spill] sm:$0xff] %v3546_v4  ;;  %v3714_v4 = vld [vmem:[%s5484_s0 + $0x158] sm:$0x3] }
  0xf0   :  { %6448 = vst [vmem:[#allocation156_spill] sm:$0xff] %v3555_v41  ;;  %v3728_v41 = vld [vmem:[%s5484_s0 + $0x15c] sm:$0x3] }
  0xf1   :  { %6449 = vst [vmem:[#allocation157_spill] sm:$0xff] %v3560_v37  ;;  %v3723_v37 = vld [vmem:[%s5484_s0 + $0x15a] sm:$0x3] }
  0xf2   :  { %6450 = vst [vmem:[#allocation158_spill] sm:$0xff] %v3565_v3  ;;  %v3757_v3 = vld [vmem:[%s5484_s0 + $0x176] sm:$0x3] }
  0xf3   :  { %6451 = vst [vmem:[#allocation159_spill] sm:$0xff] %v3570_v0  ;;  %v3738_v0 = vld [vmem:[%s5484_s0 + $0x170] sm:$0x3] }
  0xf4   :  { %6452 = vst [vmem:[#allocation160_spill] sm:$0xff] %v3579_v30  ;;  %v3752_v30 = vld [vmem:[%s5484_s0 + $0x174] sm:$0x3] }
  0xf5   :  { %6453 = vst [vmem:[#allocation161_spill] sm:$0xff] %v3584_v22  ;;  %v3747_v22 = vld [vmem:[%s5484_s0 + $0x172] sm:$0x3] }
  0xf6   :  { %6454 = vst [vmem:[#allocation162_spill] sm:$0xff] %v3589_v45  ;;  %v3781_v45 = vld [vmem:[%s5484_s0 + $0x17e] sm:$0x3] }
  0xf7   :  { %6455 = vst [vmem:[#allocation163_spill] sm:$0xff] %v3594_v28  ;;  %v3762_v28 = vld [vmem:[%s5484_s0 + $0x178] sm:$0x3] }
  0xf8   :  { %6456 = vst [vmem:[#allocation164_spill] sm:$0xff] %v3603_v17  ;;  %v3776_v17 = vld [vmem:[%s5484_s0 + $0x17c] sm:$0x3] }
  0xf9   :  { %6457 = vst [vmem:[#allocation165_spill] sm:$0xff] %v3608_v18  ;;  %v3771_v18 = vld [vmem:[%s5484_s0 + $0x17a] sm:$0x3] }
  0xfa   :  { %6458 = vst [vmem:[#allocation166_spill] sm:$0xff] %v3613_v39  ;;  %v3805_v39 = vld [vmem:[%s5484_s0 + $0x196] sm:$0x3] }
  0xfb   :  { %6459 = vst [vmem:[#allocation167_spill] sm:$0xff] %v3618_v20  ;;  %v3786_v20 = vld [vmem:[%s5484_s0 + $0x190] sm:$0x3] }
  0xfc   :  { %6460 = vst [vmem:[#allocation168_spill] sm:$0xff] %v3627_v13  ;;  %v3800_v13 = vld [vmem:[%s5484_s0 + $0x194] sm:$0x3] }
  0xfd   :  { %6461 = vst [vmem:[#allocation169_spill] sm:$0xff] %v3632_v14  ;;  %v3795_v14 = vld [vmem:[%s5484_s0 + $0x192] sm:$0x3] }
  0xfe   :  { %6462 = vst [vmem:[#allocation170_spill] sm:$0xff] %v3637_v38  ;;  %v3829_v38 = vld [vmem:[%s5484_s0 + $0x19e] sm:$0x3] }
  0xff   :  { %6463 = vst [vmem:[#allocation171_spill] sm:$0xff] %v3642_v16  ;;  %v3810_v16 = vld [vmem:[%s5484_s0 + $0x198] sm:$0x3] }
 0x100   :  { %6464 = vst [vmem:[#allocation172_spill] sm:$0xff] %v3651_v9  ;;  %v3824_v9 = vld [vmem:[%s5484_s0 + $0x19c] sm:$0x3] }
 0x101   :  { %6465 = vst [vmem:[#allocation173_spill] sm:$0xff] %v3656_v10  ;;  %v3819_v10 = vld [vmem:[%s5484_s0 + $0x19a] sm:$0x3] }
 0x102   :  { %6466 = vst [vmem:[#allocation174_spill] sm:$0xff] %v3661_v19  ;;  %v3853_v19 = vld [vmem:[%s5484_s0 + $0x1b6] sm:$0x3] }
 0x103   :  { %6467 = vst [vmem:[#allocation175_spill] sm:$0xff] %v3666_v12  ;;  %v3834_v12 = vld [vmem:[%s5484_s0 + $0x1b0] sm:$0x3] }
 0x104   :  { %6468 = vst [vmem:[#allocation176_spill] sm:$0xff] %v3675_v5  ;;  %v3848_v5 = vld [vmem:[%s5484_s0 + $0x1b4] sm:$0x3] }
 0x105   :  { %6469 = vst [vmem:[#allocation177_spill] sm:$0xff] %v3680_v6  ;;  %v3843_v6 = vld [vmem:[%s5484_s0 + $0x1b2] sm:$0x3] }
 0x106   :  { %6470 = vst [vmem:[#allocation178_spill] sm:$0xff] %v3685_v15  ;;  %v3877_v15 = vld [vmem:[%s5484_s0 + $0x1be] sm:$0x3] }
 0x107   :  { %6471 = vst [vmem:[#allocation179_spill] sm:$0xff] %v3690_v8  ;;  %v3858_v8 = vld [vmem:[%s5484_s0 + $0x1b8] sm:$0x3] }
 0x108   :  { %6472 = vst [vmem:[#allocation180_spill] sm:$0xff] %v3699_v1  ;;  %v3872_v1 = vld [vmem:[%s5484_s0 + $0x1bc] sm:$0x3] }
 0x109   :  { %6473 = vst [vmem:[#allocation181_spill] sm:$0xff] %v3704_v2  ;;  %v3867_v2 = vld [vmem:[%s5484_s0 + $0x1ba] sm:$0x3] }
 0x10a   :  { %6474 = vst [vmem:[#allocation182_spill] sm:$0xff] %v3709_v11  ;;  %v3901_v11 = vld [vmem:[%s5484_s0 + $0x1d6] sm:$0x3] }
 0x10b   :  { %6475 = vst [vmem:[#allocation183_spill] sm:$0xff] %v3714_v4  ;;  %v3882_v4 = vld [vmem:[%s5484_s0 + $0x1d0] sm:$0x3] }
 0x10c   :  { %6476 = vst [vmem:[#allocation184_spill] sm:$0xff] %v3723_v37  ;;  %v3896_v37 = vld [vmem:[%s5484_s0 + $0x1d4] sm:$0x3] }
 0x10d   :  { %6477 = vst [vmem:[#allocation185_spill] sm:$0xff] %v3728_v41  ;;  %v3891_v41 = vld [vmem:[%s5484_s0 + $0x1d2] sm:$0x3] }
 0x10e   :  { %6478 = vst [vmem:[#allocation186_spill] sm:$0xff] %v3733_v7  ;;  %v3925_v7 = vld [vmem:[%s5484_s0 + $0x1de] sm:$0x3] }
 0x10f   :  { %6479 = vst [vmem:[#allocation187_spill] sm:$0xff] %v3738_v0  ;;  %v3906_v0 = vld [vmem:[%s5484_s0 + $0x1d8] sm:$0x3] }
 0x110   :  { %6480 = vst [vmem:[#allocation188_spill] sm:$0xff] %v3747_v22  ;;  %v3920_v22 = vld [vmem:[%s5484_s0 + $0x1dc] sm:$0x3] }
 0x111   :  { %6481 = vst [vmem:[#allocation189_spill] sm:$0xff] %v3752_v30  ;;  %v3915_v30 = vld [vmem:[%s5484_s0 + $0x1da] sm:$0x3] }
 0x112   :  { %6482 = vst [vmem:[#allocation190_spill] sm:$0xff] %v3757_v3  ;;  %v3949_v3 = vld [vmem:[%s5484_s0 + $0x1f6] sm:$0x3] }
 0x113   :  { %6483 = vst [vmem:[#allocation191_spill] sm:$0xff] %v3762_v28  ;;  %v3930_v28 = vld [vmem:[%s5484_s0 + $0x1f0] sm:$0x3] }
 0x114   :  { %6484 = vst [vmem:[#allocation192_spill] sm:$0xff] %v3771_v18  ;;  %v3944_v18 = vld [vmem:[%s5484_s0 + $0x1f4] sm:$0x3] }
 0x115   :  { %6485 = vst [vmem:[#allocation193_spill] sm:$0xff] %v3776_v17  ;;  %v3939_v17 = vld [vmem:[%s5484_s0 + $0x1f2] sm:$0x3] }
 0x116   :  { %6486 = vst [vmem:[#allocation194_spill] sm:$0xff] %v3781_v45 }
 0x117   :  { %6487 = vst [vmem:[#allocation195_spill] sm:$0xff] %v3786_v20  ;;  %v3954_v20 = vld [vmem:[%s5484_s0 + $0x1f8] sm:$0x3] }
 0x118   :  { %6488 = vst [vmem:[#allocation196_spill] sm:$0xff] %v3795_v14  ;;  %v6499_v14 = vrot.slane %v3153_v58, 1 }
 0x119   :  { %6489 = vst [vmem:[#allocation197_spill] sm:$0xff] %v3800_v13  ;;  %v3963_v13 = vld [vmem:[%s5484_s0 + $0x1fa] sm:$0x3] }
 0x11a   :  { %6490 = vst [vmem:[#allocation198_spill] sm:$0xff] %v3805_v39  ;;  %v6500_v39 = vrot.slane %v3158_v60, 1 }
 0x11b   :  { %6491 = vst [vmem:[#allocation199_spill] sm:$0xff] %v3810_v16  ;;  %v6496_v16 = vrot.slane %v3118_v51, 1 }
 0x11c   :  { %6492 = vst [vmem:[#allocation200_spill] sm:$0xff] %v3834_v12  ;;  %v6497_v12 = vrot.slane %v3143_v43, 1 }
 0x11d   :  { %6493 = vst [vmem:[#allocation201_spill] sm:$0xff] %v3858_v8  ;;  %v4001_v45 = vmax.f32 %v3118_v51, %v6496_v16  ;;  %v4016_v8 = vmax.f32 %v3153_v58, %v6499_v14  ;;  %v4021_v16 = vmax.f32 %v3158_v60, %v6500_v39  ;;  %v6502_v51 = vrot.slane %v3183_v35, 1 }
 0x11e   :  { %6494 = vst [vmem:[#allocation202_spill] sm:$0xff] %v3877_v15  ;;  %v4036_v14 = vmax.f32 %v3193_v33, %v6506_v50  ;;  %v6508_v58 = vrot.slane %v3198_v32, 1  ;;  %v6509_v60 = vrot.slane %v3223_v27, 1  ;;  %v6512_v50 = vrot.slane %v3238_v29, 1 }
 0x11f   :  { %6495 = vst [vmem:[#allocation203_spill] sm:$0xff] %v3882_v4  ;;  %v4006_v4 = vmax.f32 %v3143_v43, %v6497_v12  ;;  %v4026_v12 = vmax.f32 %v3183_v35, %v6502_v51  ;;  %v6504_v43 = vrot.slane %v3188_v34, 1  ;;  %v6510_v51 = vrot.slane %v3228_v26, 1 }
 0x120   :  { %6501 = vst [vmem:[#allocation204_spill] sm:$0xff] %v4021_v16  ;;  %v4041_v39 = vmax.f32 %v3198_v32, %v6508_v58  ;;  %v4046_v35 = vmax.f32 %v3223_v27, %v6509_v60  ;;  %v4061_v32 = vmax.f32 %v3238_v29, %v6512_v50  ;;  %v6514_v58 = vrot.slane %v3263_v48, 1  ;;  %v6824_v16 = vld [vmem:[#allocation94_spill] sm:$0xff] }
 0x121   :  { %6503 = vst [vmem:[#allocation205_spill] sm:$0xff] %v4026_v12  ;;  %v4031_v42 = vmax.f32 %v3188_v34, %v6504_v43  ;;  %v4051_v34 = vmax.f32 %v3228_v26, %v6510_v51  ;;  %v6511_v43 = vrot.slane %v3233_v52, 1  ;;  %v6516_v60 = vrot.slane %v3268_v47, 1  ;;  %v6825_v12 = vld [vmem:[#allocation95_spill] sm:$0xff] }
 0x122   :  { %6507 = vst [vmem:[#allocation207_spill] sm:$0xff] %v4036_v14  ;;  %v4066_v27 = vmax.f32 %v3263_v48, %v6514_v58  ;;  %v6518_v51 = vrot.slane %v3273_v44, 1  ;;  %v6521_v50 = vrot.slane %v3303_v55, 1  ;;  %v6522_v58 = vrot.slane %v3308_v54, 1 }
 0x123   :  { %6505 = vst [vmem:[#allocation206_spill] sm:$0xff] %v4031_v42  ;;  %v4056_v33 = vmax.f32 %v3233_v52, %v6511_v43  ;;  %v4071_v26 = vmax.f32 %v3268_v47, %v6516_v60  ;;  %v6520_v43 = vrot.slane %v3278_v21, 1  ;;  %v6523_v60 = vrot.slane %v3313_v36, 1 }
 0x124   :  { %6513 = vst [vmem:[#allocation208_spill] sm:$0xff] %v4061_v32  ;;  %v4076_v52 = vmax.f32 %v3273_v44, %v6518_v51  ;;  %v4086_v48 = vmax.f32 %v3303_v55, %v6521_v50  ;;  %v4091_v47 = vmax.f32 %v3308_v54, %v6522_v58  ;;  %v6525_v51 = vrot.slane %v3318_v57, 1 }
 0x125   :  { %6515 = vst [vmem:[#allocation209_spill] sm:$0xff] %v4066_v27  ;;  %v4081_v29 = vmax.f32 %v3278_v21, %v6520_v43  ;;  %v4096_v44 = vmax.f32 %v3313_v36, %v6523_v60  ;;  %v6527_v43 = vrot.slane %v3339_v62, 1  ;;  %v6529_v50 = vrot.slane %v3344_v63, 1 }
 0x126   :  { %6517 = vst [vmem:[#allocation210_spill] sm:$0xff] %v4071_v26  ;;  %v4101_v21 = vmax.f32 %v3318_v57, %v6525_v51  ;;  %v6531_v58 = vrot.slane %v3349_v59, 1  ;;  %v6533_v60 = vrot.slane %v3354_v46, 1  ;;  %v6535_v51 = vrot.slane %v3363_v56, 1 }
 0x127   :  { %6519 = vst [vmem:[#allocation211_spill] sm:$0xff] %v4076_v52  ;;  %v4106_v55 = vmax.f32 %v3339_v62, %v6527_v43  ;;  %v4111_v54 = vmax.f32 %v3344_v63, %v6529_v50  ;;  %v6537_v43 = vrot.slane %v3368_v31, 1  ;;  %v6539_v50 = vrot.slane %v3373_v49, 1 }
 0x128   :  { %6524 = vst [vmem:[#allocation212_spill] sm:$0xff] %v4096_v44  ;;  %v4116_v36 = vmax.f32 %v3349_v59, %v6531_v58  ;;  %v4121_v57 = vmax.f32 %v3354_v46, %v6533_v60  ;;  %v4126_v62 = vmax.f32 %v3363_v56, %v6535_v51  ;;  %v6541_v58 = vrot.slane %v3378_v40, 1  ;;  %v7036_v32 = vld [vmem:[#allocation205_spill] sm:$0xff] }
 0x129   :  { %6526 = vst [vmem:[#allocation213_spill] sm:$0xff] %v4101_v21  ;;  %v4131_v63 = vmax.f32 %v3368_v31, %v6537_v43  ;;  %v4136_v59 = vmax.f32 %v3373_v49, %v6539_v50  ;;  %v6543_v60 = vrot.slane %v3387_v25, 1  ;;  %v6545_v51 = vrot.slane %v3392_v61, 1  ;;  %v6547_v43 = vld [vmem:[#allocation130_spill] sm:$0xff]  ;;  %v6550_v50 = vld [vmem:[#allocation131_spill] sm:$0xff] }
 0x12a   :  { %6528 = vst [vmem:[#allocation214_spill] sm:$0xff] %v4106_v55  ;;  %v4141_v46 = vmax.f32 %v3378_v40, %v6541_v58  ;;  %v6548_v15 = vrot.slane %v6547_v43, 1  ;;  %v6553_v58 = vld [vmem:[#allocation132_spill] sm:$0xff] }
 0x12b   :  { %6530 = vst [vmem:[#allocation215_spill] sm:$0xff] %v4111_v54  ;;  %v4146_v56 = vmax.f32 %v3387_v25, %v6543_v60  ;;  %v4151_v31 = vmax.f32 %v3392_v61, %v6545_v51  ;;  %v6556_v60 = vld [vmem:[#allocation133_spill] sm:$0xff]  ;;  %v6559_v51 = vld [vmem:[#allocation134_spill] sm:$0xff]  ;;  %v6993_v54 = vld [vmem:[#allocation75_spill] sm:$0xff] }
 0x12c   :  { %6532 = vst [vmem:[#allocation216_spill] sm:$0xff] %v4116_v36  ;;  %v4156_v49 = vmax.f32 %v6547_v43, %v6548_v15  ;;  %v6562_v43 = vld [vmem:[#allocation135_spill] sm:$0xff] }
 0x12d   :  { %6534 = vst [vmem:[#allocation217_spill] sm:$0xff] %v4121_v57 }
 0x12e   :  { %6536 = vst [vmem:[#allocation218_spill] sm:$0xff] %v4126_v62  ;;  %v6982_v62 = vld [vmem:[#allocation72_spill] sm:$0xff] }
 0x12f   :  { %6538 = vst [vmem:[#allocation219_spill] sm:$0xff] %v4131_v63  ;;  %v6983_v63 = vld [vmem:[#allocation110_spill] sm:$0xff] }
 0x130   :  { %6540 = vst [vmem:[#allocation220_spill] sm:$0xff] %v4136_v59  ;;  %v6551_v59 = vrot.slane %v6550_v50, 1 }
 0x131   :  { %6542 = vst [vmem:[#allocation221_spill] sm:$0xff] %v4141_v46  ;;  %v6554_v46 = vrot.slane %v6553_v58, 1 }
 0x132   :  { %6544 = vst [vmem:[#allocation222_spill] sm:$0xff] %v4146_v56  ;;  %v4161_v40 = vmax.f32 %v6550_v50, %v6551_v59  ;;  %v6557_v56 = vrot.slane %v6556_v60, 1  ;;  %v6565_v50 = vld [vmem:[#allocation136_spill] sm:$0xff] }
 0x133   :  { %6546 = vst [vmem:[#allocation223_spill] sm:$0xff] %v4151_v31  ;;  %v4166_v25 = vmax.f32 %v6553_v58, %v6554_v46  ;;  %v6560_v31 = vrot.slane %v6559_v51, 1  ;;  %v6568_v58 = vld [vmem:[#allocation137_spill] sm:$0xff] }
 0x134   :  { %6549 = vst [vmem:[#allocation130_spill] sm:$0xff] %v4156_v49  ;;  %v4171_v61 = vmax.f32 %v6556_v60, %v6557_v56  ;;  %v6563_v49 = vrot.slane %v6562_v43, 1  ;;  %v6571_v60 = vld [vmem:[#allocation138_spill] sm:$0xff] }
 0x135   :  { %6552 = vst [vmem:[#allocation131_spill] sm:$0xff] %v4161_v40  ;;  %v4176_v15 = vmax.f32 %v6559_v51, %v6560_v31  ;;  %v6566_v40 = vrot.slane %v6565_v50, 1  ;;  %v6574_v51 = vld [vmem:[#allocation139_spill] sm:$0xff] }
 0x136   :  { %6555 = vst [vmem:[#allocation132_spill] sm:$0xff] %v4166_v25  ;;  %v4181_v59 = vmax.f32 %v6562_v43, %v6563_v49  ;;  %v6569_v25 = vrot.slane %v6568_v58, 1  ;;  %v6577_v43 = vld [vmem:[#allocation140_spill] sm:$0xff] }
 0x137   :  { %6558 = vst [vmem:[#allocation133_spill] sm:$0xff] %v4171_v61  ;;  %v4186_v46 = vmax.f32 %v6565_v50, %v6566_v40  ;;  %v6572_v61 = vrot.slane %v6571_v60, 1  ;;  %v6580_v50 = vld [vmem:[#allocation141_spill] sm:$0xff] }
 0x138   :  { %6561 = vst [vmem:[#allocation134_spill] sm:$0xff] %v4176_v15  ;;  %v4191_v56 = vmax.f32 %v6568_v58, %v6569_v25  ;;  %v6575_v15 = vrot.slane %v6574_v51, 1  ;;  %v6583_v58 = vld [vmem:[#allocation142_spill] sm:$0xff] }
 0x139   :  { %6564 = vst [vmem:[#allocation135_spill] sm:$0xff] %v4181_v59  ;;  %v4196_v31 = vmax.f32 %v6571_v60, %v6572_v61  ;;  %v6578_v59 = vrot.slane %v6577_v43, 1  ;;  %v6586_v60 = vld [vmem:[#allocation143_spill] sm:$0xff] }
 0x13a   :  { %6567 = vst [vmem:[#allocation136_spill] sm:$0xff] %v4186_v46  ;;  %v4201_v49 = vmax.f32 %v6574_v51, %v6575_v15  ;;  %v6581_v46 = vrot.slane %v6580_v50, 1  ;;  %v6589_v51 = vld [vmem:[#allocation144_spill] sm:$0xff] }
 0x13b   :  { %6570 = vst [vmem:[#allocation137_spill] sm:$0xff] %v4191_v56  ;;  %v4206_v40 = vmax.f32 %v6577_v43, %v6578_v59  ;;  %v6584_v56 = vrot.slane %v6583_v58, 1  ;;  %v6592_v43 = vld [vmem:[#allocation145_spill] sm:$0xff] }
 0x13c   :  { %6573 = vst [vmem:[#allocation138_spill] sm:$0xff] %v4196_v31  ;;  %v4211_v25 = vmax.f32 %v6580_v50, %v6581_v46  ;;  %v6587_v31 = vrot.slane %v6586_v60, 1  ;;  %v6595_v50 = vld [vmem:[#allocation146_spill] sm:$0xff] }
 0x13d   :  { %6576 = vst [vmem:[#allocation139_spill] sm:$0xff] %v4201_v49  ;;  %v4216_v61 = vmax.f32 %v6583_v58, %v6584_v56  ;;  %v6590_v49 = vrot.slane %v6589_v51, 1  ;;  %v6598_v58 = vld [vmem:[#allocation147_spill] sm:$0xff] }
 0x13e   :  { %6579 = vst [vmem:[#allocation140_spill] sm:$0xff] %v4206_v40  ;;  %v4221_v15 = vmax.f32 %v6586_v60, %v6587_v31  ;;  %v6593_v40 = vrot.slane %v6592_v43, 1  ;;  %v6601_v60 = vld [vmem:[#allocation148_spill] sm:$0xff] }
 0x13f   :  { %6582 = vst [vmem:[#allocation141_spill] sm:$0xff] %v4211_v25  ;;  %v4226_v59 = vmax.f32 %v6589_v51, %v6590_v49  ;;  %v6596_v25 = vrot.slane %v6595_v50, 1  ;;  %v6604_v51 = vld [vmem:[#allocation149_spill] sm:$0xff] }
 0x140   :  { %6585 = vst [vmem:[#allocation142_spill] sm:$0xff] %v4216_v61  ;;  %v4231_v46 = vmax.f32 %v6592_v43, %v6593_v40  ;;  %v6599_v61 = vrot.slane %v6598_v58, 1  ;;  %v6607_v43 = vld [vmem:[#allocation150_spill] sm:$0xff] }
 0x141   :  { %6588 = vst [vmem:[#allocation143_spill] sm:$0xff] %v4221_v15  ;;  %v4236_v56 = vmax.f32 %v6595_v50, %v6596_v25  ;;  %v6602_v15 = vrot.slane %v6601_v60, 1  ;;  %v6610_v50 = vld [vmem:[#allocation151_spill] sm:$0xff] }
 0x142   :  { %6591 = vst [vmem:[#allocation144_spill] sm:$0xff] %v4226_v59  ;;  %v4241_v31 = vmax.f32 %v6598_v58, %v6599_v61  ;;  %v6605_v59 = vrot.slane %v6604_v51, 1  ;;  %v6613_v58 = vld [vmem:[#allocation152_spill] sm:$0xff] }
 0x143   :  { %6594 = vst [vmem:[#allocation145_spill] sm:$0xff] %v4231_v46  ;;  %v4246_v49 = vmax.f32 %v6601_v60, %v6602_v15  ;;  %v6608_v46 = vrot.slane %v6607_v43, 1  ;;  %v6616_v60 = vld [vmem:[#allocation153_spill] sm:$0xff] }
 0x144   :  { %6597 = vst [vmem:[#allocation146_spill] sm:$0xff] %v4236_v56  ;;  %v4251_v40 = vmax.f32 %v6604_v51, %v6605_v59  ;;  %v6611_v56 = vrot.slane %v6610_v50, 1  ;;  %v6619_v51 = vld [vmem:[#allocation154_spill] sm:$0xff] }
 0x145   :  { %6600 = vst [vmem:[#allocation147_spill] sm:$0xff] %v4241_v31  ;;  %v4256_v25 = vmax.f32 %v6607_v43, %v6608_v46  ;;  %v6614_v31 = vrot.slane %v6613_v58, 1  ;;  %v6622_v43 = vld [vmem:[#allocation155_spill] sm:$0xff] }
 0x146   :  { %6603 = vst [vmem:[#allocation148_spill] sm:$0xff] %v4246_v49  ;;  %v4261_v61 = vmax.f32 %v6610_v50, %v6611_v56  ;;  %v6617_v49 = vrot.slane %v6616_v60, 1  ;;  %v6625_v50 = vld [vmem:[#allocation156_spill] sm:$0xff] }
 0x147   :  { %6606 = vst [vmem:[#allocation149_spill] sm:$0xff] %v4251_v40  ;;  %v4266_v15 = vmax.f32 %v6613_v58, %v6614_v31  ;;  %v6620_v40 = vrot.slane %v6619_v51, 1  ;;  %v6628_v58 = vld [vmem:[#allocation157_spill] sm:$0xff] }
 0x148   :  { %6609 = vst [vmem:[#allocation150_spill] sm:$0xff] %v4256_v25  ;;  %v4271_v59 = vmax.f32 %v6616_v60, %v6617_v49  ;;  %v6623_v25 = vrot.slane %v6622_v43, 1  ;;  %v6631_v60 = vld [vmem:[#allocation158_spill] sm:$0xff] }
 0x149   :  { %6612 = vst [vmem:[#allocation151_spill] sm:$0xff] %v4261_v61  ;;  %v4276_v46 = vmax.f32 %v6619_v51, %v6620_v40  ;;  %v6626_v61 = vrot.slane %v6625_v50, 1  ;;  %v6634_v51 = vld [vmem:[#allocation159_spill] sm:$0xff] }
 0x14a   :  { %6615 = vst [vmem:[#allocation152_spill] sm:$0xff] %v4266_v15  ;;  %v4281_v56 = vmax.f32 %v6622_v43, %v6623_v25  ;;  %v6629_v15 = vrot.slane %v6628_v58, 1  ;;  %v6637_v43 = vld [vmem:[#allocation160_spill] sm:$0xff] }
 0x14b   :  { %6618 = vst [vmem:[#allocation153_spill] sm:$0xff] %v4271_v59  ;;  %v4286_v31 = vmax.f32 %v6625_v50, %v6626_v61  ;;  %v6632_v59 = vrot.slane %v6631_v60, 1  ;;  %v6640_v50 = vld [vmem:[#allocation161_spill] sm:$0xff] }
 0x14c   :  { %6621 = vst [vmem:[#allocation154_spill] sm:$0xff] %v4276_v46  ;;  %v4291_v49 = vmax.f32 %v6628_v58, %v6629_v15  ;;  %v6635_v46 = vrot.slane %v6634_v51, 1  ;;  %v6643_v58 = vld [vmem:[#allocation162_spill] sm:$0xff] }
 0x14d   :  { %6624 = vst [vmem:[#allocation155_spill] sm:$0xff] %v4281_v56  ;;  %v4296_v40 = vmax.f32 %v6631_v60, %v6632_v59  ;;  %v6638_v56 = vrot.slane %v6637_v43, 1  ;;  %v6646_v60 = vld [vmem:[#allocation163_spill] sm:$0xff] }
 0x14e   :  { %6627 = vst [vmem:[#allocation156_spill] sm:$0xff] %v4286_v31  ;;  %v4301_v25 = vmax.f32 %v6634_v51, %v6635_v46  ;;  %v6641_v31 = vrot.slane %v6640_v50, 1  ;;  %v6649_v51 = vld [vmem:[#allocation164_spill] sm:$0xff] }
 0x14f   :  { %6630 = vst [vmem:[#allocation157_spill] sm:$0xff] %v4291_v49  ;;  %v4306_v61 = vmax.f32 %v6637_v43, %v6638_v56  ;;  %v6644_v49 = vrot.slane %v6643_v58, 1  ;;  %v6652_v43 = vld [vmem:[#allocation165_spill] sm:$0xff] }
 0x150   :  { %6633 = vst [vmem:[#allocation158_spill] sm:$0xff] %v4296_v40  ;;  %v4311_v15 = vmax.f32 %v6640_v50, %v6641_v31  ;;  %v6647_v40 = vrot.slane %v6646_v60, 1  ;;  %v6655_v50 = vld [vmem:[#allocation166_spill] sm:$0xff] }
 0x151   :  { %6636 = vst [vmem:[#allocation159_spill] sm:$0xff] %v4301_v25  ;;  %v4316_v59 = vmax.f32 %v6643_v58, %v6644_v49  ;;  %v6650_v25 = vrot.slane %v6649_v51, 1  ;;  %v6658_v58 = vld [vmem:[#allocation167_spill] sm:$0xff] }
 0x152   :  { %6639 = vst [vmem:[#allocation160_spill] sm:$0xff] %v4306_v61  ;;  %v4321_v46 = vmax.f32 %v6646_v60, %v6647_v40  ;;  %v6653_v61 = vrot.slane %v6652_v43, 1  ;;  %v6661_v60 = vld [vmem:[#allocation168_spill] sm:$0xff] }
 0x153   :  { %6642 = vst [vmem:[#allocation161_spill] sm:$0xff] %v4311_v15  ;;  %v4326_v56 = vmax.f32 %v6649_v51, %v6650_v25  ;;  %v6656_v15 = vrot.slane %v6655_v50, 1  ;;  %v6664_v51 = vld [vmem:[#allocation169_spill] sm:$0xff] }
 0x154   :  { %6645 = vst [vmem:[#allocation162_spill] sm:$0xff] %v4316_v59  ;;  %v4331_v31 = vmax.f32 %v6652_v43, %v6653_v61  ;;  %v6659_v59 = vrot.slane %v6658_v58, 1  ;;  %v6667_v43 = vld [vmem:[#allocation170_spill] sm:$0xff] }
 0x155   :  { %6648 = vst [vmem:[#allocation163_spill] sm:$0xff] %v4321_v46  ;;  %v4336_v49 = vmax.f32 %v6655_v50, %v6656_v15  ;;  %v6662_v46 = vrot.slane %v6661_v60, 1  ;;  %v6670_v50 = vld [vmem:[#allocation171_spill] sm:$0xff] }
 0x156   :  { %6651 = vst [vmem:[#allocation164_spill] sm:$0xff] %v4326_v56  ;;  %v4341_v40 = vmax.f32 %v6658_v58, %v6659_v59  ;;  %v6665_v56 = vrot.slane %v6664_v51, 1  ;;  %v6673_v58 = vld [vmem:[#allocation172_spill] sm:$0xff] }
 0x157   :  { %6654 = vst [vmem:[#allocation165_spill] sm:$0xff] %v4331_v31  ;;  %v4346_v25 = vmax.f32 %v6661_v60, %v6662_v46  ;;  %v6668_v31 = vrot.slane %v6667_v43, 1  ;;  %v6676_v60 = vld [vmem:[#allocation173_spill] sm:$0xff] }
 0x158   :  { %6657 = vst [vmem:[#allocation166_spill] sm:$0xff] %v4336_v49  ;;  %v4351_v61 = vmax.f32 %v6664_v51, %v6665_v56  ;;  %v6671_v49 = vrot.slane %v6670_v50, 1  ;;  %v6679_v51 = vld [vmem:[#allocation174_spill] sm:$0xff] }
 0x159   :  { %6660 = vst [vmem:[#allocation167_spill] sm:$0xff] %v4341_v40  ;;  %v4356_v15 = vmax.f32 %v6667_v43, %v6668_v31  ;;  %v6674_v40 = vrot.slane %v6673_v58, 1  ;;  %v6682_v43 = vld [vmem:[#allocation175_spill] sm:$0xff] }
 0x15a   :  { %6663 = vst [vmem:[#allocation168_spill] sm:$0xff] %v4346_v25  ;;  %v4361_v59 = vmax.f32 %v6670_v50, %v6671_v49  ;;  %v6677_v25 = vrot.slane %v6676_v60, 1  ;;  %v6685_v50 = vld [vmem:[#allocation176_spill] sm:$0xff] }
 0x15b   :  { %6666 = vst [vmem:[#allocation169_spill] sm:$0xff] %v4351_v61  ;;  %v4366_v46 = vmax.f32 %v6673_v58, %v6674_v40  ;;  %v6680_v61 = vrot.slane %v6679_v51, 1  ;;  %v6688_v58 = vld [vmem:[#allocation177_spill] sm:$0xff] }
 0x15c   :  { %6669 = vst [vmem:[#allocation170_spill] sm:$0xff] %v4356_v15  ;;  %v4371_v56 = vmax.f32 %v6676_v60, %v6677_v25  ;;  %v6683_v15 = vrot.slane %v6682_v43, 1  ;;  %v6691_v60 = vld [vmem:[#allocation178_spill] sm:$0xff] }
 0x15d   :  { %6672 = vst [vmem:[#allocation171_spill] sm:$0xff] %v4361_v59  ;;  %v4376_v31 = vmax.f32 %v6679_v51, %v6680_v61  ;;  %v6686_v59 = vrot.slane %v6685_v50, 1  ;;  %v6694_v51 = vld [vmem:[#allocation179_spill] sm:$0xff] }
 0x15e   :  { %6675 = vst [vmem:[#allocation172_spill] sm:$0xff] %v4366_v46  ;;  %v4381_v49 = vmax.f32 %v6682_v43, %v6683_v15  ;;  %v6689_v46 = vrot.slane %v6688_v58, 1  ;;  %v6697_v43 = vld [vmem:[#allocation180_spill] sm:$0xff] }
 0x15f   :  { %6678 = vst [vmem:[#allocation173_spill] sm:$0xff] %v4371_v56  ;;  %v4386_v40 = vmax.f32 %v6685_v50, %v6686_v59  ;;  %v6692_v56 = vrot.slane %v6691_v60, 1  ;;  %v6700_v50 = vld [vmem:[#allocation181_spill] sm:$0xff] }
 0x160   :  { %6681 = vst [vmem:[#allocation174_spill] sm:$0xff] %v4376_v31  ;;  %v4391_v25 = vmax.f32 %v6688_v58, %v6689_v46  ;;  %v6695_v31 = vrot.slane %v6694_v51, 1  ;;  %v6703_v58 = vld [vmem:[#allocation182_spill] sm:$0xff] }
 0x161   :  { %6684 = vst [vmem:[#allocation175_spill] sm:$0xff] %v4381_v49  ;;  %v4396_v61 = vmax.f32 %v6691_v60, %v6692_v56  ;;  %v6698_v49 = vrot.slane %v6697_v43, 1  ;;  %v6706_v60 = vld [vmem:[#allocation183_spill] sm:$0xff] }
 0x162   :  { %6687 = vst [vmem:[#allocation176_spill] sm:$0xff] %v4386_v40  ;;  %v4401_v15 = vmax.f32 %v6694_v51, %v6695_v31  ;;  %v6701_v40 = vrot.slane %v6700_v50, 1  ;;  %v6709_v51 = vld [vmem:[#allocation184_spill] sm:$0xff] }
 0x163   :  { %6690 = vst [vmem:[#allocation177_spill] sm:$0xff] %v4391_v25  ;;  %v4406_v59 = vmax.f32 %v6697_v43, %v6698_v49  ;;  %v6704_v25 = vrot.slane %v6703_v58, 1  ;;  %v6712_v43 = vld [vmem:[#allocation185_spill] sm:$0xff] }
 0x164   :  { %6693 = vst [vmem:[#allocation178_spill] sm:$0xff] %v4396_v61  ;;  %v4411_v46 = vmax.f32 %v6700_v50, %v6701_v40  ;;  %v6707_v61 = vrot.slane %v6706_v60, 1  ;;  %v6715_v50 = vld [vmem:[#allocation186_spill] sm:$0xff] }
 0x165   :  { %6696 = vst [vmem:[#allocation179_spill] sm:$0xff] %v4401_v15  ;;  %v4416_v56 = vmax.f32 %v6703_v58, %v6704_v25  ;;  %v6710_v15 = vrot.slane %v6709_v51, 1  ;;  %v6718_v58 = vld [vmem:[#allocation187_spill] sm:$0xff] }
 0x166   :  { %6699 = vst [vmem:[#allocation180_spill] sm:$0xff] %v4406_v59  ;;  %v4421_v31 = vmax.f32 %v6706_v60, %v6707_v61  ;;  %v6713_v59 = vrot.slane %v6712_v43, 1  ;;  %v6721_v60 = vld [vmem:[#allocation188_spill] sm:$0xff] }
 0x167   :  { %6702 = vst [vmem:[#allocation181_spill] sm:$0xff] %v4411_v46  ;;  %v4426_v49 = vmax.f32 %v6709_v51, %v6710_v15  ;;  %v6716_v46 = vrot.slane %v6715_v50, 1  ;;  %v6724_v51 = vld [vmem:[#allocation189_spill] sm:$0xff] }
 0x168   :  { %6705 = vst [vmem:[#allocation182_spill] sm:$0xff] %v4416_v56  ;;  %v4431_v40 = vmax.f32 %v6712_v43, %v6713_v59  ;;  %v6719_v56 = vrot.slane %v6718_v58, 1  ;;  %v6727_v43 = vld [vmem:[#allocation190_spill] sm:$0xff] }
 0x169   :  { %6708 = vst [vmem:[#allocation183_spill] sm:$0xff] %v4421_v31  ;;  %v4436_v25 = vmax.f32 %v6715_v50, %v6716_v46  ;;  %v6722_v31 = vrot.slane %v6721_v60, 1  ;;  %v6730_v50 = vld [vmem:[#allocation191_spill] sm:$0xff] }
 0x16a   :  { %6711 = vst [vmem:[#allocation184_spill] sm:$0xff] %v4426_v49  ;;  %v4441_v61 = vmax.f32 %v6718_v58, %v6719_v56  ;;  %v6725_v49 = vrot.slane %v6724_v51, 1  ;;  %v6733_v58 = vld [vmem:[#allocation192_spill] sm:$0xff] }
 0x16b   :  { %6714 = vst [vmem:[#allocation185_spill] sm:$0xff] %v4431_v40  ;;  %v4446_v15 = vmax.f32 %v6721_v60, %v6722_v31  ;;  %v6728_v40 = vrot.slane %v6727_v43, 1  ;;  %v6736_v60 = vld [vmem:[#allocation193_spill] sm:$0xff] }
 0x16c   :  { %6717 = vst [vmem:[#allocation186_spill] sm:$0xff] %v4436_v25  ;;  %v4451_v59 = vmax.f32 %v6724_v51, %v6725_v49  ;;  %v6731_v25 = vrot.slane %v6730_v50, 1  ;;  %v6739_v51 = vld [vmem:[#allocation194_spill] sm:$0xff] }
 0x16d   :  { %6720 = vst [vmem:[#allocation187_spill] sm:$0xff] %v4441_v61  ;;  %v4456_v46 = vmax.f32 %v6727_v43, %v6728_v40  ;;  %v6734_v61 = vrot.slane %v6733_v58, 1  ;;  %v6742_v43 = vld [vmem:[#allocation195_spill] sm:$0xff] }
 0x16e   :  { %6723 = vst [vmem:[#allocation188_spill] sm:$0xff] %v4446_v15  ;;  %v4461_v56 = vmax.f32 %v6730_v50, %v6731_v25  ;;  %v6737_v15 = vrot.slane %v6736_v60, 1  ;;  %v6744_v50 = vld [vmem:[#allocation196_spill] sm:$0xff] }
 0x16f   :  { %6726 = vst [vmem:[#allocation189_spill] sm:$0xff] %v4451_v59  ;;  %v4466_v31 = vmax.f32 %v6733_v58, %v6734_v61  ;;  %v6740_v59 = vrot.slane %v6739_v51, 1  ;;  %v6746_v58 = vld [vmem:[#allocation197_spill] sm:$0xff] }
 0x170   :  { %6729 = vst [vmem:[#allocation190_spill] sm:$0xff] %v4456_v46  ;;  %v4471_v49 = vmax.f32 %v6736_v60, %v6737_v15  ;;  %v6743_v46 = vrot.slane %v6742_v43, 1  ;;  %v6748_v60 = vld [vmem:[#allocation198_spill] sm:$0xff] }
 0x171   :  { %6732 = vst [vmem:[#allocation191_spill] sm:$0xff] %v4461_v56  ;;  %v4476_v40 = vmax.f32 %v6739_v51, %v6740_v59  ;;  %v6745_v56 = vrot.slane %v6744_v50, 1  ;;  %v6751_v51 = vld [vmem:[#allocation199_spill] sm:$0xff] }
 0x172   :  { %6735 = vst [vmem:[#allocation192_spill] sm:$0xff] %v4466_v31  ;;  %v4481_v25 = vmax.f32 %v6742_v43, %v6743_v46  ;;  %v6747_v31 = vrot.slane %v6746_v58, 1  ;;  %v6754_v43 = vrot.slane %v3819_v10, 1 }
 0x173   :  { %6738 = vst [vmem:[#allocation193_spill] sm:$0xff] %v4471_v49  ;;  %v4486_v61 = vmax.f32 %v6744_v50, %v6745_v56  ;;  %v6749_v49 = vrot.slane %v6748_v60, 1  ;;  %v6756_v50 = vrot.slane %v3824_v9, 1 }
 0x174   :  { %6741 = vst [vmem:[#allocation194_spill] sm:$0xff] %v4476_v40  ;;  %v4491_v15 = vmax.f32 %v6746_v58, %v6747_v31  ;;  %v6752_v40 = vrot.slane %v6751_v51, 1  ;;  %v4506_v56 = vmax.f32 %v3819_v10, %v6754_v43  ;;  %v6758_v58 = vrot.slane %v3829_v38, 1 }
 0x175   :  { %v4496_v59 = vmax.f32 %v6748_v60, %v6749_v49  ;;  %v4511_v31 = vmax.f32 %v3824_v9, %v6756_v50  ;;  %v6760_v60 = vld [vmem:[#allocation200_spill] sm:$0xff]  ;;  %v6763_v43 = vrot.slane %v3848_v5, 1  ;;  %v6765_v50 = vrot.slane %v3853_v19, 1 }
 0x176   :  { %v4501_v46 = vmax.f32 %v6751_v51, %v6752_v40  ;;  %6755 = vst [vmem:[#allocation197_spill] sm:$0xff] %v4506_v56  ;;  %v4516_v49 = vmax.f32 %v3829_v38, %v6758_v58  ;;  %v6762_v51 = vrot.slane %v3843_v6, 1  ;;  %v6767_v58 = vld [vmem:[#allocation201_spill] sm:$0xff]  ;;  %v6957_v36 = vld [vmem:[#allocation188_spill] sm:$0xff] }
 0x177   :  { %6750 = vst [vmem:[#allocation195_spill] sm:$0xff] %v4496_v59  ;;  %v6761_v59 = vrot.slane %v6760_v60, 1  ;;  %v4531_v9 = vmax.f32 %v3848_v5, %v6763_v43  ;;  %v4536_v38 = vmax.f32 %v3853_v19, %v6765_v50  ;;  %v6774_v43 = vld [vmem:[#allocation202_spill] sm:$0xff]  ;;  %v6777_v50 = vld [vmem:[#allocation203_spill] sm:$0xff]  ;;  %v6987_v56 = vld [vmem:[#allocation112_spill] sm:$0xff] }
 0x178   :  { %6753 = vst [vmem:[#allocation196_spill] sm:$0xff] %v4501_v46  ;;  %v4526_v10 = vmax.f32 %v3843_v6, %v6762_v51  ;;  %v6772_v51 = vrot.slane %v3872_v1, 1  ;;  %v6985_v46 = vld [vmem:[#allocation111_spill] sm:$0xff] }
 0x179   :  { %6757 = vst [vmem:[#allocation198_spill] sm:$0xff] %v4511_v31  ;;  %v4521_v40 = vmax.f32 %v6760_v60, %v6761_v59  ;;  %v6770_v60 = vrot.slane %v3867_v2, 1 }
 0x17a   :  { %6759 = vst [vmem:[#allocation199_spill] sm:$0xff] %v4516_v49  ;;  %v6768_v49 = vrot.slane %v6767_v58, 1  ;;  %v4551_v5 = vmax.f32 %v3872_v1, %v6772_v51  ;;  %v6781_v51 = vrot.slane %v3901_v11, 1 }
 0x17b   :  { %6764 = vst [vmem:[#allocation200_spill] sm:$0xff] %v4531_v9  ;;  %v4546_v6 = vmax.f32 %v3867_v2, %v6770_v60  ;;  %v6775_v9 = vrot.slane %v6774_v43, 1  ;;  %v6780_v60 = vrot.slane %v3896_v37, 1 }
 0x17c   :  { %6766 = vst [vmem:[#allocation224_spill] sm:$0xff] %v4536_v38  ;;  %v4541_v59 = vmax.f32 %v6767_v58, %v6768_v49  ;;  %v6778_v38 = vrot.slane %v6777_v50, 1  ;;  %v6779_v58 = vrot.slane %v3891_v41, 1 }
 0x17d   :  { %6771 = vst [vmem:[#allocation225_spill] sm:$0xff] %v4546_v6  ;;  %v4556_v19 = vmax.f32 %v6774_v43, %v6775_v9  ;;  %v4571_v1 = vmax.f32 %v3896_v37, %v6780_v60  ;;  %v4576_v9 = vmax.f32 %v3901_v11, %v6781_v51  ;;  %v6782_v43 = vrot.slane %v3906_v0, 1 }
 0x17e   :  { %6769 = vst [vmem:[#allocation201_spill] sm:$0xff] %v4541_v59  ;;  %v4561_v49 = vmax.f32 %v6777_v50, %v6778_v38  ;;  %v4566_v2 = vmax.f32 %v3891_v41, %v6779_v58  ;;  %v6784_v50 = vrot.slane %v3915_v30, 1  ;;  %v6786_v58 = vrot.slane %v3920_v22, 1 }
 0x17f   :  { %6773 = vst [vmem:[#allocation226_spill] sm:$0xff] %v4551_v5  ;;  %v4581_v38 = vmax.f32 %v3906_v0, %v6782_v43  ;;  %v6788_v60 = vrot.slane %v3925_v7, 1  ;;  %v6790_v51 = vrot.slane %v3930_v28, 1  ;;  %v6792_v43 = vrot.slane %v3939_v17, 1 }
 0x180   :  { %6776 = vst [vmem:[#allocation202_spill] sm:$0xff] %v4556_v19  ;;  %v4586_v41 = vmax.f32 %v3915_v30, %v6784_v50  ;;  %v4591_v37 = vmax.f32 %v3920_v22, %v6786_v58  ;;  %v6794_v50 = vrot.slane %v3944_v18, 1  ;;  %v6796_v58 = vrot.slane %v3949_v3, 1 }
 0x181   :  { %6783 = vst [vmem:[#allocation203_spill] sm:$0xff] %v4581_v38  ;;  %v4596_v11 = vmax.f32 %v3925_v7, %v6788_v60  ;;  %v4601_v0 = vmax.f32 %v3930_v28, %v6790_v51  ;;  %v4606_v30 = vmax.f32 %v3939_v17, %v6792_v43  ;;  %v6798_v60 = vrot.slane %v3954_v20, 1  ;;  %v7045_v38 = vld [vmem:[#allocation217_spill] sm:$0xff] }
 0x182   :  { %6785 = vst [vmem:[#allocation227_spill] sm:$0xff] %v4586_v41  ;;  %v4611_v22 = vmax.f32 %v3944_v18, %v6794_v50  ;;  %v4616_v7 = vmax.f32 %v3949_v3, %v6796_v58  ;;  %v6800_v51 = vrot.slane %v3963_v13, 1  ;;  %v6802_v43 = vrot.slane %v3972_v24, 1  ;;  %v6806_v58 = vld [vmem:[#allocation76_spill] sm:$0xff] }
 0x183   :  { %6787 = vst [vmem:[#allocation228_spill] sm:$0xff] %v4591_v37  ;;  %v4621_v28 = vmax.f32 %v3954_v20, %v6798_v60  ;;  %v6804_v50 = vrot.slane %v3981_v23, 1  ;;  %v6807_v20 = vld [vmem:[#allocation77_spill] sm:$0xff]  ;;  %v6814_v60 = vld [vmem:[#allocation84_spill] sm:$0xff] }
 0x184   :  { %6789 = vst [vmem:[#allocation229_spill] sm:$0xff] %v4596_v11  ;;  %v4626_v17 = vmax.f32 %v3963_v13, %v6800_v51  ;;  %v4631_v18 = vmax.f32 %v3972_v24, %v6802_v43  ;;  %v6809_v51 = vld [vmem:[#allocation79_spill] sm:$0xff]  ;;  %v6815_v13 = vld [vmem:[#allocation85_spill] sm:$0xff]  ;;  %v6981_v57 = vmax.f32 %v6807_v20, %v4006_v4  ;;  %v6984_v44 = vld [vmem:[#allocation200_spill] sm:$0xff]  ;;  %v6995_v4 = vmax.f32 %v6806_v58, %v4001_v45 }
 0x185   :  { %6791 = vst [vmem:[#allocation230_spill] sm:$0xff] %v4601_v0  ;;  %v4636_v3 = vmax.f32 %v3981_v23, %v6804_v50  ;;  %v6817_v43 = vld [vmem:[#allocation87_spill] sm:$0xff]  ;;  %v6822_v0 = vld [vmem:[#allocation92_spill] sm:$0xff]  ;;  %v6823_v11 = vld [vmem:[#allocation93_spill] sm:$0xff]  ;;  %v7000_v45 = vmax.f32 %v6814_v60, %v4041_v39 }
 0x186   :  { %6793 = vst [vmem:[#allocation231_spill] sm:$0xff] %v4606_v30  ;;  %v6958_v23 = vld [vmem:[#allocation60_spill] sm:$0xff]  ;;  %v6971_v30 = vld [vmem:[#allocation67_spill] sm:$0xff]  ;;  %v6973_v50 = vld [vmem:[#allocation69_spill] sm:$0xff]  ;;  %v1544_v27 = vrot.slane %v6981_v57, 7  ;;  %v6990_v57 = vmax.f32 %v6815_v13, %v4046_v35 }
 0x187   :  { %6795 = vst [vmem:[#allocation232_spill] sm:$0xff] %v4611_v22  ;;  %v6975_v22 = vld [vmem:[#allocation70_spill] sm:$0xff]  ;;  %v6986_v42 = vld [vmem:[#allocation224_spill] sm:$0xff]  ;;  %v6998_v24 = vld [vmem:[#allocation115_spill] sm:$0xff] }
 0x188   :  { %6797 = vst [vmem:[#allocation233_spill] sm:$0xff] %v4616_v7  ;;  %v1565_v20 = vrot.slane %v6990_v57, 7  ;;  %v1546_v6 = vsel %vm1545_vm0, %v1544_v27, %v6995_v4  ;;  %v6997_v57 = vmax.f32 %v6823_v11, %v4086_v48  ;;  %v7004_v4 = vmax.f32 %v6809_v51, %v4016_v8  ;;  %v7019_v11 = vld [vmem:[#allocation218_spill] sm:$0xff]  ;;  %v7022_v8 = vld [vmem:[#allocation123_spill] sm:$0xff]  ;;  %v7027_v37 = vld [vmem:[#allocation124_spill] sm:$0xff] }
 0x189   :  { %6799 = vst [vmem:[#allocation234_spill] sm:$0xff] %v4621_v28  ;;  %v6808_v28 = vld [vmem:[#allocation78_spill] sm:$0xff] }
 0x18a   :  { %6801 = vst [vmem:[#allocation235_spill] sm:$0xff] %v4626_v17  ;;  %v6816_v17 = vld [vmem:[#allocation86_spill] sm:$0xff]  ;;  %v6994_v14 = vmax.f32 %v6808_v28, %v4011_v53  ;;  %v1579_v21 = vrot.slane %v6997_v57, 7  ;;  %v6999_v53 = vld [vmem:[#allocation116_spill] sm:$0xff]  ;;  %v1566_v27 = vsel %vm1545_vm0, %v1565_v20, %v7000_v45  ;;  %v7001_v28 = vmax.f32 %v6824_v16, %v4091_v47 }
 0x18b   :  { %6803 = vst [vmem:[#allocation236_spill] sm:$0xff] %v4631_v18  ;;  %v6960_v18 = vld [vmem:[#allocation61_spill] sm:$0xff]  ;;  %v6996_v35 = vmax.f32 %v6816_v17, %v4051_v34  ;;  %v7005_v57 = vmax.f32 %v6822_v0, %v4081_v29  ;;  %v7007_v47 = vmax.f32 %v6817_v43, %v4056_v33  ;;  %v7057_v20 = vld [vmem:[#allocation82_spill] sm:$0xff] }
 0x18c   :  { %6805 = vst [vmem:[#allocation237_spill] sm:$0xff] %v4636_v3  ;;  %v6972_v3 = vld [vmem:[#allocation68_spill] sm:$0xff]  ;;  %v1547_v26 = vrot.slane %v6994_v14, 6  ;;  %v1581_v34 = vrot.slane %v7001_v28, 6  ;;  %v7002_v17 = vld [vmem:[#allocation117_spill] sm:$0xff] }
 0x18d   :  { %v1567_v13 = vrot.slane %v6996_v35, 6  ;;  %v1550_v35 = vrot.slane %v7004_v4, 5  ;;  %v1580_v39 = vsel %vm1545_vm0, %v1579_v21, %v7005_v57  ;;  %v1569_v45 = vrot.slane %v7007_v47, 5  ;;  %v7011_v21 = vld [vmem:[#allocation212_spill] sm:$0xff]  ;;  %v7018_v47 = vld [vmem:[#allocation101_spill] sm:$0xff]  ;;  %v7021_v4 = vld [vmem:[#allocation231_spill] sm:$0xff] }
 0x18e   :  { %v1549_v16 = vsel %vm1548_vm1, %v1547_v26, %v1546_v6  ;;  %v7012_v0 = vmax.f32 %v6825_v12, %v7011_v21  ;;  %v7015_v6 = vld [vmem:[#allocation80_spill] sm:$0xff]  ;;  %v1582_v43 = vsel %vm1548_vm1, %v1581_v34, %v1580_v39  ;;  %v7020_v19 = vmax.f32 %v7018_v47, %v7019_v11 }
 0x18f   :  { %v1568_v29 = vsel %vm1548_vm1, %v1567_v13, %v1566_v27  ;;  %v7016_v14 = vld [vmem:[#allocation204_spill] sm:$0xff]  ;;  %v1552_v27 = vsel %vm1551_vm2, %v1550_v35, %v1549_v16  ;;  %v7035_v16 = vld [vmem:[#allocation81_spill] sm:$0xff] }
 0x190   :  { %v1583_v57 = vrot.slane %v7012_v0, 5  ;;  %v7017_v55 = vmax.f32 %v7015_v6, %v7016_v14  ;;  %v1593_v7 = vrot.slane %v7020_v19, 7  ;;  %v7023_v12 = vld [vmem:[#allocation88_spill] sm:$0xff]  ;;  %v1570_v39 = vsel %vm1551_vm2, %v1569_v45, %v1568_v29  ;;  %v7031_v19 = vld [vmem:[#allocation213_spill] sm:$0xff]  ;;  %v7039_v14 = vld [vmem:[#allocation219_spill] sm:$0xff] }
 0x191   :  { %v7024_v21 = vld [vmem:[#allocation208_spill] sm:$0xff]  ;;  %v7037_v41 = vmax.f32 %v7035_v16, %v7036_v32  ;;  %v7041_v45 = vld [vmem:[#allocation89_spill] sm:$0xff]  ;;  %v7060_v16 = vld [vmem:[#allocation103_spill] sm:$0xff] }
 0x192   :  { %v1553_v33 = vrot.slane %v7017_v55, 4  ;;  %v7025_v0 = vmax.f32 %v7023_v12, %v7024_v21  ;;  %v7026_v51 = vld [vmem:[#allocation232_spill] sm:$0xff]  ;;  %v1584_v21 = vsel %vm1551_vm2, %v1583_v57, %v1582_v43  ;;  %v7042_v29 = vld [vmem:[#allocation209_spill] sm:$0xff] }
 0x193   :  { %v7030_v11 = vld [vmem:[#allocation96_spill] sm:$0xff]  ;;  %v1556_v12 = vrot.slane %v7037_v41, 3  ;;  %v7049_v43 = vld [vmem:[#allocation97_spill] sm:$0xff]  ;;  %v7078_v41 = vld [vmem:[#allocation3_spill] sm:$0xff] }
 0x194   :  { %v1571_v26 = vrot.slane %v7025_v0, 4  ;;  %v7032_v47 = vmax.f32 %v7030_v11, %v7031_v19  ;;  %v7038_v0 = vld [vmem:[#allocation102_spill] sm:$0xff]  ;;  %v1555_v34 = vsel %vm1554_vm3, %v1553_v33, %v1552_v27  ;;  %v7043_v11 = vmax.f32 %v7041_v45, %v7042_v29  ;;  %v7052_v33 = vld [vmem:[#allocation4_spill] sm:$0xff]  ;;  %v7067_v45 = vld [vmem:[#allocation207_spill] sm:$0xff] }
 0x195   :  { %v7040_v60 = vmax.f32 %v7038_v0, %v7039_v14  ;;  %v7050_v14 = vld [vmem:[#allocation214_spill] sm:$0xff]  ;;  %v7053_v27 = vld [vmem:[#allocation132_spill] sm:$0xff] }
 0x196   :  { %v1585_v28 = vrot.slane %v7032_v47, 4  ;;  %v1573_v19 = vrot.slane %v7043_v11, 3  ;;  %v7044_v47 = vld [vmem:[#allocation100_spill] sm:$0xff]  ;;  %v1572_v57 = vsel %vm1554_vm3, %v1571_v26, %v1570_v39  ;;  %v7054_v5 = vmax.f32 %v7052_v33, %v7053_v27  ;;  %v7066_v11 = vld [vmem:[#allocation83_spill] sm:$0xff] }
 0x197   :  { %v1595_v52 = vrot.slane %v7040_v60, 6  ;;  %v7046_v35 = vmax.f32 %v7044_v47, %v7045_v38  ;;  %v7051_v60 = vmax.f32 %v7049_v43, %v7050_v14  ;;  %v7058_v38 = vld [vmem:[#allocation206_spill] sm:$0xff]  ;;  %v7061_v32 = vld [vmem:[#allocation220_spill] sm:$0xff]  ;;  %v1558_v43 = vsel %vm1557_vm4, %v1556_v12, %v1555_v34 }
 0x198   :  { %v1607_v48 = vrot.slane %v7054_v5, 7  ;;  %v7059_v47 = vmax.f32 %v7057_v20, %v7058_v38  ;;  %v7062_v26 = vmax.f32 %v7060_v16, %v7061_v32  ;;  %v7063_v14 = vld [vmem:[#allocation90_spill] sm:$0xff]  ;;  %v7068_v29 = vmax.f32 %v7066_v11, %v7067_v45  ;;  %v7072_v16 = vld [vmem:[#allocation5_spill] sm:$0xff]  ;;  %v7079_v45 = vld [vmem:[#allocation131_spill] sm:$0xff] }
 0x199   :  { %v1594_v13 = vsel %vm1545_vm0, %v1593_v7, %v7046_v35  ;;  %v1587_v0 = vrot.slane %v7051_v60, 3  ;;  %v1586_v35 = vsel %vm1554_vm3, %v1585_v28, %v1584_v21  ;;  %v7064_v60 = vld [vmem:[#allocation210_spill] sm:$0xff]  ;;  %v1574_v38 = vsel %vm1557_vm4, %v1573_v19, %v1572_v57  ;;  %v7070_v21 = vld [vmem:[#allocation215_spill] sm:$0xff] }
 0x19a   :  { %v1559_v7 = vrot.slane %v7059_v47, 2  ;;  %v1597_v39 = vrot.slane %v7062_v26, 5  ;;  %v7065_v33 = vmax.f32 %v7063_v14, %v7064_v60  ;;  %v1596_v27 = vsel %vm1548_vm1, %v1595_v52, %v1594_v13  ;;  %v7069_v28 = vld [vmem:[#allocation98_spill] sm:$0xff]  ;;  %v7073_v26 = vld [vmem:[#allocation133_spill] sm:$0xff]  ;;  %v7075_v60 = vld [vmem:[#allocation104_spill] sm:$0xff] }
 0x19b   :  { %v1562_v20 = vrot.slane %v7068_v29, 1  ;;  %v7071_v47 = vmax.f32 %v7069_v28, %v7070_v21  ;;  %v7074_v34 = vmax.f32 %v7072_v16, %v7073_v26  ;;  %v1588_v14 = vsel %vm1557_vm4, %v1587_v0, %v1586_v35  ;;  %v7081_v11 = vld [vmem:[#allocation91_spill] sm:$0xff]  ;;  %v7084_v26 = vld [vmem:[#allocation12_spill] sm:$0xff] }
 0x19c   :  { %v1575_v5 = vrot.slane %v7065_v33, 2  ;;  %v7076_v33 = vld [vmem:[#allocation221_spill] sm:$0xff]  ;;  %v7080_v29 = vmax.f32 %v7078_v41, %v7079_v45  ;;  %v1561_v57 = vsel %vm1560_vm5, %v1559_v7, %v1558_v43  ;;  %v7082_v28 = vld [vmem:[#allocation211_spill] sm:$0xff]  ;;  %v1598_v16 = vsel %vm1551_vm2, %v1597_v39, %v1596_v27  ;;  %v7090_v45 = vld [vmem:[#allocation216_spill] sm:$0xff] }
 0x19d   :  { %v1589_v32 = vrot.slane %v7071_v47, 2  ;;  %v1609_v12 = vrot.slane %v7074_v34, 6  ;;  %v7077_v52 = vmax.f32 %v7075_v60, %v7076_v33  ;;  %v7083_v21 = vmax.f32 %v7081_v11, %v7082_v28  ;;  %v7085_v34 = vld [vmem:[#allocation140_spill] sm:$0xff]  ;;  %v7089_v41 = vld [vmem:[#allocation99_spill] sm:$0xff]  ;;  %v7092_v7 = vld [vmem:[#allocation6_spill] sm:$0xff] }
 0x19e   :  { %v1608_v19 = vsel %vm1545_vm0, %v1607_v48, %v7080_v29  ;;  %v7086_v0 = vmax.f32 %v7084_v26, %v7085_v34  ;;  %v7091_v48 = vmax.f32 %v7089_v41, %v7090_v45  ;;  %v7093_v43 = vld [vmem:[#allocation134_spill] sm:$0xff]  ;;  %v7095_v39 = vld [vmem:[#allocation105_spill] sm:$0xff]  ;;  %v7099_v33 = vld [vmem:[#allocation148_spill] sm:$0xff] }
 0x19f   :  { %v1599_v13 = vrot.slane %v7077_v52, 4  ;;  %v1577_v47 = vrot.slane %v7083_v21, 1  ;;  %v1576_v52 = vsel %vm1560_vm5, %v1575_v5, %v1574_v38  ;;  %v7094_v59 = vmax.f32 %v7092_v7, %v7093_v43  ;;  %v7096_v27 = vld [vmem:[#allocation222_spill] sm:$0xff]  ;;  %v7102_v45 = vld [vmem:[#allocation13_spill] sm:$0xff] }
 0x1a0   :  { %v1621_v35 = vrot.slane %v7086_v0, 7  ;;  %v1591_v29 = vrot.slane %v7091_v48, 1  ;;  %v1590_v28 = vsel %vm1560_vm5, %v1589_v32, %v1588_v14  ;;  %v7097_v21 = vmax.f32 %v7095_v39, %v7096_v27  ;;  %v7098_v0 = vld [vmem:[#allocation20_spill] sm:$0xff]  ;;  %v7103_v48 = vld [vmem:[#allocation141_spill] sm:$0xff] }
 0x1a1   :  { %v1611_v11 = vrot.slane %v7094_v59, 5  ;;  %v1610_v34 = vsel %vm1548_vm1, %v1609_v12, %v1608_v19  ;;  %v7100_v58 = vmax.f32 %v7098_v0, %v7099_v33  ;;  %v5026_v38 = vsel %vm1563_vm6, %v1562_v20, %v1561_v57  ;;  %v7105_v32 = vld [vmem:[#allocation28_spill] sm:$0xff]  ;;  %v7109_v12 = vld [vmem:[#allocation106_spill] sm:$0xff]  ;;  %v7110_v19 = vld [vmem:[#allocation223_spill] sm:$0xff] }
 0x1a2   :  { %v1601_v26 = vrot.slane %v7097_v21, 3  ;;  %7101 = vst [vmem:[#allocation76_spill] sm:$0xff] %v5026_v38  ;;  %v1600_v41 = vsel %vm1554_vm3, %v1599_v13, %v1598_v16  ;;  %v7104_v59 = vmax.f32 %v7102_v45, %v7103_v48  ;;  %v7106_v14 = vld [vmem:[#allocation156_spill] sm:$0xff]  ;;  %v5036_v27 = vsel %vm1563_vm6, %v1577_v47, %v1576_v52  ;;  %v7112_v21 = vld [vmem:[#allocation7_spill] sm:$0xff] }
 0x1a3   :  { %v1635_v5 = vrot.slane %v7100_v58, 7  ;;  %v7107_v43 = vmax.f32 %v7105_v32, %v7106_v14  ;;  %7108 = vst [vmem:[#allocation77_spill] sm:$0xff] %v5036_v27  ;;  %v7111_v33 = vmax.f32 %v7109_v12, %v7110_v19  ;;  %v7113_v20 = vld [vmem:[#allocation135_spill] sm:$0xff]  ;;  %v5049_v48 = vsel %vm1563_vm6, %v1591_v29, %v1590_v28  ;;  %v7120_v32 = vld [vmem:[#allocation130_spill] sm:$0xff]  ;;  %v7123_v12 = vld [vmem:[#allocation149_spill] sm:$0xff] }
 0x1a4   :  { %v1623_v7 = vrot.slane %v7104_v59, 6  ;;  %v7114_v57 = vmax.f32 %v7112_v21, %v7113_v20  ;;  %v7115_v13 = vld [vmem:[#allocation11_spill] sm:$0xff]  ;;  %7118 = vst [vmem:[#allocation78_spill] sm:$0xff] %v5049_v48  ;;  %v7119_v59 = vld [vmem:[#allocation2_spill] sm:$0xff]  ;;  %v1612_v14 = vsel %vm1551_vm2, %v1611_v11, %v1610_v34  ;;  %v1602_v21 = vsel %vm1557_vm4, %v1601_v26, %v1600_v41  ;;  %v7131_v48 = vld [vmem:[#allocation29_spill] sm:$0xff] }
 0x1a5   :  { %v1649_v39 = vrot.slane %v7107_v43, 7  ;;  %v1603_v58 = vrot.slane %v7111_v33, 2  ;;  %v7116_v16 = vld [vmem:[#allocation139_spill] sm:$0xff]  ;;  %v7121_v47 = vmax.f32 %v7119_v59, %v7120_v32  ;;  %v7122_v43 = vld [vmem:[#allocation21_spill] sm:$0xff]  ;;  %v7125_v20 = vld [vmem:[#allocation14_spill] sm:$0xff] }
 0x1a6   :  { %v1613_v0 = vrot.slane %v7114_v57, 4  ;;  %v7117_v60 = vmax.f32 %v7115_v13, %v7116_v16  ;;  %v7124_v19 = vmax.f32 %v7122_v43, %v7123_v12  ;;  %v7126_v57 = vld [vmem:[#allocation142_spill] sm:$0xff]  ;;  %v7132_v59 = vld [vmem:[#allocation157_spill] sm:$0xff]  ;;  %v7134_v34 = vld [vmem:[#allocation27_spill] sm:$0xff] }
 0x1a7   :  { %v1605_v52 = vrot.slane %v7121_v47, 1  ;;  %v7127_v13 = vmax.f32 %v7125_v20, %v7126_v57  ;;  %v7133_v32 = vmax.f32 %v7131_v48, %v7132_v59  ;;  %v7135_v43 = vld [vmem:[#allocation155_spill] sm:$0xff]  ;;  %v7137_v41 = vld [vmem:[#allocation36_spill] sm:$0xff]  ;;  %v7141_v27 = vld [vmem:[#allocation165_spill] sm:$0xff] }
 0x1a8   :  { %v1622_v45 = vsel %vm1545_vm0, %v1621_v35, %v7117_v60  ;;  %v1637_v33 = vrot.slane %v7124_v19, 6  ;;  %v7128_v35 = vld [vmem:[#allocation19_spill] sm:$0xff]  ;;  %v7136_v12 = vmax.f32 %v7134_v34, %v7135_v43  ;;  %v7138_v19 = vld [vmem:[#allocation164_spill] sm:$0xff]  ;;  %v7149_v43 = vld [vmem:[#allocation22_spill] sm:$0xff] }
 0x1a9   :  { %v1625_v16 = vrot.slane %v7127_v13, 5  ;;  %v7129_v60 = vld [vmem:[#allocation147_spill] sm:$0xff]  ;;  %v1651_v47 = vrot.slane %v7133_v32, 6  ;;  %v1624_v11 = vsel %vm1548_vm1, %v1623_v7, %v1622_v45  ;;  %v7139_v20 = vmax.f32 %v7137_v41, %v7138_v19  ;;  %v7140_v13 = vld [vmem:[#allocation37_spill] sm:$0xff]  ;;  %v7144_v48 = vld [vmem:[#allocation136_spill] sm:$0xff] }
 0x1aa   :  { %v7130_v29 = vmax.f32 %v7128_v35, %v7129_v60  ;;  %v1650_v26 = vsel %vm1545_vm0, %v1649_v39, %v7136_v12  ;;  %v7142_v35 = vmax.f32 %v7140_v13, %v7141_v27  ;;  %v7146_v7 = vld [vmem:[#allocation9_spill] sm:$0xff]  ;;  %v7150_v39 = vld [vmem:[#allocation150_spill] sm:$0xff]  ;;  %v7152_v41 = vld [vmem:[#allocation15_spill] sm:$0xff] }
 0x1ab   :  { %v1663_v57 = vrot.slane %v7139_v20, 7  ;;  %v7147_v45 = vld [vmem:[#allocation137_spill] sm:$0xff]  ;;  %v7151_v12 = vmax.f32 %v7149_v43, %v7150_v39  ;;  %v7153_v19 = vld [vmem:[#allocation143_spill] sm:$0xff]  ;;  %v7155_v13 = vld [vmem:[#allocation30_spill] sm:$0xff]  ;;  %v1652_v43 = vsel %vm1548_vm1, %v1651_v47, %v1650_v26 }
 0x1ac   :  { %v1636_v28 = vsel %vm1545_vm0, %v1635_v5, %v7130_v29  ;;  %v1665_v60 = vrot.slane %v7142_v35, 6  ;;  %v1614_v5 = vsel %vm1554_vm3, %v1613_v0, %v1612_v14  ;;  %v7143_v29 = vld [vmem:[#allocation8_spill] sm:$0xff]  ;;  %v7148_v38 = vmax.f32 %v7146_v7, %v7147_v45  ;;  %v7156_v0 = vld [vmem:[#allocation158_spill] sm:$0xff] }
 0x1ad   :  { %v7145_v59 = vmax.f32 %v7143_v29, %v7144_v48  ;;  %v1639_v31 = vrot.slane %v7151_v12, 5  ;;  %v7154_v20 = vmax.f32 %v7152_v41, %v7153_v19  ;;  %v1638_v27 = vsel %vm1548_vm1, %v1637_v33, %v1636_v28  ;;  %v7158_v29 = vld [vmem:[#allocation35_spill] sm:$0xff]  ;;  %v7161_v39 = vld [vmem:[#allocation38_spill] sm:$0xff]  ;;  %v7174_v26 = vld [vmem:[#allocation144_spill] sm:$0xff] }
 0x1ae   :  { %v1617_v34 = vrot.slane %v7148_v38, 2  ;;  %v7157_v14 = vmax.f32 %v7155_v13, %v7156_v0  ;;  %v7159_v48 = vld [vmem:[#allocation163_spill] sm:$0xff]  ;;  %v1604_v38 = vsel %vm1560_vm5, %v1603_v58, %v1602_v21  ;;  %v1626_v45 = vsel %vm1551_vm2, %v1625_v16, %v1624_v11  ;;  %v7162_v12 = vld [vmem:[#allocation166_spill] sm:$0xff]  ;;  %v7171_v58 = vld [vmem:[#allocation172_spill] sm:$0xff] }
 0x1af   :  { %v1615_v32 = vrot.slane %v7145_v59, 3  ;;  %v1627_v55 = vrot.slane %v7154_v20, 4  ;;  %v7160_v59 = vmax.f32 %v7158_v29, %v7159_v48  ;;  %v7163_v41 = vmax.f32 %v7161_v39, %v7162_v12  ;;  %v7164_v33 = vld [vmem:[#allocation10_spill] sm:$0xff]  ;;  %v7167_v0 = vld [vmem:[#allocation23_spill] sm:$0xff]  ;;  %v7170_v48 = vld [vmem:[#allocation44_spill] sm:$0xff] }
 0x1b0   :  { %v1653_v35 = vrot.slane %v7157_v14, 5  ;;  %v7165_v28 = vld [vmem:[#allocation138_spill] sm:$0xff]  ;;  %v7168_v14 = vld [vmem:[#allocation151_spill] sm:$0xff]  ;;  %v7172_v21 = vmax.f32 %v7170_v48, %v7171_v58  ;;  %v7173_v11 = vld [vmem:[#allocation16_spill] sm:$0xff]  ;;  %v1640_v12 = vsel %vm1551_vm2, %v1639_v31, %v1638_v27 }
 0x1b1   :  { %v1664_v7 = vsel %vm1545_vm0, %v1663_v57, %v7160_v59  ;;  %v1667_v19 = vrot.slane %v7163_v41, 5  ;;  %v7166_v20 = vmax.f32 %v7164_v33, %v7165_v28  ;;  %v7169_v6 = vmax.f32 %v7167_v0, %v7168_v14  ;;  %v7176_v41 = vld [vmem:[#allocation31_spill] sm:$0xff]  ;;  %v7182_v48 = vld [vmem:[#allocation17_spill] sm:$0xff]  ;;  %v7185_v31 = vld [vmem:[#allocation24_spill] sm:$0xff] }
 0x1b2   :  { %v1666_v57 = vsel %vm1548_vm1, %v1665_v60, %v1664_v7  ;;  %v1677_v16 = vrot.slane %v7172_v21, 7  ;;  %v1616_v47 = vsel %vm1557_vm4, %v1615_v32, %v1614_v5  ;;  %v7175_v59 = vmax.f32 %v7173_v11, %v7174_v26  ;;  %v7177_v33 = vld [vmem:[#allocation159_spill] sm:$0xff]  ;;  %v7183_v58 = vld [vmem:[#allocation145_spill] sm:$0xff]  ;;  %v7186_v27 = vld [vmem:[#allocation152_spill] sm:$0xff] }
 0x1b3   :  { %v1619_v13 = vrot.slane %v7166_v20, 1  ;;  %v1641_v29 = vrot.slane %v7169_v6, 4  ;;  %v7178_v28 = vmax.f32 %v7176_v41, %v7177_v33  ;;  %v5126_v6 = vsel %vm1563_vm6, %v1605_v52, %v1604_v38  ;;  %v7179_v0 = vld [vmem:[#allocation39_spill] sm:$0xff]  ;;  %v7188_v52 = vld [vmem:[#allocation45_spill] sm:$0xff] }
 0x1b4   :  { %v1629_v39 = vrot.slane %v7175_v59, 3  ;;  %v1628_v60 = vsel %vm1554_vm3, %v1627_v55, %v1626_v45  ;;  %v1654_v7 = vsel %vm1551_vm2, %v1653_v35, %v1652_v43  ;;  %v7180_v14 = vld [vmem:[#allocation167_spill] sm:$0xff]  ;;  %v7184_v21 = vmax.f32 %v7182_v48, %v7183_v58  ;;  %v7189_v38 = vld [vmem:[#allocation173_spill] sm:$0xff]  ;;  %v7191_v43 = vld [vmem:[#allocation32_spill] sm:$0xff]  ;;  %1795 = vst.msk [vmem:[%s5485_s1 + $0x18] sm:$0xff] %vm1791_vm7, %v5126_v6 }
 0x1b5   :  { %v1655_v20 = vrot.slane %v7178_v28, 4  ;;  %v7181_v5 = vmax.f32 %v7179_v0, %v7180_v14  ;;  %v7187_v26 = vmax.f32 %v7185_v31, %v7186_v27  ;;  %v1668_v41 = vsel %vm1551_vm2, %v1667_v19, %v1666_v57  ;;  %v7192_v28 = vld [vmem:[#allocation160_spill] sm:$0xff]  ;;  %v7195_v48 = vld [vmem:[#allocation171_spill] sm:$0xff] }
 0x1b6   :  { %v1631_v11 = vrot.slane %v7184_v21, 2  ;;  %v7190_v33 = vmax.f32 %v7188_v52, %v7189_v38  ;;  %v1618_v35 = vsel %vm1560_vm5, %v1617_v34, %v1616_v47  ;;  %v1642_v45 = vsel %vm1554_vm3, %v1641_v29, %v1640_v12  ;;  %v7197_v57 = vld [vmem:[#allocation40_spill] sm:$0xff]  ;;  %v7203_v38 = vld [vmem:[#allocation18_spill] sm:$0xff] }
 0x1b7   :  { %v1669_v32 = vrot.slane %v7181_v5, 4  ;;  %v1643_v59 = vrot.slane %v7187_v26, 3  ;;  %v7193_v0 = vmax.f32 %v7191_v43, %v7192_v28  ;;  %v7194_v5 = vld [vmem:[#allocation43_spill] sm:$0xff]  ;;  %v1630_v31 = vsel %vm1557_vm4, %v1629_v39, %v1628_v60  ;;  %v7198_v27 = vld [vmem:[#allocation168_spill] sm:$0xff]  ;;  %v7209_v60 = vld [vmem:[#allocation46_spill] sm:$0xff] }
 0x1b8   :  { %v1679_v55 = vrot.slane %v7190_v33, 6  ;;  %v7196_v58 = vmax.f32 %v7194_v5, %v7195_v48  ;;  %v1656_v19 = vsel %vm1554_vm3, %v1655_v20, %v1654_v7  ;;  %v7199_v26 = vmax.f32 %v7197_v57, %v7198_v27  ;;  %v7200_v34 = vld [vmem:[#allocation52_spill] sm:$0xff]  ;;  %v7204_v33 = vld [vmem:[#allocation146_spill] sm:$0xff]  ;;  %v7207_v5 = vld [vmem:[#allocation153_spill] sm:$0xff] }
 0x1b9   :  { %v1657_v14 = vrot.slane %v7193_v0, 3  ;;  %v7201_v47 = vld [vmem:[#allocation180_spill] sm:$0xff]  ;;  %v7205_v43 = vmax.f32 %v7203_v38, %v7204_v33  ;;  %v7206_v0 = vld [vmem:[#allocation25_spill] sm:$0xff]  ;;  %v1670_v39 = vsel %vm1554_vm3, %v1669_v32, %v1668_v41  ;;  %v7210_v20 = vld [vmem:[#allocation174_spill] sm:$0xff]  ;;  %v5171_v57 = vsel %vm1563_vm6, %v1619_v13, %v1618_v35 }
 0x1ba   :  { %v1678_v21 = vsel %vm1545_vm0, %v1677_v16, %v7196_v58  ;;  %v1671_v52 = vrot.slane %v7199_v26, 3  ;;  %v7202_v29 = vmax.f32 %v7200_v34, %v7201_v47  ;;  %v7208_v48 = vmax.f32 %v7206_v0, %v7207_v5  ;;  %v7212_v26 = vld [vmem:[#allocation33_spill] sm:$0xff]  ;;  %1796 = vst.msk [vmem:[%s5485_s1 + $0x20] sm:$0xff] %vm1791_vm7, %v5171_v57 }
 0x1bb   :  { %v1633_v28 = vrot.slane %v7205_v43, 1  ;;  %v7211_v7 = vmax.f32 %v7209_v60, %v7210_v20  ;;  %v1644_v27 = vsel %vm1557_vm4, %v1643_v59, %v1642_v45  ;;  %v7213_v34 = vld [vmem:[#allocation161_spill] sm:$0xff]  ;;  %v1680_v38 = vsel %vm1548_vm1, %v1679_v55, %v1678_v21  ;;  %v7221_v20 = vld [vmem:[#allocation26_spill] sm:$0xff]  ;;  %v7225_v55 = vld [vmem:[#allocation175_spill] sm:$0xff] }
 0x1bc   :  { %v1691_v12 = vrot.slane %v7202_v29, 7  ;;  %v1645_v16 = vrot.slane %v7208_v48, 2  ;;  %v7214_v47 = vmax.f32 %v7212_v26, %v7213_v34  ;;  %v1632_v33 = vsel %vm1560_vm5, %v1631_v11, %v1630_v31  ;;  %v7215_v32 = vld [vmem:[#allocation41_spill] sm:$0xff]  ;;  %v7222_v59 = vld [vmem:[#allocation154_spill] sm:$0xff]  ;;  %v7224_v34 = vld [vmem:[#allocation47_spill] sm:$0xff] }
 0x1bd   :  { %v1681_v58 = vrot.slane %v7211_v7, 5  ;;  %v1658_v43 = vsel %vm1557_vm4, %v1657_v14, %v1656_v19  ;;  %v7216_v41 = vld [vmem:[#allocation169_spill] sm:$0xff]  ;;  %v7223_v45 = vmax.f32 %v7221_v20, %v7222_v59  ;;  %v1672_v26 = vsel %vm1557_vm4, %v1671_v52, %v1670_v39  ;;  %v7227_v31 = vld [vmem:[#allocation51_spill] sm:$0xff] }
 0x1be   :  { %v1659_v29 = vrot.slane %v7214_v47, 2  ;;  %v7217_v0 = vmax.f32 %v7215_v32, %v7216_v41  ;;  %v7218_v48 = vld [vmem:[#allocation53_spill] sm:$0xff]  ;;  %v7226_v21 = vmax.f32 %v7224_v34, %v7225_v55  ;;  %v7228_v14 = vld [vmem:[#allocation179_spill] sm:$0xff]  ;;  %v1646_v32 = vsel %vm1560_vm5, %v1645_v16, %v1644_v27  ;;  %v7230_v41 = vld [vmem:[#allocation34_spill] sm:$0xff] }
 0x1bf   :  { %v7219_v60 = vld [vmem:[#allocation181_spill] sm:$0xff]  ;;  %v1647_v7 = vrot.slane %v7223_v45, 1  ;;  %v7229_v19 = vmax.f32 %v7227_v31, %v7228_v14  ;;  %v7233_v52 = vmax.f32 %v6958_v23, %v6957_v36  ;;  %v5206_v20 = vsel %vm1563_vm6, %v1633_v28, %v1632_v33  ;;  %v7234_v45 = vld [vmem:[#allocation42_spill] sm:$0xff] }
 0x1c0   :  { %v1673_v5 = vrot.slane %v7217_v0, 2  ;;  %v7220_v13 = vmax.f32 %v7218_v48, %v7219_v60  ;;  %v1683_v11 = vrot.slane %v7226_v21, 4  ;;  %v7231_v0 = vld [vmem:[#allocation162_spill] sm:$0xff]  ;;  %v1660_v59 = vsel %vm1560_vm5, %v1659_v29, %v1658_v43  ;;  %1797 = vst.msk [vmem:[%s5485_s1 + $0x28] sm:$0xff] %vm1791_vm7, %v5206_v20 }
 0x1c1   :  { %v1692_v47 = vsel %vm1545_vm0, %v1691_v12, %v7229_v19  ;;  %v7232_v48 = vmax.f32 %v7230_v41, %v7231_v0  ;;  %v1705_v39 = vrot.slane %v7233_v52, 7  ;;  %v7235_v34 = vld [vmem:[#allocation170_spill] sm:$0xff]  ;;  %v7243_v28 = vmax.f32 %v6972_v3, %v4486_v61  ;;  %v7244_v41 = vld [vmem:[#allocation189_spill] sm:$0xff] }
 0x1c2   :  { %v1693_v35 = vrot.slane %v7220_v13, 6  ;;  %v1682_v13 = vsel %vm1551_vm2, %v1681_v58, %v1680_v38  ;;  %v7236_v12 = vmax.f32 %v7234_v45, %v7235_v34  ;;  %v7237_v16 = vld [vmem:[#allocation54_spill] sm:$0xff]  ;;  %v1674_v14 = vsel %vm1560_vm5, %v1673_v5, %v1672_v26  ;;  %v7240_v58 = vld [vmem:[#allocation48_spill] sm:$0xff]  ;;  %v7250_v45 = vld [vmem:[#allocation55_spill] sm:$0xff] }
 0x1c3   :  { %v1661_v60 = vrot.slane %v7232_v48, 1  ;;  %v7238_v27 = vld [vmem:[#allocation182_spill] sm:$0xff]  ;;  %v7241_v38 = vld [vmem:[#allocation176_spill] sm:$0xff]  ;;  %v1719_v29 = vrot.slane %v7243_v28, 7  ;;  %v5224_v33 = vsel %vm1563_vm6, %v1647_v7, %v1646_v32  ;;  %v1684_v43 = vsel %vm1554_vm3, %v1683_v11, %v1682_v13  ;;  %v7251_v7 = vld [vmem:[#allocation183_spill] sm:$0xff] }
 0x1c4   :  { %v1675_v55 = vrot.slane %v7236_v12, 1  ;;  %v7239_v21 = vmax.f32 %v7237_v16, %v7238_v27  ;;  %v7242_v19 = vmax.f32 %v7240_v58, %v7241_v38  ;;  %v1694_v23 = vsel %vm1548_vm1, %v1693_v35, %v1692_v47  ;;  %v7247_v35 = vld [vmem:[#allocation49_spill] sm:$0xff]  ;;  %v7253_v11 = vld [vmem:[#allocation59_spill] sm:$0xff]  ;;  %v7261_v28 = vld [vmem:[#allocation190_spill] sm:$0xff]  ;;  %1798 = vst.msk [vmem:[%s5485_s1 + $0x30] sm:$0xff] %vm1791_vm7, %v5224_v33 }
 0x1c5   :  { %v7245_v0 = vmax.f32 %v6960_v18, %v7244_v41  ;;  %v7246_v5 = vmax.f32 %v6983_v63, %v4526_v10  ;;  %v5234_v52 = vsel %vm1563_vm6, %v1661_v60, %v1660_v59  ;;  %v7248_v47 = vld [vmem:[#allocation177_spill] sm:$0xff]  ;;  %v7252_v32 = vmax.f32 %v7250_v45, %v7251_v7  ;;  %v7254_v13 = vld [vmem:[#allocation187_spill] sm:$0xff]  ;;  %v7256_v63 = vld [vmem:[#allocation50_spill] sm:$0xff] }
 0x1c6   :  { %v1695_v31 = vrot.slane %v7239_v21, 5  ;;  %v1685_v36 = vrot.slane %v7242_v19, 3  ;;  %v7249_v61 = vmax.f32 %v7247_v35, %v7248_v47  ;;  %v7255_v12 = vmax.f32 %v7253_v11, %v7254_v13  ;;  %v7257_v10 = vld [vmem:[#allocation178_spill] sm:$0xff]  ;;  %v7272_v47 = vld [vmem:[#allocation185_spill] sm:$0xff]  ;;  %1799 = vst.msk [vmem:[%s5485_s1 + $0x38] sm:$0xff] %vm1791_vm7, %v5234_v52 }
 0x1c7   :  { %v1707_v48 = vrot.slane %v7245_v0, 6  ;;  %v1733_v26 = vrot.slane %v7246_v5, 7  ;;  %v1697_v34 = vrot.slane %v7252_v32, 4  ;;  %v5247_v16 = vsel %vm1563_vm6, %v1675_v55, %v1674_v14  ;;  %v7260_v19 = vld [vmem:[#allocation62_spill] sm:$0xff]  ;;  %v7351_v33 = vld [vmem:[#allocation237_spill] sm:$0xff] }
 0x1c8   :  { %v1687_v3 = vrot.slane %v7249_v61, 2  ;;  %v1706_v18 = vsel %vm1545_vm0, %v1705_v39, %v7255_v12  ;;  %v7258_v60 = vmax.f32 %v7256_v63, %v7257_v10  ;;  %v1696_v27 = vsel %vm1551_vm2, %v1695_v31, %v1694_v23  ;;  %1800 = vst.msk [vmem:[%s5485_s1 + $0x40] sm:$0xff] %vm1791_vm7, %v5247_v16 }
 0x1c9   :  { %v7259_v21 = vmax.f32 %v6973_v50, %v4491_v15  ;;  %v1686_v38 = vsel %vm1557_vm4, %v1685_v36, %v1684_v43  ;;  %v7262_v41 = vmax.f32 %v7260_v19, %v7261_v28  ;;  %v7263_v55 = vmax.f32 %v6971_v30, %v4481_v25  ;;  %v7268_v43 = vld [vmem:[#allocation56_spill] sm:$0xff]  ;;  %v7287_v19 = vld [vmem:[#allocation125_spill] sm:$0xff] }
 0x1ca   :  { %v5252_v59 = vrot.slane %v7258_v60, 1  ;;  %v7264_v0 = vmax.f32 %v6985_v46, %v6984_v44  ;;  %v1708_v31 = vsel %vm1548_vm1, %v1707_v48, %v1706_v18  ;;  %v7265_v15 = vmax.f32 %v6982_v62, %v4521_v40  ;;  %v7269_v44 = vld [vmem:[#allocation184_spill] sm:$0xff]  ;;  %v7271_v48 = vld [vmem:[#allocation57_spill] sm:$0xff]  ;;  %v7274_v40 = vld [vmem:[#allocation195_spill] sm:$0xff] }
 0x1cb   :  { %v1721_v58 = vrot.slane %v7259_v21, 6  ;;  %v1709_v39 = vrot.slane %v7262_v41, 5  ;;  %v1720_v14 = vsel %vm1545_vm0, %v1719_v29, %v7263_v55  ;;  %v7266_v36 = vmax.f32 %v6998_v24, %v4566_v2  ;;  %v7276_v2 = vld [vmem:[#allocation63_spill] sm:$0xff]  ;;  %v7288_v28 = vld [vmem:[#allocation233_spill] sm:$0xff] }
 0x1cc   :  { %v1735_v5 = vrot.slane %v7264_v0, 6  ;;  %v1734_v50 = vsel %vm1545_vm0, %v1733_v26, %v7265_v15  ;;  %v7267_v25 = vmax.f32 %v6999_v53, %v4571_v1  ;;  %v1698_v29 = vsel %vm1554_vm3, %v1697_v34, %v1696_v27  ;;  %v7277_v24 = vld [vmem:[#allocation191_spill] sm:$0xff]  ;;  %v7294_v0 = vld [vmem:[#allocation201_spill] sm:$0xff]  ;;  %v7296_v15 = vld [vmem:[#allocation122_spill] sm:$0xff] }
 0x1cd   :  { %v1747_v23 = vrot.slane %v7266_v36, 7  ;;  %v7270_v46 = vmax.f32 %v7268_v43, %v7269_v44  ;;  %v7273_v61 = vmax.f32 %v7271_v48, %v7272_v47  ;;  %v7275_v26 = vmax.f32 %v6975_v22, %v7274_v40  ;;  %v7283_v27 = vld [vmem:[#allocation71_spill] sm:$0xff]  ;;  %v7303_v47 = vld [vmem:[#allocation197_spill] sm:$0xff] }
 0x1ce   :  { %v1749_v30 = vrot.slane %v7267_v25, 6  ;;  %v7278_v7 = vmax.f32 %v7276_v2, %v7277_v24  ;;  %v1722_v1 = vsel %vm1548_vm1, %v1721_v58, %v1720_v14  ;;  %v7279_v53 = vmax.f32 %v6987_v56, %v6986_v42  ;;  %v7284_v42 = vld [vmem:[#allocation196_spill] sm:$0xff]  ;;  %v7299_v25 = vld [vmem:[#allocation118_spill] sm:$0xff]  ;;  %v7302_v48 = vld [vmem:[#allocation107_spill] sm:$0xff] }
 0x1cf   :  { %v1699_v35 = vrot.slane %v7270_v46, 3  ;;  %v1701_v62 = vrot.slane %v7273_v61, 2  ;;  %v1723_v45 = vrot.slane %v7275_v26, 5  ;;  %v7280_v11 = vmax.f32 %v6993_v54, %v4561_v49  ;;  %v7306_v2 = vld [vmem:[#allocation234_spill] sm:$0xff] }
 0x1d0   :  { %v1711_v32 = vrot.slane %v7278_v7, 4  ;;  %v1737_v34 = vrot.slane %v7279_v53, 5  ;;  %v1710_v12 = vsel %vm1551_vm2, %v1709_v39, %v1708_v31  ;;  %v1736_v22 = vsel %vm1548_vm1, %v1735_v5, %v1734_v50  ;;  %v7297_v50 = vld [vmem:[#allocation230_spill] sm:$0xff]  ;;  %v7308_v53 = vld [vmem:[#allocation113_spill] sm:$0xff] }
 0x1d1   :  { %v1748_v13 = vsel %vm1545_vm0, %v1747_v23, %v7280_v11  ;;  %v7281_v18 = vmax.f32 %v7002_v17, %v4576_v9  ;;  %v7282_v10 = vmax.f32 %v7022_v8, %v7021_v4  ;;  %v7285_v56 = vmax.f32 %v7283_v27, %v7284_v42  ;;  %v7290_v9 = vld [vmem:[#allocation64_spill] sm:$0xff]  ;;  %v7293_v4 = vld [vmem:[#allocation73_spill] sm:$0xff]  ;;  %v7315_v27 = vld [vmem:[#allocation119_spill] sm:$0xff] }
 0x1d2   :  { %v1750_v54 = vsel %vm1548_vm1, %v1749_v30, %v1748_v13  ;;  %v7286_v49 = vmax.f32 %v7027_v37, %v7026_v51  ;;  %v7289_v41 = vmax.f32 %v7287_v19, %v7288_v28  ;;  %v7291_v17 = vld [vmem:[#allocation192_spill] sm:$0xff]  ;;  %v1724_v8 = vsel %vm1551_vm2, %v1723_v45, %v1722_v1  ;;  %v7300_v30 = vld [vmem:[#allocation203_spill] sm:$0xff]  ;;  %v7305_v45 = vld [vmem:[#allocation126_spill] sm:$0xff] }
 0x1d3   :  { %v1751_v63 = vrot.slane %v7281_v18, 5  ;;  %v1761_v60 = vrot.slane %v7282_v10, 7  ;;  %v1725_v21 = vrot.slane %v7285_v56, 4  ;;  %v7292_v55 = vmax.f32 %v7290_v9, %v7291_v17  ;;  %v7313_v10 = vld [vmem:[#allocation193_spill] sm:$0xff]  ;;  %v7316_v42 = vld [vmem:[#allocation227_spill] sm:$0xff] }
 0x1d4   :  { %v1763_v58 = vrot.slane %v7286_v49, 6  ;;  %v1765_v39 = vrot.slane %v7289_v41, 5  ;;  %v7295_v5 = vmax.f32 %v7293_v4, %v7294_v0  ;;  %v7298_v36 = vmax.f32 %v7296_v15, %v7297_v50  ;;  %v7322_v41 = vld [vmem:[#allocation127_spill] sm:$0xff]  ;;  %v7327_v4 = vld [vmem:[#allocation186_spill] sm:$0xff] }
 0x1d5   :  { %v1713_v14 = vrot.slane %v7292_v55, 3  ;;  %v1712_v51 = vsel %vm1554_vm3, %v1711_v32, %v1710_v12  ;;  %v1738_v23 = vsel %vm1551_vm2, %v1737_v34, %v1736_v22  ;;  %v7301_v43 = vmax.f32 %v7299_v25, %v7300_v30  ;;  %v7309_v34 = vld [vmem:[#allocation225_spill] sm:$0xff]  ;;  %v7311_v22 = vld [vmem:[#allocation76_spill] sm:$0xff]  ;;  %v7325_v55 = vld [vmem:[#allocation78_spill] sm:$0xff] }
 0x1d6   :  { %v1739_v31 = vrot.slane %v7295_v5, 4  ;;  %v1762_v37 = vsel %vm1545_vm0, %v1761_v60, %v7298_v36  ;;  %v7304_v61 = vmax.f32 %v7302_v48, %v7303_v47  ;;  %v1752_v26 = vsel %vm1551_vm2, %v1751_v63, %v1750_v54  ;;  %1792 = vst.msk [vmem:[%s5485_s1] sm:$0xff] %vm1791_vm7, %v7311_v22  ;;  %v7312_v63 = vld [vmem:[#allocation65_spill] sm:$0xff]  ;;  %v7330_v15 = vld [vmem:[#allocation226_spill] sm:$0xff]  ;;  %v7336_v48 = vld [vmem:[#allocation228_spill] sm:$0xff] }
 0x1d7   :  { %v1753_v44 = vrot.slane %v7301_v43, 4  ;;  %v1764_v46 = vsel %vm1548_vm1, %v1763_v58, %v1762_v37  ;;  %v7307_v24 = vmax.f32 %v7305_v45, %v7306_v2  ;;  %v1688_v32 = vsel %vm1560_vm5, %v1687_v3, %v1686_v38  ;;  %v7318_v54 = vld [vmem:[#allocation77_spill] sm:$0xff]  ;;  %v7319_v58 = vld [vmem:[#allocation108_spill] sm:$0xff]  ;;  %1794 = vst.msk [vmem:[%s5485_s1 + $0x10] sm:$0xff] %vm1791_vm7, %v7325_v55  ;;  %v7333_v25 = vld [vmem:[#allocation194_spill] sm:$0xff] }
 0x1d8   :  { %v1727_v40 = vrot.slane %v7304_v61, 3  ;;  %v1726_v1 = vsel %vm1554_vm3, %v1725_v21, %v1724_v8  ;;  %v7310_v11 = vmax.f32 %v7308_v53, %v7309_v34  ;;  %v1766_v12 = vsel %vm1551_vm2, %v1765_v39, %v1764_v46  ;;  %1793 = vst.msk [vmem:[%s5485_s1 + $0x8] sm:$0xff] %vm1791_vm7, %v7318_v54  ;;  %v7323_v39 = vld [vmem:[#allocation235_spill] sm:$0xff]  ;;  %v7326_v8 = vld [vmem:[#allocation58_spill] sm:$0xff]  ;;  %v7335_v46 = vld [vmem:[#allocation120_spill] sm:$0xff] }
 0x1d9   :  { %v1767_v7 = vrot.slane %v7307_v24, 4  ;;  %v1700_v18 = vsel %vm1557_vm4, %v1699_v35, %v1698_v29  ;;  %v7314_v60 = vmax.f32 %v7312_v63, %v7313_v10  ;;  %v1740_v38 = vsel %vm1554_vm3, %v1739_v31, %v1738_v23  ;;  %v7320_v29 = vld [vmem:[#allocation198_spill] sm:$0xff]  ;;  %v7341_v24 = vld [vmem:[#allocation128_spill] sm:$0xff]  ;;  %v7347_v10 = vld [vmem:[#allocation121_spill] sm:$0xff] }
 0x1da   :  { %v1741_v13 = vrot.slane %v7310_v11, 3  ;;  %v7317_v56 = vmax.f32 %v7315_v27, %v7316_v42  ;;  %v1714_v49 = vsel %vm1557_vm4, %v1713_v14, %v1712_v51  ;;  %v7321_v35 = vmax.f32 %v7319_v58, %v7320_v29  ;;  %v7329_v31 = vld [vmem:[#allocation114_spill] sm:$0xff]  ;;  %v7350_v27 = vld [vmem:[#allocation129_spill] sm:$0xff] }
 0x1db   :  { %v1715_v3 = vrot.slane %v7314_v60, 2  ;;  %v1754_v28 = vsel %vm1554_vm3, %v1753_v44, %v1752_v26  ;;  %v7324_v9 = vmax.f32 %v7322_v41, %v7323_v39  ;;  %v7328_v0 = vmax.f32 %v7326_v8, %v7327_v4  ;;  %v7332_v23 = vld [vmem:[#allocation66_spill] sm:$0xff] }
 0x1dc   :  { %v1755_v21 = vrot.slane %v7317_v56, 3  ;;  %v1729_v19 = vrot.slane %v7321_v35, 2  ;;  %v1728_v5 = vsel %vm1557_vm4, %v1727_v40, %v1726_v1  ;;  %v7331_v50 = vmax.f32 %v7329_v31, %v7330_v15  ;;  %v7338_v40 = vld [vmem:[#allocation109_spill] sm:$0xff]  ;;  %v7344_v11 = vld [vmem:[#allocation74_spill] sm:$0xff] }
 0x1dd   :  { %v1769_v17 = vrot.slane %v7324_v9, 3  ;;  %v1703_v14 = vrot.slane %v7328_v0, 1  ;;  %v1768_v37 = vsel %vm1554_vm3, %v1767_v7, %v1766_v12  ;;  %v1702_v51 = vsel %vm1560_vm5, %v1701_v62, %v1700_v18  ;;  %v7339_v62 = vld [vmem:[#allocation199_spill] sm:$0xff]  ;;  %v7342_v7 = vld [vmem:[#allocation236_spill] sm:$0xff] }
 0x1de   :  { %v1743_v36 = vrot.slane %v7331_v50, 2  ;;  %v7334_v30 = vmax.f32 %v7332_v23, %v7333_v25  ;;  %v1742_v44 = vsel %vm1557_vm4, %v1741_v13, %v1740_v38  ;;  %v7337_v47 = vmax.f32 %v7335_v46, %v7336_v48  ;;  %v7345_v13 = vld [vmem:[#allocation202_spill] sm:$0xff] }
 0x1df   :  { %v1716_v6 = vsel %vm1560_vm5, %v1715_v3, %v1714_v49  ;;  %v7340_v26 = vmax.f32 %v7338_v40, %v7339_v62  ;;  %v1756_v2 = vsel %vm1557_vm4, %v1755_v21, %v1754_v28  ;;  %v7343_v1 = vmax.f32 %v7341_v24, %v7342_v7 }
 0x1e0   :  { %v1717_v43 = vrot.slane %v7334_v30, 1  ;;  %v1757_v61 = vrot.slane %v7337_v47, 2  ;;  %v1690_v57 = vsel %vm1563_vm6, %v5252_v59, %v1688_v32  ;;  %v1730_v34 = vsel %vm1560_vm5, %v1729_v19, %v1728_v5  ;;  %v7348_v59 = vld [vmem:[#allocation229_spill] sm:$0xff] }
 0x1e1   :  { %v1731_v45 = vrot.slane %v7340_v26, 1  ;;  %v1771_v53 = vrot.slane %v7343_v1, 2  ;;  %v7346_v12 = vmax.f32 %v7344_v11, %v7345_v13  ;;  %v1770_v18 = vsel %vm1557_vm4, %v1769_v17, %v1768_v37  ;;  %1801 = vst.msk [vmem:[%s5485_s1 + $0x48] sm:$0xff] %vm1791_vm7, %v1690_v57 }
 0x1e2   :  { %v1704_v63 = vsel %vm1563_vm6, %v1703_v14, %v1702_v51  ;;  %v1744_v20 = vsel %vm1560_vm5, %v1743_v36, %v1742_v44  ;;  %v7349_v32 = vmax.f32 %v7347_v10, %v7348_v59  ;;  %v1718_v3 = vsel %vm1563_vm6, %v1717_v43, %v1716_v6 }
 0x1e3   :  { %v1745_v22 = vrot.slane %v7346_v12, 1  ;;  %v1758_v38 = vsel %vm1560_vm5, %v1757_v61, %v1756_v2  ;;  %v7352_v42 = vmax.f32 %v7350_v27, %v7351_v33  ;;  %v1732_v21 = vsel %vm1563_vm6, %v1731_v45, %v1730_v34  ;;  %1802 = vst.msk [vmem:[%s5485_s1 + $0x50] sm:$0xff] %vm1791_vm7, %v1704_v63 }
 0x1e4   :  { %v1759_v60 = vrot.slane %v7349_v32, 1  ;;  %v1772_v54 = vsel %vm1560_vm5, %v1771_v53, %v1770_v18  ;;  %1803 = vst.msk [vmem:[%s5485_s1 + $0x58] sm:$0xff] %vm1791_vm7, %v1718_v3 }
 0x1e5   :  { %v1773_v56 = vrot.slane %v7352_v42, 1  ;;  %v1746_v52 = vsel %vm1563_vm6, %v1745_v22, %v1744_v20  ;;  %1804 = vst.msk [vmem:[%s5485_s1 + $0x60] sm:$0xff] %vm1791_vm7, %v1732_v21 }
 0x1e6   :  { %v1760_v49 = vsel %vm1563_vm6, %v1759_v60, %v1758_v38  ;;  %1805 = vst.msk [vmem:[%s5485_s1 + $0x68] sm:$0xff] %vm1791_vm7, %v1746_v52 }
 0x1e7   :  { %v1774_v16 = vsel %vm1563_vm6, %v1773_v56, %v1772_v54  ;;  %1806 = vst.msk [vmem:[%s5485_s1 + $0x70] sm:$0xff] %vm1791_vm7, %v1760_v49 }
 0x1e8   :  { %1807 = vst.msk [vmem:[%s5485_s1 + $0x78] sm:$0xff] %vm1791_vm7, %v1774_v16 }

// kernel: segmentation_decoder_forward.9
= control target key start
LH: loop header
LB: loop body
LE: loop exit
PB: predicated region body
PF: predicated region fallthrough
CT: control target
= control target key end

     0   :  { %vm322_vm0 = vcmask 1041408   ;;  %s743_s1 = inlined_call_operand.vmem [shape: f32[512,256], index: 1, kind: input, shape index: {}]   ;;  %s744_s0 = inlined_call_operand.vmem [shape: f32[2,512], index: 0, kind: input, shape index: {}]   ;;  %s745_s2 = inlined_call_operand.vmem [shape: f32[1,256], index: 2, kind: input, shape index: {}]   ;;  %s746_s3 = inlined_call_operand.vmem [shape: f32[2,256], index: 3, kind: output, shape index: {}]  }
   0x1   :  { %v109_v0 = vld [vmem:[%s743_s1 + $0x2f0] sm:$0xff]  ;;  %v107_v2 = vld [vmem:[%s743_s1 + $0x2e0] sm:$0xff]  ;;  %v110_v62 = vld [vmem:[%s743_s1 + $0x2f8] sm:$0xff] }
   0x2   :  { %v45_v1 = vld [vmem:[%s743_s1 + $0xf0] sm:$0xff]  ;;  %199 = vmatpush.msra.mxu2 %v109_v0  ;;  %v43_v4 = vld [vmem:[%s743_s1 + $0xe0] sm:$0xff]  ;;  %v46_v0 = vld [vmem:[%s743_s1 + $0xf8] sm:$0xff] }
   0x3   :  { %159 = vmatpush.msra.mxu0 %v45_v1  ;;  %v141_v3 = vld [vmem:[%s743_s1 + $0x3f0] sm:$0xff]  ;;  %v139_v7 = vld [vmem:[%s743_s1 + $0x3e0] sm:$0xff]  ;;  %v142_v1 = vld [vmem:[%s743_s1 + $0x3f8] sm:$0xff] }
   0x4   :  { %v77_v5 = vld [vmem:[%s743_s1 + $0x1f0] sm:$0xff]  ;;  %219 = vmatpush.msra.mxu3 %v141_v3  ;;  %200 = vmatpush.msra.mxu2 %v107_v2  ;;  %v75_v9 = vld [vmem:[%s743_s1 + $0x1e0] sm:$0xff]  ;;  %v108_v2 = vld [vmem:[%s743_s1 + $0x2e8] sm:$0xff] }
   0x5   :  { %179 = vmatpush.msra.mxu1 %v77_v5  ;;  %v105_v6 = vld [vmem:[%s743_s1 + $0x2d0] sm:$0xff]  ;;  %160 = vmatpush.msra.mxu0 %v43_v4  ;;  %v103_v11 = vld [vmem:[%s743_s1 + $0x2c0] sm:$0xff]  ;;  %v44_v4 = vld [vmem:[%s743_s1 + $0xe8] sm:$0xff] }
   0x6   :  { %v41_v8 = vld [vmem:[%s743_s1 + $0xd0] sm:$0xff]  ;;  %220 = vmatpush.msra.mxu3 %v139_v7  ;;  %v39_v12 = vld [vmem:[%s743_s1 + $0xc0] sm:$0xff]  ;;  %201 = vmatpush.msra.mxu2 %v105_v6  ;;  %v78_v5 = vld [vmem:[%s743_s1 + $0x1f8] sm:$0xff] }
   0x7   :  { %v137_v10 = vld [vmem:[%s743_s1 + $0x3d0] sm:$0xff]  ;;  %180 = vmatpush.msra.mxu1 %v75_v9  ;;  %161 = vmatpush.msra.mxu0 %v41_v8  ;;  %v135_v14 = vld [vmem:[%s743_s1 + $0x3c0] sm:$0xff]  ;;  %v106_v6 = vld [vmem:[%s743_s1 + $0x2d8] sm:$0xff] }
   0x8   :  { %v73_v13 = vld [vmem:[%s743_s1 + $0x1d0] sm:$0xff]  ;;  %v71_v15 = vld [vmem:[%s743_s1 + $0x1c0] sm:$0xff]  ;;  %221 = vmatpush.msra.mxu3 %v137_v10  ;;  %202 = vmatpush.msra.mxu2 %v103_v11  ;;  %v140_v7 = vld [vmem:[%s743_s1 + $0x3e8] sm:$0xff] }
   0x9   :  { %181 = vmatpush.msra.mxu1 %v73_v13  ;;  %v101_v16 = vld [vmem:[%s743_s1 + $0x2b0] sm:$0xff]  ;;  %162 = vmatpush.msra.mxu0 %v39_v12  ;;  %v99_v20 = vld [vmem:[%s743_s1 + $0x2a0] sm:$0xff]  ;;  %v42_v8 = vld [vmem:[%s743_s1 + $0xd8] sm:$0xff] }
   0xa   :  { %v37_v17 = vld [vmem:[%s743_s1 + $0xb0] sm:$0xff]  ;;  %222 = vmatpush.msra.mxu3 %v135_v14  ;;  %v35_v21 = vld [vmem:[%s743_s1 + $0xa0] sm:$0xff]  ;;  %203 = vmatpush.msra.mxu2 %v101_v16  ;;  %v76_v9 = vld [vmem:[%s743_s1 + $0x1e8] sm:$0xff] }
   0xb   :  { %v133_v18 = vld [vmem:[%s743_s1 + $0x3b0] sm:$0xff]  ;;  %182 = vmatpush.msra.mxu1 %v71_v15  ;;  %163 = vmatpush.msra.mxu0 %v37_v17  ;;  %v131_v22 = vld [vmem:[%s743_s1 + $0x3a0] sm:$0xff]  ;;  %v104_v10 = vld [vmem:[%s743_s1 + $0x2c8] sm:$0xff] }
   0xc   :  { %v69_v19 = vld [vmem:[%s743_s1 + $0x1b0] sm:$0xff]  ;;  %v67_v23 = vld [vmem:[%s743_s1 + $0x1a0] sm:$0xff]  ;;  %223 = vmatpush.msra.mxu3 %v133_v18  ;;  %204 = vmatpush.msra.mxu2 %v99_v20  ;;  %v138_v11 = vld [vmem:[%s743_s1 + $0x3d8] sm:$0xff] }
   0xd   :  { %183 = vmatpush.msra.mxu1 %v69_v19  ;;  %v97_v24 = vld [vmem:[%s743_s1 + $0x290] sm:$0xff]  ;;  %164 = vmatpush.msra.mxu0 %v35_v21  ;;  %v95_v28 = vld [vmem:[%s743_s1 + $0x280] sm:$0xff]  ;;  %v40_v12 = vld [vmem:[%s743_s1 + $0xc8] sm:$0xff] }
   0xe   :  { %v33_v25 = vld [vmem:[%s743_s1 + $0x90] sm:$0xff]  ;;  %224 = vmatpush.msra.mxu3 %v131_v22  ;;  %v31_v29 = vld [vmem:[%s743_s1 + $0x80] sm:$0xff]  ;;  %205 = vmatpush.msra.mxu2 %v97_v24  ;;  %v74_v13 = vld [vmem:[%s743_s1 + $0x1d8] sm:$0xff] }
   0xf   :  { %v129_v26 = vld [vmem:[%s743_s1 + $0x390] sm:$0xff]  ;;  %184 = vmatpush.msra.mxu1 %v67_v23  ;;  %165 = vmatpush.msra.mxu0 %v33_v25  ;;  %v127_v30 = vld [vmem:[%s743_s1 + $0x380] sm:$0xff]  ;;  %v102_v15 = vld [vmem:[%s743_s1 + $0x2b8] sm:$0xff] }
  0x10   :  { %v65_v27 = vld [vmem:[%s743_s1 + $0x190] sm:$0xff]  ;;  %v63_v31 = vld [vmem:[%s743_s1 + $0x180] sm:$0xff]  ;;  %225 = vmatpush.msra.mxu3 %v129_v26  ;;  %206 = vmatpush.msra.mxu2 %v95_v28  ;;  %v136_v16 = vld [vmem:[%s743_s1 + $0x3c8] sm:$0xff] }
  0x11   :  { %185 = vmatpush.msra.mxu1 %v65_v27  ;;  %v93_v32 = vld [vmem:[%s743_s1 + $0x270] sm:$0xff]  ;;  %166 = vmatpush.msra.mxu0 %v31_v29  ;;  %v91_v36 = vld [vmem:[%s743_s1 + $0x260] sm:$0xff]  ;;  %v38_v17 = vld [vmem:[%s743_s1 + $0xb8] sm:$0xff] }
  0x12   :  { %v29_v33 = vld [vmem:[%s743_s1 + $0x70] sm:$0xff]  ;;  %226 = vmatpush.msra.mxu3 %v127_v30  ;;  %v27_v37 = vld [vmem:[%s743_s1 + $0x60] sm:$0xff]  ;;  %207 = vmatpush.msra.mxu2 %v93_v32  ;;  %v72_v18 = vld [vmem:[%s743_s1 + $0x1c8] sm:$0xff] }
  0x13   :  { %v125_v34 = vld [vmem:[%s743_s1 + $0x370] sm:$0xff]  ;;  %186 = vmatpush.msra.mxu1 %v63_v31  ;;  %167 = vmatpush.msra.mxu0 %v29_v33  ;;  %v123_v38 = vld [vmem:[%s743_s1 + $0x360] sm:$0xff]  ;;  %v100_v19 = vld [vmem:[%s743_s1 + $0x2a8] sm:$0xff] }
  0x14   :  { %v61_v35 = vld [vmem:[%s743_s1 + $0x170] sm:$0xff]  ;;  %v59_v39 = vld [vmem:[%s743_s1 + $0x160] sm:$0xff]  ;;  %227 = vmatpush.msra.mxu3 %v125_v34  ;;  %208 = vmatpush.msra.mxu2 %v91_v36  ;;  %v134_v20 = vld [vmem:[%s743_s1 + $0x3b8] sm:$0xff] }
  0x15   :  { %187 = vmatpush.msra.mxu1 %v61_v35  ;;  %v89_v40 = vld [vmem:[%s743_s1 + $0x250] sm:$0xff]  ;;  %168 = vmatpush.msra.mxu0 %v27_v37  ;;  %v87_v44 = vld [vmem:[%s743_s1 + $0x240] sm:$0xff]  ;;  %v36_v21 = vld [vmem:[%s743_s1 + $0xa8] sm:$0xff] }
  0x16   :  { %v25_v41 = vld [vmem:[%s743_s1 + $0x50] sm:$0xff]  ;;  %228 = vmatpush.msra.mxu3 %v123_v38  ;;  %v23_v45 = vld [vmem:[%s743_s1 + $0x40] sm:$0xff]  ;;  %209 = vmatpush.msra.mxu2 %v89_v40  ;;  %v70_v22 = vld [vmem:[%s743_s1 + $0x1b8] sm:$0xff] }
  0x17   :  { %v121_v42 = vld [vmem:[%s743_s1 + $0x350] sm:$0xff]  ;;  %188 = vmatpush.msra.mxu1 %v59_v39  ;;  %169 = vmatpush.msra.mxu0 %v25_v41  ;;  %v119_v46 = vld [vmem:[%s743_s1 + $0x340] sm:$0xff]  ;;  %v98_v23 = vld [vmem:[%s743_s1 + $0x298] sm:$0xff] }
  0x18   :  { %v57_v43 = vld [vmem:[%s743_s1 + $0x150] sm:$0xff]  ;;  %v55_v47 = vld [vmem:[%s743_s1 + $0x140] sm:$0xff]  ;;  %229 = vmatpush.msra.mxu3 %v121_v42  ;;  %210 = vmatpush.msra.mxu2 %v87_v44  ;;  %v132_v24 = vld [vmem:[%s743_s1 + $0x3a8] sm:$0xff] }
  0x19   :  { %189 = vmatpush.msra.mxu1 %v57_v43  ;;  %v85_v48 = vld [vmem:[%s743_s1 + $0x230] sm:$0xff]  ;;  %170 = vmatpush.msra.mxu0 %v23_v45  ;;  %v83_v52 = vld [vmem:[%s743_s1 + $0x220] sm:$0xff]  ;;  %v34_v25 = vld [vmem:[%s743_s1 + $0x98] sm:$0xff] }
  0x1a   :  { %v21_v49 = vld [vmem:[%s743_s1 + $0x30] sm:$0xff]  ;;  %230 = vmatpush.msra.mxu3 %v119_v46  ;;  %v19_v53 = vld [vmem:[%s743_s1 + $0x20] sm:$0xff]  ;;  %211 = vmatpush.msra.mxu2 %v85_v48  ;;  %v68_v26 = vld [vmem:[%s743_s1 + $0x1a8] sm:$0xff] }
  0x1b   :  { %v117_v50 = vld [vmem:[%s743_s1 + $0x330] sm:$0xff]  ;;  %190 = vmatpush.msra.mxu1 %v55_v47  ;;  %171 = vmatpush.msra.mxu0 %v21_v49  ;;  %v115_v54 = vld [vmem:[%s743_s1 + $0x320] sm:$0xff]  ;;  %v96_v27 = vld [vmem:[%s743_s1 + $0x288] sm:$0xff] }
  0x1c   :  { %v53_v51 = vld [vmem:[%s743_s1 + $0x130] sm:$0xff]  ;;  %v51_v55 = vld [vmem:[%s743_s1 + $0x120] sm:$0xff]  ;;  %231 = vmatpush.msra.mxu3 %v117_v50  ;;  %212 = vmatpush.msra.mxu2 %v83_v52  ;;  %v130_v28 = vld [vmem:[%s743_s1 + $0x398] sm:$0xff] }
  0x1d   :  { %191 = vmatpush.msra.mxu1 %v53_v51  ;;  %v81_v56 = vld [vmem:[%s743_s1 + $0x210] sm:$0xff]  ;;  %172 = vmatpush.msra.mxu0 %v19_v53  ;;  %v79_v60 = vld [vmem:[%s743_s1 + $0x200] sm:$0xff]  ;;  %v32_v29 = vld [vmem:[%s743_s1 + $0x88] sm:$0xff] }
  0x1e   :  { %v17_v57 = vld [vmem:[%s743_s1 + $0x10] sm:$0xff]  ;;  %232 = vmatpush.msra.mxu3 %v115_v54  ;;  %v15_v61 = vld [vmem:[%s743_s1] sm:$0xff]  ;;  %213 = vmatpush.msra.mxu2 %v81_v56  ;;  %v66_v30 = vld [vmem:[%s743_s1 + $0x198] sm:$0xff] }
  0x1f   :  { %v113_v58 = vld [vmem:[%s743_s1 + $0x310] sm:$0xff]  ;;  %192 = vmatpush.msra.mxu1 %v51_v55  ;;  %173 = vmatpush.msra.mxu0 %v17_v57  ;;  %v111_v63 = vld [vmem:[%s743_s1 + $0x300] sm:$0xff]  ;;  %v94_v31 = vld [vmem:[%s743_s1 + $0x278] sm:$0xff] }
  0x20   :  { %v49_v59 = vld [vmem:[%s743_s1 + $0x110] sm:$0xff]  ;;  %233 = vmatpush.msra.mxu3 %v113_v58  ;;  %214 = vmatpush.msra.mxu2 %v79_v60  ;;  %v47_v3 = vld [vmem:[%s743_s1 + $0x100] sm:$0xff]  ;;  %v128_v32 = vld [vmem:[%s743_s1 + $0x388] sm:$0xff] }
  0x21   :  { %193 = vmatpush.msra.mxu1 %v49_v59  ;;  %174 = vmatpush.msra.mxu0 %v15_v61  ;;  %v14_v14 = vld [vmem:[%s744_s0] sm:$0xff]  ;;  %v30_v33 = vld [vmem:[%s743_s1 + $0x78] sm:$0xff]  ;;  %v64_v34 = vld [vmem:[%s743_s1 + $0x188] sm:$0xff] }
  0x22   :  { %279 = vmatpush.msrb.mxu2 %v110_v62  ;;  %234 = vmatpush.msra.mxu3 %v111_v63  ;;  %150 = vst [vmem:[#allocation1] ss:$4 sm:$0xff] %v14_v14  ;;  %v92_v35 = vld [vmem:[%s743_s1 + $0x268] sm:$0xff]  ;;  %v126_v36 = vld [vmem:[%s743_s1 + $0x378] sm:$0xff] }
  0x23   :  { %239 = vmatpush.msrb.mxu0 %v46_v0  ;;  %194 = vmatpush.msra.mxu1 %v47_v3  ;;  %v28_v37 = vld [vmem:[%s743_s1 + $0x68] sm:$0xff]  ;;  %v62_v38 = vld [vmem:[%s743_s1 + $0x178] sm:$0xff] }
  0x24   :  { %299 = vmatpush.msrb.mxu3 %v142_v1  ;;  %280 = vmatpush.msrb.mxu2 %v108_v2  ;;  %v90_v39 = vld [vmem:[%s743_s1 + $0x258] sm:$0xff]  ;;  %v124_v40 = vld [vmem:[%s743_s1 + $0x368] sm:$0xff] }
  0x25   :  { %240 = vmatpush.msrb.mxu0 %v44_v4  ;;  %259 = vmatpush.msrb.mxu1 %v78_v5  ;;  %v26_v41 = vld [vmem:[%s743_s1 + $0x58] sm:$0xff]  ;;  %v60_v42 = vld [vmem:[%s743_s1 + $0x168] sm:$0xff]  ;;  %v143_v5 = vld [vmem:[%s745_s2] sm:$0x3] }
  0x26   :  { %281 = vmatpush.msrb.mxu2 %v106_v6  ;;  %300 = vmatpush.msrb.mxu3 %v140_v7  ;;  %v88_v43 = vld [vmem:[%s743_s1 + $0x248] sm:$0xff]  ;;  %v122_v44 = vld [vmem:[%s743_s1 + $0x358] sm:$0xff]  ;;  %v145_v7 = vperm.slane %v143_v5, 0 }
  0x27   :  { %241 = vmatpush.msrb.mxu0 %v42_v8  ;;  %260 = vmatpush.msrb.mxu1 %v76_v9  ;;  %v24_v46 = vld [vmem:[%s743_s1 + $0x48] sm:$0xff]  ;;  %v58_v47 = vld [vmem:[%s743_s1 + $0x158] sm:$0xff] }
  0x28   :  { %282 = vmatpush.msrb.mxu2 %v104_v10  ;;  %301 = vmatpush.msrb.mxu3 %v138_v11  ;;  %v86_v48 = vld [vmem:[%s743_s1 + $0x238] sm:$0xff]  ;;  %v120_v49 = vld [vmem:[%s743_s1 + $0x348] sm:$0xff] }
  0x29   :  { %242 = vmatpush.msrb.mxu0 %v40_v12  ;;  %261 = vmatpush.msrb.mxu1 %v74_v13  ;;  %v153_v45 = vld.sshfl [vmem:[#allocation1 + $0x10] sm:$0xff pattern:$0x73625140]  ;;  %v151_v50 = vld.sshfl [vmem:[#allocation1] sm:$0xff pattern:$0x73625140] }
  0x2a   :  { %283 = vmatpush.msrb.mxu2 %v102_v15  ;;  %302 = vmatpush.msrb.mxu3 %v136_v16  ;;  %v154_v51 = vld.sshfl [vmem:[#allocation1 + $0x18] sm:$0xff pattern:$0x73625140]  ;;  %v56_v53 = vld [vmem:[%s743_s1 + $0x148] sm:$0xff]  ;;  %v146_v12 = vperm.slane %v143_v5, 1 }
  0x2b   :  { %243 = vmatpush.msrb.mxu0 %v38_v17  ;;  %262 = vmatpush.msrb.mxu1 %v72_v18  ;;  %v22_v52 = vld [vmem:[%s743_s1 + $0x38] sm:$0xff]  ;;  %v84_v54 = vld [vmem:[%s743_s1 + $0x228] sm:$0xff] }
  0x2c   :  { %284 = vmatpush.msrb.mxu2 %v100_v19  ;;  %303 = vmatpush.msrb.mxu3 %v134_v20  ;;  %v118_v55 = vld [vmem:[%s743_s1 + $0x338] sm:$0xff]  ;;  %v152_v56 = vld.sshfl [vmem:[#allocation1 + $0x8] sm:$0xff pattern:$0x73625140] }
  0x2d   :  { %244 = vmatpush.msrb.mxu0 %v36_v21  ;;  %263 = vmatpush.msrb.mxu1 %v70_v22  ;;  %v20_v57 = vld [vmem:[%s743_s1 + $0x28] sm:$0xff]  ;;  %v54_v58 = vld [vmem:[%s743_s1 + $0x138] sm:$0xff] }
  0x2e   :  { %285 = vmatpush.msrb.mxu2 %v98_v23  ;;  %304 = vmatpush.msrb.mxu3 %v132_v24  ;;  %v82_v59 = vld [vmem:[%s743_s1 + $0x218] sm:$0xff]  ;;  %v116_v60 = vld [vmem:[%s743_s1 + $0x328] sm:$0xff] }
  0x2f   :  { %245 = vmatpush.msrb.mxu0 %v34_v25  ;;  %264 = vmatpush.msrb.mxu1 %v68_v26  ;;  %v18_v61 = vld [vmem:[%s743_s1 + $0x18] sm:$0xff]  ;;  %v52_v62 = vld [vmem:[%s743_s1 + $0x128] sm:$0xff] }
  0x30   :  { %286 = vmatpush.msrb.mxu2 %v96_v27  ;;  %305 = vmatpush.msrb.mxu3 %v130_v28  ;;  %v80_v63 = vld [vmem:[%s743_s1 + $0x208] sm:$0xff]  ;;  %v114_v0 = vld [vmem:[%s743_s1 + $0x318] sm:$0xff] }
  0x31   :  { %246 = vmatpush.msrb.mxu0 %v32_v29  ;;  %265 = vmatpush.msrb.mxu1 %v66_v30  ;;  %v16_v1 = vld [vmem:[%s743_s1 + $0x8] sm:$0xff]  ;;  %v50_v2 = vld [vmem:[%s743_s1 + $0x118] sm:$0xff] }
  0x32   :  { %287 = vmatpush.msrb.mxu2 %v94_v31  ;;  %306 = vmatpush.msrb.mxu3 %v128_v32  ;;  %v112_v3 = vld [vmem:[%s743_s1 + $0x308] sm:$0xff] }
  0x33   :  { %247 = vmatpush.msrb.mxu0 %v30_v33  ;;  %266 = vmatpush.msrb.mxu1 %v64_v34  ;;  %v48_v4 = vld [vmem:[%s743_s1 + $0x108] sm:$0xff] }
  0x34   :  { %288 = vmatpush.msrb.mxu2 %v92_v35  ;;  %307 = vmatpush.msrb.mxu3 %v126_v36 }
  0x35   :  { %248 = vmatpush.msrb.mxu0 %v28_v37  ;;  %267 = vmatpush.msrb.mxu1 %v62_v38 }
  0x36   :  { %289 = vmatpush.msrb.mxu2 %v90_v39  ;;  %308 = vmatpush.msrb.mxu3 %v124_v40 }
  0x37   :  { %249 = vmatpush.msrb.mxu0 %v26_v41  ;;  %268 = vmatpush.msrb.mxu1 %v60_v42 }
  0x38   :  { %290 = vmatpush.msrb.mxu2 %v88_v43  ;;  %309 = vmatpush.msrb.mxu3 %v122_v44 }
  0x39   :  { %215 = vmatmul.f32.vlgmr.msra.gmra.mxu2 %v153_v45  ;;  %250 = vmatpush.msrb.mxu0 %v24_v46 }
  0x3a   :  { %269 = vmatpush.msrb.mxu1 %v58_v47  ;;  %291 = vmatpush.msrb.mxu2 %v86_v48 }
  0x3b   :  { %310 = vmatpush.msrb.mxu3 %v120_v49  ;;  %175 = vmatmul.f32.vlgmr.msra.gmra.mxu0 %v151_v50 }
  0x3c   :  { %235 = vmatmul.f32.vlgmr.msra.gmra.mxu3 %v154_v51  ;;  %251 = vmatpush.msrb.mxu0 %v22_v52 }
  0x3d   :  { %270 = vmatpush.msrb.mxu1 %v56_v53  ;;  %292 = vmatpush.msrb.mxu2 %v84_v54 }
  0x3e   :  { %311 = vmatpush.msrb.mxu3 %v118_v55  ;;  %195 = vmatmul.f32.vlgmr.msra.gmra.mxu1 %v152_v56 }
  0x3f   :  { %252 = vmatpush.msrb.mxu0 %v20_v57  ;;  %271 = vmatpush.msrb.mxu1 %v54_v58 }
  0x40   :  { %293 = vmatpush.msrb.mxu2 %v82_v59  ;;  %312 = vmatpush.msrb.mxu3 %v116_v60 }
  0x41   :  { %253 = vmatpush.msrb.mxu0 %v18_v61  ;;  %272 = vmatpush.msrb.mxu1 %v52_v62 }
  0x42   :  { %294 = vmatpush.msrb.mxu2 %v80_v63  ;;  %313 = vmatpush.msrb.mxu3 %v114_v0 }
  0x43   :  { %295 = vmatmul.f32.vlgmr.msrb.gmra.mxu2 %v153_v45  ;;  %254 = vmatpush.msrb.mxu0 %v16_v1 }
  0x44   :  { %273 = vmatpush.msrb.mxu1 %v50_v2  ;;  %314 = vmatpush.msrb.mxu3 %v112_v3 }
  0x45   :  { %255 = vmatmul.f32.vlgmr.msrb.gmra.mxu0 %v151_v50  ;;  %315 = vmatmul.f32.vlgmr.msrb.gmra.mxu3 %v154_v51 }
  0x46   :  { %274 = vmatpush.msrb.mxu1 %v48_v4 }
  0x47   :  { %275 = vmatmul.f32.vlgmr.msrb.gmra.mxu1 %v152_v56 }
  0xb8   :  { %v176_v6 = vpop.f32.mrf.mxu0 }
  0xb9   :  { %v177_v10 = vadd.f32 %v176_v6, %v145_v7 }
  0xbb   :  { %v196_v8 = vpop.f32.mrf.mxu1 }
  0xbc   :  { %v216_v9 = vpop.f32.mrf.mxu2  ;;  %v197_v14 = vadd.f32 %v196_v8, %v177_v10 }
  0xbe   :  { %v217_v19 = vadd.f32 %v216_v9, %v197_v14 }
  0xbf   :  { %v236_v11 = vpop.f32.mrf.mxu3 }
  0xc0   :  { %v237_v23 = vadd.f32 %v236_v11, %v217_v19 }
  0xc2   :  { %v256_v13 = vpop.f32.mrf.mxu0 }
  0xc3   :  { %v257_v15 = vadd.f32 %v256_v13, %v146_v12 }
  0xc4   :  { %v276_v16 = vpop.f32.mrf.mxu1 }
  0xc5   :  { %v277_v17 = vadd.f32 %v276_v16, %v257_v15 }
  0xc6   :  { %v296_v18 = vpop.f32.mrf.mxu2 }
  0xc7   :  { %v297_v20 = vadd.f32 %v296_v18, %v277_v17 }
  0xc8   :  { %v316_v21 = vpop.f32.mrf.mxu3 }
  0xc9   :  { %v317_v22 = vadd.f32 %v316_v21, %v297_v20 }
  0xcb   :  { %v321_v24 = vrot.slane %v317_v22, 6 }
  0xcd   :  { %v323_v25 = vsel %vm322_vm0, %v237_v23, %v321_v24 }
  0xce   :  { %325 = vst [vmem:[%s746_s3] sm:$0xf] %v323_v25 }

// kernel: segmentation_decoder_forward.10
= control target key start
LH: loop header
LB: loop body
LE: loop exit
PB: predicated region body
PF: predicated region fallthrough
CT: control target
= control target key end

     0   :  { %vm2653_vm0 = vcmask 523264   ;;  %s5860_s1 = inlined_call_operand.vmem [shape: f32[3456,64], index: 1, kind: input, shape index: {}]   ;;  %s5861_s2 = inlined_call_operand.vmem [shape: f32[1,64], index: 2, kind: input, shape index: {}]   ;;  %s5862_s0 = inlined_call_operand.vmem [shape: f32[128,3456], index: 0, kind: input, shape index: {}]   ;;  %s5863_s3 = inlined_call_operand.vmem [shape: f32[128,64], index: 3, kind: output, shape index: {}]  }
   0x1   :  { %v461_v0 = vld [vmem:[%s5860_s1 + $0x78] sm:$0xff]  ;;  %v460_v1 = vld [vmem:[%s5860_s1 + $0x70] sm:$0xff]  ;;  %v459_v4 = vld [vmem:[%s5860_s1 + $0x68] sm:$0xff] }
   0x2   :  { %882 = vmatpush.msra.mxu0 %v461_v0  ;;  %2674 = vmatpush.msra.mxu3 %v461_v0  ;;  %v2752_v2 = vld [vmem:[%s5860_s1 + $0x178] sm:$0xff]  ;;  %v2757_v3 = vld [vmem:[%s5860_s1 + $0x170] sm:$0xff]  ;;  %v2771_v6 = vld [vmem:[%s5860_s1 + $0x168] sm:$0xff] }
   0x3   :  { %2706 = vmatpush.msra.mxu2 %v2752_v2  ;;  %v2766_v5 = vld [vmem:[%s5860_s1 + $0xf8] sm:$0xff]  ;;  %v2776_v7 = vld [vmem:[%s5860_s1 + $0xf0] sm:$0xff]  ;;  %v458_v8 = vld [vmem:[%s5860_s1 + $0x60] sm:$0xff] }
   0x4   :  { %883 = vmatpush.msra.mxu0 %v460_v1  ;;  %2675 = vmatpush.msra.mxu3 %v460_v1  ;;  %v2786_v9 = vld [vmem:[%s5860_s1 + $0x160] sm:$0xff]  ;;  %v2791_v10 = vld [vmem:[%s5860_s1 + $0xe8] sm:$0xff]  ;;  %v457_v11 = vld [vmem:[%s5860_s1 + $0x58] sm:$0xff] }
   0x5   :  { %2707 = vmatpush.msra.mxu2 %v2757_v3  ;;  %2690 = vmatpush.msra.mxu1 %v2766_v5  ;;  %v2801_v12 = vld [vmem:[%s5860_s1 + $0x158] sm:$0xff]  ;;  %v2806_v13 = vld [vmem:[%s5860_s1 + $0xe0] sm:$0xff]  ;;  %v456_v14 = vld [vmem:[%s5860_s1 + $0x50] sm:$0xff] }
   0x6   :  { %884 = vmatpush.msra.mxu0 %v459_v4  ;;  %2676 = vmatpush.msra.mxu3 %v459_v4  ;;  %v2816_v15 = vld [vmem:[%s5860_s1 + $0x150] sm:$0xff]  ;;  %v2821_v16 = vld [vmem:[%s5860_s1 + $0xd8] sm:$0xff]  ;;  %v455_v17 = vld [vmem:[%s5860_s1 + $0x48] sm:$0xff] }
   0x7   :  { %2708 = vmatpush.msra.mxu2 %v2771_v6  ;;  %2691 = vmatpush.msra.mxu1 %v2776_v7  ;;  %v2831_v18 = vld [vmem:[%s5860_s1 + $0x148] sm:$0xff]  ;;  %v2836_v19 = vld [vmem:[%s5860_s1 + $0xd0] sm:$0xff]  ;;  %v454_v20 = vld [vmem:[%s5860_s1 + $0x40] sm:$0xff] }
   0x8   :  { %885 = vmatpush.msra.mxu0 %v458_v8  ;;  %2677 = vmatpush.msra.mxu3 %v458_v8  ;;  %v2846_v21 = vld [vmem:[%s5860_s1 + $0x140] sm:$0xff]  ;;  %v2851_v22 = vld [vmem:[%s5860_s1 + $0xc8] sm:$0xff]  ;;  %v453_v23 = vld [vmem:[%s5860_s1 + $0x38] sm:$0xff] }
   0x9   :  { %2709 = vmatpush.msra.mxu2 %v2786_v9  ;;  %2692 = vmatpush.msra.mxu1 %v2791_v10  ;;  %v2861_v24 = vld [vmem:[%s5860_s1 + $0x138] sm:$0xff]  ;;  %v2866_v25 = vld [vmem:[%s5860_s1 + $0xc0] sm:$0xff]  ;;  %v452_v26 = vld [vmem:[%s5860_s1 + $0x30] sm:$0xff] }
   0xa   :  { %886 = vmatpush.msra.mxu0 %v457_v11  ;;  %2678 = vmatpush.msra.mxu3 %v457_v11  ;;  %v2876_v27 = vld [vmem:[%s5860_s1 + $0x130] sm:$0xff]  ;;  %v2881_v28 = vld [vmem:[%s5860_s1 + $0xb8] sm:$0xff]  ;;  %v451_v29 = vld [vmem:[%s5860_s1 + $0x28] sm:$0xff] }
   0xb   :  { %2710 = vmatpush.msra.mxu2 %v2801_v12  ;;  %2693 = vmatpush.msra.mxu1 %v2806_v13  ;;  %v2891_v30 = vld [vmem:[%s5860_s1 + $0x128] sm:$0xff]  ;;  %v2896_v31 = vld [vmem:[%s5860_s1 + $0xb0] sm:$0xff]  ;;  %v450_v32 = vld [vmem:[%s5860_s1 + $0x20] sm:$0xff] }
   0xc   :  { %887 = vmatpush.msra.mxu0 %v456_v14  ;;  %2679 = vmatpush.msra.mxu3 %v456_v14  ;;  %v2906_v33 = vld [vmem:[%s5860_s1 + $0x120] sm:$0xff]  ;;  %v2911_v34 = vld [vmem:[%s5860_s1 + $0xa8] sm:$0xff]  ;;  %v449_v35 = vld [vmem:[%s5860_s1 + $0x18] sm:$0xff] }
   0xd   :  { %2711 = vmatpush.msra.mxu2 %v2816_v15  ;;  %2694 = vmatpush.msra.mxu1 %v2821_v16  ;;  %v2921_v36 = vld [vmem:[%s5860_s1 + $0x118] sm:$0xff]  ;;  %v2926_v37 = vld [vmem:[%s5860_s1 + $0xa0] sm:$0xff]  ;;  %v448_v38 = vld [vmem:[%s5860_s1 + $0x10] sm:$0xff] }
   0xe   :  { %888 = vmatpush.msra.mxu0 %v455_v17  ;;  %2680 = vmatpush.msra.mxu3 %v455_v17  ;;  %v2936_v39 = vld [vmem:[%s5860_s1 + $0x110] sm:$0xff]  ;;  %v2941_v40 = vld [vmem:[%s5860_s1 + $0x98] sm:$0xff]  ;;  %v447_v41 = vld [vmem:[%s5860_s1 + $0x8] sm:$0xff] }
   0xf   :  { %2712 = vmatpush.msra.mxu2 %v2831_v18  ;;  %2695 = vmatpush.msra.mxu1 %v2836_v19  ;;  %v2951_v42 = vld [vmem:[%s5860_s1 + $0x108] sm:$0xff]  ;;  %v2956_v43 = vld [vmem:[%s5860_s1 + $0x90] sm:$0xff]  ;;  %v446_v44 = vld [vmem:[%s5860_s1] sm:$0xff] }
  0x10   :  { %889 = vmatpush.msra.mxu0 %v454_v20  ;;  %2681 = vmatpush.msra.mxu3 %v454_v20  ;;  %v14_v45 = vld [vmem:[%s5862_s0] sm:$0xff]  ;;  %v509_v47 = vld [vmem:[%s5860_s1 + $0x1f8] sm:$0xff]  ;;  %v2982_v49 = vld [vmem:[%s5860_s1 + $0x88] sm:$0xff] }
  0x11   :  { %2713 = vmatpush.msra.mxu2 %v2846_v21  ;;  %2696 = vmatpush.msra.mxu1 %v2851_v22  ;;  %v122_v46 = vld [vmem:[%s5862_s0 + $0x360] sm:$0xff]  ;;  %v124_v50 = vld [vmem:[%s5862_s0 + $0x370] sm:$0xff]  ;;  %v557_v52 = vld [vmem:[%s5860_s1 + $0x378] sm:$0xff] }
  0x12   :  { %890 = vmatpush.msra.mxu0 %v453_v23  ;;  %2682 = vmatpush.msra.mxu3 %v453_v23  ;;  %v2977_v48 = vld [vmem:[%s5860_s1 + $0x100] sm:$0xff]  ;;  %v508_v51 = vld [vmem:[%s5860_s1 + $0x1f0] sm:$0xff]  ;;  %v123_v54 = vld [vmem:[%s5862_s0 + $0x368] sm:$0xff] }
  0x13   :  { %2714 = vmatpush.msra.mxu2 %v2861_v24  ;;  %2697 = vmatpush.msra.mxu1 %v2866_v25  ;;  %v2999_v53 = vld [vmem:[%s5860_s1 + $0x80] sm:$0xff]  ;;  %v507_v55 = vld [vmem:[%s5860_s1 + $0x1e8] sm:$0xff]  ;;  %v541_v56 = vld [vmem:[%s5860_s1 + $0x2f8] sm:$0xff] }
  0x14   :  { %891 = vmatpush.msra.mxu0 %v452_v26  ;;  %2683 = vmatpush.msra.mxu3 %v452_v26  ;;  %v41_v57 = vld [vmem:[%s5862_s0 + $0xd8] sm:$0xff]  ;;  %v556_v59 = vld [vmem:[%s5860_s1 + $0x370] sm:$0xff]  ;;  %v506_v61 = vld [vmem:[%s5860_s1 + $0x1e0] sm:$0xff] }
  0x15   :  { %2715 = vmatpush.msra.mxu2 %v2876_v27  ;;  %2698 = vmatpush.msra.mxu1 %v2881_v28  ;;  %v149_v58 = vld [vmem:[%s5862_s0 + $0x438] sm:$0xff]  ;;  %v540_v60 = vld [vmem:[%s5860_s1 + $0x2f0] sm:$0xff]  ;;  %v151_v62 = vld [vmem:[%s5862_s0 + $0x448] sm:$0xff] }
  0x16   :  { %892 = vmatpush.msra.mxu0 %v451_v29  ;;  %2684 = vmatpush.msra.mxu3 %v451_v29  ;;  %v555_v63 = vld [vmem:[%s5860_s1 + $0x368] sm:$0xff]  ;;  %v505_v1 = vld [vmem:[%s5860_s1 + $0x1d8] sm:$0xff]  ;;  %v150_v4 = vld [vmem:[%s5862_s0 + $0x440] sm:$0xff] }
  0x17   :  { %2716 = vmatpush.msra.mxu2 %v2891_v30  ;;  %2699 = vmatpush.msra.mxu1 %v2896_v31  ;;  %v539_v0 = vld [vmem:[%s5860_s1 + $0x2e8] sm:$0xff]  ;;  %v68_v8 = vld [vmem:[%s5862_s0 + $0x1b0] sm:$0xff]  ;;  %v537_v14 = vld [vmem:[%s5860_s1 + $0x2d8] sm:$0xff] }
  0x18   :  { %893 = vmatpush.msra.mxu0 %v450_v32  ;;  %2685 = vmatpush.msra.mxu3 %v450_v32  ;;  %v504_v11 = vld [vmem:[%s5860_s1 + $0x1d0] sm:$0xff]  ;;  %v503_v17 = vld [vmem:[%s5860_s1 + $0x1c8] sm:$0xff]  ;;  %v502_v23 = vld [vmem:[%s5860_s1 + $0x1c0] sm:$0xff] }
  0x19   :  { %2717 = vmatpush.msra.mxu2 %v2906_v33  ;;  %2700 = vmatpush.msra.mxu1 %v2911_v34  ;;  %v536_v20 = vld [vmem:[%s5860_s1 + $0x2d0] sm:$0xff]  ;;  %v95_v26 = vld [vmem:[%s5862_s0 + $0x288] sm:$0xff]  ;;  %v550_v32 = vld [vmem:[%s5860_s1 + $0x340] sm:$0xff] }
  0x1a   :  { %894 = vmatpush.msra.mxu0 %v449_v35  ;;  %2686 = vmatpush.msra.mxu3 %v449_v35  ;;  %v535_v29 = vld [vmem:[%s5860_s1 + $0x2c8] sm:$0xff]  ;;  %v534_v35 = vld [vmem:[%s5860_s1 + $0x2c0] sm:$0xff] }
  0x1b   :  { %2718 = vmatpush.msra.mxu2 %v2921_v36  ;;  %2701 = vmatpush.msra.mxu1 %v2926_v37 }
  0x1c   :  { %895 = vmatpush.msra.mxu0 %v448_v38  ;;  %2687 = vmatpush.msra.mxu3 %v448_v38  ;;  %v549_v38 = vld [vmem:[%s5860_s1 + $0x338] sm:$0xff] }
  0x1d   :  { %2719 = vmatpush.msra.mxu2 %v2936_v39  ;;  %2702 = vmatpush.msra.mxu1 %v2941_v40 }
  0x1e   :  { %896 = vmatpush.msra.mxu0 %v447_v41  ;;  %2688 = vmatpush.msra.mxu3 %v447_v41  ;;  %v499_v41 = vld [vmem:[%s5860_s1 + $0x1a8] sm:$0xff] }
  0x1f   :  { %2720 = vmatpush.msra.mxu2 %v2951_v42  ;;  %2703 = vmatpush.msra.mxu1 %v2956_v43 }
  0x20   :  { %897 = vmatpush.msra.mxu0 %v446_v44  ;;  %2689 = vmatpush.msra.mxu3 %v446_v44  ;;  %v533_v44 = vld [vmem:[%s5860_s1 + $0x2b8] sm:$0xff] }
  0x21   :  { %898 = vmatmul.f32.vlgmr.msra.gmra.mxu0 %v14_v45  ;;  %910 = vmatmul.f32.vlgmr.msra.gmra.mxu3 %v122_v46  ;;  %v15_v45 = vld [vmem:[%s5862_s0 + $0x8] sm:$0xff]  ;;  %v548_v46 = vld [vmem:[%s5860_s1 + $0x330] sm:$0xff] }
  0x22   :  { %1077 = vmatpush.msrb.mxu3 %v509_v47  ;;  %947 = vmatpush.msrb.mxu0 %v2766_v5  ;;  %v554_v5 = vld [vmem:[%s5860_s1 + $0x360] sm:$0xff]  ;;  %v232_v47 = vld [vmem:[%s5862_s0 + $0x6d0] sm:$0xff] }
  0x23   :  { %2721 = vmatpush.msra.mxu2 %v2977_v48  ;;  %2704 = vmatpush.msra.mxu1 %v2982_v49 }
  0x24   :  { %948 = vmatpush.msrb.mxu0 %v2776_v7  ;;  %1040 = vmatmul.f32.vlgmr.msra.gmra.mxu2 %v124_v50  ;;  %v538_v7 = vld [vmem:[%s5860_s1 + $0x2e0] sm:$0xff] }
  0x25   :  { %1078 = vmatpush.msrb.mxu3 %v508_v51  ;;  %1272 = vmatpush.msrb.mxu2 %v557_v52  ;;  %v498_v50 = vld [vmem:[%s5860_s1 + $0x1a0] sm:$0xff]  ;;  %v547_v51 = vld [vmem:[%s5860_s1 + $0x328] sm:$0xff] }
  0x26   :  { %949 = vmatpush.msrb.mxu0 %v2791_v10  ;;  %2705 = vmatpush.msra.mxu1 %v2999_v53  ;;  %v176_v10 = vld [vmem:[%s5862_s0 + $0x510] sm:$0xff]  ;;  %v231_v52 = vld [vmem:[%s5862_s0 + $0x6c8] sm:$0xff] }
  0x27   :  { %975 = vmatmul.f32.vlgmr.msra.gmra.mxu1 %v123_v54  ;;  %1079 = vmatpush.msrb.mxu3 %v507_v55  ;;  %v259_v54 = vld [vmem:[%s5862_s0 + $0x7a8] sm:$0xff]  ;;  %v546_v55 = vld [vmem:[%s5860_s1 + $0x320] sm:$0xff] }
  0x28   :  { %950 = vmatpush.msrb.mxu0 %v2806_v13  ;;  %1207 = vmatpush.msrb.mxu1 %v541_v56  ;;  %v553_v13 = vld [vmem:[%s5860_s1 + $0x358] sm:$0xff]  ;;  %v530_v56 = vld [vmem:[%s5860_s1 + $0x2a0] sm:$0xff] }
  0x29   :  { %901 = vmatmul.f32.gmra.mxu0 %v41_v57  ;;  %913 = vmatmul.f32.gmra.mxu3 %v149_v58  ;;  %v496_v57 = vld [vmem:[%s5860_s1 + $0x190] sm:$0xff]  ;;  %v69_v58 = vld [vmem:[%s5862_s0 + $0x1b8] sm:$0xff] }
  0x2a   :  { %951 = vmatpush.msrb.mxu0 %v2821_v16  ;;  %1273 = vmatpush.msrb.mxu2 %v556_v59  ;;  %v178_v16 = vld [vmem:[%s5862_s0 + $0x520] sm:$0xff] }
  0x2b   :  { %1208 = vmatpush.msrb.mxu1 %v540_v60  ;;  %1080 = vmatpush.msrb.mxu3 %v506_v61  ;;  %v286_v59 = vld [vmem:[%s5862_s0 + $0x880] sm:$0xff]  ;;  %v495_v60 = vld [vmem:[%s5860_s1 + $0x188] sm:$0xff]  ;;  %v544_v61 = vld [vmem:[%s5860_s1 + $0x310] sm:$0xff] }
  0x2c   :  { %952 = vmatpush.msrb.mxu0 %v2836_v19  ;;  %1043 = vmatmul.f32.gmra.mxu2 %v151_v62  ;;  %v552_v19 = vld [vmem:[%s5860_s1 + $0x350] sm:$0xff]  ;;  %v313_v62 = vld [vmem:[%s5862_s0 + $0x958] sm:$0xff] }
  0x2d   :  { %1274 = vmatpush.msrb.mxu2 %v555_v63  ;;  %1209 = vmatpush.msrb.mxu1 %v539_v0  ;;  %v494_v63 = vld [vmem:[%s5860_s1 + $0x180] sm:$0xff]  ;;  %v312_v0 = vld [vmem:[%s5862_s0 + $0x950] sm:$0xff] }
  0x2e   :  { %953 = vmatpush.msrb.mxu0 %v2851_v22  ;;  %1081 = vmatpush.msrb.mxu3 %v505_v1  ;;  %v177_v22 = vld [vmem:[%s5862_s0 + $0x518] sm:$0xff]  ;;  %v527_v1 = vld [vmem:[%s5860_s1 + $0x288] sm:$0xff] }
  0x2f   :  { %978 = vmatmul.f32.gmra.mxu1 %v150_v4  ;;  %1275 = vmatpush.msrb.mxu2 %v554_v5  ;;  %v525_v4 = vld [vmem:[%s5860_s1 + $0x278] sm:$0xff]  ;;  %v340_v5 = vld [vmem:[%s5862_s0 + $0xa30] sm:$0xff] }
  0x30   :  { %954 = vmatpush.msrb.mxu0 %v2866_v25  ;;  %1210 = vmatpush.msrb.mxu1 %v538_v7  ;;  %v551_v25 = vld [vmem:[%s5860_s1 + $0x348] sm:$0xff]  ;;  %v542_v7 = vld [vmem:[%s5860_s1 + $0x300] sm:$0xff] }
  0x31   :  { %904 = vmatmul.f32.gmra.mxu0 %v68_v8  ;;  %916 = vmatmul.f32.gmra.mxu3 %v176_v10  ;;  %v573_v8 = vld [vmem:[%s5860_s1 + $0x3f8] sm:$0xff]  ;;  %v523_v10 = vld [vmem:[%s5860_s1 + $0x268] sm:$0xff] }
  0x32   :  { %955 = vmatpush.msrb.mxu0 %v2881_v28  ;;  %1082 = vmatpush.msrb.mxu3 %v504_v11  ;;  %v203_v28 = vld [vmem:[%s5862_s0 + $0x5e8] sm:$0xff] }
  0x33   :  { %1276 = vmatpush.msrb.mxu2 %v553_v13  ;;  %1211 = vmatpush.msrb.mxu1 %v537_v14  ;;  %v339_v11 = vld [vmem:[%s5862_s0 + $0xa28] sm:$0xff]  ;;  %v621_v13 = vld [vmem:[%s5860_s1 + $0x578] sm:$0xff]  ;;  %v522_v14 = vld [vmem:[%s5860_s1 + $0x260] sm:$0xff] }
  0x34   :  { %956 = vmatpush.msrb.mxu0 %v2896_v31  ;;  %1046 = vmatmul.f32.gmra.mxu2 %v178_v16  ;;  %v501_v31 = vld [vmem:[%s5860_s1 + $0x1b8] sm:$0xff] }
  0x35   :  { %1083 = vmatpush.msrb.mxu3 %v503_v17  ;;  %1277 = vmatpush.msrb.mxu2 %v552_v19  ;;  %v365_v16 = vld [vmem:[%s5862_s0 + $0xaf8] sm:$0xff]  ;;  %v43_v17 = vld [vmem:[%s5862_s0 + $0xe8] sm:$0xff] }
  0x36   :  { %957 = vmatpush.msrb.mxu0 %v2911_v34  ;;  %1212 = vmatpush.msrb.mxu1 %v536_v20  ;;  %v205_v34 = vld [vmem:[%s5862_s0 + $0x5f8] sm:$0xff]  ;;  %v367_v20 = vld [vmem:[%s5862_s0 + $0xb08] sm:$0xff] }
  0x37   :  { %981 = vmatmul.f32.gmra.mxu1 %v177_v22  ;;  %1084 = vmatpush.msrb.mxu3 %v502_v23  ;;  %v521_v19 = vld [vmem:[%s5860_s1 + $0x258] sm:$0xff]  ;;  %v520_v22 = vld [vmem:[%s5860_s1 + $0x250] sm:$0xff] }
  0x38   :  { %958 = vmatpush.msrb.mxu0 %v2926_v37  ;;  %1278 = vmatpush.msrb.mxu2 %v551_v25  ;;  %v500_v37 = vld [vmem:[%s5860_s1 + $0x1b0] sm:$0xff]  ;;  %v605_v25 = vld [vmem:[%s5860_s1 + $0x4f8] sm:$0xff] }
  0x39   :  { %907 = vmatmul.f32.gmra.mxu0 %v95_v26  ;;  %919 = vmatmul.f32.gmra.mxu3 %v203_v28  ;;  %v572_v23 = vld [vmem:[%s5860_s1 + $0x3f0] sm:$0xff]  ;;  %v519_v26 = vld [vmem:[%s5860_s1 + $0x248] sm:$0xff]  ;;  %v366_v28 = vld [vmem:[%s5862_s0 + $0xb00] sm:$0xff] }
  0x3a   :  { %959 = vmatpush.msrb.mxu0 %v2941_v40  ;;  %1213 = vmatpush.msrb.mxu1 %v535_v29  ;;  %v204_v40 = vld [vmem:[%s5862_s0 + $0x5f0] sm:$0xff] }
  0x3b   :  { %1085 = vmatpush.msrb.mxu3 %v501_v31  ;;  %1279 = vmatpush.msrb.mxu2 %v550_v32  ;;  %v620_v29 = vld [vmem:[%s5860_s1 + $0x570] sm:$0xff]  ;;  %v518_v31 = vld [vmem:[%s5860_s1 + $0x240] sm:$0xff] }
  0x3c   :  { %960 = vmatpush.msrb.mxu0 %v2956_v43  ;;  %1049 = vmatmul.f32.gmra.mxu2 %v205_v34  ;;  %v230_v43 = vld [vmem:[%s5862_s0 + $0x6c0] sm:$0xff]  ;;  %v392_v32 = vld [vmem:[%s5862_s0 + $0xbd0] sm:$0xff] }
  0x3d   :  { %1214 = vmatpush.msrb.mxu1 %v534_v35  ;;  %1086 = vmatpush.msrb.mxu3 %v500_v37  ;;  %v70_v34 = vld [vmem:[%s5862_s0 + $0x1c0] sm:$0xff]  ;;  %v517_v35 = vld [vmem:[%s5860_s1 + $0x238] sm:$0xff] }
  0x3e   :  { %961 = vmatpush.msrb.mxu0 %v2982_v49  ;;  %1280 = vmatpush.msrb.mxu2 %v549_v38  ;;  %v532_v49 = vld [vmem:[%s5860_s1 + $0x2b0] sm:$0xff]  ;;  %v394_v37 = vld [vmem:[%s5862_s0 + $0xbe0] sm:$0xff] }
  0x3f   :  { %984 = vmatmul.f32.gmra.mxu1 %v204_v40  ;;  %1087 = vmatpush.msrb.mxu3 %v499_v41  ;;  %v516_v38 = vld [vmem:[%s5860_s1 + $0x230] sm:$0xff]  ;;  %v571_v40 = vld [vmem:[%s5860_s1 + $0x3e8] sm:$0xff] }
  0x40   :  { %962 = vmatpush.msrb.mxu0 %v2999_v53  ;;  %1215 = vmatpush.msrb.mxu1 %v533_v44  ;;  %v531_v53 = vld [vmem:[%s5860_s1 + $0x2a8] sm:$0xff]  ;;  %v604_v41 = vld [vmem:[%s5860_s1 + $0x4f0] sm:$0xff] }
  0x41   :  { %922 = vmatmul.f32.gmra.mxu3 %v230_v43  ;;  %963 = vmatmul.f32.vlgmr.msrb.gmra.mxu0 %v15_v45  ;;  %v515_v44 = vld [vmem:[%s5860_s1 + $0x228] sm:$0xff]  ;;  %v393_v43 = vld [vmem:[%s5862_s0 + $0xbd8] sm:$0xff] }
  0x42   :  { %1012 = vmatpush.msra.mxu0 %v2752_v2  ;;  %1281 = vmatpush.msrb.mxu2 %v548_v46  ;;  %v257_v2 = vld [vmem:[%s5862_s0 + $0x798] sm:$0xff]  ;;  %v619_v45 = vld [vmem:[%s5860_s1 + $0x568] sm:$0xff]  ;;  %v514_v46 = vld [vmem:[%s5860_s1 + $0x220] sm:$0xff] }
  0x43   :  { %1216 = vmatpush.msrb.mxu1 %v532_v49  ;;  %1088 = vmatpush.msrb.mxu3 %v498_v50  ;;  %v97_v49 = vld [vmem:[%s5862_s0 + $0x298] sm:$0xff] }
  0x44   :  { %1013 = vmatpush.msra.mxu0 %v2757_v3  ;;  %1052 = vmatmul.f32.gmra.mxu2 %v232_v47  ;;  %v42_v3 = vld [vmem:[%s5862_s0 + $0xe0] sm:$0xff]  ;;  %v419_v47 = vld [vmem:[%s5862_s0 + $0xca8] sm:$0xff]  ;;  %v513_v50 = vld [vmem:[%s5860_s1 + $0x218] sm:$0xff] }
  0x45   :  { %1282 = vmatpush.msrb.mxu2 %v547_v51  ;;  %1217 = vmatpush.msrb.mxu1 %v531_v53  ;;  %v421_v51 = vld [vmem:[%s5862_s0 + $0xcb8] sm:$0xff]  ;;  %v570_v53 = vld [vmem:[%s5860_s1 + $0x3e0] sm:$0xff] }
  0x46   :  { %1014 = vmatpush.msra.mxu0 %v2771_v6  ;;  %v497_v6 = vld [vmem:[%s5860_s1 + $0x198] sm:$0xff] }
  0x47   :  { %987 = vmatmul.f32.gmra.mxu1 %v231_v52  ;;  %1089 = vmatpush.msrb.mxu3 %v497_v6  ;;  %v512_v52 = vld [vmem:[%s5860_s1 + $0x210] sm:$0xff]  ;;  %v510_v6 = vld [vmem:[%s5860_s1 + $0x200] sm:$0xff] }
  0x48   :  { %1015 = vmatpush.msra.mxu0 %v2786_v9  ;;  %1283 = vmatpush.msrb.mxu2 %v546_v55  ;;  %v258_v9 = vld [vmem:[%s5862_s0 + $0x7a0] sm:$0xff]  ;;  %v17_v55 = vld [vmem:[%s5862_s0 + $0x18] sm:$0xff] }
  0x49   :  { %925 = vmatmul.f32.gmra.mxu3 %v257_v2  ;;  %966 = vmatmul.f32.gmra.mxu0 %v42_v3  ;;  %v603_v2 = vld [vmem:[%s5860_s1 + $0x4e8] sm:$0xff] }
  0x4a   :  { %1016 = vmatpush.msra.mxu0 %v2801_v12  ;;  %1218 = vmatpush.msrb.mxu1 %v530_v56  ;;  %v545_v12 = vld [vmem:[%s5860_s1 + $0x318] sm:$0xff]  ;;  %v511_v3 = vld [vmem:[%s5860_s1 + $0x208] sm:$0xff] }
  0x4b   :  { %1090 = vmatpush.msrb.mxu3 %v496_v57  ;;  %1284 = vmatpush.msrb.mxu2 %v545_v12  ;;  %v589_v56 = vld [vmem:[%s5860_s1 + $0x478] sm:$0xff]  ;;  %v618_v57 = vld [vmem:[%s5860_s1 + $0x560] sm:$0xff]  ;;  %v20_v12 = vld [vmem:[%s5862_s0 + $0x30] sm:$0xff] }
  0x4c   :  { %1017 = vmatpush.msra.mxu0 %v2816_v15  ;;  %1055 = vmatmul.f32.gmra.mxu2 %v259_v54  ;;  %v284_v15 = vld [vmem:[%s5862_s0 + $0x870] sm:$0xff] }
  0x4d   :  { %1091 = vmatpush.msrb.mxu3 %v495_v60  ;;  %1285 = vmatpush.msrb.mxu2 %v544_v61  ;;  %v420_v54 = vld [vmem:[%s5862_s0 + $0xcb0] sm:$0xff]  ;;  %v586_v60 = vld [vmem:[%s5860_s1 + $0x460] sm:$0xff] }
  0x4e   :  { %1018 = vmatpush.msra.mxu0 %v2831_v18  ;;  %v529_v18 = vld [vmem:[%s5860_s1 + $0x298] sm:$0xff]  ;;  %v44_v61 = vld [vmem:[%s5862_s0 + $0xf0] sm:$0xff] }
  0x4f   :  { %990 = vmatmul.f32.gmra.mxu1 %v258_v9  ;;  %1092 = vmatpush.msrb.mxu3 %v494_v63  ;;  %v18_v9 = vld [vmem:[%s5862_s0 + $0x20] sm:$0xff]  ;;  %v585_v63 = vld [vmem:[%s5860_s1 + $0x458] sm:$0xff] }
  0x50   :  { %1019 = vmatpush.msra.mxu0 %v2846_v21  ;;  %1219 = vmatpush.msrb.mxu1 %v529_v18  ;;  %v285_v21 = vld [vmem:[%s5862_s0 + $0x878] sm:$0xff]  ;;  %v587_v18 = vld [vmem:[%s5860_s1 + $0x468] sm:$0xff] }
  0x51   :  { %928 = vmatmul.f32.gmra.mxu3 %v284_v15  ;;  %969 = vmatmul.f32.gmra.mxu0 %v69_v58  ;;  %v588_v15 = vld [vmem:[%s5860_s1 + $0x470] sm:$0xff]  ;;  %v569_v58 = vld [vmem:[%s5860_s1 + $0x3d8] sm:$0xff] }
  0x52   :  { %1020 = vmatpush.msra.mxu0 %v2861_v24  ;;  %v311_v24 = vld [vmem:[%s5862_s0 + $0x948] sm:$0xff]  ;;  %1337 = vmatpush.msra.mxu3 %v573_v8  ;;  %v73_v8 = vld [vmem:[%s5862_s0 + $0x1d8] sm:$0xff] }
  0x54   :  { %1021 = vmatpush.msra.mxu0 %v2876_v27  ;;  %1058 = vmatmul.f32.gmra.mxu2 %v286_v59  ;;  %v96_v27 = vld [vmem:[%s5862_s0 + $0x290] sm:$0xff]  ;;  %v602_v59 = vld [vmem:[%s5860_s1 + $0x4e0] sm:$0xff] }
  0x55   :  { %1338 = vmatpush.msra.mxu3 %v572_v23  ;;  %v126_v23 = vld [vmem:[%s5862_s0 + $0x380] sm:$0xff] }
  0x56   :  { %1022 = vmatpush.msra.mxu0 %v2891_v30  ;;  %v528_v30 = vld [vmem:[%s5860_s1 + $0x290] sm:$0xff] }
  0x57   :  { %993 = vmatmul.f32.gmra.mxu1 %v285_v21  ;;  %1339 = vmatpush.msra.mxu3 %v571_v40  ;;  %v19_v21 = vld [vmem:[%s5862_s0 + $0x28] sm:$0xff] }
  0x58   :  { %1023 = vmatpush.msra.mxu0 %v2906_v33  ;;  %1220 = vmatpush.msrb.mxu1 %v528_v30  ;;  %v543_v33 = vld [vmem:[%s5860_s1 + $0x308] sm:$0xff]  ;;  %v568_v30 = vld [vmem:[%s5860_s1 + $0x3d0] sm:$0xff] }
  0x59   :  { %931 = vmatmul.f32.gmra.mxu3 %v311_v24  ;;  %972 = vmatmul.f32.gmra.mxu0 %v96_v27  ;;  %v45_v24 = vld [vmem:[%s5862_s0 + $0xf8] sm:$0xff] }
  0x5a   :  { %1024 = vmatpush.msra.mxu0 %v2921_v36  ;;  %1286 = vmatpush.msrb.mxu2 %v543_v33  ;;  %v338_v36 = vld [vmem:[%s5862_s0 + $0xa20] sm:$0xff]  ;;  %v617_v27 = vld [vmem:[%s5860_s1 + $0x558] sm:$0xff] }
  0x5b   :  { %1221 = vmatpush.msrb.mxu1 %v527_v1  ;;  %1340 = vmatpush.msra.mxu3 %v570_v53  ;;  %v601_v33 = vld [vmem:[%s5860_s1 + $0x4d8] sm:$0xff]  ;;  %v71_v1 = vld [vmem:[%s5862_s0 + $0x1c8] sm:$0xff] }
  0x5c   :  { %1025 = vmatpush.msra.mxu0 %v2936_v39  ;;  %1061 = vmatmul.f32.gmra.mxu2 %v313_v62  ;;  %v16_v39 = vld [vmem:[%s5862_s0 + $0x10] sm:$0xff]  ;;  %v47_v62 = vld [vmem:[%s5862_s0 + $0x108] sm:$0xff] }
  0x5d   :  { %1287 = vmatpush.msrb.mxu2 %v542_v7  ;;  %1341 = vmatpush.msra.mxu3 %v569_v58  ;;  %v600_v7 = vld [vmem:[%s5860_s1 + $0x4d0] sm:$0xff]  ;;  %v182_v58 = vld [vmem:[%s5862_s0 + $0x540] sm:$0xff] }
  0x5e   :  { %1026 = vmatpush.msra.mxu0 %v2951_v42  ;;  %v524_v42 = vld [vmem:[%s5860_s1 + $0x270] sm:$0xff] }
  0x5f   :  { %996 = vmatmul.f32.gmra.mxu1 %v312_v0  ;;  %1532 = vmatpush.msra.mxu2 %v621_v13  ;;  %v46_v0 = vld [vmem:[%s5862_s0 + $0x100] sm:$0xff]  ;;  %v101_v13 = vld [vmem:[%s5862_s0 + $0x2b8] sm:$0xff] }
  0x60   :  { %1027 = vmatpush.msra.mxu0 %v2977_v48  ;;  %v526_v48 = vld [vmem:[%s5860_s1 + $0x280] sm:$0xff]  ;;  %1342 = vmatpush.msra.mxu3 %v568_v30 }
  0x61   :  { %934 = vmatmul.f32.gmra.mxu3 %v338_v36  ;;  %1028 = vmatmul.f32.vlgmr.msra.gmra.mxu0 %v16_v39  ;;  %v72_v36 = vld [vmem:[%s5862_s0 + $0x1d0] sm:$0xff]  ;;  %v206_v30 = vld [vmem:[%s5862_s0 + $0x600] sm:$0xff] }
  0x62   :  { %1142 = vmatpush.msrb.mxu0 %v525_v4  ;;  %1222 = vmatpush.msrb.mxu1 %v526_v48  ;;  %v616_v39 = vld [vmem:[%s5860_s1 + $0x550] sm:$0xff]  ;;  %v74_v4 = vld [vmem:[%s5862_s0 + $0x1e0] sm:$0xff] }
  0x63   :  { %1533 = vmatpush.msra.mxu2 %v620_v29  ;;  %v98_v48 = vld [vmem:[%s5862_s0 + $0x2a0] sm:$0xff]  ;;  %v565_v29 = vld [vmem:[%s5860_s1 + $0x3b8] sm:$0xff] }
  0x64   :  { %1064 = vmatmul.f32.gmra.mxu2 %v340_v5  ;;  %1143 = vmatpush.msrb.mxu0 %v524_v42  ;;  %v567_v5 = vld [vmem:[%s5860_s1 + $0x3c8] sm:$0xff]  ;;  %v584_v42 = vld [vmem:[%s5860_s1 + $0x450] sm:$0xff] }
  0x65   :  { %1467 = vmatpush.msra.mxu1 %v605_v25  ;;  %1534 = vmatpush.msra.mxu2 %v619_v45  ;;  %v614_v25 = vld [vmem:[%s5860_s1 + $0x540] sm:$0xff] }
  0x66   :  { %1144 = vmatpush.msrb.mxu0 %v523_v10  ;;  %1343 = vmatpush.msra.mxu3 %v567_v5  ;;  %v99_v10 = vld [vmem:[%s5862_s0 + $0x2a8] sm:$0xff] }
  0x67   :  { %999 = vmatmul.f32.gmra.mxu1 %v339_v11  ;;  %1535 = vmatpush.msra.mxu2 %v618_v57  ;;  %v615_v11 = vld [vmem:[%s5860_s1 + $0x548] sm:$0xff] }
  0x68   :  { %1145 = vmatpush.msrb.mxu0 %v522_v14  ;;  %1468 = vmatpush.msra.mxu1 %v604_v41  ;;  %v566_v14 = vld [vmem:[%s5860_s1 + $0x3c0] sm:$0xff]  ;;  %v152_v41 = vld [vmem:[%s5862_s0 + $0x450] sm:$0xff]  ;;  %v579_v5 = vld [vmem:[%s5860_s1 + $0x428] sm:$0xff] }
  0x69   :  { %937 = vmatmul.f32.gmra.mxu3 %v365_v16  ;;  %1031 = vmatmul.f32.gmra.mxu0 %v43_v17  ;;  %v583_v16 = vld [vmem:[%s5860_s1 + $0x448] sm:$0xff] }
  0x6a   :  { %1146 = vmatpush.msrb.mxu0 %v521_v19  ;;  %1469 = vmatpush.msra.mxu1 %v603_v2  ;;  %v599_v17 = vld [vmem:[%s5860_s1 + $0x4c8] sm:$0xff]  ;;  %v100_v19 = vld [vmem:[%s5862_s0 + $0x2b0] sm:$0xff] }
  0x6b   :  { %1536 = vmatpush.msra.mxu2 %v617_v27  ;;  %1344 = vmatpush.msra.mxu3 %v566_v14  ;;  %v234_v14 = vld [vmem:[%s5862_s0 + $0x6e0] sm:$0xff] }
  0x6c   :  { %1067 = vmatmul.f32.gmra.mxu2 %v367_v20  ;;  %1147 = vmatpush.msrb.mxu0 %v520_v22  ;;  %v125_v22 = vld [vmem:[%s5862_s0 + $0x378] sm:$0xff] }
  0x6d   :  { %1470 = vmatpush.msra.mxu1 %v602_v59  ;;  %1537 = vmatpush.msra.mxu2 %v616_v39  ;;  %v563_v59 = vld [vmem:[%s5860_s1 + $0x3a8] sm:$0xff]  ;;  %v209_v39 = vld [vmem:[%s5862_s0 + $0x618] sm:$0xff] }
  0x6e   :  { %1148 = vmatpush.msrb.mxu0 %v519_v26  ;;  %v3500_v26 = vld [vmem:[%s5861_s2] ss:$0 sm:$0xff]  ;;  %1345 = vmatpush.msra.mxu3 %v565_v29 }
  0x6f   :  { %1002 = vmatmul.f32.gmra.mxu1 %v366_v28  ;;  %1538 = vmatpush.msra.mxu2 %v615_v11  ;;  %v128_v28 = vld [vmem:[%s5862_s0 + $0x390] sm:$0xff]  ;;  %v594_v29 = vld [vmem:[%s5860_s1 + $0x4a0] sm:$0xff] }
  0x70   :  { %1149 = vmatpush.msrb.mxu0 %v518_v31  ;;  %1471 = vmatpush.msra.mxu1 %v601_v33  ;;  %v582_v31 = vld [vmem:[%s5860_s1 + $0x440] sm:$0xff] }
  0x71   :  { %940 = vmatmul.f32.gmra.mxu3 %v392_v32  ;;  %1034 = vmatmul.f32.gmra.mxu0 %v70_v34  ;;  %v598_v32 = vld [vmem:[%s5860_s1 + $0x4c0] sm:$0xff] }
  0x72   :  { %1150 = vmatpush.msrb.mxu0 %v517_v35  ;;  %1472 = vmatpush.msra.mxu1 %v600_v7 }
  0x73   :  { %1539 = vmatpush.msra.mxu2 %v614_v25  ;;  %v561_v25 = vld [vmem:[%s5860_s1 + $0x398] sm:$0xff] }
  0x74   :  { %1070 = vmatmul.f32.gmra.mxu2 %v394_v37  ;;  %1151 = vmatpush.msrb.mxu0 %v516_v38  ;;  %v127_v37 = vld [vmem:[%s5862_s0 + $0x388] sm:$0xff] }
  0x75   :  { %1473 = vmatpush.msra.mxu1 %v599_v17 }
  0x76   :  { %1152 = vmatpush.msrb.mxu0 %v515_v44  ;;  %v153_v44 = vld [vmem:[%s5862_s0 + $0x458] sm:$0xff] }
  0x77   :  { %1005 = vmatmul.f32.gmra.mxu1 %v393_v43 }
  0x78   :  { %1153 = vmatpush.msrb.mxu0 %v514_v46  ;;  %1474 = vmatpush.msra.mxu1 %v598_v32  ;;  %v613_v46 = vld [vmem:[%s5860_s1 + $0x538] sm:$0xff] }
  0x79   :  { %943 = vmatmul.f32.gmra.mxu3 %v419_v47  ;;  %1037 = vmatmul.f32.gmra.mxu0 %v97_v49  ;;  %v155_v49 = vld [vmem:[%s5862_s0 + $0x468] sm:$0xff] }
  0x7a   :  { %1154 = vmatpush.msrb.mxu0 %v513_v50  ;;  %1540 = vmatpush.msra.mxu2 %v613_v46  ;;  %v564_v50 = vld [vmem:[%s5860_s1 + $0x3b0] sm:$0xff] }
  0x7b   :  { %1346 = vmatpush.msra.mxu3 %v564_v50  ;;  %v560_v50 = vld [vmem:[%s5860_s1 + $0x390] sm:$0xff] }
  0x7c   :  { %1073 = vmatmul.f32.gmra.mxu2 %v421_v51  ;;  %1155 = vmatpush.msrb.mxu0 %v512_v52  ;;  %v581_v51 = vld [vmem:[%s5860_s1 + $0x438] sm:$0xff] }
  0x7d   :  { %v597_v52 = vld [vmem:[%s5860_s1 + $0x4b8] sm:$0xff]  ;;  %1347 = vmatpush.msra.mxu3 %v563_v59 }
  0x7e   :  { %1156 = vmatpush.msrb.mxu0 %v511_v3  ;;  %1475 = vmatpush.msra.mxu1 %v597_v52  ;;  %v154_v3 = vld [vmem:[%s5862_s0 + $0x460] sm:$0xff]  ;;  %v593_v52 = vld [vmem:[%s5860_s1 + $0x498] sm:$0xff] }
  0x7f   :  { %1008 = vmatmul.f32.gmra.mxu1 %v420_v54 }
  0x80   :  { %1157 = vmatpush.msrb.mxu0 %v510_v6 }
  0x81   :  { %1093 = vmatmul.f32.vlgmr.msrb.gmra.mxu3 %v17_v55  ;;  %1158 = vmatmul.f32.vlgmr.msrb.gmra.mxu0 %v18_v9  ;;  %v179_v55 = vld [vmem:[%s5862_s0 + $0x528] sm:$0xff]  ;;  %v180_v9 = vld [vmem:[%s5862_s0 + $0x530] sm:$0xff] }
  0x82   :  { %1402 = vmatpush.msra.mxu0 %v589_v56 }
  0x84   :  { %1288 = vmatmul.f32.vlgmr.msrb.gmra.mxu2 %v20_v12  ;;  %1403 = vmatpush.msra.mxu0 %v588_v15  ;;  %v612_v12 = vld [vmem:[%s5860_s1 + $0x530] sm:$0xff] }
  0x85   :  { %1541 = vmatpush.msra.mxu2 %v612_v12 }
  0x86   :  { %1404 = vmatpush.msra.mxu0 %v587_v18  ;;  %v580_v18 = vld [vmem:[%s5860_s1 + $0x430] sm:$0xff] }
  0x87   :  { %1223 = vmatmul.f32.vlgmr.msrb.gmra.mxu1 %v19_v21  ;;  %v596_v21 = vld [vmem:[%s5860_s1 + $0x4b0] sm:$0xff] }
  0x88   :  { %1405 = vmatpush.msra.mxu0 %v586_v60  ;;  %1476 = vmatpush.msra.mxu1 %v596_v21  ;;  %v559_v21 = vld [vmem:[%s5860_s1 + $0x388] sm:$0xff] }
  0x89   :  { %1096 = vmatmul.f32.gmra.mxu3 %v44_v61  ;;  %1161 = vmatmul.f32.gmra.mxu0 %v45_v24  ;;  %v181_v24 = vld [vmem:[%s5862_s0 + $0x538] sm:$0xff] }
  0x8a   :  { %1406 = vmatpush.msra.mxu0 %v585_v63  ;;  %v207_v63 = vld [vmem:[%s5862_s0 + $0x608] sm:$0xff] }
  0x8c   :  { %1291 = vmatmul.f32.gmra.mxu2 %v47_v62  ;;  %1407 = vmatpush.msra.mxu0 %v584_v42  ;;  %v595_v42 = vld [vmem:[%s5860_s1 + $0x4a8] sm:$0xff] }
  0x8d   :  { %1477 = vmatpush.msra.mxu1 %v595_v42 }
  0x8e   :  { %1408 = vmatpush.msra.mxu0 %v583_v16 }
  0x8f   :  { %1226 = vmatmul.f32.gmra.mxu1 %v46_v0 }
  0x90   :  { %1409 = vmatpush.msra.mxu0 %v582_v31  ;;  %1478 = vmatpush.msra.mxu1 %v594_v29 }
  0x91   :  { %1099 = vmatmul.f32.gmra.mxu3 %v71_v1  ;;  %1164 = vmatmul.f32.gmra.mxu0 %v72_v36  ;;  %v611_v1 = vld [vmem:[%s5860_s1 + $0x528] sm:$0xff] }
  0x92   :  { %1410 = vmatpush.msra.mxu0 %v581_v51  ;;  %1542 = vmatpush.msra.mxu2 %v611_v1  ;;  %v577_v51 = vld [vmem:[%s5860_s1 + $0x418] sm:$0xff]  ;;  %v315_v1 = vld [vmem:[%s5862_s0 + $0x968] sm:$0xff] }
  0x93   :  { %1479 = vmatpush.msra.mxu1 %v593_v52  ;;  %v369_v52 = vld [vmem:[%s5862_s0 + $0xb18] sm:$0xff] }
  0x94   :  { %1294 = vmatmul.f32.gmra.mxu2 %v74_v4  ;;  %1411 = vmatpush.msra.mxu0 %v580_v18  ;;  %v562_v4 = vld [vmem:[%s5860_s1 + $0x3a0] sm:$0xff] }
  0x95   :  { %1348 = vmatpush.msra.mxu3 %v562_v4  ;;  %v290_v18 = vld [vmem:[%s5862_s0 + $0x8a0] sm:$0xff] }
  0x96   :  { %1412 = vmatpush.msra.mxu0 %v579_v5  ;;  %v607_v5 = vld [vmem:[%s5860_s1 + $0x508] sm:$0xff] }
  0x97   :  { %1229 = vmatmul.f32.gmra.mxu1 %v73_v8  ;;  %1349 = vmatpush.msra.mxu3 %v561_v25  ;;  %v342_v25 = vld [vmem:[%s5862_s0 + $0xa40] sm:$0xff] }
  0x99   :  { %1102 = vmatmul.f32.gmra.mxu3 %v98_v48  ;;  %1167 = vmatmul.f32.gmra.mxu0 %v99_v10  ;;  %v208_v48 = vld [vmem:[%s5862_s0 + $0x610] sm:$0xff] }
  0x9a   :  { %1350 = vmatpush.msra.mxu3 %v560_v50 }
  0x9c   :  { %1297 = vmatmul.f32.gmra.mxu2 %v101_v13  ;;  %v233_v13 = vld [vmem:[%s5862_s0 + $0x6d8] sm:$0xff]  ;;  %1351 = vmatpush.msra.mxu3 %v559_v21  ;;  %v370_v21 = vld [vmem:[%s5862_s0 + $0xb20] sm:$0xff] }
  0x9e   :  { %v3486_v20 = vpop.f32.mrf.mxu0 }
  0x9f   :  { %1232 = vmatmul.f32.gmra.mxu1 %v100_v19  ;;  %v610_v19 = vld [vmem:[%s5860_s1 + $0x520] sm:$0xff] }
  0xa0   :  { %1543 = vmatpush.msra.mxu2 %v610_v19 }
  0xa1   :  { %1105 = vmatmul.f32.gmra.mxu3 %v125_v22  ;;  %1170 = vmatmul.f32.gmra.mxu0 %v126_v23  ;;  %v236_v23 = vld [vmem:[%s5862_s0 + $0x6f0] sm:$0xff] }
  0xa4   :  { %v911_v34 = vpop.f32.mrf.mxu3  ;;  %v976_v35 = vpop.f32.mrf.mxu1  ;;  %1300 = vmatmul.f32.gmra.mxu2 %v128_v28  ;;  %v578_v28 = vld [vmem:[%s5860_s1 + $0x420] sm:$0xff] }
  0xa5   :  { %v912_v38 = vadd.f32 %v3500_v26, %v911_v34  ;;  %1413 = vmatpush.msra.mxu0 %v578_v28  ;;  %v235_v34 = vld [vmem:[%s5862_s0 + $0x6e8] sm:$0xff] }
  0xa6   :  { %v3518_v40 = vpop.f32.mrf.mxu0 }
  0xa7   :  { %v977_v43 = vadd.f32 %v976_v35, %v912_v38  ;;  %v1041_v45 = vpop.f32.mrf.mxu2  ;;  %1235 = vmatmul.f32.gmra.mxu1 %v127_v37  ;;  %v260_v38 = vld [vmem:[%s5862_s0 + $0x7b0] sm:$0xff]  ;;  %1414 = vmatpush.msra.mxu0 %v577_v51 }
  0xa8   :  { %v368_v51 = vld [vmem:[%s5862_s0 + $0xb10] sm:$0xff] }
  0xa9   :  { %v3529_v47 = vadd.f32 %v1041_v45, %v977_v43  ;;  %1108 = vmatmul.f32.gmra.mxu3 %v152_v41  ;;  %1173 = vmatmul.f32.gmra.mxu0 %v153_v44  ;;  %v261_v41 = vld [vmem:[%s5862_s0 + $0x7b8] sm:$0xff] }
  0xaa   :  { %v609_v45 = vld [vmem:[%s5860_s1 + $0x518] sm:$0xff] }
  0xab   :  { %1544 = vmatpush.msra.mxu2 %v609_v45  ;;  %v343_v45 = vld [vmem:[%s5862_s0 + $0xa48] sm:$0xff] }
  0xac   :  { %v914_v53 = vpop.f32.mrf.mxu3  ;;  %v979_v2 = vpop.f32.mrf.mxu1  ;;  %1303 = vmatmul.f32.gmra.mxu2 %v155_v49  ;;  %v263_v49 = vld [vmem:[%s5862_s0 + $0x7c8] sm:$0xff] }
  0xad   :  { %v915_v54 = vadd.f32 %v3500_v26, %v914_v53 }
  0xae   :  { %v3547_v6 = vpop.f32.mrf.mxu0 }
  0xaf   :  { %v980_v56 = vadd.f32 %v979_v2, %v915_v54  ;;  %v1044_v57 = vpop.f32.mrf.mxu2  ;;  %1238 = vmatmul.f32.gmra.mxu1 %v154_v3  ;;  %v262_v3 = vld [vmem:[%s5862_s0 + $0x7c0] sm:$0xff] }
  0xb1   :  { %v3558_v15 = vadd.f32 %v1044_v57, %v980_v56  ;;  %1111 = vmatmul.f32.gmra.mxu3 %v179_v55  ;;  %1176 = vmatmul.f32.gmra.mxu0 %v180_v9  ;;  %v287_v9 = vld [vmem:[%s5862_s0 + $0x888] sm:$0xff]  ;;  %v288_v56 = vld [vmem:[%s5862_s0 + $0x890] sm:$0xff] }
  0xb4   :  { %v917_v60 = vpop.f32.mrf.mxu3  ;;  %v982_v61 = vpop.f32.mrf.mxu1  ;;  %1306 = vmatmul.f32.gmra.mxu2 %v182_v58  ;;  %v608_v58 = vld [vmem:[%s5860_s1 + $0x510] sm:$0xff] }
  0xb5   :  { %v918_v27 = vadd.f32 %v3500_v26, %v917_v60  ;;  %1545 = vmatpush.msra.mxu2 %v608_v58  ;;  %v576_v60 = vld [vmem:[%s5860_s1 + $0x410] sm:$0xff] }
  0xb6   :  { %v3576_v62 = vpop.f32.mrf.mxu0  ;;  %1415 = vmatpush.msra.mxu0 %v576_v60 }
  0xb7   :  { %v983_v33 = vadd.f32 %v982_v61, %v918_v27  ;;  %v1047_v0 = vpop.f32.mrf.mxu2  ;;  %1241 = vmatmul.f32.gmra.mxu1 %v181_v24  ;;  %v592_v61 = vld [vmem:[%s5860_s1 + $0x490] sm:$0xff]  ;;  %1546 = vmatpush.msra.mxu2 %v607_v5 }
  0xb8   :  { %1480 = vmatpush.msra.mxu1 %v592_v61  ;;  %v652_v5 = vld [vmem:[%s5860_s1 + $0x670] sm:$0xff] }
  0xb9   :  { %v3587_v36 = vadd.f32 %v1047_v0, %v983_v33  ;;  %1114 = vmatmul.f32.gmra.mxu3 %v206_v30  ;;  %1179 = vmatmul.f32.gmra.mxu0 %v207_v63  ;;  %v289_v30 = vld [vmem:[%s5862_s0 + $0x898] sm:$0xff]  ;;  %v314_v0 = vld [vmem:[%s5862_s0 + $0x960] sm:$0xff] }
  0xbc   :  { %v920_v7 = vpop.f32.mrf.mxu3  ;;  %v985_v8 = vpop.f32.mrf.mxu1  ;;  %1309 = vmatmul.f32.gmra.mxu2 %v209_v39 }
  0xbd   :  { %v921_v10 = vadd.f32 %v3500_v26, %v920_v7  ;;  %v317_v7 = vld [vmem:[%s5862_s0 + $0x978] sm:$0xff] }
  0xbe   :  { %v3605_v11 = vpop.f32.mrf.mxu0 }
  0xbf   :  { %v986_v16 = vadd.f32 %v985_v8, %v921_v10  ;;  %v1050_v17 = vpop.f32.mrf.mxu2  ;;  %1244 = vmatmul.f32.gmra.mxu1 %v208_v48  ;;  %v558_v8 = vld [vmem:[%s5860_s1 + $0x380] sm:$0xff]  ;;  %v575_v48 = vld [vmem:[%s5860_s1 + $0x408] sm:$0xff] }
  0xc0   :  { %1352 = vmatpush.msra.mxu3 %v558_v8  ;;  %1416 = vmatpush.msra.mxu0 %v575_v48  ;;  %v591_v10 = vld [vmem:[%s5860_s1 + $0x488] sm:$0xff] }
  0xc1   :  { %v3616_v22 = vadd.f32 %v1050_v17, %v986_v16  ;;  %1117 = vmatmul.f32.gmra.mxu3 %v233_v13  ;;  %1182 = vmatmul.f32.gmra.mxu0 %v234_v14  ;;  %v316_v16 = vld [vmem:[%s5862_s0 + $0x970] sm:$0xff] }
  0xc2   :  { %1481 = vmatpush.msra.mxu1 %v591_v10  ;;  %v397_v10 = vld [vmem:[%s5862_s0 + $0xbf8] sm:$0xff] }
  0xc4   :  { %v923_v31 = vpop.f32.mrf.mxu3  ;;  %v988_v32 = vpop.f32.mrf.mxu1  ;;  %1312 = vmatmul.f32.gmra.mxu2 %v236_v23  ;;  %v341_v23 = vld [vmem:[%s5862_s0 + $0xa38] sm:$0xff] }
  0xc5   :  { %v924_v35 = vadd.f32 %v3500_v26, %v923_v31  ;;  %v606_v31 = vld [vmem:[%s5860_s1 + $0x500] sm:$0xff] }
  0xc6   :  { %v3634_v37 = vpop.f32.mrf.mxu0  ;;  %1547 = vmatpush.msra.mxu2 %v606_v31  ;;  %v425_v31 = vld [vmem:[%s5862_s0 + $0xcd8] sm:$0xff] }
  0xc7   :  { %v989_v44 = vadd.f32 %v988_v32, %v924_v35  ;;  %v1053_v43 = vpop.f32.mrf.mxu2  ;;  %1247 = vmatmul.f32.gmra.mxu1 %v235_v34  ;;  %v344_v34 = vld [vmem:[%s5862_s0 + $0xa50] sm:$0xff]  ;;  %v574_v35 = vld [vmem:[%s5860_s1 + $0x400] sm:$0xff] }
  0xc8   :  { %1417 = vmatpush.msra.mxu0 %v574_v35  ;;  %v651_v35 = vld [vmem:[%s5860_s1 + $0x668] sm:$0xff] }
  0xc9   :  { %v3645_v46 = vadd.f32 %v1053_v43, %v989_v44  ;;  %1120 = vmatmul.f32.gmra.mxu3 %v260_v38  ;;  %1185 = vmatmul.f32.gmra.mxu0 %v261_v41  ;;  %v637_v38 = vld [vmem:[%s5860_s1 + $0x5f8] sm:$0xff]  ;;  %v590_v41 = vld [vmem:[%s5860_s1 + $0x480] sm:$0xff] }
  0xca   :  { %1597 = vmatpush.msrb.mxu3 %v637_v38  ;;  %1482 = vmatpush.msra.mxu1 %v590_v41  ;;  %v667_v38 = vld [vmem:[%s5860_s1 + $0x6e8] sm:$0xff] }
  0xcc   :  { %v926_v53 = vpop.f32.mrf.mxu3  ;;  %v991_v2 = vpop.f32.mrf.mxu1  ;;  %1315 = vmatmul.f32.gmra.mxu2 %v263_v49 }
  0xcd   :  { %v927_v54 = vadd.f32 %v3500_v26, %v926_v53 }
  0xce   :  { %v3663_v55 = vpop.f32.mrf.mxu0 }
  0xcf   :  { %v992_v57 = vadd.f32 %v991_v2, %v927_v54  ;;  %v1056_v12 = vpop.f32.mrf.mxu2  ;;  %1250 = vmatmul.f32.gmra.mxu1 %v262_v3  ;;  %v685_v3 = vld [vmem:[%s5860_s1 + $0x778] sm:$0xff] }
  0xd0   :  { %1792 = vmatpush.msrb.mxu2 %v685_v3 }
  0xd1   :  { %v3674_v59 = vadd.f32 %v1056_v12, %v992_v57  ;;  %1123 = vmatmul.f32.gmra.mxu3 %v287_v9  ;;  %1188 = vmatmul.f32.gmra.mxu0 %v288_v56  ;;  %v371_v9 = vld [vmem:[%s5862_s0 + $0xb28] sm:$0xff]  ;;  %v636_v56 = vld [vmem:[%s5860_s1 + $0x5f0] sm:$0xff]  ;;  %v653_v57 = vld [vmem:[%s5860_s1 + $0x678] sm:$0xff] }
  0xd2   :  { %1598 = vmatpush.msrb.mxu3 %v636_v56  ;;  %1662 = vmatpush.msrb.mxu0 %v653_v57  ;;  %v669_v12 = vld [vmem:[%s5860_s1 + $0x6f8] sm:$0xff] }
  0xd3   :  { %1727 = vmatpush.msrb.mxu1 %v669_v12  ;;  %v24_v12 = vld [vmem:[%s5862_s0 + $0x50] sm:$0xff] }
  0xd4   :  { %v929_v24 = vpop.f32.mrf.mxu3  ;;  %v994_v27 = vpop.f32.mrf.mxu1  ;;  %1318 = vmatmul.f32.gmra.mxu2 %v290_v18  ;;  %1663 = vmatpush.msrb.mxu0 %v652_v5  ;;  %v681_v5 = vld [vmem:[%s5860_s1 + $0x758] sm:$0xff] }
  0xd5   :  { %v930_v63 = vadd.f32 %v3500_v26, %v929_v24  ;;  %v395_v24 = vld [vmem:[%s5862_s0 + $0xbe8] sm:$0xff] }
  0xd6   :  { %v3692_v33 = vpop.f32.mrf.mxu0  ;;  %1664 = vmatpush.msrb.mxu0 %v651_v35  ;;  %v906_v35 = vadd.f32 %v3500_v26, %v3547_v6  ;;  %v631_v6 = vld [vmem:[%s5860_s1 + $0x5c8] sm:$0xff] }
  0xd7   :  { %v995_v39 = vadd.f32 %v994_v27, %v930_v63  ;;  %v1059_v4 = vpop.f32.mrf.mxu2  ;;  %1253 = vmatmul.f32.gmra.mxu1 %v289_v30  ;;  %v396_v27 = vld [vmem:[%s5862_s0 + $0xbf0] sm:$0xff] }
  0xd9   :  { %v3703_v42 = vadd.f32 %v1059_v4, %v995_v39  ;;  %1126 = vmatmul.f32.gmra.mxu3 %v314_v0  ;;  %1191 = vmatmul.f32.gmra.mxu0 %v315_v1  ;;  %v684_v0 = vld [vmem:[%s5860_s1 + $0x770] sm:$0xff]  ;;  %v398_v39 = vld [vmem:[%s5862_s0 + $0xc00] sm:$0xff]  ;;  %v635_v4 = vld [vmem:[%s5860_s1 + $0x5e8] sm:$0xff] }
  0xda   :  { %1793 = vmatpush.msrb.mxu2 %v684_v0  ;;  %1599 = vmatpush.msrb.mxu3 %v635_v4  ;;  %v903_v0 = vadd.f32 %v3500_v26, %v3518_v40  ;;  %v632_v40 = vld [vmem:[%s5860_s1 + $0x5d0] sm:$0xff] }
  0xdc   :  { %v932_v13 = vpop.f32.mrf.mxu3  ;;  %v997_v14 = vpop.f32.mrf.mxu1  ;;  %1321 = vmatmul.f32.gmra.mxu2 %v317_v7  ;;  %v668_v7 = vld [vmem:[%s5860_s1 + $0x6f0] sm:$0xff] }
  0xdd   :  { %v933_v17 = vadd.f32 %v3500_v26, %v932_v13  ;;  %1728 = vmatpush.msrb.mxu1 %v668_v7  ;;  %v968_v7 = vadd.f32 %v3634_v37, %v903_v0 }
  0xde   :  { %v3721_v19 = vpop.f32.mrf.mxu0 }
  0xdf   :  { %v998_v28 = vadd.f32 %v997_v14, %v933_v17  ;;  %v1062_v29 = vpop.f32.mrf.mxu2  ;;  %1256 = vmatmul.f32.gmra.mxu1 %v316_v16  ;;  %v422_v16 = vld [vmem:[%s5862_s0 + $0xcc0] sm:$0xff]  ;;  %v423_v17 = vld [vmem:[%s5862_s0 + $0xcc8] sm:$0xff] }
  0xe0   :  { %1729 = vmatpush.msrb.mxu1 %v667_v38 }
  0xe1   :  { %v3732_v32 = vadd.f32 %v1062_v29, %v998_v28  ;;  %1129 = vmatmul.f32.gmra.mxu3 %v341_v23  ;;  %1194 = vmatmul.f32.gmra.mxu0 %v342_v25  ;;  %v683_v28 = vld [vmem:[%s5860_s1 + $0x768] sm:$0xff] }
  0xe2   :  { %1794 = vmatpush.msrb.mxu2 %v683_v28 }
  0xe4   :  { %v935_v44 = vpop.f32.mrf.mxu3  ;;  %v1000_v43 = vpop.f32.mrf.mxu1  ;;  %1324 = vmatmul.f32.gmra.mxu2 %v344_v34  ;;  %v634_v34 = vld [vmem:[%s5860_s1 + $0x5e0] sm:$0xff] }
  0xe5   :  { %v936_v49 = vadd.f32 %v3500_v26, %v935_v44  ;;  %1600 = vmatpush.msrb.mxu3 %v634_v34  ;;  %v76_v34 = vld [vmem:[%s5862_s0 + $0x1f0] sm:$0xff] }
  0xe6   :  { %v3750_v50 = vpop.f32.mrf.mxu0 }
  0xe7   :  { %v1001_v53 = vadd.f32 %v1000_v43, %v936_v49  ;;  %v1065_v2 = vpop.f32.mrf.mxu2  ;;  %1259 = vmatmul.f32.gmra.mxu1 %v343_v45  ;;  %v424_v43 = vld [vmem:[%s5862_s0 + $0xcd0] sm:$0xff]  ;;  %v21_v49 = vld [vmem:[%s5862_s0 + $0x38] sm:$0xff] }
  0xe9   :  { %v3761_v54 = vadd.f32 %v1065_v2, %v1001_v53  ;;  %1132 = vmatmul.f32.gmra.mxu3 %v368_v51  ;;  %1197 = vmatmul.f32.gmra.mxu0 %v369_v52  ;;  %v22_v52 = vld [vmem:[%s5862_s0 + $0x40] sm:$0xff]  ;;  %v900_v53 = vadd.f32 %v3500_v26, %v3486_v20  ;;  %v633_v20 = vld [vmem:[%s5860_s1 + $0x5d8] sm:$0xff] }
  0xea   :  { %1601 = vmatpush.msrb.mxu3 %v633_v20  ;;  %v103_v20 = vld [vmem:[%s5862_s0 + $0x2c8] sm:$0xff] }
  0xeb   :  { %v965_v56 = vadd.f32 %v3605_v11, %v900_v53  ;;  %v664_v53 = vld [vmem:[%s5860_s1 + $0x6d0] sm:$0xff] }
  0xec   :  { %v938_v58 = vpop.f32.mrf.mxu3  ;;  %v1003_v18 = vpop.f32.mrf.mxu1  ;;  %1327 = vmatmul.f32.gmra.mxu2 %v371_v9  ;;  %v682_v9 = vld [vmem:[%s5860_s1 + $0x760] sm:$0xff]  ;;  %1602 = vmatpush.msrb.mxu3 %v632_v40 }
  0xed   :  { %v939_v60 = vadd.f32 %v3500_v26, %v938_v58  ;;  %1795 = vmatpush.msrb.mxu2 %v682_v9  ;;  %v650_v58 = vld [vmem:[%s5860_s1 + $0x660] sm:$0xff]  ;;  %v1030_v11 = vadd.f32 %v3721_v19, %v965_v56  ;;  %v49_v19 = vld [vmem:[%s5862_s0 + $0x118] sm:$0xff] }
  0xee   :  { %v3779_v61 = vpop.f32.mrf.mxu0  ;;  %1665 = vmatpush.msrb.mxu0 %v650_v58  ;;  %1603 = vmatpush.msrb.mxu3 %v631_v6  ;;  %v77_v9 = vld [vmem:[%s5862_s0 + $0x1f8] sm:$0xff]  ;;  %v909_v58 = vadd.f32 %v3500_v26, %v3576_v62  ;;  %v647_v62 = vld [vmem:[%s5860_s1 + $0x648] sm:$0xff]  ;;  %v678_v40 = vld [vmem:[%s5860_s1 + $0x740] sm:$0xff] }
  0xef   :  { %v1004_v30 = vadd.f32 %v1003_v18, %v939_v60  ;;  %v1068_v63 = vpop.f32.mrf.mxu2  ;;  %1262 = vmatmul.f32.gmra.mxu1 %v370_v21  ;;  %v666_v18 = vld [vmem:[%s5860_s1 + $0x6e0] sm:$0xff]  ;;  %1796 = vmatpush.msrb.mxu2 %v681_v5  ;;  %v129_v5 = vld [vmem:[%s5862_s0 + $0x398] sm:$0xff]  ;;  %v628_v6 = vld [vmem:[%s5860_s1 + $0x5b0] sm:$0xff] }
  0xf0   :  { %1730 = vmatpush.msrb.mxu1 %v666_v18 }
  0xf1   :  { %v3790_v1 = vadd.f32 %v1068_v63, %v1004_v30  ;;  %1135 = vmatmul.f32.gmra.mxu3 %v395_v24  ;;  %1200 = vmatmul.f32.gmra.mxu0 %v396_v27  ;;  %v23_v24 = vld [vmem:[%s5862_s0 + $0x48] sm:$0xff]  ;;  %v48_v30 = vld [vmem:[%s5862_s0 + $0x110] sm:$0xff] }
  0xf4   :  { %v941_v8 = vpop.f32.mrf.mxu3  ;;  %v1006_v48 = vpop.f32.mrf.mxu1  ;;  %1330 = vmatmul.f32.gmra.mxu2 %v398_v39 }
  0xf5   :  { %v942_v13 = vadd.f32 %v3500_v26, %v941_v8 }
  0xf6   :  { %v3808_v14 = vpop.f32.mrf.mxu0 }
  0xf7   :  { %v1007_v23 = vadd.f32 %v1006_v48, %v942_v13  ;;  %v1071_v25 = vpop.f32.mrf.mxu2  ;;  %1265 = vmatmul.f32.gmra.mxu1 %v397_v10  ;;  %v51_v48 = vld [vmem:[%s5862_s0 + $0x128] sm:$0xff]  ;;  %v649_v10 = vld [vmem:[%s5860_s1 + $0x658] sm:$0xff]  ;;  %v1033_v13 = vadd.f32 %v3750_v50, %v968_v7  ;;  %v130_v7 = vld [vmem:[%s5862_s0 + $0x3a0] sm:$0xff] }
  0xf8   :  { %1666 = vmatpush.msrb.mxu0 %v649_v10 }
  0xf9   :  { %v3819_v29 = vadd.f32 %v1071_v25, %v1007_v23  ;;  %1138 = vmatmul.f32.gmra.mxu3 %v422_v16  ;;  %1203 = vmatmul.f32.gmra.mxu0 %v423_v17  ;;  %v665_v16 = vld [vmem:[%s5860_s1 + $0x6d8] sm:$0xff]  ;;  %v50_v25 = vld [vmem:[%s5862_s0 + $0x120] sm:$0xff] }
  0xfa   :  { %1731 = vmatpush.msrb.mxu1 %v665_v16  ;;  %v629_v16 = vld [vmem:[%s5860_s1 + $0x5b8] sm:$0xff] }
  0xfc   :  { %v944_v41 = vpop.f32.mrf.mxu3  ;;  %v1009_v44 = vpop.f32.mrf.mxu1  ;;  %1333 = vmatmul.f32.gmra.mxu2 %v425_v31  ;;  %v75_v31 = vld [vmem:[%s5862_s0 + $0x1e8] sm:$0xff]  ;;  %1732 = vmatpush.msrb.mxu1 %v664_v53  ;;  %v661_v53 = vld [vmem:[%s5860_s1 + $0x6b8] sm:$0xff] }
  0xfd   :  { %v945_v45 = vadd.f32 %v3500_v26, %v944_v41  ;;  %v630_v26 = vld [vmem:[%s5860_s1 + $0x5c0] sm:$0xff] }
  0xfe   :  { %v1159_v51 = vpop.f32.mrf.mxu0  ;;  %1604 = vmatpush.msrb.mxu3 %v630_v26  ;;  %v660_v26 = vld [vmem:[%s5860_s1 + $0x6b0] sm:$0xff] }
  0xff   :  { %v1010_v2 = vadd.f32 %v1009_v44, %v945_v45  ;;  %v1074_v3 = vpop.f32.mrf.mxu2  ;;  %1268 = vmatmul.f32.gmra.mxu1 %v424_v43  ;;  %v680_v44 = vld [vmem:[%s5860_s1 + $0x750] sm:$0xff]  ;;  %v971_v43 = vadd.f32 %v3663_v55, %v906_v35 }
 0x100   :  { %1797 = vmatpush.msrb.mxu2 %v680_v44  ;;  %1605 = vmatpush.msrb.mxu3 %v629_v16  ;;  %v156_v35 = vld [vmem:[%s5862_s0 + $0x470] sm:$0xff] }
 0x101   :  { %v3849_v57 = vadd.f32 %v1074_v3, %v1010_v2  ;;  %1353 = vmatmul.f32.vlgmr.msra.gmra.mxu3 %v21_v49  ;;  %1418 = vmatmul.f32.vlgmr.msra.gmra.mxu0 %v22_v52  ;;  %v78_v49 = vld [vmem:[%s5862_s0 + $0x200] sm:$0xff]  ;;  %v1036_v52 = vadd.f32 %v3779_v61, %v971_v43 }
 0x102   :  { %1606 = vmatpush.msrb.mxu3 %v628_v6 }
 0x104   :  { %v1094_v21 = vpop.f32.mrf.mxu3  ;;  %1548 = vmatmul.f32.vlgmr.msra.gmra.mxu2 %v24_v12  ;;  %v1224_v60 = vpop.f32.mrf.mxu1  ;;  %v102_v12 = vld [vmem:[%s5862_s0 + $0x2c0] sm:$0xff] }
 0x105   :  { %v1095_v27 = vadd.f32 %v1094_v21, %v1030_v11  ;;  %v679_v21 = vld [vmem:[%s5860_s1 + $0x748] sm:$0xff] }
 0x106   :  { %v1162_v63 = vpop.f32.mrf.mxu0  ;;  %1798 = vmatpush.msrb.mxu2 %v679_v21 }
 0x107   :  { %v1160_v39 = vadd.f32 %v1159_v51, %v1095_v27  ;;  %v1289_v4 = vpop.f32.mrf.mxu2  ;;  %1483 = vmatmul.f32.vlgmr.msra.gmra.mxu1 %v23_v24  ;;  %v648_v51 = vld [vmem:[%s5860_s1 + $0x650] sm:$0xff]  ;;  %v105_v27 = vld [vmem:[%s5862_s0 + $0x2d8] sm:$0xff] }
 0x108   :  { %1667 = vmatpush.msrb.mxu0 %v648_v51  ;;  %1799 = vmatpush.msrb.mxu2 %v678_v40  ;;  %v645_v51 = vld [vmem:[%s5860_s1 + $0x638] sm:$0xff]  ;;  %v643_v40 = vld [vmem:[%s5860_s1 + $0x628] sm:$0xff] }
 0x109   :  { %v1225_v8 = vadd.f32 %v1224_v60, %v1160_v39  ;;  %1356 = vmatmul.f32.gmra.mxu3 %v48_v30  ;;  %1421 = vmatmul.f32.gmra.mxu0 %v49_v19  ;;  %v974_v60 = vadd.f32 %v3692_v33, %v909_v58  ;;  %v104_v39 = vld [vmem:[%s5862_s0 + $0x2d0] sm:$0xff] }
 0x10a   :  { %1668 = vmatpush.msrb.mxu0 %v647_v62 }
 0x10b   :  { %v3889_v37 = vadd.f32 %v1289_v4, %v1225_v8  ;;  %v1039_v30 = vadd.f32 %v3808_v14, %v974_v60  ;;  %v627_v60 = vld [vmem:[%s5860_s1 + $0x5a8] sm:$0xff] }
 0x10c   :  { %v1097_v17 = vpop.f32.mrf.mxu3  ;;  %1551 = vmatmul.f32.gmra.mxu2 %v51_v48  ;;  %v1227_v23 = vpop.f32.mrf.mxu1  ;;  %1607 = vmatpush.msrb.mxu3 %v627_v60 }
 0x10d   :  { %v1098_v28 = vadd.f32 %v1097_v17, %v1033_v13  ;;  %v132_v13 = vld [vmem:[%s5862_s0 + $0x3b0] sm:$0xff]  ;;  %v646_v17 = vld [vmem:[%s5860_s1 + $0x640] sm:$0xff] }
 0x10e   :  { %v1165_v50 = vpop.f32.mrf.mxu0  ;;  %1669 = vmatpush.msrb.mxu0 %v646_v17 }
 0x10f   :  { %v1163_v38 = vadd.f32 %v1162_v63, %v1098_v28  ;;  %v1292_v41 = vpop.f32.mrf.mxu2  ;;  %1486 = vmatmul.f32.gmra.mxu1 %v50_v25  ;;  %v663_v63 = vld [vmem:[%s5860_s1 + $0x6c8] sm:$0xff]  ;;  %v662_v25 = vld [vmem:[%s5860_s1 + $0x6c0] sm:$0xff] }
 0x110   :  { %1733 = vmatpush.msrb.mxu1 %v663_v63  ;;  %1670 = vmatpush.msrb.mxu0 %v645_v51  ;;  %v185_v63 = vld [vmem:[%s5862_s0 + $0x558] sm:$0xff] }
 0x111   :  { %v1228_v45 = vadd.f32 %v1227_v23, %v1163_v38  ;;  %1359 = vmatmul.f32.gmra.mxu3 %v75_v31  ;;  %1424 = vmatmul.f32.gmra.mxu0 %v76_v34 }
 0x112   :  { %1734 = vmatpush.msrb.mxu1 %v662_v25  ;;  %v212_v25 = vld [vmem:[%s5862_s0 + $0x630] sm:$0xff] }
 0x113   :  { %v3919_v55 = vadd.f32 %v1292_v41, %v1228_v45  ;;  %v157_v41 = vld [vmem:[%s5862_s0 + $0x478] sm:$0xff] }
 0x114   :  { %v1100_v2 = vpop.f32.mrf.mxu3  ;;  %1554 = vmatmul.f32.gmra.mxu2 %v78_v49  ;;  %v1230_v3 = vpop.f32.mrf.mxu1  ;;  %v677_v45 = vld [vmem:[%s5860_s1 + $0x738] sm:$0xff]  ;;  %1735 = vmatpush.msrb.mxu1 %v661_v53  ;;  %v239_v53 = vld [vmem:[%s5862_s0 + $0x708] sm:$0xff] }
 0x115   :  { %v1101_v56 = vadd.f32 %v1100_v2, %v1036_v52  ;;  %1800 = vmatpush.msrb.mxu2 %v677_v45  ;;  %v642_v45 = vld [vmem:[%s5860_s1 + $0x620] sm:$0xff] }
 0x116   :  { %v1168_v61 = vpop.f32.mrf.mxu0  ;;  %1736 = vmatpush.msrb.mxu1 %v660_v26  ;;  %v266_v26 = vld [vmem:[%s5862_s0 + $0x7e0] sm:$0xff] }
 0x117   :  { %v1166_v11 = vadd.f32 %v1165_v50, %v1101_v56  ;;  %v1295_v18 = vpop.f32.mrf.mxu2  ;;  %1489 = vmatmul.f32.gmra.mxu1 %v77_v9  ;;  %v131_v50 = vld [vmem:[%s5862_s0 + $0x3a8] sm:$0xff]  ;;  %v158_v9 = vld [vmem:[%s5862_s0 + $0x480] sm:$0xff] }
 0x119   :  { %v1231_v24 = vadd.f32 %v1230_v3, %v1166_v11  ;;  %1362 = vmatmul.f32.gmra.mxu3 %v102_v12  ;;  %1427 = vmatmul.f32.gmra.mxu0 %v103_v20  ;;  %v183_v12 = vld [vmem:[%s5862_s0 + $0x548] sm:$0xff]  ;;  %v184_v20 = vld [vmem:[%s5862_s0 + $0x550] sm:$0xff] }
 0x11b   :  { %v3949_v33 = vadd.f32 %v1295_v18, %v1231_v24  ;;  %v676_v18 = vld [vmem:[%s5860_s1 + $0x730] sm:$0xff] }
 0x11c   :  { %v1103_v19 = vpop.f32.mrf.mxu3  ;;  %1557 = vmatmul.f32.gmra.mxu2 %v105_v27  ;;  %v1233_v0 = vpop.f32.mrf.mxu1  ;;  %v644_v24 = vld [vmem:[%s5860_s1 + $0x630] sm:$0xff] }
 0x11d   :  { %v1104_v4 = vadd.f32 %v1103_v19, %v1039_v30  ;;  %1801 = vmatpush.msrb.mxu2 %v676_v18  ;;  %1671 = vmatpush.msrb.mxu0 %v644_v24  ;;  %v641_v18 = vld [vmem:[%s5860_s1 + $0x618] sm:$0xff] }
 0x11e   :  { %v1171_v14 = vpop.f32.mrf.mxu0 }
 0x11f   :  { %v1169_v8 = vadd.f32 %v1168_v61, %v1104_v4  ;;  %v1298_v48 = vpop.f32.mrf.mxu2  ;;  %1492 = vmatmul.f32.gmra.mxu1 %v104_v39  ;;  %v211_v4 = vld [vmem:[%s5862_s0 + $0x628] sm:$0xff]  ;;  %1672 = vmatpush.msrb.mxu0 %v643_v40 }
 0x121   :  { %v1234_v10 = vadd.f32 %v1233_v0, %v1169_v8  ;;  %1365 = vmatmul.f32.gmra.mxu3 %v129_v5  ;;  %1430 = vmatmul.f32.gmra.mxu0 %v130_v7  ;;  %v210_v0 = vld [vmem:[%s5862_s0 + $0x620] sm:$0xff]  ;;  %v675_v7 = vld [vmem:[%s5860_s1 + $0x728] sm:$0xff] }
 0x122   :  { %1802 = vmatpush.msrb.mxu2 %v675_v7  ;;  %1673 = vmatpush.msrb.mxu0 %v642_v45  ;;  %v640_v7 = vld [vmem:[%s5860_s1 + $0x610] sm:$0xff] }
 0x123   :  { %v3975_v23 = vadd.f32 %v1298_v48, %v1234_v10  ;;  %v626_v48 = vld [vmem:[%s5860_s1 + $0x5a0] sm:$0xff] }
 0x124   :  { %v1106_v28 = vpop.f32.mrf.mxu3  ;;  %1560 = vmatmul.f32.gmra.mxu2 %v132_v13  ;;  %v1236_v31 = vpop.f32.mrf.mxu1  ;;  %1608 = vmatpush.msrb.mxu3 %v626_v48  ;;  %v659_v13 = vld [vmem:[%s5860_s1 + $0x6a8] sm:$0xff] }
 0x125   :  { %v1107_v34 = vadd.f32 %v1106_v28, %v3529_v47  ;;  %v159_v47 = vld [vmem:[%s5862_s0 + $0x488] sm:$0xff]  ;;  %1737 = vmatpush.msrb.mxu1 %v659_v13  ;;  %1674 = vmatpush.msrb.mxu0 %v641_v18  ;;  %v293_v13 = vld [vmem:[%s5862_s0 + $0x8b8] sm:$0xff] }
 0x126   :  { %v1174_v38 = vpop.f32.mrf.mxu0 }
 0x127   :  { %v1172_v44 = vadd.f32 %v1171_v14, %v1107_v34  ;;  %v1301_v43 = vpop.f32.mrf.mxu2  ;;  %1495 = vmatmul.f32.gmra.mxu1 %v131_v50  ;;  %v238_v34 = vld [vmem:[%s5862_s0 + $0x700] sm:$0xff]  ;;  %1675 = vmatpush.msrb.mxu0 %v640_v7 }
 0x129   :  { %v1237_v49 = vadd.f32 %v1236_v31, %v1172_v44  ;;  %1368 = vmatmul.f32.gmra.mxu3 %v156_v35  ;;  %1433 = vmatmul.f32.gmra.mxu0 %v157_v41  ;;  %v237_v31 = vld [vmem:[%s5862_s0 + $0x6f8] sm:$0xff]  ;;  %v674_v41 = vld [vmem:[%s5860_s1 + $0x720] sm:$0xff] }
 0x12a   :  { %1803 = vmatpush.msrb.mxu2 %v674_v41  ;;  %v639_v41 = vld [vmem:[%s5860_s1 + $0x608] sm:$0xff] }
 0x12b   :  { %v4002_v52 = vadd.f32 %v1301_v43, %v1237_v49  ;;  %v625_v43 = vld [vmem:[%s5860_s1 + $0x598] sm:$0xff]  ;;  %1676 = vmatpush.msrb.mxu0 %v639_v41 }
 0x12c   :  { %v1109_v2 = vpop.f32.mrf.mxu3  ;;  %1563 = vmatmul.f32.gmra.mxu2 %v159_v47  ;;  %v1239_v3 = vpop.f32.mrf.mxu1  ;;  %1609 = vmatpush.msrb.mxu3 %v625_v43  ;;  %v658_v47 = vld [vmem:[%s5860_s1 + $0x6a0] sm:$0xff] }
 0x12d   :  { %v1110_v56 = vadd.f32 %v1109_v2, %v3558_v15  ;;  %v186_v15 = vld [vmem:[%s5862_s0 + $0x560] sm:$0xff]  ;;  %1738 = vmatpush.msrb.mxu1 %v658_v47  ;;  %v320_v47 = vld [vmem:[%s5862_s0 + $0x990] sm:$0xff] }
 0x12e   :  { %v1177_v61 = vpop.f32.mrf.mxu0 }
 0x12f   :  { %v1175_v58 = vadd.f32 %v1174_v38, %v1110_v56  ;;  %v1304_v11 = vpop.f32.mrf.mxu2  ;;  %1498 = vmatmul.f32.gmra.mxu1 %v158_v9  ;;  %v265_v56 = vld [vmem:[%s5862_s0 + $0x7d8] sm:$0xff] }
 0x131   :  { %v1240_v21 = vadd.f32 %v1239_v3, %v1175_v58  ;;  %1371 = vmatmul.f32.gmra.mxu3 %v183_v12  ;;  %1436 = vmatmul.f32.gmra.mxu0 %v184_v20  ;;  %v264_v3 = vld [vmem:[%s5862_s0 + $0x7d0] sm:$0xff]  ;;  %v673_v20 = vld [vmem:[%s5860_s1 + $0x718] sm:$0xff] }
 0x132   :  { %1804 = vmatpush.msrb.mxu2 %v673_v20  ;;  %v701_v20 = vld [vmem:[%s5860_s1 + $0x7f8] sm:$0xff] }
 0x133   :  { %v4029_v27 = vadd.f32 %v1304_v11, %v1240_v21  ;;  %v624_v11 = vld [vmem:[%s5860_s1 + $0x590] sm:$0xff] }
 0x134   :  { %v1112_v62 = vpop.f32.mrf.mxu3  ;;  %1566 = vmatmul.f32.gmra.mxu2 %v186_v15  ;;  %v1242_v30 = vpop.f32.mrf.mxu1  ;;  %1610 = vmatpush.msrb.mxu3 %v624_v11  ;;  %v657_v15 = vld [vmem:[%s5860_s1 + $0x698] sm:$0xff] }
 0x135   :  { %v1113_v19 = vadd.f32 %v1112_v62, %v3587_v36  ;;  %v213_v36 = vld [vmem:[%s5862_s0 + $0x638] sm:$0xff]  ;;  %1739 = vmatpush.msrb.mxu1 %v657_v15  ;;  %v347_v15 = vld [vmem:[%s5862_s0 + $0xa68] sm:$0xff] }
 0x136   :  { %v1180_v39 = vpop.f32.mrf.mxu0 }
 0x137   :  { %v1178_v5 = vadd.f32 %v1177_v61, %v1113_v19  ;;  %v1307_v14 = vpop.f32.mrf.mxu2  ;;  %1501 = vmatmul.f32.gmra.mxu1 %v185_v63  ;;  %v292_v19 = vld [vmem:[%s5862_s0 + $0x8b0] sm:$0xff] }
 0x139   :  { %v1243_v8 = vadd.f32 %v1242_v30, %v1178_v5  ;;  %1374 = vmatmul.f32.gmra.mxu3 %v210_v0  ;;  %1439 = vmatmul.f32.gmra.mxu0 %v211_v4  ;;  %v291_v30 = vld [vmem:[%s5862_s0 + $0x8a8] sm:$0xff]  ;;  %v672_v4 = vld [vmem:[%s5860_s1 + $0x710] sm:$0xff] }
 0x13a   :  { %1805 = vmatpush.msrb.mxu2 %v672_v4  ;;  %v717_v4 = vld [vmem:[%s5860_s1 + $0x878] sm:$0xff] }
 0x13b   :  { %v4056_v10 = vadd.f32 %v1307_v14, %v1243_v8  ;;  %v623_v14 = vld [vmem:[%s5860_s1 + $0x588] sm:$0xff] }
 0x13c   :  { %v1115_v16 = vpop.f32.mrf.mxu3  ;;  %1569 = vmatmul.f32.gmra.mxu2 %v213_v36  ;;  %v1245_v17 = vpop.f32.mrf.mxu1  ;;  %1611 = vmatpush.msrb.mxu3 %v623_v14  ;;  %v656_v36 = vld [vmem:[%s5860_s1 + $0x690] sm:$0xff] }
 0x13d   :  { %v1116_v28 = vadd.f32 %v1115_v16, %v3616_v22  ;;  %v240_v22 = vld [vmem:[%s5862_s0 + $0x710] sm:$0xff]  ;;  %1740 = vmatpush.msrb.mxu1 %v656_v36  ;;  %v374_v36 = vld [vmem:[%s5862_s0 + $0xb40] sm:$0xff] }
 0x13e   :  { %v1183_v50 = vpop.f32.mrf.mxu0 }
 0x13f   :  { %v1181_v35 = vadd.f32 %v1180_v39, %v1116_v28  ;;  %v1310_v38 = vpop.f32.mrf.mxu2  ;;  %1504 = vmatmul.f32.gmra.mxu1 %v212_v25  ;;  %v319_v28 = vld [vmem:[%s5862_s0 + $0x988] sm:$0xff] }
 0x141   :  { %v1246_v44 = vadd.f32 %v1245_v17, %v1181_v35  ;;  %1377 = vmatmul.f32.gmra.mxu3 %v237_v31  ;;  %1442 = vmatmul.f32.gmra.mxu0 %v238_v34  ;;  %v318_v17 = vld [vmem:[%s5862_s0 + $0x980] sm:$0xff]  ;;  %v671_v34 = vld [vmem:[%s5860_s1 + $0x708] sm:$0xff] }
 0x142   :  { %1806 = vmatpush.msrb.mxu2 %v671_v34  ;;  %v716_v34 = vld [vmem:[%s5860_s1 + $0x870] sm:$0xff] }
 0x143   :  { %v4083_v49 = vadd.f32 %v1310_v38, %v1246_v44  ;;  %v622_v38 = vld [vmem:[%s5860_s1 + $0x580] sm:$0xff] }
 0x144   :  { %v1118_v6 = vpop.f32.mrf.mxu3  ;;  %1572 = vmatmul.f32.gmra.mxu2 %v240_v22  ;;  %v1248_v51 = vpop.f32.mrf.mxu1  ;;  %1612 = vmatpush.msrb.mxu3 %v622_v38  ;;  %v655_v22 = vld [vmem:[%s5860_s1 + $0x688] sm:$0xff] }
 0x145   :  { %v1119_v2 = vadd.f32 %v1118_v6, %v3645_v46  ;;  %v267_v46 = vld [vmem:[%s5862_s0 + $0x7e8] sm:$0xff]  ;;  %1741 = vmatpush.msrb.mxu1 %v655_v22  ;;  %v401_v22 = vld [vmem:[%s5862_s0 + $0xc18] sm:$0xff] }
 0x146   :  { %v1186_v9 = vpop.f32.mrf.mxu0  ;;  %1857 = vmatpush.msra.mxu3 %v701_v20 }
 0x147   :  { %v1184_v12 = vadd.f32 %v1183_v50, %v1119_v2  ;;  %v1313_v61 = vpop.f32.mrf.mxu2  ;;  %1507 = vmatmul.f32.gmra.mxu1 %v239_v53  ;;  %v346_v2 = vld [vmem:[%s5862_s0 + $0xa60] sm:$0xff] }
 0x149   :  { %v1249_v58 = vadd.f32 %v1248_v51, %v1184_v12  ;;  %1380 = vmatmul.f32.gmra.mxu3 %v264_v3  ;;  %1445 = vmatmul.f32.gmra.mxu0 %v265_v56  ;;  %v345_v51 = vld [vmem:[%s5862_s0 + $0xa58] sm:$0xff]  ;;  %v670_v56 = vld [vmem:[%s5860_s1 + $0x700] sm:$0xff] }
 0x14a   :  { %1807 = vmatpush.msrb.mxu2 %v670_v56  ;;  %v715_v56 = vld [vmem:[%s5860_s1 + $0x868] sm:$0xff] }
 0x14b   :  { %v4110_v21 = vadd.f32 %v1313_v61, %v1249_v58  ;;  %v638_v61 = vld [vmem:[%s5860_s1 + $0x600] sm:$0xff] }
 0x14c   :  { %v1121_v60 = vpop.f32.mrf.mxu3  ;;  %1575 = vmatmul.f32.gmra.mxu2 %v267_v46  ;;  %v1251_v24 = vpop.f32.mrf.mxu1  ;;  %1677 = vmatpush.msrb.mxu0 %v638_v61  ;;  %v654_v46 = vld [vmem:[%s5860_s1 + $0x680] sm:$0xff] }
 0x14d   :  { %v1122_v62 = vadd.f32 %v1121_v60, %v3674_v59  ;;  %v294_v59 = vld [vmem:[%s5862_s0 + $0x8c0] sm:$0xff]  ;;  %1742 = vmatpush.msrb.mxu1 %v654_v46  ;;  %v428_v46 = vld [vmem:[%s5862_s0 + $0xcf0] sm:$0xff] }
 0x14e   :  { %v1189_v63 = vpop.f32.mrf.mxu0  ;;  %1922 = vmatpush.msra.mxu0 %v717_v4 }
 0x14f   :  { %v1187_v0 = vadd.f32 %v1186_v9, %v1122_v62  ;;  %v1316_v39 = vpop.f32.mrf.mxu2  ;;  %1510 = vmatmul.f32.gmra.mxu1 %v266_v26  ;;  %v373_v62 = vld [vmem:[%s5862_s0 + $0xb38] sm:$0xff] }
 0x150   :  { %1923 = vmatpush.msra.mxu0 %v716_v34 }
 0x151   :  { %v1252_v5 = vadd.f32 %v1251_v24, %v1187_v0  ;;  %1383 = vmatmul.f32.gmra.mxu3 %v291_v30  ;;  %1448 = vmatmul.f32.gmra.mxu0 %v292_v19  ;;  %v372_v24 = vld [vmem:[%s5862_s0 + $0xb30] sm:$0xff]  ;;  %v749_v19 = vld [vmem:[%s5860_s1 + $0x978] sm:$0xff] }
 0x152   :  { %2052 = vmatpush.msra.mxu2 %v749_v19  ;;  %1924 = vmatpush.msra.mxu0 %v715_v56  ;;  %v714_v19 = vld [vmem:[%s5860_s1 + $0x860] sm:$0xff] }
 0x153   :  { %v4137_v8 = vadd.f32 %v1316_v39, %v1252_v5  ;;  %v700_v39 = vld [vmem:[%s5860_s1 + $0x7f0] sm:$0xff] }
 0x154   :  { %v1124_v48 = vpop.f32.mrf.mxu3  ;;  %1578 = vmatmul.f32.gmra.mxu2 %v294_v59  ;;  %v1254_v40 = vpop.f32.mrf.mxu1  ;;  %1858 = vmatpush.msra.mxu3 %v700_v39  ;;  %v733_v59 = vld [vmem:[%s5860_s1 + $0x8f8] sm:$0xff] }
 0x155   :  { %v1125_v16 = vadd.f32 %v1124_v48, %v3703_v42  ;;  %v321_v42 = vld [vmem:[%s5862_s0 + $0x998] sm:$0xff]  ;;  %1987 = vmatpush.msra.mxu1 %v733_v59  ;;  %1925 = vmatpush.msra.mxu0 %v714_v19  ;;  %v27_v59 = vld [vmem:[%s5862_s0 + $0x68] sm:$0xff] }
 0x156   :  { %v1192_v25 = vpop.f32.mrf.mxu0 }
 0x157   :  { %v1190_v31 = vadd.f32 %v1189_v63, %v1125_v16  ;;  %v1319_v50 = vpop.f32.mrf.mxu2  ;;  %1513 = vmatmul.f32.gmra.mxu1 %v293_v13  ;;  %v400_v16 = vld [vmem:[%s5862_s0 + $0xc10] sm:$0xff] }
 0x159   :  { %v1255_v35 = vadd.f32 %v1254_v40, %v1190_v31  ;;  %1386 = vmatmul.f32.gmra.mxu3 %v318_v17  ;;  %1451 = vmatmul.f32.gmra.mxu0 %v319_v28  ;;  %v399_v40 = vld [vmem:[%s5862_s0 + $0xc08] sm:$0xff]  ;;  %v748_v28 = vld [vmem:[%s5860_s1 + $0x970] sm:$0xff] }
 0x15a   :  { %2053 = vmatpush.msra.mxu2 %v748_v28  ;;  %v713_v28 = vld [vmem:[%s5860_s1 + $0x858] sm:$0xff] }
 0x15b   :  { %v4164_v44 = vadd.f32 %v1319_v50, %v1255_v35  ;;  %v699_v50 = vld [vmem:[%s5860_s1 + $0x7e8] sm:$0xff]  ;;  %1926 = vmatpush.msra.mxu0 %v713_v28 }
 0x15c   :  { %v1127_v43 = vpop.f32.mrf.mxu3  ;;  %1581 = vmatmul.f32.gmra.mxu2 %v321_v42  ;;  %v1257_v45 = vpop.f32.mrf.mxu1  ;;  %1859 = vmatpush.msra.mxu3 %v699_v50  ;;  %v732_v42 = vld [vmem:[%s5860_s1 + $0x8f0] sm:$0xff] }
 0x15d   :  { %v1128_v6 = vadd.f32 %v1127_v43, %v3732_v32  ;;  %v348_v32 = vld [vmem:[%s5862_s0 + $0xa70] sm:$0xff]  ;;  %1988 = vmatpush.msra.mxu1 %v732_v42  ;;  %v54_v42 = vld [vmem:[%s5862_s0 + $0x140] sm:$0xff] }
 0x15e   :  { %v1195_v53 = vpop.f32.mrf.mxu0 }
 0x15f   :  { %v1193_v3 = vadd.f32 %v1192_v25, %v1128_v6  ;;  %v1322_v9 = vpop.f32.mrf.mxu2  ;;  %1516 = vmatmul.f32.gmra.mxu1 %v320_v47  ;;  %v427_v6 = vld [vmem:[%s5862_s0 + $0xce8] sm:$0xff] }
 0x161   :  { %v1258_v12 = vadd.f32 %v1257_v45, %v1193_v3  ;;  %1389 = vmatmul.f32.gmra.mxu3 %v345_v51  ;;  %1454 = vmatmul.f32.gmra.mxu0 %v346_v2  ;;  %v426_v45 = vld [vmem:[%s5862_s0 + $0xce0] sm:$0xff]  ;;  %v747_v2 = vld [vmem:[%s5860_s1 + $0x968] sm:$0xff] }
 0x162   :  { %2054 = vmatpush.msra.mxu2 %v747_v2  ;;  %v712_v2 = vld [vmem:[%s5860_s1 + $0x850] sm:$0xff] }
 0x163   :  { %v4191_v58 = vadd.f32 %v1322_v9, %v1258_v12  ;;  %v698_v9 = vld [vmem:[%s5860_s1 + $0x7e0] sm:$0xff]  ;;  %1927 = vmatpush.msra.mxu0 %v712_v2 }
 0x164   :  { %v1130_v11 = vpop.f32.mrf.mxu3  ;;  %1584 = vmatmul.f32.gmra.mxu2 %v348_v32  ;;  %v1260_v18 = vpop.f32.mrf.mxu1  ;;  %1860 = vmatpush.msra.mxu3 %v698_v9  ;;  %v731_v32 = vld [vmem:[%s5860_s1 + $0x8e8] sm:$0xff] }
 0x165   :  { %v1131_v60 = vadd.f32 %v1130_v11, %v3761_v54  ;;  %v375_v54 = vld [vmem:[%s5862_s0 + $0xb48] sm:$0xff]  ;;  %1989 = vmatpush.msra.mxu1 %v731_v32  ;;  %v81_v32 = vld [vmem:[%s5862_s0 + $0x218] sm:$0xff] }
 0x166   :  { %v1198_v26 = vpop.f32.mrf.mxu0 }
 0x167   :  { %v1196_v30 = vadd.f32 %v1195_v53, %v1131_v60  ;;  %v1325_v63 = vpop.f32.mrf.mxu2  ;;  %1519 = vmatmul.f32.gmra.mxu1 %v347_v15  ;;  %v26_v60 = vld [vmem:[%s5862_s0 + $0x60] sm:$0xff] }
 0x169   :  { %v1261_v0 = vadd.f32 %v1260_v18, %v1196_v30  ;;  %1392 = vmatmul.f32.gmra.mxu3 %v372_v24  ;;  %1457 = vmatmul.f32.gmra.mxu0 %v373_v62  ;;  %v25_v18 = vld [vmem:[%s5862_s0 + $0x58] sm:$0xff]  ;;  %v746_v62 = vld [vmem:[%s5860_s1 + $0x960] sm:$0xff] }
 0x16a   :  { %2055 = vmatpush.msra.mxu2 %v746_v62  ;;  %v711_v62 = vld [vmem:[%s5860_s1 + $0x848] sm:$0xff] }
 0x16b   :  { %v4218_v5 = vadd.f32 %v1325_v63, %v1261_v0  ;;  %v697_v63 = vld [vmem:[%s5860_s1 + $0x7d8] sm:$0xff]  ;;  %1928 = vmatpush.msra.mxu0 %v711_v62 }
 0x16c   :  { %v1133_v14 = vpop.f32.mrf.mxu3  ;;  %1587 = vmatmul.f32.gmra.mxu2 %v375_v54  ;;  %v1263_v7 = vpop.f32.mrf.mxu1  ;;  %1861 = vmatpush.msra.mxu3 %v697_v63  ;;  %v730_v54 = vld [vmem:[%s5860_s1 + $0x8e0] sm:$0xff] }
 0x16d   :  { %v1134_v48 = vadd.f32 %v1133_v14, %v3790_v1  ;;  %v402_v1 = vld [vmem:[%s5862_s0 + $0xc20] sm:$0xff]  ;;  %1990 = vmatpush.msra.mxu1 %v730_v54  ;;  %v108_v54 = vld [vmem:[%s5862_s0 + $0x2f0] sm:$0xff] }
 0x16e   :  { %v1201_v13 = vpop.f32.mrf.mxu0 }
 0x16f   :  { %v1199_v17 = vadd.f32 %v1198_v26, %v1134_v48  ;;  %v1328_v25 = vpop.f32.mrf.mxu2  ;;  %1522 = vmatmul.f32.gmra.mxu1 %v374_v36  ;;  %v53_v48 = vld [vmem:[%s5862_s0 + $0x138] sm:$0xff] }
 0x171   :  { %v1264_v31 = vadd.f32 %v1263_v7, %v1199_v17  ;;  %1395 = vmatmul.f32.gmra.mxu3 %v399_v40  ;;  %1460 = vmatmul.f32.gmra.mxu0 %v400_v16  ;;  %v52_v7 = vld [vmem:[%s5862_s0 + $0x130] sm:$0xff]  ;;  %v745_v16 = vld [vmem:[%s5860_s1 + $0x958] sm:$0xff] }
 0x172   :  { %2056 = vmatpush.msra.mxu2 %v745_v16  ;;  %v710_v16 = vld [vmem:[%s5860_s1 + $0x840] sm:$0xff] }
 0x173   :  { %v4245_v35 = vadd.f32 %v1328_v25, %v1264_v31  ;;  %v696_v25 = vld [vmem:[%s5860_s1 + $0x7d0] sm:$0xff]  ;;  %1929 = vmatpush.msra.mxu0 %v710_v16 }
 0x174   :  { %v1136_v38 = vpop.f32.mrf.mxu3  ;;  %1590 = vmatmul.f32.gmra.mxu2 %v402_v1  ;;  %v1266_v41 = vpop.f32.mrf.mxu1  ;;  %1862 = vmatpush.msra.mxu3 %v696_v25  ;;  %v729_v1 = vld [vmem:[%s5860_s1 + $0x8d8] sm:$0xff] }
 0x175   :  { %v1137_v43 = vadd.f32 %v1136_v38, %v3819_v29  ;;  %v429_v29 = vld [vmem:[%s5862_s0 + $0xcf8] sm:$0xff]  ;;  %1991 = vmatpush.msra.mxu1 %v729_v1  ;;  %v135_v1 = vld [vmem:[%s5862_s0 + $0x3c8] sm:$0xff] }
 0x176   :  { %v1204_v47 = vpop.f32.mrf.mxu0 }
 0x177   :  { %v1202_v51 = vadd.f32 %v1201_v13, %v1137_v43  ;;  %v1331_v53 = vpop.f32.mrf.mxu2  ;;  %1525 = vmatmul.f32.gmra.mxu1 %v401_v22  ;;  %v80_v43 = vld [vmem:[%s5862_s0 + $0x210] sm:$0xff] }
 0x179   :  { %v1267_v3 = vadd.f32 %v1266_v41, %v1202_v51  ;;  %1398 = vmatmul.f32.gmra.mxu3 %v426_v45  ;;  %1463 = vmatmul.f32.gmra.mxu0 %v427_v6  ;;  %v79_v41 = vld [vmem:[%s5862_s0 + $0x208] sm:$0xff]  ;;  %v744_v6 = vld [vmem:[%s5860_s1 + $0x950] sm:$0xff] }
 0x17a   :  { %2057 = vmatpush.msra.mxu2 %v744_v6  ;;  %v709_v6 = vld [vmem:[%s5860_s1 + $0x838] sm:$0xff] }
 0x17b   :  { %v4272_v12 = vadd.f32 %v1331_v53, %v1267_v3  ;;  %v695_v53 = vld [vmem:[%s5860_s1 + $0x7c8] sm:$0xff]  ;;  %1930 = vmatpush.msra.mxu0 %v709_v6 }
 0x17c   :  { %v1139_v61 = vpop.f32.mrf.mxu3  ;;  %1593 = vmatmul.f32.gmra.mxu2 %v429_v29  ;;  %v1269_v20 = vpop.f32.mrf.mxu1  ;;  %1863 = vmatpush.msra.mxu3 %v695_v53  ;;  %v728_v29 = vld [vmem:[%s5860_s1 + $0x8d0] sm:$0xff] }
 0x17d   :  { %v1140_v11 = vadd.f32 %v1139_v61, %v3849_v57  ;;  %v28_v57 = vld [vmem:[%s5862_s0 + $0x70] sm:$0xff]  ;;  %1992 = vmatpush.msra.mxu1 %v728_v29  ;;  %v162_v29 = vld [vmem:[%s5862_s0 + $0x4a0] sm:$0xff] }
 0x17e   :  { %v1419_v15 = vpop.f32.mrf.mxu0 }
 0x17f   :  { %v1205_v24 = vadd.f32 %v1204_v47, %v1140_v11  ;;  %v1334_v26 = vpop.f32.mrf.mxu2  ;;  %1528 = vmatmul.f32.gmra.mxu1 %v428_v46  ;;  %v107_v11 = vld [vmem:[%s5862_s0 + $0x2e8] sm:$0xff] }
 0x181   :  { %v1270_v30 = vadd.f32 %v1269_v20, %v1205_v24  ;;  %1613 = vmatmul.f32.vlgmr.msrb.gmra.mxu3 %v25_v18  ;;  %1678 = vmatmul.f32.vlgmr.msrb.gmra.mxu0 %v26_v60  ;;  %v106_v20 = vld [vmem:[%s5862_s0 + $0x2e0] sm:$0xff]  ;;  %v743_v60 = vld [vmem:[%s5860_s1 + $0x948] sm:$0xff] }
 0x182   :  { %2058 = vmatpush.msra.mxu2 %v743_v60  ;;  %v708_v60 = vld [vmem:[%s5860_s1 + $0x830] sm:$0xff] }
 0x183   :  { %v4299_v0 = vadd.f32 %v1334_v26, %v1270_v30  ;;  %v694_v26 = vld [vmem:[%s5860_s1 + $0x7c0] sm:$0xff]  ;;  %1931 = vmatpush.msra.mxu0 %v708_v60 }
 0x184   :  { %v1354_v39 = vpop.f32.mrf.mxu3  ;;  %1808 = vmatmul.f32.vlgmr.msrb.gmra.mxu2 %v28_v57  ;;  %v1484_v4 = vpop.f32.mrf.mxu1  ;;  %1864 = vmatpush.msra.mxu3 %v694_v26  ;;  %v727_v57 = vld [vmem:[%s5860_s1 + $0x8c8] sm:$0xff] }
 0x185   :  { %v1355_v14 = vadd.f32 %v1354_v39, %v3889_v37  ;;  %v55_v37 = vld [vmem:[%s5862_s0 + $0x148] sm:$0xff]  ;;  %1993 = vmatpush.msra.mxu1 %v727_v57  ;;  %v189_v57 = vld [vmem:[%s5862_s0 + $0x578] sm:$0xff] }
 0x186   :  { %v1422_v36 = vpop.f32.mrf.mxu0 }
 0x187   :  { %v1420_v40 = vadd.f32 %v1419_v15, %v1355_v14  ;;  %v1549_v13 = vpop.f32.mrf.mxu2  ;;  %1743 = vmatmul.f32.vlgmr.msrb.gmra.mxu1 %v27_v59  ;;  %v134_v14 = vld [vmem:[%s5862_s0 + $0x3c0] sm:$0xff] }
 0x189   :  { %v1485_v17 = vadd.f32 %v1484_v4, %v1420_v40  ;;  %1616 = vmatmul.f32.gmra.mxu3 %v52_v7  ;;  %1681 = vmatmul.f32.gmra.mxu0 %v53_v48  ;;  %v133_v4 = vld [vmem:[%s5862_s0 + $0x3b8] sm:$0xff]  ;;  %v742_v48 = vld [vmem:[%s5860_s1 + $0x940] sm:$0xff] }
 0x18a   :  { %2059 = vmatpush.msra.mxu2 %v742_v48  ;;  %v707_v48 = vld [vmem:[%s5860_s1 + $0x828] sm:$0xff] }
 0x18b   :  { %v4326_v31 = vadd.f32 %v1549_v13, %v1485_v17  ;;  %v693_v13 = vld [vmem:[%s5860_s1 + $0x7b8] sm:$0xff]  ;;  %1932 = vmatpush.msra.mxu0 %v707_v48 }
 0x18c   :  { %v1357_v50 = vpop.f32.mrf.mxu3  ;;  %1811 = vmatmul.f32.gmra.mxu2 %v55_v37  ;;  %v1487_v34 = vpop.f32.mrf.mxu1  ;;  %1865 = vmatpush.msra.mxu3 %v693_v13  ;;  %v726_v37 = vld [vmem:[%s5860_s1 + $0x8c0] sm:$0xff] }
 0x18d   :  { %v1358_v38 = vadd.f32 %v1357_v50, %v3919_v55  ;;  %v82_v55 = vld [vmem:[%s5862_s0 + $0x220] sm:$0xff]  ;;  %1994 = vmatpush.msra.mxu1 %v726_v37  ;;  %v216_v37 = vld [vmem:[%s5862_s0 + $0x650] sm:$0xff] }
 0x18e   :  { %v1425_v22 = vpop.f32.mrf.mxu0 }
 0x18f   :  { %v1423_v45 = vadd.f32 %v1422_v36, %v1358_v38  ;;  %v1552_v47 = vpop.f32.mrf.mxu2  ;;  %1746 = vmatmul.f32.gmra.mxu1 %v54_v42  ;;  %v161_v38 = vld [vmem:[%s5862_s0 + $0x498] sm:$0xff] }
 0x191   :  { %v1488_v51 = vadd.f32 %v1487_v34, %v1423_v45  ;;  %1619 = vmatmul.f32.gmra.mxu3 %v79_v41  ;;  %1684 = vmatmul.f32.gmra.mxu0 %v80_v43  ;;  %v160_v34 = vld [vmem:[%s5862_s0 + $0x490] sm:$0xff]  ;;  %v741_v43 = vld [vmem:[%s5860_s1 + $0x938] sm:$0xff] }
 0x192   :  { %2060 = vmatpush.msra.mxu2 %v741_v43  ;;  %v706_v43 = vld [vmem:[%s5860_s1 + $0x820] sm:$0xff] }
 0x193   :  { %v4353_v3 = vadd.f32 %v1552_v47, %v1488_v51  ;;  %v692_v47 = vld [vmem:[%s5860_s1 + $0x7b0] sm:$0xff]  ;;  %1933 = vmatpush.msra.mxu0 %v706_v43 }
 0x194   :  { %v1360_v9 = vpop.f32.mrf.mxu3  ;;  %1814 = vmatmul.f32.gmra.mxu2 %v82_v55  ;;  %v1490_v56 = vpop.f32.mrf.mxu1  ;;  %1866 = vmatpush.msra.mxu3 %v692_v47  ;;  %v725_v55 = vld [vmem:[%s5860_s1 + $0x8b8] sm:$0xff] }
 0x195   :  { %v1361_v61 = vadd.f32 %v1360_v9, %v3949_v33  ;;  %v109_v33 = vld [vmem:[%s5862_s0 + $0x2f8] sm:$0xff]  ;;  %1995 = vmatpush.msra.mxu1 %v725_v55  ;;  %v243_v55 = vld [vmem:[%s5862_s0 + $0x728] sm:$0xff] }
 0x196   :  { %v1428_v46 = vpop.f32.mrf.mxu0 }
 0x197   :  { %v1426_v18 = vadd.f32 %v1425_v22, %v1361_v61  ;;  %v1555_v15 = vpop.f32.mrf.mxu2  ;;  %1749 = vmatmul.f32.gmra.mxu1 %v81_v32  ;;  %v188_v61 = vld [vmem:[%s5862_s0 + $0x570] sm:$0xff] }
 0x199   :  { %v1491_v24 = vadd.f32 %v1490_v56, %v1426_v18  ;;  %1622 = vmatmul.f32.gmra.mxu3 %v106_v20  ;;  %1687 = vmatmul.f32.gmra.mxu0 %v107_v11  ;;  %v187_v56 = vld [vmem:[%s5862_s0 + $0x568] sm:$0xff]  ;;  %v740_v11 = vld [vmem:[%s5860_s1 + $0x930] sm:$0xff] }
 0x19a   :  { %2061 = vmatpush.msra.mxu2 %v740_v11  ;;  %v705_v11 = vld [vmem:[%s5860_s1 + $0x818] sm:$0xff] }
 0x19b   :  { %v4380_v30 = vadd.f32 %v1555_v15, %v1491_v24  ;;  %v691_v15 = vld [vmem:[%s5860_s1 + $0x7a8] sm:$0xff]  ;;  %1934 = vmatpush.msra.mxu0 %v705_v11 }
 0x19c   :  { %v1363_v63 = vpop.f32.mrf.mxu3  ;;  %1817 = vmatmul.f32.gmra.mxu2 %v109_v33  ;;  %v1493_v19 = vpop.f32.mrf.mxu1  ;;  %1867 = vmatpush.msra.mxu3 %v691_v15  ;;  %v724_v33 = vld [vmem:[%s5860_s1 + $0x8b0] sm:$0xff] }
 0x19d   :  { %v1364_v39 = vadd.f32 %v1363_v63, %v3975_v23  ;;  %v136_v23 = vld [vmem:[%s5862_s0 + $0x3d0] sm:$0xff]  ;;  %1996 = vmatpush.msra.mxu1 %v724_v33  ;;  %v270_v33 = vld [vmem:[%s5862_s0 + $0x800] sm:$0xff] }
 0x19e   :  { %v1431_v59 = vpop.f32.mrf.mxu0 }
 0x19f   :  { %v1429_v7 = vadd.f32 %v1428_v46, %v1364_v39  ;;  %v1558_v36 = vpop.f32.mrf.mxu2  ;;  %1752 = vmatmul.f32.gmra.mxu1 %v108_v54  ;;  %v215_v39 = vld [vmem:[%s5862_s0 + $0x648] sm:$0xff] }
 0x1a1   :  { %v1494_v40 = vadd.f32 %v1493_v19, %v1429_v7  ;;  %1625 = vmatmul.f32.gmra.mxu3 %v133_v4  ;;  %1690 = vmatmul.f32.gmra.mxu0 %v134_v14  ;;  %v214_v19 = vld [vmem:[%s5862_s0 + $0x640] sm:$0xff]  ;;  %v739_v14 = vld [vmem:[%s5860_s1 + $0x928] sm:$0xff] }
 0x1a2   :  { %2062 = vmatpush.msra.mxu2 %v739_v14  ;;  %v704_v14 = vld [vmem:[%s5860_s1 + $0x810] sm:$0xff] }
 0x1a3   :  { %v4407_v17 = vadd.f32 %v1558_v36, %v1494_v40  ;;  %v690_v36 = vld [vmem:[%s5860_s1 + $0x7a0] sm:$0xff]  ;;  %1935 = vmatpush.msra.mxu0 %v704_v14 }
 0x1a4   :  { %v1366_v25 = vpop.f32.mrf.mxu3  ;;  %1820 = vmatmul.f32.gmra.mxu2 %v136_v23  ;;  %v1496_v28 = vpop.f32.mrf.mxu1  ;;  %1868 = vmatpush.msra.mxu3 %v690_v36  ;;  %v723_v23 = vld [vmem:[%s5860_s1 + $0x8a8] sm:$0xff] }
 0x1a5   :  { %v1367_v50 = vadd.f32 %v1366_v25, %v4002_v52  ;;  %v163_v52 = vld [vmem:[%s5862_s0 + $0x4a8] sm:$0xff]  ;;  %1997 = vmatpush.msra.mxu1 %v723_v23  ;;  %v297_v23 = vld [vmem:[%s5862_s0 + $0x8d8] sm:$0xff] }
 0x1a6   :  { %v1434_v42 = vpop.f32.mrf.mxu0 }
 0x1a7   :  { %v1432_v41 = vadd.f32 %v1431_v59, %v1367_v50  ;;  %v1561_v22 = vpop.f32.mrf.mxu2  ;;  %1755 = vmatmul.f32.gmra.mxu1 %v135_v1  ;;  %v242_v50 = vld [vmem:[%s5862_s0 + $0x720] sm:$0xff] }
 0x1a9   :  { %v1497_v45 = vadd.f32 %v1496_v28, %v1432_v41  ;;  %1628 = vmatmul.f32.gmra.mxu3 %v160_v34  ;;  %1693 = vmatmul.f32.gmra.mxu0 %v161_v38  ;;  %v241_v28 = vld [vmem:[%s5862_s0 + $0x718] sm:$0xff]  ;;  %v738_v38 = vld [vmem:[%s5860_s1 + $0x920] sm:$0xff] }
 0x1aa   :  { %2063 = vmatpush.msra.mxu2 %v738_v38  ;;  %v703_v38 = vld [vmem:[%s5860_s1 + $0x808] sm:$0xff] }
 0x1ab   :  { %v4434_v51 = vadd.f32 %v1561_v22, %v1497_v45  ;;  %v689_v22 = vld [vmem:[%s5860_s1 + $0x798] sm:$0xff]  ;;  %1936 = vmatpush.msra.mxu0 %v703_v38 }
 0x1ac   :  { %v1369_v53 = vpop.f32.mrf.mxu3  ;;  %1823 = vmatmul.f32.gmra.mxu2 %v163_v52  ;;  %v1499_v2 = vpop.f32.mrf.mxu1  ;;  %1869 = vmatpush.msra.mxu3 %v689_v22  ;;  %v722_v52 = vld [vmem:[%s5860_s1 + $0x8a0] sm:$0xff] }
 0x1ad   :  { %v1370_v9 = vadd.f32 %v1369_v53, %v4029_v27  ;;  %v190_v27 = vld [vmem:[%s5862_s0 + $0x580] sm:$0xff]  ;;  %1998 = vmatpush.msra.mxu1 %v722_v52  ;;  %v324_v52 = vld [vmem:[%s5862_s0 + $0x9b0] sm:$0xff] }
 0x1ae   :  { %v1437_v32 = vpop.f32.mrf.mxu0 }
 0x1af   :  { %v1435_v20 = vadd.f32 %v1434_v42, %v1370_v9  ;;  %v1564_v46 = vpop.f32.mrf.mxu2  ;;  %1758 = vmatmul.f32.gmra.mxu1 %v162_v29  ;;  %v269_v9 = vld [vmem:[%s5862_s0 + $0x7f8] sm:$0xff] }
 0x1b1   :  { %v1500_v18 = vadd.f32 %v1499_v2, %v1435_v20  ;;  %1631 = vmatmul.f32.gmra.mxu3 %v187_v56  ;;  %1696 = vmatmul.f32.gmra.mxu0 %v188_v61  ;;  %v268_v2 = vld [vmem:[%s5862_s0 + $0x7f0] sm:$0xff]  ;;  %v737_v61 = vld [vmem:[%s5860_s1 + $0x918] sm:$0xff] }
 0x1b2   :  { %2064 = vmatpush.msra.mxu2 %v737_v61  ;;  %v765_v61 = vld [vmem:[%s5860_s1 + $0x9f8] sm:$0xff] }
 0x1b3   :  { %v4461_v24 = vadd.f32 %v1564_v46, %v1500_v18  ;;  %v688_v46 = vld [vmem:[%s5860_s1 + $0x790] sm:$0xff] }
 0x1b4   :  { %v1372_v26 = vpop.f32.mrf.mxu3  ;;  %1826 = vmatmul.f32.gmra.mxu2 %v190_v27  ;;  %v1502_v62 = vpop.f32.mrf.mxu1  ;;  %1870 = vmatpush.msra.mxu3 %v688_v46  ;;  %v721_v27 = vld [vmem:[%s5860_s1 + $0x898] sm:$0xff] }
 0x1b5   :  { %v1373_v63 = vadd.f32 %v1372_v26, %v4056_v10  ;;  %v217_v10 = vld [vmem:[%s5862_s0 + $0x658] sm:$0xff]  ;;  %1999 = vmatpush.msra.mxu1 %v721_v27  ;;  %v351_v27 = vld [vmem:[%s5862_s0 + $0xa88] sm:$0xff] }
 0x1b6   :  { %v1440_v54 = vpop.f32.mrf.mxu0 }
 0x1b7   :  { %v1438_v4 = vadd.f32 %v1437_v32, %v1373_v63  ;;  %v1567_v59 = vpop.f32.mrf.mxu2  ;;  %1761 = vmatmul.f32.gmra.mxu1 %v189_v57  ;;  %v296_v63 = vld [vmem:[%s5862_s0 + $0x8d0] sm:$0xff] }
 0x1b9   :  { %v1503_v7 = vadd.f32 %v1502_v62, %v1438_v4  ;;  %1634 = vmatmul.f32.gmra.mxu3 %v214_v19  ;;  %1699 = vmatmul.f32.gmra.mxu0 %v215_v39  ;;  %v295_v62 = vld [vmem:[%s5862_s0 + $0x8c8] sm:$0xff]  ;;  %v736_v39 = vld [vmem:[%s5860_s1 + $0x910] sm:$0xff] }
 0x1ba   :  { %2065 = vmatpush.msra.mxu2 %v736_v39  ;;  %v781_v39 = vld [vmem:[%s5860_s1 + $0xa78] sm:$0xff] }
 0x1bb   :  { %v4488_v40 = vadd.f32 %v1567_v59, %v1503_v7  ;;  %v687_v59 = vld [vmem:[%s5860_s1 + $0x788] sm:$0xff] }
 0x1bc   :  { %v1375_v13 = vpop.f32.mrf.mxu3  ;;  %1829 = vmatmul.f32.gmra.mxu2 %v217_v10  ;;  %v1505_v16 = vpop.f32.mrf.mxu1  ;;  %1871 = vmatpush.msra.mxu3 %v687_v59  ;;  %v720_v10 = vld [vmem:[%s5860_s1 + $0x890] sm:$0xff] }
 0x1bd   :  { %v1376_v25 = vadd.f32 %v1375_v13, %v4083_v49  ;;  %v244_v49 = vld [vmem:[%s5862_s0 + $0x730] sm:$0xff]  ;;  %2000 = vmatpush.msra.mxu1 %v720_v10  ;;  %v378_v10 = vld [vmem:[%s5862_s0 + $0xb60] sm:$0xff] }
 0x1be   :  { %v1443_v1 = vpop.f32.mrf.mxu0 }
 0x1bf   :  { %v1441_v34 = vadd.f32 %v1440_v54, %v1376_v25  ;;  %v1570_v42 = vpop.f32.mrf.mxu2  ;;  %1764 = vmatmul.f32.gmra.mxu1 %v216_v37  ;;  %v323_v25 = vld [vmem:[%s5862_s0 + $0x9a8] sm:$0xff] }
 0x1c1   :  { %v1506_v41 = vadd.f32 %v1505_v16, %v1441_v34  ;;  %1637 = vmatmul.f32.gmra.mxu3 %v241_v28  ;;  %1702 = vmatmul.f32.gmra.mxu0 %v242_v50  ;;  %v322_v16 = vld [vmem:[%s5862_s0 + $0x9a0] sm:$0xff]  ;;  %v735_v50 = vld [vmem:[%s5860_s1 + $0x908] sm:$0xff] }
 0x1c2   :  { %2066 = vmatpush.msra.mxu2 %v735_v50  ;;  %v780_v50 = vld [vmem:[%s5860_s1 + $0xa70] sm:$0xff] }
 0x1c3   :  { %v4515_v45 = vadd.f32 %v1570_v42, %v1506_v41  ;;  %v686_v42 = vld [vmem:[%s5860_s1 + $0x780] sm:$0xff] }
 0x1c4   :  { %v1378_v47 = vpop.f32.mrf.mxu3  ;;  %1832 = vmatmul.f32.gmra.mxu2 %v244_v49  ;;  %v1508_v6 = vpop.f32.mrf.mxu1  ;;  %1872 = vmatpush.msra.mxu3 %v686_v42  ;;  %v719_v49 = vld [vmem:[%s5860_s1 + $0x888] sm:$0xff] }
 0x1c5   :  { %v1379_v53 = vadd.f32 %v1378_v47, %v4110_v21  ;;  %v271_v21 = vld [vmem:[%s5862_s0 + $0x808] sm:$0xff]  ;;  %2001 = vmatpush.msra.mxu1 %v719_v49  ;;  %v405_v49 = vld [vmem:[%s5862_s0 + $0xc38] sm:$0xff] }
 0x1c6   :  { %v1446_v29 = vpop.f32.mrf.mxu0  ;;  %2117 = vmatpush.msrb.mxu3 %v765_v61 }
 0x1c7   :  { %v1444_v56 = vadd.f32 %v1443_v1, %v1379_v53  ;;  %v1573_v32 = vpop.f32.mrf.mxu2  ;;  %1767 = vmatmul.f32.gmra.mxu1 %v243_v55  ;;  %v350_v53 = vld [vmem:[%s5862_s0 + $0xa80] sm:$0xff] }
 0x1c9   :  { %v1509_v20 = vadd.f32 %v1508_v6, %v1444_v56  ;;  %1640 = vmatmul.f32.gmra.mxu3 %v268_v2  ;;  %1705 = vmatmul.f32.gmra.mxu0 %v269_v9  ;;  %v349_v6 = vld [vmem:[%s5862_s0 + $0xa78] sm:$0xff]  ;;  %v734_v9 = vld [vmem:[%s5860_s1 + $0x900] sm:$0xff] }
 0x1ca   :  { %2067 = vmatpush.msra.mxu2 %v734_v9  ;;  %v779_v9 = vld [vmem:[%s5860_s1 + $0xa68] sm:$0xff] }
 0x1cb   :  { %v4542_v18 = vadd.f32 %v1573_v32, %v1509_v20  ;;  %v702_v32 = vld [vmem:[%s5860_s1 + $0x800] sm:$0xff] }
 0x1cc   :  { %v1381_v15 = vpop.f32.mrf.mxu3  ;;  %1835 = vmatmul.f32.gmra.mxu2 %v271_v21  ;;  %v1511_v60 = vpop.f32.mrf.mxu1  ;;  %1937 = vmatpush.msra.mxu0 %v702_v32  ;;  %v718_v21 = vld [vmem:[%s5860_s1 + $0x880] sm:$0xff] }
 0x1cd   :  { %v1382_v26 = vadd.f32 %v1381_v15, %v4137_v8  ;;  %v298_v8 = vld [vmem:[%s5862_s0 + $0x8e0] sm:$0xff]  ;;  %2002 = vmatpush.msra.mxu1 %v718_v21  ;;  %v432_v21 = vld [vmem:[%s5862_s0 + $0xd10] sm:$0xff] }
 0x1ce   :  { %v1449_v57 = vpop.f32.mrf.mxu0  ;;  %2182 = vmatpush.msrb.mxu0 %v781_v39 }
 0x1cf   :  { %v1447_v19 = vadd.f32 %v1446_v29, %v1382_v26  ;;  %v1576_v54 = vpop.f32.mrf.mxu2  ;;  %1770 = vmatmul.f32.gmra.mxu1 %v270_v33  ;;  %v377_v26 = vld [vmem:[%s5862_s0 + $0xb58] sm:$0xff] }
 0x1d0   :  { %2183 = vmatpush.msrb.mxu0 %v780_v50 }
 0x1d1   :  { %v1512_v4 = vadd.f32 %v1511_v60, %v1447_v19  ;;  %1643 = vmatmul.f32.gmra.mxu3 %v295_v62  ;;  %1708 = vmatmul.f32.gmra.mxu0 %v296_v63  ;;  %v376_v60 = vld [vmem:[%s5862_s0 + $0xb50] sm:$0xff]  ;;  %v813_v63 = vld [vmem:[%s5860_s1 + $0xb78] sm:$0xff] }
 0x1d2   :  { %2312 = vmatpush.msrb.mxu2 %v813_v63  ;;  %2184 = vmatpush.msrb.mxu0 %v779_v9  ;;  %v778_v63 = vld [vmem:[%s5860_s1 + $0xa60] sm:$0xff] }
 0x1d3   :  { %v4569_v7 = vadd.f32 %v1576_v54, %v1512_v4  ;;  %v764_v54 = vld [vmem:[%s5860_s1 + $0x9f0] sm:$0xff] }
 0x1d4   :  { %v1384_v36 = vpop.f32.mrf.mxu3  ;;  %1838 = vmatmul.f32.gmra.mxu2 %v298_v8  ;;  %v1514_v48 = vpop.f32.mrf.mxu1  ;;  %2118 = vmatpush.msrb.mxu3 %v764_v54  ;;  %v797_v8 = vld [vmem:[%s5860_s1 + $0xaf8] sm:$0xff] }
 0x1d5   :  { %v1385_v13 = vadd.f32 %v1384_v36, %v4164_v44  ;;  %v325_v44 = vld [vmem:[%s5862_s0 + $0x9b8] sm:$0xff]  ;;  %2247 = vmatpush.msrb.mxu1 %v797_v8  ;;  %2185 = vmatpush.msrb.mxu0 %v778_v63  ;;  %v31_v8 = vld [vmem:[%s5862_s0 + $0x88] sm:$0xff] }
 0x1d6   :  { %v1452_v37 = vpop.f32.mrf.mxu0 }
 0x1d7   :  { %v1450_v28 = vadd.f32 %v1449_v57, %v1385_v13  ;;  %v1579_v1 = vpop.f32.mrf.mxu2  ;;  %1773 = vmatmul.f32.gmra.mxu1 %v297_v23  ;;  %v404_v13 = vld [vmem:[%s5862_s0 + $0xc30] sm:$0xff] }
 0x1d9   :  { %v1515_v34 = vadd.f32 %v1514_v48, %v1450_v28  ;;  %1646 = vmatmul.f32.gmra.mxu3 %v322_v16  ;;  %1711 = vmatmul.f32.gmra.mxu0 %v323_v25  ;;  %v403_v48 = vld [vmem:[%s5862_s0 + $0xc28] sm:$0xff]  ;;  %v812_v25 = vld [vmem:[%s5860_s1 + $0xb70] sm:$0xff] }
 0x1da   :  { %2313 = vmatpush.msrb.mxu2 %v812_v25  ;;  %v777_v25 = vld [vmem:[%s5860_s1 + $0xa58] sm:$0xff] }
 0x1db   :  { %v4596_v41 = vadd.f32 %v1579_v1, %v1515_v34  ;;  %v763_v1 = vld [vmem:[%s5860_s1 + $0x9e8] sm:$0xff]  ;;  %2186 = vmatpush.msrb.mxu0 %v777_v25 }
 0x1dc   :  { %v1387_v22 = vpop.f32.mrf.mxu3  ;;  %1841 = vmatmul.f32.gmra.mxu2 %v325_v44  ;;  %v1517_v43 = vpop.f32.mrf.mxu1  ;;  %2119 = vmatpush.msrb.mxu3 %v763_v1  ;;  %v796_v44 = vld [vmem:[%s5860_s1 + $0xaf0] sm:$0xff] }
 0x1dd   :  { %v1388_v47 = vadd.f32 %v1387_v22, %v4191_v58  ;;  %v352_v58 = vld [vmem:[%s5862_s0 + $0xa90] sm:$0xff]  ;;  %2248 = vmatpush.msrb.mxu1 %v796_v44  ;;  %v58_v44 = vld [vmem:[%s5862_s0 + $0x160] sm:$0xff] }
 0x1de   :  { %v1455_v55 = vpop.f32.mrf.mxu0 }
 0x1df   :  { %v1453_v2 = vadd.f32 %v1452_v37, %v1388_v47  ;;  %v1582_v29 = vpop.f32.mrf.mxu2  ;;  %1776 = vmatmul.f32.gmra.mxu1 %v324_v52  ;;  %v431_v47 = vld [vmem:[%s5862_s0 + $0xd08] sm:$0xff] }
 0x1e1   :  { %v1518_v56 = vadd.f32 %v1517_v43, %v1453_v2  ;;  %1649 = vmatmul.f32.gmra.mxu3 %v349_v6  ;;  %1714 = vmatmul.f32.gmra.mxu0 %v350_v53  ;;  %v430_v43 = vld [vmem:[%s5862_s0 + $0xd00] sm:$0xff]  ;;  %v811_v53 = vld [vmem:[%s5860_s1 + $0xb68] sm:$0xff] }
 0x1e2   :  { %2314 = vmatpush.msrb.mxu2 %v811_v53  ;;  %v776_v53 = vld [vmem:[%s5860_s1 + $0xa50] sm:$0xff] }
 0x1e3   :  { %v4623_v20 = vadd.f32 %v1582_v29, %v1518_v56  ;;  %v762_v29 = vld [vmem:[%s5860_s1 + $0x9e0] sm:$0xff]  ;;  %2187 = vmatpush.msrb.mxu0 %v776_v53 }
 0x1e4   :  { %v1390_v46 = vpop.f32.mrf.mxu3  ;;  %1844 = vmatmul.f32.gmra.mxu2 %v352_v58  ;;  %v1520_v11 = vpop.f32.mrf.mxu1  ;;  %2120 = vmatpush.msrb.mxu3 %v762_v29  ;;  %v795_v58 = vld [vmem:[%s5860_s1 + $0xae8] sm:$0xff] }
 0x1e5   :  { %v1391_v15 = vadd.f32 %v1390_v46, %v4218_v5  ;;  %v379_v5 = vld [vmem:[%s5862_s0 + $0xb68] sm:$0xff]  ;;  %2249 = vmatpush.msrb.mxu1 %v795_v58  ;;  %v85_v58 = vld [vmem:[%s5862_s0 + $0x238] sm:$0xff] }
 0x1e6   :  { %v1458_v33 = vpop.f32.mrf.mxu0 }
 0x1e7   :  { %v1456_v62 = vadd.f32 %v1455_v55, %v1391_v15  ;;  %v1585_v57 = vpop.f32.mrf.mxu2  ;;  %1779 = vmatmul.f32.gmra.mxu1 %v351_v27  ;;  %v30_v15 = vld [vmem:[%s5862_s0 + $0x80] sm:$0xff] }
 0x1e9   :  { %v1521_v19 = vadd.f32 %v1520_v11, %v1456_v62  ;;  %1652 = vmatmul.f32.gmra.mxu3 %v376_v60  ;;  %1717 = vmatmul.f32.gmra.mxu0 %v377_v26  ;;  %v29_v11 = vld [vmem:[%s5862_s0 + $0x78] sm:$0xff]  ;;  %v810_v26 = vld [vmem:[%s5860_s1 + $0xb60] sm:$0xff] }
 0x1ea   :  { %2315 = vmatpush.msrb.mxu2 %v810_v26  ;;  %v775_v26 = vld [vmem:[%s5860_s1 + $0xa48] sm:$0xff] }
 0x1eb   :  { %v4650_v4 = vadd.f32 %v1585_v57, %v1521_v19  ;;  %v761_v57 = vld [vmem:[%s5860_s1 + $0x9d8] sm:$0xff]  ;;  %2188 = vmatpush.msrb.mxu0 %v775_v26 }
 0x1ec   :  { %v1393_v59 = vpop.f32.mrf.mxu3  ;;  %1847 = vmatmul.f32.gmra.mxu2 %v379_v5  ;;  %v1523_v14 = vpop.f32.mrf.mxu1  ;;  %2121 = vmatpush.msrb.mxu3 %v761_v57  ;;  %v794_v5 = vld [vmem:[%s5860_s1 + $0xae0] sm:$0xff] }
 0x1ed   :  { %v1394_v36 = vadd.f32 %v1393_v59, %v4245_v35  ;;  %v406_v35 = vld [vmem:[%s5862_s0 + $0xc40] sm:$0xff]  ;;  %2250 = vmatpush.msrb.mxu1 %v794_v5  ;;  %v112_v5 = vld [vmem:[%s5862_s0 + $0x310] sm:$0xff] }
 0x1ee   :  { %v1461_v23 = vpop.f32.mrf.mxu0 }
 0x1ef   :  { %v1459_v16 = vadd.f32 %v1458_v33, %v1394_v36  ;;  %v1588_v37 = vpop.f32.mrf.mxu2  ;;  %1782 = vmatmul.f32.gmra.mxu1 %v378_v10  ;;  %v57_v36 = vld [vmem:[%s5862_s0 + $0x158] sm:$0xff] }
 0x1f1   :  { %v1524_v28 = vadd.f32 %v1523_v14, %v1459_v16  ;;  %1655 = vmatmul.f32.gmra.mxu3 %v403_v48  ;;  %1720 = vmatmul.f32.gmra.mxu0 %v404_v13  ;;  %v56_v14 = vld [vmem:[%s5862_s0 + $0x150] sm:$0xff]  ;;  %v809_v13 = vld [vmem:[%s5860_s1 + $0xb58] sm:$0xff] }
 0x1f2   :  { %2316 = vmatpush.msrb.mxu2 %v809_v13  ;;  %v774_v13 = vld [vmem:[%s5860_s1 + $0xa40] sm:$0xff] }
 0x1f3   :  { %v4677_v34 = vadd.f32 %v1588_v37, %v1524_v28  ;;  %v760_v37 = vld [vmem:[%s5860_s1 + $0x9d0] sm:$0xff]  ;;  %2189 = vmatpush.msrb.mxu0 %v774_v13 }
 0x1f4   :  { %v1396_v42 = vpop.f32.mrf.mxu3  ;;  %1850 = vmatmul.f32.gmra.mxu2 %v406_v35  ;;  %v1526_v38 = vpop.f32.mrf.mxu1  ;;  %2122 = vmatpush.msrb.mxu3 %v760_v37  ;;  %v793_v35 = vld [vmem:[%s5860_s1 + $0xad8] sm:$0xff] }
 0x1f5   :  { %v1397_v22 = vadd.f32 %v1396_v42, %v4272_v12  ;;  %v433_v12 = vld [vmem:[%s5862_s0 + $0xd18] sm:$0xff]  ;;  %2251 = vmatpush.msrb.mxu1 %v793_v35  ;;  %v139_v35 = vld [vmem:[%s5862_s0 + $0x3e8] sm:$0xff] }
 0x1f6   :  { %v1464_v52 = vpop.f32.mrf.mxu0 }
 0x1f7   :  { %v1462_v6 = vadd.f32 %v1461_v23, %v1397_v22  ;;  %v1591_v55 = vpop.f32.mrf.mxu2  ;;  %1785 = vmatmul.f32.gmra.mxu1 %v405_v49  ;;  %v84_v22 = vld [vmem:[%s5862_s0 + $0x230] sm:$0xff] }
 0x1f9   :  { %v1527_v2 = vadd.f32 %v1526_v38, %v1462_v6  ;;  %1658 = vmatmul.f32.gmra.mxu3 %v430_v43  ;;  %1723 = vmatmul.f32.gmra.mxu0 %v431_v47  ;;  %v83_v38 = vld [vmem:[%s5862_s0 + $0x228] sm:$0xff]  ;;  %v808_v47 = vld [vmem:[%s5860_s1 + $0xb50] sm:$0xff] }
 0x1fa   :  { %2317 = vmatpush.msrb.mxu2 %v808_v47  ;;  %v773_v47 = vld [vmem:[%s5860_s1 + $0xa38] sm:$0xff] }
 0x1fb   :  { %v4704_v56 = vadd.f32 %v1591_v55, %v1527_v2  ;;  %v759_v55 = vld [vmem:[%s5860_s1 + $0x9c8] sm:$0xff]  ;;  %2190 = vmatpush.msrb.mxu0 %v773_v47 }
 0x1fc   :  { %v1399_v32 = vpop.f32.mrf.mxu3  ;;  %1853 = vmatmul.f32.gmra.mxu2 %v433_v12  ;;  %v1529_v61 = vpop.f32.mrf.mxu1  ;;  %2123 = vmatpush.msrb.mxu3 %v759_v55  ;;  %v792_v12 = vld [vmem:[%s5860_s1 + $0xad0] sm:$0xff] }
 0x1fd   :  { %v1400_v46 = vadd.f32 %v1399_v32, %v4299_v0  ;;  %v32_v0 = vld [vmem:[%s5862_s0 + $0x90] sm:$0xff]  ;;  %2252 = vmatpush.msrb.mxu1 %v792_v12  ;;  %v166_v12 = vld [vmem:[%s5862_s0 + $0x4c0] sm:$0xff] }
 0x1fe   :  { %v1679_v27 = vpop.f32.mrf.mxu0 }
 0x1ff   :  { %v1465_v60 = vadd.f32 %v1464_v52, %v1400_v46  ;;  %v1594_v33 = vpop.f32.mrf.mxu2  ;;  %1788 = vmatmul.f32.gmra.mxu1 %v432_v21  ;;  %v111_v46 = vld [vmem:[%s5862_s0 + $0x308] sm:$0xff] }
 0x201   :  { %v1530_v62 = vadd.f32 %v1529_v61, %v1465_v60  ;;  %1873 = vmatmul.f32.vlgmr.msra.gmra.mxu3 %v29_v11  ;;  %1938 = vmatmul.f32.vlgmr.msra.gmra.mxu0 %v30_v15  ;;  %v110_v61 = vld [vmem:[%s5862_s0 + $0x300] sm:$0xff]  ;;  %v807_v15 = vld [vmem:[%s5860_s1 + $0xb48] sm:$0xff] }
 0x202   :  { %2318 = vmatpush.msrb.mxu2 %v807_v15  ;;  %v772_v15 = vld [vmem:[%s5860_s1 + $0xa30] sm:$0xff] }
 0x203   :  { %v4731_v19 = vadd.f32 %v1594_v33, %v1530_v62  ;;  %v758_v33 = vld [vmem:[%s5860_s1 + $0x9c0] sm:$0xff]  ;;  %2191 = vmatpush.msrb.mxu0 %v772_v15 }
 0x204   :  { %v1614_v54 = vpop.f32.mrf.mxu3  ;;  %2068 = vmatmul.f32.vlgmr.msra.gmra.mxu2 %v32_v0  ;;  %v1744_v39 = vpop.f32.mrf.mxu1  ;;  %2124 = vmatpush.msrb.mxu3 %v758_v33  ;;  %v791_v0 = vld [vmem:[%s5860_s1 + $0xac8] sm:$0xff] }
 0x205   :  { %v1615_v59 = vadd.f32 %v1614_v54, %v4326_v31  ;;  %v59_v31 = vld [vmem:[%s5862_s0 + $0x168] sm:$0xff]  ;;  %2253 = vmatpush.msrb.mxu1 %v791_v0  ;;  %v193_v0 = vld [vmem:[%s5862_s0 + $0x598] sm:$0xff] }
 0x206   :  { %v1682_v10 = vpop.f32.mrf.mxu0 }
 0x207   :  { %v1680_v48 = vadd.f32 %v1679_v27, %v1615_v59  ;;  %v1809_v23 = vpop.f32.mrf.mxu2  ;;  %2003 = vmatmul.f32.vlgmr.msra.gmra.mxu1 %v31_v8  ;;  %v138_v59 = vld [vmem:[%s5862_s0 + $0x3e0] sm:$0xff] }
 0x209   :  { %v1745_v16 = vadd.f32 %v1744_v39, %v1680_v48  ;;  %1876 = vmatmul.f32.gmra.mxu3 %v56_v14  ;;  %1941 = vmatmul.f32.gmra.mxu0 %v57_v36  ;;  %v137_v39 = vld [vmem:[%s5862_s0 + $0x3d8] sm:$0xff]  ;;  %v806_v36 = vld [vmem:[%s5860_s1 + $0xb40] sm:$0xff] }
 0x20a   :  { %2319 = vmatpush.msrb.mxu2 %v806_v36  ;;  %v771_v36 = vld [vmem:[%s5860_s1 + $0xa28] sm:$0xff] }
 0x20b   :  { %v4758_v28 = vadd.f32 %v1809_v23, %v1745_v16  ;;  %v757_v23 = vld [vmem:[%s5860_s1 + $0x9b8] sm:$0xff]  ;;  %2192 = vmatpush.msrb.mxu0 %v771_v36 }
 0x20c   :  { %v1617_v1 = vpop.f32.mrf.mxu3  ;;  %2071 = vmatmul.f32.gmra.mxu2 %v59_v31  ;;  %v1747_v50 = vpop.f32.mrf.mxu1  ;;  %2125 = vmatpush.msrb.mxu3 %v757_v23  ;;  %v790_v31 = vld [vmem:[%s5860_s1 + $0xac0] sm:$0xff] }
 0x20d   :  { %v1618_v42 = vadd.f32 %v1617_v1, %v4353_v3  ;;  %v86_v3 = vld [vmem:[%s5862_s0 + $0x240] sm:$0xff]  ;;  %2254 = vmatpush.msrb.mxu1 %v790_v31  ;;  %v220_v31 = vld [vmem:[%s5862_s0 + $0x670] sm:$0xff] }
 0x20e   :  { %v1685_v49 = vpop.f32.mrf.mxu0 }
 0x20f   :  { %v1683_v43 = vadd.f32 %v1682_v10, %v1618_v42  ;;  %v1812_v52 = vpop.f32.mrf.mxu2  ;;  %2006 = vmatmul.f32.gmra.mxu1 %v58_v44  ;;  %v165_v42 = vld [vmem:[%s5862_s0 + $0x4b8] sm:$0xff] }
 0x211   :  { %v1748_v6 = vadd.f32 %v1747_v50, %v1683_v43  ;;  %1879 = vmatmul.f32.gmra.mxu3 %v83_v38  ;;  %1944 = vmatmul.f32.gmra.mxu0 %v84_v22  ;;  %v164_v50 = vld [vmem:[%s5862_s0 + $0x4b0] sm:$0xff]  ;;  %v805_v22 = vld [vmem:[%s5860_s1 + $0xb38] sm:$0xff] }
 0x212   :  { %2320 = vmatpush.msrb.mxu2 %v805_v22  ;;  %v770_v22 = vld [vmem:[%s5860_s1 + $0xa20] sm:$0xff] }
 0x213   :  { %v4785_v2 = vadd.f32 %v1812_v52, %v1748_v6  ;;  %v756_v52 = vld [vmem:[%s5860_s1 + $0x9b0] sm:$0xff]  ;;  %2193 = vmatpush.msrb.mxu0 %v770_v22 }
 0x214   :  { %v1620_v29 = vpop.f32.mrf.mxu3  ;;  %2074 = vmatmul.f32.gmra.mxu2 %v86_v3  ;;  %v1750_v9 = vpop.f32.mrf.mxu1  ;;  %2126 = vmatpush.msrb.mxu3 %v756_v52  ;;  %v789_v3 = vld [vmem:[%s5860_s1 + $0xab8] sm:$0xff] }
 0x215   :  { %v1621_v32 = vadd.f32 %v1620_v29, %v4380_v30  ;;  %v113_v30 = vld [vmem:[%s5862_s0 + $0x318] sm:$0xff]  ;;  %2255 = vmatpush.msrb.mxu1 %v789_v3  ;;  %v247_v3 = vld [vmem:[%s5862_s0 + $0x748] sm:$0xff] }
 0x216   :  { %v1688_v21 = vpop.f32.mrf.mxu0 }
 0x217   :  { %v1686_v11 = vadd.f32 %v1685_v49, %v1621_v32  ;;  %v1815_v27 = vpop.f32.mrf.mxu2  ;;  %2009 = vmatmul.f32.gmra.mxu1 %v85_v58  ;;  %v192_v32 = vld [vmem:[%s5862_s0 + $0x590] sm:$0xff] }
 0x219   :  { %v1751_v60 = vadd.f32 %v1750_v9, %v1686_v11  ;;  %1882 = vmatmul.f32.gmra.mxu3 %v110_v61  ;;  %1947 = vmatmul.f32.gmra.mxu0 %v111_v46  ;;  %v191_v9 = vld [vmem:[%s5862_s0 + $0x588] sm:$0xff]  ;;  %v804_v46 = vld [vmem:[%s5860_s1 + $0xb30] sm:$0xff] }
 0x21a   :  { %2321 = vmatpush.msrb.mxu2 %v804_v46  ;;  %v769_v46 = vld [vmem:[%s5860_s1 + $0xa18] sm:$0xff] }
 0x21b   :  { %v4812_v62 = vadd.f32 %v1815_v27, %v1751_v60  ;;  %v755_v27 = vld [vmem:[%s5860_s1 + $0x9a8] sm:$0xff]  ;;  %2194 = vmatpush.msrb.mxu0 %v769_v46 }
 0x21c   :  { %v1623_v57 = vpop.f32.mrf.mxu3  ;;  %2077 = vmatmul.f32.gmra.mxu2 %v113_v30  ;;  %v1753_v63 = vpop.f32.mrf.mxu1  ;;  %2127 = vmatpush.msrb.mxu3 %v755_v27  ;;  %v788_v30 = vld [vmem:[%s5860_s1 + $0xab0] sm:$0xff] }
 0x21d   :  { %v1624_v54 = vadd.f32 %v1623_v57, %v4407_v17  ;;  %v140_v17 = vld [vmem:[%s5862_s0 + $0x3f0] sm:$0xff]  ;;  %2256 = vmatpush.msrb.mxu1 %v788_v30  ;;  %v274_v30 = vld [vmem:[%s5862_s0 + $0x820] sm:$0xff] }
 0x21e   :  { %v1691_v8 = vpop.f32.mrf.mxu0 }
 0x21f   :  { %v1689_v14 = vadd.f32 %v1688_v21, %v1624_v54  ;;  %v1818_v10 = vpop.f32.mrf.mxu2  ;;  %2012 = vmatmul.f32.gmra.mxu1 %v112_v5  ;;  %v219_v54 = vld [vmem:[%s5862_s0 + $0x668] sm:$0xff] }
 0x221   :  { %v1754_v48 = vadd.f32 %v1753_v63, %v1689_v14  ;;  %1885 = vmatmul.f32.gmra.mxu3 %v137_v39  ;;  %1950 = vmatmul.f32.gmra.mxu0 %v138_v59  ;;  %v218_v63 = vld [vmem:[%s5862_s0 + $0x660] sm:$0xff]  ;;  %v803_v59 = vld [vmem:[%s5860_s1 + $0xb28] sm:$0xff] }
 0x222   :  { %2322 = vmatpush.msrb.mxu2 %v803_v59  ;;  %v768_v59 = vld [vmem:[%s5860_s1 + $0xa10] sm:$0xff] }
 0x223   :  { %v4839_v16 = vadd.f32 %v1818_v10, %v1754_v48  ;;  %v754_v10 = vld [vmem:[%s5860_s1 + $0x9a0] sm:$0xff]  ;;  %2195 = vmatpush.msrb.mxu0 %v768_v59 }
 0x224   :  { %v1626_v37 = vpop.f32.mrf.mxu3  ;;  %2080 = vmatmul.f32.gmra.mxu2 %v140_v17  ;;  %v1756_v25 = vpop.f32.mrf.mxu1  ;;  %2128 = vmatpush.msrb.mxu3 %v754_v10  ;;  %v787_v17 = vld [vmem:[%s5860_s1 + $0xaa8] sm:$0xff] }
 0x225   :  { %v1627_v1 = vadd.f32 %v1626_v37, %v4434_v51  ;;  %v167_v51 = vld [vmem:[%s5862_s0 + $0x4c8] sm:$0xff]  ;;  %2257 = vmatpush.msrb.mxu1 %v787_v17  ;;  %v301_v17 = vld [vmem:[%s5862_s0 + $0x8f8] sm:$0xff] }
 0x226   :  { %v1694_v44 = vpop.f32.mrf.mxu0 }
 0x227   :  { %v1692_v38 = vadd.f32 %v1691_v8, %v1627_v1  ;;  %v1821_v49 = vpop.f32.mrf.mxu2  ;;  %2015 = vmatmul.f32.gmra.mxu1 %v139_v35  ;;  %v246_v1 = vld [vmem:[%s5862_s0 + $0x740] sm:$0xff] }
 0x229   :  { %v1757_v43 = vadd.f32 %v1756_v25, %v1692_v38  ;;  %1888 = vmatmul.f32.gmra.mxu3 %v164_v50  ;;  %1953 = vmatmul.f32.gmra.mxu0 %v165_v42  ;;  %v245_v25 = vld [vmem:[%s5862_s0 + $0x738] sm:$0xff]  ;;  %v802_v42 = vld [vmem:[%s5860_s1 + $0xb20] sm:$0xff] }
 0x22a   :  { %2323 = vmatpush.msrb.mxu2 %v802_v42  ;;  %v767_v42 = vld [vmem:[%s5860_s1 + $0xa08] sm:$0xff] }
 0x22b   :  { %v4866_v6 = vadd.f32 %v1821_v49, %v1757_v43  ;;  %v753_v49 = vld [vmem:[%s5860_s1 + $0x998] sm:$0xff]  ;;  %2196 = vmatpush.msrb.mxu0 %v767_v42 }
 0x22c   :  { %v1629_v55 = vpop.f32.mrf.mxu3  ;;  %2083 = vmatmul.f32.gmra.mxu2 %v167_v51  ;;  %v1759_v53 = vpop.f32.mrf.mxu1  ;;  %2129 = vmatpush.msrb.mxu3 %v753_v49  ;;  %v786_v51 = vld [vmem:[%s5860_s1 + $0xaa0] sm:$0xff] }
 0x22d   :  { %v1630_v29 = vadd.f32 %v1629_v55, %v4461_v24  ;;  %v194_v24 = vld [vmem:[%s5862_s0 + $0x5a0] sm:$0xff]  ;;  %2258 = vmatpush.msrb.mxu1 %v786_v51  ;;  %v328_v51 = vld [vmem:[%s5862_s0 + $0x9d0] sm:$0xff] }
 0x22e   :  { %v1697_v58 = vpop.f32.mrf.mxu0 }
 0x22f   :  { %v1695_v61 = vadd.f32 %v1694_v44, %v1630_v29  ;;  %v1824_v21 = vpop.f32.mrf.mxu2  ;;  %2018 = vmatmul.f32.gmra.mxu1 %v166_v12  ;;  %v273_v29 = vld [vmem:[%s5862_s0 + $0x818] sm:$0xff] }
 0x231   :  { %v1760_v11 = vadd.f32 %v1759_v53, %v1695_v61  ;;  %1891 = vmatmul.f32.gmra.mxu3 %v191_v9  ;;  %1956 = vmatmul.f32.gmra.mxu0 %v192_v32  ;;  %v272_v53 = vld [vmem:[%s5862_s0 + $0x810] sm:$0xff]  ;;  %v801_v32 = vld [vmem:[%s5860_s1 + $0xb18] sm:$0xff] }
 0x232   :  { %2324 = vmatpush.msrb.mxu2 %v801_v32  ;;  %v829_v32 = vld [vmem:[%s5860_s1 + $0xbf8] sm:$0xff] }
 0x233   :  { %v4893_v60 = vadd.f32 %v1824_v21, %v1760_v11  ;;  %v752_v21 = vld [vmem:[%s5860_s1 + $0x990] sm:$0xff] }
 0x234   :  { %v1632_v33 = vpop.f32.mrf.mxu3  ;;  %2086 = vmatmul.f32.gmra.mxu2 %v194_v24  ;;  %v1762_v26 = vpop.f32.mrf.mxu1  ;;  %2130 = vmatpush.msrb.mxu3 %v752_v21  ;;  %v785_v24 = vld [vmem:[%s5860_s1 + $0xa98] sm:$0xff] }
 0x235   :  { %v1633_v57 = vadd.f32 %v1632_v33, %v4488_v40  ;;  %v221_v40 = vld [vmem:[%s5862_s0 + $0x678] sm:$0xff]  ;;  %2259 = vmatpush.msrb.mxu1 %v785_v24  ;;  %v355_v24 = vld [vmem:[%s5862_s0 + $0xaa8] sm:$0xff] }
 0x236   :  { %v1700_v5 = vpop.f32.mrf.mxu0 }
 0x237   :  { %v1698_v39 = vadd.f32 %v1697_v58, %v1633_v57  ;;  %v1827_v8 = vpop.f32.mrf.mxu2  ;;  %2021 = vmatmul.f32.gmra.mxu1 %v193_v0  ;;  %v300_v57 = vld [vmem:[%s5862_s0 + $0x8f0] sm:$0xff] }
 0x239   :  { %v1763_v14 = vadd.f32 %v1762_v26, %v1698_v39  ;;  %1894 = vmatmul.f32.gmra.mxu3 %v218_v63  ;;  %1959 = vmatmul.f32.gmra.mxu0 %v219_v54  ;;  %v299_v26 = vld [vmem:[%s5862_s0 + $0x8e8] sm:$0xff]  ;;  %v800_v54 = vld [vmem:[%s5860_s1 + $0xb10] sm:$0xff] }
 0x23a   :  { %2325 = vmatpush.msrb.mxu2 %v800_v54  ;;  %v845_v54 = vld [vmem:[%s5860_s1 + $0xc78] sm:$0xff] }
 0x23b   :  { %v4920_v48 = vadd.f32 %v1827_v8, %v1763_v14  ;;  %v751_v8 = vld [vmem:[%s5860_s1 + $0x988] sm:$0xff] }
 0x23c   :  { %v1635_v23 = vpop.f32.mrf.mxu3  ;;  %2089 = vmatmul.f32.gmra.mxu2 %v221_v40  ;;  %v1765_v13 = vpop.f32.mrf.mxu1  ;;  %2131 = vmatpush.msrb.mxu3 %v751_v8  ;;  %v784_v40 = vld [vmem:[%s5860_s1 + $0xa90] sm:$0xff] }
 0x23d   :  { %v1636_v37 = vadd.f32 %v1635_v23, %v4515_v45  ;;  %v248_v45 = vld [vmem:[%s5862_s0 + $0x750] sm:$0xff]  ;;  %2260 = vmatpush.msrb.mxu1 %v784_v40  ;;  %v382_v40 = vld [vmem:[%s5862_s0 + $0xb80] sm:$0xff] }
 0x23e   :  { %v1703_v35 = vpop.f32.mrf.mxu0 }
 0x23f   :  { %v1701_v50 = vadd.f32 %v1700_v5, %v1636_v37  ;;  %v1830_v44 = vpop.f32.mrf.mxu2  ;;  %2024 = vmatmul.f32.gmra.mxu1 %v220_v31  ;;  %v327_v37 = vld [vmem:[%s5862_s0 + $0x9c8] sm:$0xff] }
 0x241   :  { %v1766_v38 = vadd.f32 %v1765_v13, %v1701_v50  ;;  %1897 = vmatmul.f32.gmra.mxu3 %v245_v25  ;;  %1962 = vmatmul.f32.gmra.mxu0 %v246_v1  ;;  %v326_v13 = vld [vmem:[%s5862_s0 + $0x9c0] sm:$0xff]  ;;  %v799_v1 = vld [vmem:[%s5860_s1 + $0xb08] sm:$0xff] }
 0x242   :  { %2326 = vmatpush.msrb.mxu2 %v799_v1  ;;  %v844_v1 = vld [vmem:[%s5860_s1 + $0xc70] sm:$0xff] }
 0x243   :  { %v4947_v43 = vadd.f32 %v1830_v44, %v1766_v38  ;;  %v750_v44 = vld [vmem:[%s5860_s1 + $0x980] sm:$0xff] }
 0x244   :  { %v1638_v52 = vpop.f32.mrf.mxu3  ;;  %2092 = vmatmul.f32.gmra.mxu2 %v248_v45  ;;  %v1768_v47 = vpop.f32.mrf.mxu1  ;;  %2132 = vmatpush.msrb.mxu3 %v750_v44  ;;  %v783_v45 = vld [vmem:[%s5860_s1 + $0xa88] sm:$0xff] }
 0x245   :  { %v1639_v55 = vadd.f32 %v1638_v52, %v4542_v18  ;;  %v275_v18 = vld [vmem:[%s5862_s0 + $0x828] sm:$0xff]  ;;  %2261 = vmatpush.msrb.mxu1 %v783_v45  ;;  %v409_v45 = vld [vmem:[%s5862_s0 + $0xc58] sm:$0xff] }
 0x246   :  { %v1706_v12 = vpop.f32.mrf.mxu0  ;;  %2377 = vmatpush.msra.mxu3 %v829_v32 }
 0x247   :  { %v1704_v9 = vadd.f32 %v1703_v35, %v1639_v55  ;;  %v1833_v58 = vpop.f32.mrf.mxu2  ;;  %2027 = vmatmul.f32.gmra.mxu1 %v247_v3  ;;  %v354_v55 = vld [vmem:[%s5862_s0 + $0xaa0] sm:$0xff] }
 0x249   :  { %v1769_v61 = vadd.f32 %v1768_v47, %v1704_v9  ;;  %1900 = vmatmul.f32.gmra.mxu3 %v272_v53  ;;  %1965 = vmatmul.f32.gmra.mxu0 %v273_v29  ;;  %v353_v47 = vld [vmem:[%s5862_s0 + $0xa98] sm:$0xff]  ;;  %v798_v29 = vld [vmem:[%s5860_s1 + $0xb00] sm:$0xff] }
 0x24a   :  { %2327 = vmatpush.msrb.mxu2 %v798_v29  ;;  %v843_v29 = vld [vmem:[%s5860_s1 + $0xc68] sm:$0xff] }
 0x24b   :  { %v4974_v11 = vadd.f32 %v1833_v58, %v1769_v61  ;;  %v766_v58 = vld [vmem:[%s5860_s1 + $0xa00] sm:$0xff] }
 0x24c   :  { %v1641_v27 = vpop.f32.mrf.mxu3  ;;  %2095 = vmatmul.f32.gmra.mxu2 %v275_v18  ;;  %v1771_v15 = vpop.f32.mrf.mxu1  ;;  %2197 = vmatpush.msrb.mxu0 %v766_v58  ;;  %v782_v18 = vld [vmem:[%s5860_s1 + $0xa80] sm:$0xff] }
 0x24d   :  { %v1642_v33 = vadd.f32 %v1641_v27, %v4569_v7  ;;  %v302_v7 = vld [vmem:[%s5862_s0 + $0x900] sm:$0xff]  ;;  %2262 = vmatpush.msrb.mxu1 %v782_v18  ;;  %v436_v18 = vld [vmem:[%s5862_s0 + $0xd30] sm:$0xff] }
 0x24e   :  { %v1709_v0 = vpop.f32.mrf.mxu0  ;;  %2442 = vmatpush.msra.mxu0 %v845_v54 }
 0x24f   :  { %v1707_v63 = vadd.f32 %v1706_v12, %v1642_v33  ;;  %v1836_v5 = vpop.f32.mrf.mxu2  ;;  %2030 = vmatmul.f32.gmra.mxu1 %v274_v30  ;;  %v381_v33 = vld [vmem:[%s5862_s0 + $0xb78] sm:$0xff] }
 0x250   :  { %2443 = vmatpush.msra.mxu0 %v844_v1 }
 0x251   :  { %v1772_v39 = vadd.f32 %v1771_v15, %v1707_v63  ;;  %1903 = vmatmul.f32.gmra.mxu3 %v299_v26  ;;  %1968 = vmatmul.f32.gmra.mxu0 %v300_v57  ;;  %v380_v15 = vld [vmem:[%s5862_s0 + $0xb70] sm:$0xff]  ;;  %v877_v57 = vld [vmem:[%s5860_s1 + $0xd78] sm:$0xff] }
 0x252   :  { %2572 = vmatpush.msra.mxu2 %v877_v57  ;;  %2444 = vmatpush.msra.mxu0 %v843_v29  ;;  %v842_v57 = vld [vmem:[%s5860_s1 + $0xc60] sm:$0xff] }
 0x253   :  { %v5001_v14 = vadd.f32 %v1836_v5, %v1772_v39  ;;  %v828_v5 = vld [vmem:[%s5860_s1 + $0xbf0] sm:$0xff] }
 0x254   :  { %v1644_v10 = vpop.f32.mrf.mxu3  ;;  %2098 = vmatmul.f32.gmra.mxu2 %v302_v7  ;;  %v1774_v36 = vpop.f32.mrf.mxu1  ;;  %2378 = vmatpush.msra.mxu3 %v828_v5  ;;  %v861_v7 = vld [vmem:[%s5860_s1 + $0xcf8] sm:$0xff] }
 0x255   :  { %v1645_v23 = vadd.f32 %v1644_v10, %v4596_v41  ;;  %v329_v41 = vld [vmem:[%s5862_s0 + $0x9d8] sm:$0xff]  ;;  %2507 = vmatpush.msra.mxu1 %v861_v7  ;;  %2445 = vmatpush.msra.mxu0 %v842_v57  ;;  %v35_v7 = vld [vmem:[%s5862_s0 + $0xa8] sm:$0xff] }
 0x256   :  { %v1712_v31 = vpop.f32.mrf.mxu0 }
 0x257   :  { %v1710_v25 = vadd.f32 %v1709_v0, %v1645_v23  ;;  %v1839_v35 = vpop.f32.mrf.mxu2  ;;  %2033 = vmatmul.f32.gmra.mxu1 %v301_v17  ;;  %v408_v23 = vld [vmem:[%s5862_s0 + $0xc50] sm:$0xff] }
 0x259   :  { %v1775_v50 = vadd.f32 %v1774_v36, %v1710_v25  ;;  %1906 = vmatmul.f32.gmra.mxu3 %v326_v13  ;;  %1971 = vmatmul.f32.gmra.mxu0 %v327_v37  ;;  %v407_v36 = vld [vmem:[%s5862_s0 + $0xc48] sm:$0xff]  ;;  %v876_v37 = vld [vmem:[%s5860_s1 + $0xd70] sm:$0xff] }
 0x25a   :  { %2573 = vmatpush.msra.mxu2 %v876_v37  ;;  %v841_v37 = vld [vmem:[%s5860_s1 + $0xc58] sm:$0xff] }
 0x25b   :  { %v5028_v38 = vadd.f32 %v1839_v35, %v1775_v50  ;;  %v827_v35 = vld [vmem:[%s5860_s1 + $0xbe8] sm:$0xff]  ;;  %2446 = vmatpush.msra.mxu0 %v841_v37 }
 0x25c   :  { %v1647_v49 = vpop.f32.mrf.mxu3  ;;  %2101 = vmatmul.f32.gmra.mxu2 %v329_v41  ;;  %v1777_v22 = vpop.f32.mrf.mxu1  ;;  %2379 = vmatpush.msra.mxu3 %v827_v35  ;;  %v860_v41 = vld [vmem:[%s5860_s1 + $0xcf0] sm:$0xff] }
 0x25d   :  { %v1648_v52 = vadd.f32 %v1647_v49, %v4623_v20  ;;  %v356_v20 = vld [vmem:[%s5862_s0 + $0xab0] sm:$0xff]  ;;  %2508 = vmatpush.msra.mxu1 %v860_v41  ;;  %v62_v41 = vld [vmem:[%s5862_s0 + $0x180] sm:$0xff] }
 0x25e   :  { %v1715_v3 = vpop.f32.mrf.mxu0 }
 0x25f   :  { %v1713_v53 = vadd.f32 %v1712_v31, %v1648_v52  ;;  %v1842_v12 = vpop.f32.mrf.mxu2  ;;  %2036 = vmatmul.f32.gmra.mxu1 %v328_v51  ;;  %v435_v52 = vld [vmem:[%s5862_s0 + $0xd28] sm:$0xff] }
 0x261   :  { %v1778_v9 = vadd.f32 %v1777_v22, %v1713_v53  ;;  %1909 = vmatmul.f32.gmra.mxu3 %v353_v47  ;;  %1974 = vmatmul.f32.gmra.mxu0 %v354_v55  ;;  %v434_v22 = vld [vmem:[%s5862_s0 + $0xd20] sm:$0xff]  ;;  %v875_v55 = vld [vmem:[%s5860_s1 + $0xd68] sm:$0xff] }
 0x262   :  { %2574 = vmatpush.msra.mxu2 %v875_v55  ;;  %v840_v55 = vld [vmem:[%s5860_s1 + $0xc50] sm:$0xff] }
 0x263   :  { %v5055_v61 = vadd.f32 %v1842_v12, %v1778_v9  ;;  %v826_v12 = vld [vmem:[%s5860_s1 + $0xbe0] sm:$0xff]  ;;  %2447 = vmatpush.msra.mxu0 %v840_v55 }
 0x264   :  { %v1650_v21 = vpop.f32.mrf.mxu3  ;;  %2104 = vmatmul.f32.gmra.mxu2 %v356_v20  ;;  %v1780_v46 = vpop.f32.mrf.mxu1  ;;  %2380 = vmatpush.msra.mxu3 %v826_v12  ;;  %v859_v20 = vld [vmem:[%s5860_s1 + $0xce8] sm:$0xff] }
 0x265   :  { %v1651_v27 = vadd.f32 %v1650_v21, %v4650_v4  ;;  %v383_v4 = vld [vmem:[%s5862_s0 + $0xb88] sm:$0xff]  ;;  %2509 = vmatpush.msra.mxu1 %v859_v20  ;;  %v89_v20 = vld [vmem:[%s5862_s0 + $0x258] sm:$0xff] }
 0x266   :  { %v1718_v30 = vpop.f32.mrf.mxu0 }
 0x267   :  { %v1716_v26 = vadd.f32 %v1715_v3, %v1651_v27  ;;  %v1845_v0 = vpop.f32.mrf.mxu2  ;;  %2039 = vmatmul.f32.gmra.mxu1 %v355_v24  ;;  %v34_v27 = vld [vmem:[%s5862_s0 + $0xa0] sm:$0xff] }
 0x269   :  { %v1781_v63 = vadd.f32 %v1780_v46, %v1716_v26  ;;  %1912 = vmatmul.f32.gmra.mxu3 %v380_v15  ;;  %1977 = vmatmul.f32.gmra.mxu0 %v381_v33  ;;  %v33_v46 = vld [vmem:[%s5862_s0 + $0x98] sm:$0xff]  ;;  %v874_v33 = vld [vmem:[%s5860_s1 + $0xd60] sm:$0xff] }
 0x26a   :  { %2575 = vmatpush.msra.mxu2 %v874_v33  ;;  %v839_v33 = vld [vmem:[%s5860_s1 + $0xc48] sm:$0xff] }
 0x26b   :  { %v5082_v39 = vadd.f32 %v1845_v0, %v1781_v63  ;;  %v825_v0 = vld [vmem:[%s5860_s1 + $0xbd8] sm:$0xff]  ;;  %2448 = vmatpush.msra.mxu0 %v839_v33 }
 0x26c   :  { %v1653_v8 = vpop.f32.mrf.mxu3  ;;  %2107 = vmatmul.f32.gmra.mxu2 %v383_v4  ;;  %v1783_v59 = vpop.f32.mrf.mxu1  ;;  %2381 = vmatpush.msra.mxu3 %v825_v0  ;;  %v858_v4 = vld [vmem:[%s5860_s1 + $0xce0] sm:$0xff] }
 0x26d   :  { %v1654_v10 = vadd.f32 %v1653_v8, %v4677_v34  ;;  %v410_v34 = vld [vmem:[%s5862_s0 + $0xc60] sm:$0xff]  ;;  %2510 = vmatpush.msra.mxu1 %v858_v4  ;;  %v116_v4 = vld [vmem:[%s5862_s0 + $0x330] sm:$0xff] }
 0x26e   :  { %v1721_v17 = vpop.f32.mrf.mxu0 }
 0x26f   :  { %v1719_v13 = vadd.f32 %v1718_v30, %v1654_v10  ;;  %v1848_v31 = vpop.f32.mrf.mxu2  ;;  %2042 = vmatmul.f32.gmra.mxu1 %v382_v40  ;;  %v61_v10 = vld [vmem:[%s5862_s0 + $0x178] sm:$0xff] }
 0x271   :  { %v1784_v25 = vadd.f32 %v1783_v59, %v1719_v13  ;;  %1915 = vmatmul.f32.gmra.mxu3 %v407_v36  ;;  %1980 = vmatmul.f32.gmra.mxu0 %v408_v23  ;;  %v60_v59 = vld [vmem:[%s5862_s0 + $0x170] sm:$0xff]  ;;  %v873_v23 = vld [vmem:[%s5860_s1 + $0xd58] sm:$0xff] }
 0x272   :  { %2576 = vmatpush.msra.mxu2 %v873_v23  ;;  %v838_v23 = vld [vmem:[%s5860_s1 + $0xc40] sm:$0xff] }
 0x273   :  { %v5109_v50 = vadd.f32 %v1848_v31, %v1784_v25  ;;  %v824_v31 = vld [vmem:[%s5860_s1 + $0xbd0] sm:$0xff]  ;;  %2449 = vmatpush.msra.mxu0 %v838_v23 }
 0x274   :  { %v1656_v44 = vpop.f32.mrf.mxu3  ;;  %2110 = vmatmul.f32.gmra.mxu2 %v410_v34  ;;  %v1786_v42 = vpop.f32.mrf.mxu1  ;;  %2382 = vmatpush.msra.mxu3 %v824_v31  ;;  %v857_v34 = vld [vmem:[%s5860_s1 + $0xcd8] sm:$0xff] }
 0x275   :  { %v1657_v49 = vadd.f32 %v1656_v44, %v4704_v56  ;;  %v437_v56 = vld [vmem:[%s5862_s0 + $0xd38] sm:$0xff]  ;;  %2511 = vmatpush.msra.mxu1 %v857_v34  ;;  %v143_v34 = vld [vmem:[%s5862_s0 + $0x408] sm:$0xff] }
 0x276   :  { %v1724_v51 = vpop.f32.mrf.mxu0 }
 0x277   :  { %v1722_v47 = vadd.f32 %v1721_v17, %v1657_v49  ;;  %v1851_v3 = vpop.f32.mrf.mxu2  ;;  %2045 = vmatmul.f32.gmra.mxu1 %v409_v45  ;;  %v88_v49 = vld [vmem:[%s5862_s0 + $0x250] sm:$0xff] }
 0x279   :  { %v1787_v53 = vadd.f32 %v1786_v42, %v1722_v47  ;;  %1918 = vmatmul.f32.gmra.mxu3 %v434_v22  ;;  %1983 = vmatmul.f32.gmra.mxu0 %v435_v52  ;;  %v87_v42 = vld [vmem:[%s5862_s0 + $0x248] sm:$0xff]  ;;  %v872_v52 = vld [vmem:[%s5860_s1 + $0xd50] sm:$0xff] }
 0x27a   :  { %2577 = vmatpush.msra.mxu2 %v872_v52  ;;  %v837_v52 = vld [vmem:[%s5860_s1 + $0xc38] sm:$0xff] }
 0x27b   :  { %v5136_v9 = vadd.f32 %v1851_v3, %v1787_v53  ;;  %v823_v3 = vld [vmem:[%s5860_s1 + $0xbc8] sm:$0xff]  ;;  %2450 = vmatpush.msra.mxu0 %v837_v52 }
 0x27c   :  { %v1659_v58 = vpop.f32.mrf.mxu3  ;;  %2113 = vmatmul.f32.gmra.mxu2 %v437_v56  ;;  %v1789_v32 = vpop.f32.mrf.mxu1  ;;  %2383 = vmatpush.msra.mxu3 %v823_v3  ;;  %v856_v56 = vld [vmem:[%s5860_s1 + $0xcd0] sm:$0xff] }
 0x27d   :  { %v1660_v21 = vadd.f32 %v1659_v58, %v4731_v19  ;;  %v36_v19 = vld [vmem:[%s5862_s0 + $0xb0] sm:$0xff]  ;;  %2512 = vmatpush.msra.mxu1 %v856_v56  ;;  %v170_v56 = vld [vmem:[%s5862_s0 + $0x4e0] sm:$0xff] }
 0x27e   :  { %v1939_v24 = vpop.f32.mrf.mxu0 }
 0x27f   :  { %v1725_v15 = vadd.f32 %v1724_v51, %v1660_v21  ;;  %v1854_v30 = vpop.f32.mrf.mxu2  ;;  %2048 = vmatmul.f32.gmra.mxu1 %v436_v18  ;;  %v115_v21 = vld [vmem:[%s5862_s0 + $0x328] sm:$0xff] }
 0x281   :  { %v1790_v26 = vadd.f32 %v1789_v32, %v1725_v15  ;;  %2133 = vmatmul.f32.vlgmr.msrb.gmra.mxu3 %v33_v46  ;;  %2198 = vmatmul.f32.vlgmr.msrb.gmra.mxu0 %v34_v27  ;;  %v114_v32 = vld [vmem:[%s5862_s0 + $0x320] sm:$0xff]  ;;  %v871_v27 = vld [vmem:[%s5860_s1 + $0xd48] sm:$0xff] }
 0x282   :  { %2578 = vmatpush.msra.mxu2 %v871_v27  ;;  %v836_v27 = vld [vmem:[%s5860_s1 + $0xc30] sm:$0xff] }
 0x283   :  { %v5163_v63 = vadd.f32 %v1854_v30, %v1790_v26  ;;  %v822_v30 = vld [vmem:[%s5860_s1 + $0xbc0] sm:$0xff]  ;;  %2451 = vmatpush.msra.mxu0 %v836_v27 }
 0x284   :  { %v1874_v5 = vpop.f32.mrf.mxu3  ;;  %2328 = vmatmul.f32.vlgmr.msrb.gmra.mxu2 %v36_v19  ;;  %v2004_v54 = vpop.f32.mrf.mxu1  ;;  %2384 = vmatpush.msra.mxu3 %v822_v30  ;;  %v855_v19 = vld [vmem:[%s5860_s1 + $0xcc8] sm:$0xff] }
 0x285   :  { %v1875_v8 = vadd.f32 %v1874_v5, %v4758_v28  ;;  %v63_v28 = vld [vmem:[%s5862_s0 + $0x188] sm:$0xff]  ;;  %2513 = vmatpush.msra.mxu1 %v855_v19  ;;  %v197_v19 = vld [vmem:[%s5862_s0 + $0x5b8] sm:$0xff] }
 0x286   :  { %v1942_v40 = vpop.f32.mrf.mxu0 }
 0x287   :  { %v1940_v36 = vadd.f32 %v1939_v24, %v1875_v8  ;;  %v2069_v17 = vpop.f32.mrf.mxu2  ;;  %2263 = vmatmul.f32.vlgmr.msrb.gmra.mxu1 %v35_v7  ;;  %v142_v8 = vld [vmem:[%s5862_s0 + $0x400] sm:$0xff] }
 0x289   :  { %v2005_v13 = vadd.f32 %v2004_v54, %v1940_v36  ;;  %2136 = vmatmul.f32.gmra.mxu3 %v60_v59  ;;  %2201 = vmatmul.f32.gmra.mxu0 %v61_v10  ;;  %v141_v54 = vld [vmem:[%s5862_s0 + $0x3f8] sm:$0xff]  ;;  %v870_v10 = vld [vmem:[%s5860_s1 + $0xd40] sm:$0xff] }
 0x28a   :  { %2579 = vmatpush.msra.mxu2 %v870_v10  ;;  %v835_v10 = vld [vmem:[%s5860_s1 + $0xc28] sm:$0xff] }
 0x28b   :  { %v5190_v25 = vadd.f32 %v2069_v17, %v2005_v13  ;;  %v821_v17 = vld [vmem:[%s5860_s1 + $0xbb8] sm:$0xff]  ;;  %2452 = vmatpush.msra.mxu0 %v835_v10 }
 0x28c   :  { %v1877_v35 = vpop.f32.mrf.mxu3  ;;  %2331 = vmatmul.f32.gmra.mxu2 %v63_v28  ;;  %v2007_v1 = vpop.f32.mrf.mxu1  ;;  %2385 = vmatpush.msra.mxu3 %v821_v17  ;;  %v854_v28 = vld [vmem:[%s5860_s1 + $0xcc0] sm:$0xff] }
 0x28d   :  { %v1878_v44 = vadd.f32 %v1877_v35, %v4785_v2  ;;  %v90_v2 = vld [vmem:[%s5862_s0 + $0x260] sm:$0xff]  ;;  %2514 = vmatpush.msra.mxu1 %v854_v28  ;;  %v224_v28 = vld [vmem:[%s5862_s0 + $0x690] sm:$0xff] }
 0x28e   :  { %v1945_v45 = vpop.f32.mrf.mxu0 }
 0x28f   :  { %v1943_v22 = vadd.f32 %v1942_v40, %v1878_v44  ;;  %v2072_v51 = vpop.f32.mrf.mxu2  ;;  %2266 = vmatmul.f32.gmra.mxu1 %v62_v41  ;;  %v169_v44 = vld [vmem:[%s5862_s0 + $0x4d8] sm:$0xff] }
 0x291   :  { %v2008_v47 = vadd.f32 %v2007_v1, %v1943_v22  ;;  %2139 = vmatmul.f32.gmra.mxu3 %v87_v42  ;;  %2204 = vmatmul.f32.gmra.mxu0 %v88_v49  ;;  %v168_v1 = vld [vmem:[%s5862_s0 + $0x4d0] sm:$0xff]  ;;  %v869_v49 = vld [vmem:[%s5860_s1 + $0xd38] sm:$0xff] }
 0x292   :  { %2580 = vmatpush.msra.mxu2 %v869_v49  ;;  %v834_v49 = vld [vmem:[%s5860_s1 + $0xc20] sm:$0xff] }
 0x293   :  { %v5217_v53 = vadd.f32 %v2072_v51, %v2008_v47  ;;  %v820_v51 = vld [vmem:[%s5860_s1 + $0xbb0] sm:$0xff]  ;;  %2453 = vmatpush.msra.mxu0 %v834_v49 }
 0x294   :  { %v1880_v12 = vpop.f32.mrf.mxu3  ;;  %2334 = vmatmul.f32.gmra.mxu2 %v90_v2  ;;  %v2010_v29 = vpop.f32.mrf.mxu1  ;;  %2386 = vmatpush.msra.mxu3 %v820_v51  ;;  %v853_v2 = vld [vmem:[%s5860_s1 + $0xcb8] sm:$0xff] }
 0x295   :  { %v1881_v58 = vadd.f32 %v1880_v12, %v4812_v62  ;;  %v117_v62 = vld [vmem:[%s5862_s0 + $0x338] sm:$0xff]  ;;  %2515 = vmatpush.msra.mxu1 %v853_v2  ;;  %v251_v2 = vld [vmem:[%s5862_s0 + $0x768] sm:$0xff] }
 0x296   :  { %v1948_v18 = vpop.f32.mrf.mxu0 }
 0x297   :  { %v1946_v46 = vadd.f32 %v1945_v45, %v1881_v58  ;;  %v2075_v24 = vpop.f32.mrf.mxu2  ;;  %2269 = vmatmul.f32.gmra.mxu1 %v89_v20  ;;  %v196_v58 = vld [vmem:[%s5862_s0 + $0x5b0] sm:$0xff] }
 0x299   :  { %v2011_v15 = vadd.f32 %v2010_v29, %v1946_v46  ;;  %2142 = vmatmul.f32.gmra.mxu3 %v114_v32  ;;  %2207 = vmatmul.f32.gmra.mxu0 %v115_v21  ;;  %v195_v29 = vld [vmem:[%s5862_s0 + $0x5a8] sm:$0xff]  ;;  %v868_v21 = vld [vmem:[%s5860_s1 + $0xd30] sm:$0xff] }
 0x29a   :  { %2581 = vmatpush.msra.mxu2 %v868_v21  ;;  %v833_v21 = vld [vmem:[%s5860_s1 + $0xc18] sm:$0xff] }
 0x29b   :  { %v5244_v26 = vadd.f32 %v2075_v24, %v2011_v15  ;;  %v819_v24 = vld [vmem:[%s5860_s1 + $0xba8] sm:$0xff]  ;;  %2454 = vmatpush.msra.mxu0 %v833_v21 }
 0x29c   :  { %v1883_v0 = vpop.f32.mrf.mxu3  ;;  %2337 = vmatmul.f32.gmra.mxu2 %v117_v62  ;;  %v2013_v57 = vpop.f32.mrf.mxu1  ;;  %2387 = vmatpush.msra.mxu3 %v819_v24  ;;  %v852_v62 = vld [vmem:[%s5860_s1 + $0xcb0] sm:$0xff]  ;;  %v359_v21 = vld [vmem:[%s5862_s0 + $0xac8] sm:$0xff] }
 0x29d   :  { %v1884_v5 = vadd.f32 %v1883_v0, %v4839_v16  ;;  %v144_v16 = vld [vmem:[%s5862_s0 + $0x410] sm:$0xff]  ;;  %2516 = vmatpush.msra.mxu1 %v852_v62  ;;  %v278_v62 = vld [vmem:[%s5862_s0 + $0x840] sm:$0xff] }
 0x29e   :  { %v1951_v7 = vpop.f32.mrf.mxu0 }
 0x29f   :  { %v1949_v59 = vadd.f32 %v1948_v18, %v1884_v5  ;;  %v2078_v40 = vpop.f32.mrf.mxu2  ;;  %2272 = vmatmul.f32.gmra.mxu1 %v116_v4  ;;  %v223_v5 = vld [vmem:[%s5862_s0 + $0x688] sm:$0xff] }
 0x2a1   :  { %v2014_v36 = vadd.f32 %v2013_v57, %v1949_v59  ;;  %2145 = vmatmul.f32.gmra.mxu3 %v141_v54  ;;  %2210 = vmatmul.f32.gmra.mxu0 %v142_v8  ;;  %v222_v57 = vld [vmem:[%s5862_s0 + $0x680] sm:$0xff]  ;;  %v867_v8 = vld [vmem:[%s5860_s1 + $0xd28] sm:$0xff] }
 0x2a2   :  { %2582 = vmatpush.msra.mxu2 %v867_v8  ;;  %v832_v8 = vld [vmem:[%s5860_s1 + $0xc10] sm:$0xff] }
 0x2a3   :  { %v5271_v13 = vadd.f32 %v2078_v40, %v2014_v36  ;;  %v818_v40 = vld [vmem:[%s5860_s1 + $0xba0] sm:$0xff]  ;;  %2455 = vmatpush.msra.mxu0 %v832_v8  ;;  %v412_v8 = vld [vmem:[%s5862_s0 + $0xc70] sm:$0xff] }
 0x2a4   :  { %v1886_v31 = vpop.f32.mrf.mxu3  ;;  %2340 = vmatmul.f32.gmra.mxu2 %v144_v16  ;;  %v2016_v37 = vpop.f32.mrf.mxu1  ;;  %2388 = vmatpush.msra.mxu3 %v818_v40  ;;  %v851_v16 = vld [vmem:[%s5860_s1 + $0xca8] sm:$0xff] }
 0x2a5   :  { %v1887_v35 = vadd.f32 %v1886_v31, %v4866_v6  ;;  %v171_v6 = vld [vmem:[%s5862_s0 + $0x4e8] sm:$0xff]  ;;  %2517 = vmatpush.msra.mxu1 %v851_v16  ;;  %v305_v16 = vld [vmem:[%s5862_s0 + $0x918] sm:$0xff] }
 0x2a6   :  { %v1954_v41 = vpop.f32.mrf.mxu0 }
 0x2a7   :  { %v1952_v42 = vadd.f32 %v1951_v7, %v1887_v35  ;;  %v2081_v45 = vpop.f32.mrf.mxu2  ;;  %2275 = vmatmul.f32.gmra.mxu1 %v143_v34  ;;  %v250_v35 = vld [vmem:[%s5862_s0 + $0x760] sm:$0xff] }
 0x2a9   :  { %v2017_v22 = vadd.f32 %v2016_v37, %v1952_v42  ;;  %2148 = vmatmul.f32.gmra.mxu3 %v168_v1  ;;  %2213 = vmatmul.f32.gmra.mxu0 %v169_v44  ;;  %v249_v37 = vld [vmem:[%s5862_s0 + $0x758] sm:$0xff]  ;;  %v866_v44 = vld [vmem:[%s5860_s1 + $0xd20] sm:$0xff] }
 0x2aa   :  { %2583 = vmatpush.msra.mxu2 %v866_v44  ;;  %v831_v44 = vld [vmem:[%s5860_s1 + $0xc08] sm:$0xff] }
 0x2ab   :  { %v5298_v47 = vadd.f32 %v2081_v45, %v2017_v22  ;;  %v817_v45 = vld [vmem:[%s5860_s1 + $0xb98] sm:$0xff]  ;;  %2456 = vmatpush.msra.mxu0 %v831_v44 }
 0x2ac   :  { %v1889_v3 = vpop.f32.mrf.mxu3  ;;  %2343 = vmatmul.f32.gmra.mxu2 %v171_v6  ;;  %v2019_v55 = vpop.f32.mrf.mxu1  ;;  %2389 = vmatpush.msra.mxu3 %v817_v45  ;;  %v850_v6 = vld [vmem:[%s5860_s1 + $0xca0] sm:$0xff]  ;;  %v441_v44 = vld [vmem:[%s5862_s0 + $0xd58] sm:$0xff] }
 0x2ad   :  { %v1890_v12 = vadd.f32 %v1889_v3, %v4893_v60  ;;  %v198_v60 = vld [vmem:[%s5862_s0 + $0x5c0] sm:$0xff]  ;;  %2518 = vmatpush.msra.mxu1 %v850_v6  ;;  %v332_v6 = vld [vmem:[%s5862_s0 + $0x9f0] sm:$0xff] }
 0x2ae   :  { %v1957_v20 = vpop.f32.mrf.mxu0 }
 0x2af   :  { %v1955_v32 = vadd.f32 %v1954_v41, %v1890_v12  ;;  %v2084_v18 = vpop.f32.mrf.mxu2  ;;  %2278 = vmatmul.f32.gmra.mxu1 %v170_v56  ;;  %v277_v12 = vld [vmem:[%s5862_s0 + $0x838] sm:$0xff] }
 0x2b1   :  { %v2020_v46 = vadd.f32 %v2019_v55, %v1955_v32  ;;  %2151 = vmatmul.f32.gmra.mxu3 %v195_v29  ;;  %2216 = vmatmul.f32.gmra.mxu0 %v196_v58  ;;  %v276_v55 = vld [vmem:[%s5862_s0 + $0x830] sm:$0xff]  ;;  %v865_v58 = vld [vmem:[%s5860_s1 + $0xd18] sm:$0xff] }
 0x2b2   :  { %2584 = vmatpush.msra.mxu2 %v865_v58 }
 0x2b3   :  { %v5325_v15 = vadd.f32 %v2084_v18, %v2020_v46  ;;  %v816_v18 = vld [vmem:[%s5860_s1 + $0xb90] sm:$0xff] }
 0x2b4   :  { %v1892_v30 = vpop.f32.mrf.mxu3  ;;  %2346 = vmatmul.f32.gmra.mxu2 %v198_v60  ;;  %v2022_v33 = vpop.f32.mrf.mxu1  ;;  %2390 = vmatpush.msra.mxu3 %v816_v18  ;;  %v849_v60 = vld [vmem:[%s5860_s1 + $0xc98] sm:$0xff] }
 0x2b5   :  { %v1893_v0 = vadd.f32 %v1892_v30, %v4920_v48  ;;  %v225_v48 = vld [vmem:[%s5862_s0 + $0x698] sm:$0xff]  ;;  %2519 = vmatpush.msra.mxu1 %v849_v60 }
 0x2b6   :  { %v1960_v4 = vpop.f32.mrf.mxu0 }
 0x2b7   :  { %v1958_v54 = vadd.f32 %v1957_v20, %v1893_v0  ;;  %v2087_v7 = vpop.f32.mrf.mxu2  ;;  %2281 = vmatmul.f32.gmra.mxu1 %v197_v19  ;;  %v304_v0 = vld [vmem:[%s5862_s0 + $0x910] sm:$0xff] }
 0x2b9   :  { %v2023_v59 = vadd.f32 %v2022_v33, %v1958_v54  ;;  %2154 = vmatmul.f32.gmra.mxu3 %v222_v57  ;;  %2219 = vmatmul.f32.gmra.mxu0 %v223_v5  ;;  %v303_v33 = vld [vmem:[%s5862_s0 + $0x908] sm:$0xff]  ;;  %v864_v5 = vld [vmem:[%s5860_s1 + $0xd10] sm:$0xff] }
 0x2ba   :  { %2585 = vmatpush.msra.mxu2 %v864_v5  ;;  %v386_v5 = vld [vmem:[%s5862_s0 + $0xba0] sm:$0xff] }
 0x2bb   :  { %v5352_v36 = vadd.f32 %v2087_v7, %v2023_v59  ;;  %v815_v7 = vld [vmem:[%s5860_s1 + $0xb88] sm:$0xff] }
 0x2bc   :  { %v1895_v17 = vpop.f32.mrf.mxu3  ;;  %2349 = vmatmul.f32.gmra.mxu2 %v225_v48  ;;  %v2025_v23 = vpop.f32.mrf.mxu1  ;;  %2391 = vmatpush.msra.mxu3 %v815_v7  ;;  %v848_v48 = vld [vmem:[%s5860_s1 + $0xc90] sm:$0xff] }
 0x2bd   :  { %v1896_v31 = vadd.f32 %v1895_v17, %v4947_v43  ;;  %v252_v43 = vld [vmem:[%s5862_s0 + $0x770] sm:$0xff]  ;;  %2520 = vmatpush.msra.mxu1 %v848_v48 }
 0x2be   :  { %v1963_v34 = vpop.f32.mrf.mxu0 }
 0x2bf   :  { %v1961_v1 = vadd.f32 %v1960_v4, %v1896_v31  ;;  %v2090_v41 = vpop.f32.mrf.mxu2  ;;  %2284 = vmatmul.f32.gmra.mxu1 %v224_v28  ;;  %v331_v31 = vld [vmem:[%s5862_s0 + $0x9e8] sm:$0xff] }
 0x2c1   :  { %v2026_v42 = vadd.f32 %v2025_v23, %v1961_v1  ;;  %2157 = vmatmul.f32.gmra.mxu3 %v249_v37  ;;  %2222 = vmatmul.f32.gmra.mxu0 %v250_v35  ;;  %v330_v23 = vld [vmem:[%s5862_s0 + $0x9e0] sm:$0xff]  ;;  %v863_v35 = vld [vmem:[%s5860_s1 + $0xd08] sm:$0xff] }
 0x2c2   :  { %2586 = vmatpush.msra.mxu2 %v863_v35  ;;  %v439_v35 = vld [vmem:[%s5862_s0 + $0xd48] sm:$0xff] }
 0x2c3   :  { %v5379_v22 = vadd.f32 %v2090_v41, %v2026_v42  ;;  %v814_v41 = vld [vmem:[%s5860_s1 + $0xb80] sm:$0xff] }
 0x2c4   :  { %v1898_v51 = vpop.f32.mrf.mxu3  ;;  %2352 = vmatmul.f32.gmra.mxu2 %v252_v43  ;;  %v2028_v52 = vpop.f32.mrf.mxu1  ;;  %2392 = vmatpush.msra.mxu3 %v814_v41  ;;  %v847_v43 = vld [vmem:[%s5860_s1 + $0xc88] sm:$0xff] }
 0x2c5   :  { %v1899_v3 = vadd.f32 %v1898_v51, %v4974_v11  ;;  %v279_v11 = vld [vmem:[%s5862_s0 + $0x848] sm:$0xff]  ;;  %2521 = vmatpush.msra.mxu1 %v847_v43 }
 0x2c6   :  { %v1966_v56 = vpop.f32.mrf.mxu0 }
 0x2c7   :  { %v1964_v29 = vadd.f32 %v1963_v34, %v1899_v3  ;;  %v2093_v20 = vpop.f32.mrf.mxu2  ;;  %2287 = vmatmul.f32.gmra.mxu1 %v251_v2  ;;  %v358_v3 = vld [vmem:[%s5862_s0 + $0xac0] sm:$0xff] }
 0x2c9   :  { %v2029_v32 = vadd.f32 %v2028_v52, %v1964_v29  ;;  %2160 = vmatmul.f32.gmra.mxu3 %v276_v55  ;;  %2225 = vmatmul.f32.gmra.mxu0 %v277_v12  ;;  %v357_v52 = vld [vmem:[%s5862_s0 + $0xab8] sm:$0xff]  ;;  %v862_v12 = vld [vmem:[%s5860_s1 + $0xd00] sm:$0xff] }
 0x2ca   :  { %2587 = vmatpush.msra.mxu2 %v862_v12  ;;  %v40_v12 = vld [vmem:[%s5862_s0 + $0xd0] sm:$0xff] }
 0x2cb   :  { %v5406_v46 = vadd.f32 %v2093_v20, %v2029_v32  ;;  %v830_v20 = vld [vmem:[%s5860_s1 + $0xc00] sm:$0xff] }
 0x2cc   :  { %v1901_v24 = vpop.f32.mrf.mxu3  ;;  %2355 = vmatmul.f32.gmra.mxu2 %v279_v11  ;;  %v2031_v27 = vpop.f32.mrf.mxu1  ;;  %2457 = vmatpush.msra.mxu0 %v830_v20  ;;  %v846_v32 = vld [vmem:[%s5860_s1 + $0xc80] sm:$0xff]  ;;  %v39_v20 = vld [vmem:[%s5862_s0 + $0xc8] sm:$0xff] }
 0x2cd   :  { %v1902_v30 = vadd.f32 %v1901_v24, %v5001_v14  ;;  %v306_v14 = vld [vmem:[%s5862_s0 + $0x920] sm:$0xff]  ;;  %2522 = vmatpush.msra.mxu1 %v846_v32  ;;  %v384_v24 = vld [vmem:[%s5862_s0 + $0xb90] sm:$0xff] }
 0x2ce   :  { %v1969_v19 = vpop.f32.mrf.mxu0 }
 0x2cf   :  { %v1967_v57 = vadd.f32 %v1966_v56, %v1902_v30  ;;  %v2096_v4 = vpop.f32.mrf.mxu2  ;;  %2290 = vmatmul.f32.gmra.mxu1 %v278_v62  ;;  %v385_v62 = vld [vmem:[%s5862_s0 + $0xb98] sm:$0xff] }
 0x2d1   :  { %v2032_v54 = vadd.f32 %v2031_v27, %v1967_v57  ;;  %2163 = vmatmul.f32.gmra.mxu3 %v303_v33  ;;  %2228 = vmatmul.f32.gmra.mxu0 %v304_v0  ;;  %v387_v0 = vld [vmem:[%s5862_s0 + $0xba8] sm:$0xff] }
 0x2d3   :  { %v5433_v59 = vadd.f32 %v2096_v4, %v2032_v54 }
 0x2d4   :  { %v1904_v40 = vpop.f32.mrf.mxu3  ;;  %2358 = vmatmul.f32.gmra.mxu2 %v306_v14  ;;  %v2034_v10 = vpop.f32.mrf.mxu1  ;;  %v411_v14 = vld [vmem:[%s5862_s0 + $0xc68] sm:$0xff] }
 0x2d5   :  { %v1905_v17 = vadd.f32 %v1904_v40, %v5028_v38  ;;  %v333_v38 = vld [vmem:[%s5862_s0 + $0x9f8] sm:$0xff] }
 0x2d6   :  { %v1972_v28 = vpop.f32.mrf.mxu0 }
 0x2d7   :  { %v1970_v37 = vadd.f32 %v1969_v19, %v1905_v17  ;;  %v2099_v34 = vpop.f32.mrf.mxu2  ;;  %2293 = vmatmul.f32.gmra.mxu1 %v305_v16  ;;  %v414_v16 = vld [vmem:[%s5862_s0 + $0xc80] sm:$0xff] }
 0x2d9   :  { %v2035_v1 = vadd.f32 %v2034_v10, %v1970_v37  ;;  %2166 = vmatmul.f32.gmra.mxu3 %v330_v23  ;;  %2231 = vmatmul.f32.gmra.mxu0 %v331_v31  ;;  %v438_v37 = vld [vmem:[%s5862_s0 + $0xd40] sm:$0xff] }
 0x2db   :  { %v5460_v42 = vadd.f32 %v2099_v34, %v2035_v1 }
 0x2dc   :  { %v1907_v45 = vpop.f32.mrf.mxu3  ;;  %2361 = vmatmul.f32.gmra.mxu2 %v333_v38  ;;  %v2037_v49 = vpop.f32.mrf.mxu1 }
 0x2dd   :  { %v1908_v51 = vadd.f32 %v1907_v45, %v5055_v61  ;;  %v360_v61 = vld [vmem:[%s5862_s0 + $0xad0] sm:$0xff] }
 0x2de   :  { %v1975_v2 = vpop.f32.mrf.mxu0 }
 0x2df   :  { %v1973_v55 = vadd.f32 %v1972_v28, %v1908_v51  ;;  %v2102_v56 = vpop.f32.mrf.mxu2  ;;  %2296 = vmatmul.f32.gmra.mxu1 %v332_v6  ;;  %v413_v28 = vld [vmem:[%s5862_s0 + $0xc78] sm:$0xff] }
 0x2e0   :  { %v37_v51 = vld [vmem:[%s5862_s0 + $0xb8] sm:$0xff] }
 0x2e1   :  { %v2038_v29 = vadd.f32 %v2037_v49, %v1973_v55  ;;  %2169 = vmatmul.f32.gmra.mxu3 %v357_v52  ;;  %2234 = vmatmul.f32.gmra.mxu0 %v358_v3  ;;  %v440_v49 = vld [vmem:[%s5862_s0 + $0xd50] sm:$0xff] }
 0x2e3   :  { %v5484_v58 = vadd.f32 %v2102_v56, %v2038_v29 }
 0x2e4   :  { %v1910_v11 = vpop.f32.mrf.mxu3  ;;  %2364 = vmatmul.f32.gmra.mxu2 %v360_v61  ;;  %v2040_v18 = vpop.f32.mrf.mxu1 }
 0x2e5   :  { %v1911_v60 = vadd.f32 %v1910_v11, %v5082_v39  ;;  %v64_v11 = vld [vmem:[%s5862_s0 + $0x190] sm:$0xff] }
 0x2e6   :  { %v1978_v27 = vpop.f32.mrf.mxu0 }
 0x2e7   :  { %v1976_v30 = vadd.f32 %v1975_v2, %v1911_v60  ;;  %v2105_v33 = vpop.f32.mrf.mxu2  ;;  %2299 = vmatmul.f32.gmra.mxu1 %v359_v21  ;;  %v38_v2 = vld [vmem:[%s5862_s0 + $0xc0] sm:$0xff]  ;;  %v65_v21 = vld [vmem:[%s5862_s0 + $0x198] sm:$0xff] }
 0x2e9   :  { %v2041_v19 = vadd.f32 %v2040_v18, %v1976_v30  ;;  %2172 = vmatmul.f32.gmra.mxu3 %v384_v24  ;;  %2237 = vmatmul.f32.gmra.mxu0 %v385_v62  ;;  %v67_v62 = vld [vmem:[%s5862_s0 + $0x1a8] sm:$0xff] }
 0x2eb   :  { %v5502_v39 = vadd.f32 %v2105_v33, %v2041_v19  ;;  %v66_v19 = vld [vmem:[%s5862_s0 + $0x1a0] sm:$0xff] }
 0x2ec   :  { %v1913_v57 = vpop.f32.mrf.mxu3  ;;  %2367 = vmatmul.f32.gmra.mxu2 %v387_v0  ;;  %v2043_v4 = vpop.f32.mrf.mxu1 }
 0x2ed   :  { %v1914_v54 = vadd.f32 %v1913_v57, %v5109_v50  ;;  %v91_v57 = vld [vmem:[%s5862_s0 + $0x268] sm:$0xff] }
 0x2ee   :  { %v1981_v7 = vpop.f32.mrf.mxu0 }
 0x2ef   :  { %v1979_v48 = vadd.f32 %v1978_v27, %v1914_v54  ;;  %v2108_v40 = vpop.f32.mrf.mxu2  ;;  %2302 = vmatmul.f32.gmra.mxu1 %v386_v5  ;;  %v92_v5 = vld [vmem:[%s5862_s0 + $0x270] sm:$0xff] }
 0x2f1   :  { %v2044_v10 = vadd.f32 %v2043_v4, %v1979_v48  ;;  %2175 = vmatmul.f32.gmra.mxu3 %v411_v14  ;;  %2240 = vmatmul.f32.gmra.mxu0 %v412_v8  ;;  %v94_v8 = vld [vmem:[%s5862_s0 + $0x280] sm:$0xff] }
 0x2f3   :  { %v5517_v50 = vadd.f32 %v2108_v40, %v2044_v10  ;;  %v93_v10 = vld [vmem:[%s5862_s0 + $0x278] sm:$0xff] }
 0x2f4   :  { %v1916_v17 = vpop.f32.mrf.mxu3  ;;  %2370 = vmatmul.f32.gmra.mxu2 %v414_v16  ;;  %v2046_v23 = vpop.f32.mrf.mxu1 }
 0x2f5   :  { %v1917_v31 = vadd.f32 %v1916_v17, %v5136_v9  ;;  %v118_v17 = vld [vmem:[%s5862_s0 + $0x340] sm:$0xff] }
 0x2f6   :  { %v1984_v34 = vpop.f32.mrf.mxu0 }
 0x2f7   :  { %v1982_v1 = vadd.f32 %v1981_v7, %v1917_v31  ;;  %v2111_v38 = vpop.f32.mrf.mxu2  ;;  %2305 = vmatmul.f32.gmra.mxu1 %v413_v28  ;;  %v119_v28 = vld [vmem:[%s5862_s0 + $0x348] sm:$0xff] }
 0x2f9   :  { %v2047_v41 = vadd.f32 %v2046_v23, %v1982_v1  ;;  %2178 = vmatmul.f32.gmra.mxu3 %v438_v37  ;;  %2243 = vmatmul.f32.gmra.mxu0 %v439_v35  ;;  %v121_v35 = vld [vmem:[%s5862_s0 + $0x358] sm:$0xff] }
 0x2fb   :  { %v5532_v9 = vadd.f32 %v2111_v38, %v2047_v41  ;;  %v120_v41 = vld [vmem:[%s5862_s0 + $0x350] sm:$0xff] }
 0x2fc   :  { %v1919_v43 = vpop.f32.mrf.mxu3  ;;  %2373 = vmatmul.f32.gmra.mxu2 %v441_v44  ;;  %v2049_v45 = vpop.f32.mrf.mxu1 }
 0x2fd   :  { %v1920_v6 = vadd.f32 %v1919_v43, %v5163_v63  ;;  %v145_v43 = vld [vmem:[%s5862_s0 + $0x418] sm:$0xff] }
 0x2fe   :  { %v2199_v52 = vpop.f32.mrf.mxu0 }
 0x2ff   :  { %v1985_v3 = vadd.f32 %v1984_v34, %v1920_v6  ;;  %v2114_v55 = vpop.f32.mrf.mxu2  ;;  %2308 = vmatmul.f32.gmra.mxu1 %v440_v49  ;;  %v146_v49 = vld [vmem:[%s5862_s0 + $0x420] sm:$0xff] }
 0x301   :  { %v2050_v56 = vadd.f32 %v2049_v45, %v1985_v3  ;;  %2393 = vmatmul.f32.vlgmr.msra.gmra.mxu3 %v37_v51  ;;  %2458 = vmatmul.f32.vlgmr.msra.gmra.mxu0 %v38_v2  ;;  %v148_v2 = vld [vmem:[%s5862_s0 + $0x430] sm:$0xff] }
 0x303   :  { %v5547_v63 = vadd.f32 %v2114_v55, %v2050_v56  ;;  %v147_v56 = vld [vmem:[%s5862_s0 + $0x428] sm:$0xff] }
 0x304   :  { %v2134_v29 = vpop.f32.mrf.mxu3  ;;  %2588 = vmatmul.f32.vlgmr.msra.gmra.mxu2 %v40_v12  ;;  %v2264_v61 = vpop.f32.mrf.mxu1 }
 0x305   :  { %v2135_v32 = vadd.f32 %v2134_v29, %v5190_v25  ;;  %v172_v29 = vld [vmem:[%s5862_s0 + $0x4f0] sm:$0xff] }
 0x306   :  { %v2202_v18 = vpop.f32.mrf.mxu0 }
 0x307   :  { %v2200_v60 = vadd.f32 %v2199_v52, %v2135_v32  ;;  %v2329_v24 = vpop.f32.mrf.mxu2  ;;  %2523 = vmatmul.f32.vlgmr.msra.gmra.mxu1 %v39_v20  ;;  %v173_v20 = vld [vmem:[%s5862_s0 + $0x4f8] sm:$0xff] }
 0x309   :  { %v2265_v27 = vadd.f32 %v2264_v61, %v2200_v60  ;;  %2396 = vmatmul.f32.gmra.mxu3 %v64_v11  ;;  %2461 = vmatmul.f32.gmra.mxu0 %v65_v21  ;;  %v175_v21 = vld [vmem:[%s5862_s0 + $0x508] sm:$0xff] }
 0x30b   :  { %v5562_v25 = vadd.f32 %v2329_v24, %v2265_v27  ;;  %v174_v27 = vld [vmem:[%s5862_s0 + $0x500] sm:$0xff] }
 0x30c   :  { %v2137_v30 = vpop.f32.mrf.mxu3  ;;  %2591 = vmatmul.f32.gmra.mxu2 %v67_v62  ;;  %v2267_v33 = vpop.f32.mrf.mxu1 }
 0x30d   :  { %v2138_v0 = vadd.f32 %v2137_v30, %v5217_v53  ;;  %v199_v30 = vld [vmem:[%s5862_s0 + $0x5c8] sm:$0xff] }
 0x30e   :  { %v2205_v4 = vpop.f32.mrf.mxu0 }
 0x30f   :  { %v2203_v54 = vadd.f32 %v2202_v18, %v2138_v0  ;;  %v2332_v14 = vpop.f32.mrf.mxu2  ;;  %2526 = vmatmul.f32.gmra.mxu1 %v66_v19  ;;  %v200_v19 = vld [vmem:[%s5862_s0 + $0x5d0] sm:$0xff] }
 0x311   :  { %v2268_v7 = vadd.f32 %v2267_v33, %v2203_v54  ;;  %2399 = vmatmul.f32.gmra.mxu3 %v91_v57  ;;  %2464 = vmatmul.f32.gmra.mxu0 %v92_v5  ;;  %v202_v5 = vld [vmem:[%s5862_s0 + $0x5e0] sm:$0xff] }
 0x313   :  { %v5577_v53 = vadd.f32 %v2332_v14, %v2268_v7  ;;  %v201_v7 = vld [vmem:[%s5862_s0 + $0x5d8] sm:$0xff] }
 0x314   :  { %v2140_v48 = vpop.f32.mrf.mxu3  ;;  %2594 = vmatmul.f32.gmra.mxu2 %v94_v8  ;;  %v2270_v40 = vpop.f32.mrf.mxu1 }
 0x315   :  { %v2141_v16 = vadd.f32 %v2140_v48, %v5244_v26  ;;  %v226_v48 = vld [vmem:[%s5862_s0 + $0x6a0] sm:$0xff] }
 0x316   :  { %v2208_v23 = vpop.f32.mrf.mxu0 }
 0x317   :  { %v2206_v31 = vadd.f32 %v2205_v4, %v2141_v16  ;;  %v2335_v37 = vpop.f32.mrf.mxu2  ;;  %2529 = vmatmul.f32.gmra.mxu1 %v93_v10  ;;  %v227_v10 = vld [vmem:[%s5862_s0 + $0x6a8] sm:$0xff] }
 0x319   :  { %v2271_v34 = vadd.f32 %v2270_v40, %v2206_v31  ;;  %2402 = vmatmul.f32.gmra.mxu3 %v118_v17  ;;  %2467 = vmatmul.f32.gmra.mxu0 %v119_v28  ;;  %v229_v28 = vld [vmem:[%s5862_s0 + $0x6b8] sm:$0xff] }
 0x31b   :  { %v5592_v26 = vadd.f32 %v2335_v37, %v2271_v34  ;;  %v228_v34 = vld [vmem:[%s5862_s0 + $0x6b0] sm:$0xff] }
 0x31c   :  { %v2143_v1 = vpop.f32.mrf.mxu3  ;;  %2597 = vmatmul.f32.gmra.mxu2 %v121_v35  ;;  %v2273_v38 = vpop.f32.mrf.mxu1 }
 0x31d   :  { %v2144_v44 = vadd.f32 %v2143_v1, %v5271_v13  ;;  %v253_v1 = vld [vmem:[%s5862_s0 + $0x778] sm:$0xff] }
 0x31e   :  { %v2211_v45 = vpop.f32.mrf.mxu0 }
 0x31f   :  { %v2209_v6 = vadd.f32 %v2208_v23, %v2144_v44  ;;  %v2338_v51 = vpop.f32.mrf.mxu2  ;;  %2532 = vmatmul.f32.gmra.mxu1 %v120_v41  ;;  %v254_v41 = vld [vmem:[%s5862_s0 + $0x780] sm:$0xff] }
 0x321   :  { %v2274_v52 = vadd.f32 %v2273_v38, %v2209_v6  ;;  %2405 = vmatmul.f32.gmra.mxu3 %v145_v43  ;;  %2470 = vmatmul.f32.gmra.mxu0 %v146_v49  ;;  %v256_v49 = vld [vmem:[%s5862_s0 + $0x790] sm:$0xff] }
 0x323   :  { %v5607_v13 = vadd.f32 %v2338_v51, %v2274_v52  ;;  %v255_v52 = vld [vmem:[%s5862_s0 + $0x788] sm:$0xff] }
 0x324   :  { %v2146_v3 = vpop.f32.mrf.mxu3  ;;  %2600 = vmatmul.f32.gmra.mxu2 %v148_v2  ;;  %v2276_v55 = vpop.f32.mrf.mxu1 }
 0x325   :  { %v2147_v12 = vadd.f32 %v2146_v3, %v5298_v47  ;;  %v280_v3 = vld [vmem:[%s5862_s0 + $0x850] sm:$0xff] }
 0x326   :  { %v2214_v61 = vpop.f32.mrf.mxu0 }
 0x327   :  { %v2212_v32 = vadd.f32 %v2211_v45, %v2147_v12  ;;  %v2341_v11 = vpop.f32.mrf.mxu2  ;;  %2535 = vmatmul.f32.gmra.mxu1 %v147_v56  ;;  %v281_v56 = vld [vmem:[%s5862_s0 + $0x858] sm:$0xff] }
 0x329   :  { %v2277_v18 = vadd.f32 %v2276_v55, %v2212_v32  ;;  %2408 = vmatmul.f32.gmra.mxu3 %v172_v29  ;;  %2473 = vmatmul.f32.gmra.mxu0 %v173_v20  ;;  %v283_v20 = vld [vmem:[%s5862_s0 + $0x868] sm:$0xff] }
 0x32b   :  { %v5622_v47 = vadd.f32 %v2341_v11, %v2277_v18  ;;  %v282_v18 = vld [vmem:[%s5862_s0 + $0x860] sm:$0xff] }
 0x32c   :  { %v2149_v60 = vpop.f32.mrf.mxu3  ;;  %2603 = vmatmul.f32.gmra.mxu2 %v175_v21  ;;  %v2279_v24 = vpop.f32.mrf.mxu1 }
 0x32d   :  { %v2150_v62 = vadd.f32 %v2149_v60, %v5325_v15  ;;  %v307_v60 = vld [vmem:[%s5862_s0 + $0x928] sm:$0xff] }
 0x32e   :  { %v2217_v33 = vpop.f32.mrf.mxu0 }
 0x32f   :  { %v2215_v0 = vadd.f32 %v2214_v61, %v2150_v62  ;;  %v2344_v57 = vpop.f32.mrf.mxu2  ;;  %2538 = vmatmul.f32.gmra.mxu1 %v174_v27  ;;  %v308_v27 = vld [vmem:[%s5862_s0 + $0x930] sm:$0xff] }
 0x331   :  { %v2280_v4 = vadd.f32 %v2279_v24, %v2215_v0  ;;  %2411 = vmatmul.f32.gmra.mxu3 %v199_v30  ;;  %2476 = vmatmul.f32.gmra.mxu0 %v200_v19  ;;  %v310_v19 = vld [vmem:[%s5862_s0 + $0x940] sm:$0xff] }
 0x333   :  { %v5637_v15 = vadd.f32 %v2344_v57, %v2280_v4  ;;  %v309_v4 = vld [vmem:[%s5862_s0 + $0x938] sm:$0xff] }
 0x334   :  { %v2152_v54 = vpop.f32.mrf.mxu3  ;;  %2606 = vmatmul.f32.gmra.mxu2 %v202_v5  ;;  %v2282_v14 = vpop.f32.mrf.mxu1 }
 0x335   :  { %v2153_v8 = vadd.f32 %v2152_v54, %v5352_v36  ;;  %v334_v54 = vld [vmem:[%s5862_s0 + $0xa00] sm:$0xff] }
 0x336   :  { %v2220_v40 = vpop.f32.mrf.mxu0 }
 0x337   :  { %v2218_v16 = vadd.f32 %v2217_v33, %v2153_v8  ;;  %v2347_v17 = vpop.f32.mrf.mxu2  ;;  %2541 = vmatmul.f32.gmra.mxu1 %v201_v7  ;;  %v335_v7 = vld [vmem:[%s5862_s0 + $0xa08] sm:$0xff] }
 0x339   :  { %v2283_v23 = vadd.f32 %v2282_v14, %v2218_v16  ;;  %2414 = vmatmul.f32.gmra.mxu3 %v226_v48  ;;  %2479 = vmatmul.f32.gmra.mxu0 %v227_v10  ;;  %v337_v10 = vld [vmem:[%s5862_s0 + $0xa18] sm:$0xff] }
 0x33b   :  { %v5652_v36 = vadd.f32 %v2347_v17, %v2283_v23  ;;  %v336_v23 = vld [vmem:[%s5862_s0 + $0xa10] sm:$0xff] }
 0x33c   :  { %v2155_v31 = vpop.f32.mrf.mxu3  ;;  %2609 = vmatmul.f32.gmra.mxu2 %v229_v28  ;;  %v2285_v37 = vpop.f32.mrf.mxu1 }
 0x33d   :  { %v2156_v35 = vadd.f32 %v2155_v31, %v5379_v22  ;;  %v361_v31 = vld [vmem:[%s5862_s0 + $0xad8] sm:$0xff] }
 0x33e   :  { %v2223_v38 = vpop.f32.mrf.mxu0 }
 0x33f   :  { %v2221_v44 = vadd.f32 %v2220_v40, %v2156_v35  ;;  %v2350_v43 = vpop.f32.mrf.mxu2  ;;  %2544 = vmatmul.f32.gmra.mxu1 %v228_v34  ;;  %v362_v34 = vld [vmem:[%s5862_s0 + $0xae0] sm:$0xff] }
 0x341   :  { %v2286_v45 = vadd.f32 %v2285_v37, %v2221_v44  ;;  %2417 = vmatmul.f32.gmra.mxu3 %v253_v1  ;;  %2482 = vmatmul.f32.gmra.mxu0 %v254_v41  ;;  %v364_v41 = vld [vmem:[%s5862_s0 + $0xaf0] sm:$0xff] }
 0x343   :  { %v5667_v22 = vadd.f32 %v2350_v43, %v2286_v45  ;;  %v363_v45 = vld [vmem:[%s5862_s0 + $0xae8] sm:$0xff] }
 0x344   :  { %v2158_v6 = vpop.f32.mrf.mxu3  ;;  %2612 = vmatmul.f32.gmra.mxu2 %v256_v49  ;;  %v2288_v51 = vpop.f32.mrf.mxu1 }
 0x345   :  { %v2159_v2 = vadd.f32 %v2158_v6, %v5406_v46  ;;  %v388_v6 = vld [vmem:[%s5862_s0 + $0xbb0] sm:$0xff] }
 0x346   :  { %v2226_v55 = vpop.f32.mrf.mxu0 }
 0x347   :  { %v2224_v12 = vadd.f32 %v2223_v38, %v2159_v2  ;;  %v2353_v29 = vpop.f32.mrf.mxu2  ;;  %2547 = vmatmul.f32.gmra.mxu1 %v255_v52  ;;  %v389_v52 = vld [vmem:[%s5862_s0 + $0xbb8] sm:$0xff] }
 0x349   :  { %v2289_v61 = vadd.f32 %v2288_v51, %v2224_v12  ;;  %2420 = vmatmul.f32.gmra.mxu3 %v280_v3  ;;  %2485 = vmatmul.f32.gmra.mxu0 %v281_v56  ;;  %v391_v56 = vld [vmem:[%s5862_s0 + $0xbc8] sm:$0xff] }
 0x34b   :  { %v5682_v46 = vadd.f32 %v2353_v29, %v2289_v61  ;;  %v390_v61 = vld [vmem:[%s5862_s0 + $0xbc0] sm:$0xff] }
 0x34c   :  { %v2161_v32 = vpop.f32.mrf.mxu3  ;;  %2615 = vmatmul.f32.gmra.mxu2 %v283_v20  ;;  %v2291_v11 = vpop.f32.mrf.mxu1 }
 0x34d   :  { %v2162_v21 = vadd.f32 %v2161_v32, %v5433_v59  ;;  %v415_v32 = vld [vmem:[%s5862_s0 + $0xc88] sm:$0xff] }
 0x34e   :  { %v2229_v24 = vpop.f32.mrf.mxu0 }
 0x34f   :  { %v2227_v62 = vadd.f32 %v2226_v55, %v2162_v21  ;;  %v2356_v30 = vpop.f32.mrf.mxu2  ;;  %2550 = vmatmul.f32.gmra.mxu1 %v282_v18  ;;  %v416_v18 = vld [vmem:[%s5862_s0 + $0xc90] sm:$0xff] }
 0x351   :  { %v2292_v33 = vadd.f32 %v2291_v11, %v2227_v62  ;;  %2423 = vmatmul.f32.gmra.mxu3 %v307_v60  ;;  %2488 = vmatmul.f32.gmra.mxu0 %v308_v27  ;;  %v418_v27 = vld [vmem:[%s5862_s0 + $0xca0] sm:$0xff] }
 0x353   :  { %v5697_v59 = vadd.f32 %v2356_v30, %v2292_v33  ;;  %v417_v33 = vld [vmem:[%s5862_s0 + $0xc98] sm:$0xff] }
 0x354   :  { %v2164_v0 = vpop.f32.mrf.mxu3  ;;  %2618 = vmatmul.f32.gmra.mxu2 %v310_v19  ;;  %v2294_v57 = vpop.f32.mrf.mxu1 }
 0x355   :  { %v2165_v5 = vadd.f32 %v2164_v0, %v5460_v42  ;;  %v442_v0 = vld [vmem:[%s5862_s0 + $0xd60] sm:$0xff] }
 0x356   :  { %v2232_v14 = vpop.f32.mrf.mxu0 }
 0x357   :  { %v2230_v8 = vadd.f32 %v2229_v24, %v2165_v5  ;;  %v2359_v48 = vpop.f32.mrf.mxu2  ;;  %2553 = vmatmul.f32.gmra.mxu1 %v309_v4  ;;  %v443_v4 = vld [vmem:[%s5862_s0 + $0xd68] sm:$0xff] }
 0x359   :  { %v2295_v40 = vadd.f32 %v2294_v57, %v2230_v8  ;;  %2426 = vmatmul.f32.gmra.mxu3 %v334_v54  ;;  %2491 = vmatmul.f32.gmra.mxu0 %v335_v7  ;;  %v445_v7 = vld [vmem:[%s5862_s0 + $0xd78] sm:$0xff] }
 0x35b   :  { %v5712_v42 = vadd.f32 %v2359_v48, %v2295_v40  ;;  %v444_v40 = vld [vmem:[%s5862_s0 + $0xd70] sm:$0xff] }
 0x35c   :  { %v2167_v16 = vpop.f32.mrf.mxu3  ;;  %2621 = vmatmul.f32.gmra.mxu2 %v337_v10  ;;  %v2297_v17 = vpop.f32.mrf.mxu1 }
 0x35d   :  { %v2168_v28 = vadd.f32 %v2167_v16, %v5484_v58 }
 0x35e   :  { %v2235_v37 = vpop.f32.mrf.mxu0 }
 0x35f   :  { %v2233_v35 = vadd.f32 %v2232_v14, %v2168_v28  ;;  %v2362_v1 = vpop.f32.mrf.mxu2  ;;  %2556 = vmatmul.f32.gmra.mxu1 %v336_v23 }
 0x361   :  { %v2298_v38 = vadd.f32 %v2297_v17, %v2233_v35  ;;  %2429 = vmatmul.f32.gmra.mxu3 %v361_v31  ;;  %2494 = vmatmul.f32.gmra.mxu0 %v362_v34 }
 0x363   :  { %v5727_v58 = vadd.f32 %v2362_v1, %v2298_v38 }
 0x364   :  { %v2170_v44 = vpop.f32.mrf.mxu3  ;;  %2624 = vmatmul.f32.gmra.mxu2 %v364_v41  ;;  %v2300_v43 = vpop.f32.mrf.mxu1 }
 0x365   :  { %v2171_v49 = vadd.f32 %v2170_v44, %v5502_v39 }
 0x366   :  { %v2238_v51 = vpop.f32.mrf.mxu0 }
 0x367   :  { %v2236_v2 = vadd.f32 %v2235_v37, %v2171_v49  ;;  %v2365_v3 = vpop.f32.mrf.mxu2  ;;  %2559 = vmatmul.f32.gmra.mxu1 %v363_v45 }
 0x369   :  { %v2301_v55 = vadd.f32 %v2300_v43, %v2236_v2  ;;  %2432 = vmatmul.f32.gmra.mxu3 %v388_v6  ;;  %2497 = vmatmul.f32.gmra.mxu0 %v389_v52 }
 0x36b   :  { %v5742_v39 = vadd.f32 %v2365_v3, %v2301_v55 }
 0x36c   :  { %v2173_v12 = vpop.f32.mrf.mxu3  ;;  %2627 = vmatmul.f32.gmra.mxu2 %v391_v56  ;;  %v2303_v29 = vpop.f32.mrf.mxu1 }
 0x36d   :  { %v2174_v20 = vadd.f32 %v2173_v12, %v5517_v50 }
 0x36e   :  { %v2241_v11 = vpop.f32.mrf.mxu0 }
 0x36f   :  { %v2239_v21 = vadd.f32 %v2238_v51, %v2174_v20  ;;  %v2368_v60 = vpop.f32.mrf.mxu2  ;;  %2562 = vmatmul.f32.gmra.mxu1 %v390_v61 }
 0x371   :  { %v2304_v24 = vadd.f32 %v2303_v29, %v2239_v21  ;;  %2435 = vmatmul.f32.gmra.mxu3 %v415_v32  ;;  %2500 = vmatmul.f32.gmra.mxu0 %v416_v18 }
 0x373   :  { %v5757_v50 = vadd.f32 %v2368_v60, %v2304_v24 }
 0x374   :  { %v2176_v62 = vpop.f32.mrf.mxu3  ;;  %2630 = vmatmul.f32.gmra.mxu2 %v418_v27  ;;  %v2306_v30 = vpop.f32.mrf.mxu1 }
 0x375   :  { %v2177_v19 = vadd.f32 %v2176_v62, %v5532_v9 }
 0x376   :  { %v2244_v57 = vpop.f32.mrf.mxu0 }
 0x377   :  { %v2242_v5 = vadd.f32 %v2241_v11, %v2177_v19  ;;  %v2371_v54 = vpop.f32.mrf.mxu2  ;;  %2565 = vmatmul.f32.gmra.mxu1 %v417_v33 }
 0x379   :  { %v2307_v14 = vadd.f32 %v2306_v30, %v2242_v5  ;;  %2438 = vmatmul.f32.gmra.mxu3 %v442_v0  ;;  %2503 = vmatmul.f32.gmra.mxu0 %v443_v4 }
 0x37b   :  { %v5772_v9 = vadd.f32 %v2371_v54, %v2307_v14 }
 0x37c   :  { %v2179_v8 = vpop.f32.mrf.mxu3  ;;  %2633 = vmatmul.f32.gmra.mxu2 %v445_v7  ;;  %v2309_v48 = vpop.f32.mrf.mxu1 }
 0x37d   :  { %v2180_v10 = vadd.f32 %v2179_v8, %v5547_v63 }
 0x37e   :  { %v2459_v16 = vpop.f32.mrf.mxu0 }
 0x37f   :  { %v2245_v17 = vadd.f32 %v2244_v57, %v2180_v10  ;;  %v2374_v23 = vpop.f32.mrf.mxu2  ;;  %2568 = vmatmul.f32.gmra.mxu1 %v444_v40 }
 0x381   :  { %v2310_v28 = vadd.f32 %v2309_v48, %v2245_v17 }
 0x383   :  { %v5778_v31 = vadd.f32 %v2374_v23, %v2310_v28 }
 0x384   :  { %v2394_v37 = vpop.f32.mrf.mxu3  ;;  %v2524_v34 = vpop.f32.mrf.mxu1 }
 0x385   :  { %v2395_v35 = vadd.f32 %v2394_v37, %v5562_v25 }
 0x386   :  { %v2462_v1 = vpop.f32.mrf.mxu0 }
 0x387   :  { %v2460_v38 = vadd.f32 %v2459_v16, %v2395_v35  ;;  %v2589_v41 = vpop.f32.mrf.mxu2 }
 0x389   :  { %v2525_v44 = vadd.f32 %v2524_v34, %v2460_v38 }
 0x38b   :  { %v2590_v43 = vadd.f32 %v2589_v41, %v2525_v44 }
 0x38c   :  { %v2397_v45 = vpop.f32.mrf.mxu3  ;;  %v2527_v49 = vpop.f32.mrf.mxu1 }
 0x38d   :  { %v2637_v63 = vmax.f32 %v2590_v43, 0.0  ;;  %v2398_v6 = vadd.f32 %v2397_v45, %v5577_v53 }
 0x38e   :  { %v2465_v51 = vpop.f32.mrf.mxu0 }
 0x38f   :  { %2654 = vst.msk [vmem:[%s5863_s3] sm:$0xff] %vm2653_vm0, %v2637_v63  ;;  %v2463_v52 = vadd.f32 %v2462_v1, %v2398_v6  ;;  %v2592_v2 = vpop.f32.mrf.mxu2 }
 0x391   :  { %v2528_v25 = vadd.f32 %v2527_v49, %v2463_v52 }
 0x393   :  { %v2593_v3 = vadd.f32 %v2592_v2, %v2528_v25 }
 0x394   :  { %v2400_v55 = vpop.f32.mrf.mxu3  ;;  %v2530_v56 = vpop.f32.mrf.mxu1 }
 0x395   :  { %v2638_v12 = vmax.f32 %v2593_v3, 0.0  ;;  %v2401_v29 = vadd.f32 %v2400_v55, %v5592_v26 }
 0x396   :  { %v2468_v61 = vpop.f32.mrf.mxu0 }
 0x397   :  { %2655 = vst.msk [vmem:[%s5863_s3 + $0x8] sm:$0xff] %vm2653_vm0, %v2638_v12  ;;  %v2466_v53 = vadd.f32 %v2465_v51, %v2401_v29  ;;  %v2595_v20 = vpop.f32.mrf.mxu2 }
 0x399   :  { %v2531_v32 = vadd.f32 %v2530_v56, %v2466_v53 }
 0x39b   :  { %v2596_v11 = vadd.f32 %v2595_v20, %v2531_v32 }
 0x39c   :  { %v2403_v18 = vpop.f32.mrf.mxu3  ;;  %v2533_v21 = vpop.f32.mrf.mxu1 }
 0x39d   :  { %v2639_v60 = vmax.f32 %v2596_v11, 0.0  ;;  %v2404_v24 = vadd.f32 %v2403_v18, %v5607_v13 }
 0x39e   :  { %v2471_v27 = vpop.f32.mrf.mxu0 }
 0x39f   :  { %2656 = vst.msk [vmem:[%s5863_s3 + $0x10] sm:$0xff] %vm2653_vm0, %v2639_v60  ;;  %v2469_v26 = vadd.f32 %v2468_v61, %v2404_v24  ;;  %v2598_v62 = vpop.f32.mrf.mxu2 }
 0x3a1   :  { %v2534_v30 = vadd.f32 %v2533_v21, %v2469_v26 }
 0x3a3   :  { %v2599_v33 = vadd.f32 %v2598_v62, %v2534_v30 }
 0x3a4   :  { %v2406_v19 = vpop.f32.mrf.mxu3  ;;  %v2536_v0 = vpop.f32.mrf.mxu1 }
 0x3a5   :  { %v2640_v57 = vmax.f32 %v2599_v33, 0.0  ;;  %v2407_v4 = vadd.f32 %v2406_v19, %v5622_v47 }
 0x3a6   :  { %v2474_v5 = vpop.f32.mrf.mxu0 }
 0x3a7   :  { %2657 = vst.msk [vmem:[%s5863_s3 + $0x18] sm:$0xff] %vm2653_vm0, %v2640_v57  ;;  %v2472_v13 = vadd.f32 %v2471_v27, %v2407_v4  ;;  %v2601_v54 = vpop.f32.mrf.mxu2 }
 0x3a9   :  { %v2537_v14 = vadd.f32 %v2536_v0, %v2472_v13 }
 0x3ab   :  { %v2602_v7 = vadd.f32 %v2601_v54, %v2537_v14 }
 0x3ac   :  { %v2409_v8 = vpop.f32.mrf.mxu3  ;;  %v2539_v48 = vpop.f32.mrf.mxu1 }
 0x3ad   :  { %v2641_v40 = vmax.f32 %v2602_v7, 0.0  ;;  %v2410_v10 = vadd.f32 %v2409_v8, %v5637_v15 }
 0x3ae   :  { %v2477_v16 = vpop.f32.mrf.mxu0 }
 0x3af   :  { %2658 = vst.msk [vmem:[%s5863_s3 + $0x20] sm:$0xff] %vm2653_vm0, %v2641_v40  ;;  %v2475_v47 = vadd.f32 %v2474_v5, %v2410_v10  ;;  %v2604_v17 = vpop.f32.mrf.mxu2 }
 0x3b1   :  { %v2540_v23 = vadd.f32 %v2539_v48, %v2475_v47 }
 0x3b3   :  { %v2605_v28 = vadd.f32 %v2604_v17, %v2540_v23 }
 0x3b4   :  { %v2412_v37 = vpop.f32.mrf.mxu3  ;;  %v2542_v34 = vpop.f32.mrf.mxu1 }
 0x3b5   :  { %v2642_v35 = vmax.f32 %v2605_v28, 0.0  ;;  %v2413_v1 = vadd.f32 %v2412_v37, %v5652_v36 }
 0x3b6   :  { %v2480_v38 = vpop.f32.mrf.mxu0 }
 0x3b7   :  { %2659 = vst.msk [vmem:[%s5863_s3 + $0x28] sm:$0xff] %vm2653_vm0, %v2642_v35  ;;  %v2478_v15 = vadd.f32 %v2477_v16, %v2413_v1  ;;  %v2607_v41 = vpop.f32.mrf.mxu2 }
 0x3b9   :  { %v2543_v44 = vadd.f32 %v2542_v34, %v2478_v15 }
 0x3bb   :  { %v2608_v43 = vadd.f32 %v2607_v41, %v2543_v44 }
 0x3bc   :  { %v2415_v45 = vpop.f32.mrf.mxu3  ;;  %v2545_v49 = vpop.f32.mrf.mxu1 }
 0x3bd   :  { %v2643_v63 = vmax.f32 %v2608_v43, 0.0  ;;  %v2416_v6 = vadd.f32 %v2415_v45, %v5667_v22 }
 0x3be   :  { %v2483_v51 = vpop.f32.mrf.mxu0 }
 0x3bf   :  { %2660 = vst.msk [vmem:[%s5863_s3 + $0x30] sm:$0xff] %vm2653_vm0, %v2643_v63  ;;  %v2481_v36 = vadd.f32 %v2480_v38, %v2416_v6  ;;  %v2610_v52 = vpop.f32.mrf.mxu2 }
 0x3c1   :  { %v2546_v2 = vadd.f32 %v2545_v49, %v2481_v36 }
 0x3c3   :  { %v2611_v25 = vadd.f32 %v2610_v52, %v2546_v2 }
 0x3c4   :  { %v2418_v3 = vpop.f32.mrf.mxu3  ;;  %v2548_v55 = vpop.f32.mrf.mxu1 }
 0x3c5   :  { %v2644_v56 = vmax.f32 %v2611_v25, 0.0  ;;  %v2419_v12 = vadd.f32 %v2418_v3, %v5682_v46 }
 0x3c6   :  { %v2486_v29 = vpop.f32.mrf.mxu0 }
 0x3c7   :  { %2661 = vst.msk [vmem:[%s5863_s3 + $0x38] sm:$0xff] %vm2653_vm0, %v2644_v56  ;;  %v2484_v22 = vadd.f32 %v2483_v51, %v2419_v12  ;;  %v2613_v61 = vpop.f32.mrf.mxu2 }
 0x3c9   :  { %v2549_v53 = vadd.f32 %v2548_v55, %v2484_v22 }
 0x3cb   :  { %v2614_v20 = vadd.f32 %v2613_v61, %v2549_v53 }
 0x3cc   :  { %v2421_v32 = vpop.f32.mrf.mxu3  ;;  %v2551_v11 = vpop.f32.mrf.mxu1 }
 0x3cd   :  { %v2645_v18 = vmax.f32 %v2614_v20, 0.0  ;;  %v2422_v21 = vadd.f32 %v2421_v32, %v5697_v59 }
 0x3ce   :  { %v2489_v60 = vpop.f32.mrf.mxu0 }
 0x3cf   :  { %2662 = vst.msk [vmem:[%s5863_s3 + $0x40] sm:$0xff] %vm2653_vm0, %v2645_v18  ;;  %v2487_v46 = vadd.f32 %v2486_v29, %v2422_v21  ;;  %v2616_v24 = vpop.f32.mrf.mxu2 }
 0x3d1   :  { %v2552_v27 = vadd.f32 %v2551_v11, %v2487_v46 }
 0x3d3   :  { %v2617_v26 = vadd.f32 %v2616_v24, %v2552_v27 }
 0x3d4   :  { %v2424_v62 = vpop.f32.mrf.mxu3  ;;  %v2554_v30 = vpop.f32.mrf.mxu1 }
 0x3d5   :  { %v2646_v33 = vmax.f32 %v2617_v26, 0.0  ;;  %v2425_v19 = vadd.f32 %v2424_v62, %v5712_v42 }
 0x3d6   :  { %v2492_v0 = vpop.f32.mrf.mxu0 }
 0x3d7   :  { %2663 = vst.msk [vmem:[%s5863_s3 + $0x48] sm:$0xff] %vm2653_vm0, %v2646_v33  ;;  %v2490_v59 = vadd.f32 %v2489_v60, %v2425_v19  ;;  %v2619_v57 = vpop.f32.mrf.mxu2 }
 0x3d9   :  { %v2555_v4 = vadd.f32 %v2554_v30, %v2490_v59 }
 0x3db   :  { %v2620_v5 = vadd.f32 %v2619_v57, %v2555_v4 }
 0x3dc   :  { %v2427_v13 = vpop.f32.mrf.mxu3  ;;  %v2557_v54 = vpop.f32.mrf.mxu1 }
 0x3dd   :  { %v2647_v14 = vmax.f32 %v2620_v5, 0.0  ;;  %v2428_v7 = vadd.f32 %v2427_v13, %v5727_v58 }
 0x3de   :  { %v2495_v8 = vpop.f32.mrf.mxu0 }
 0x3df   :  { %2664 = vst.msk [vmem:[%s5863_s3 + $0x50] sm:$0xff] %vm2653_vm0, %v2647_v14  ;;  %v2493_v42 = vadd.f32 %v2492_v0, %v2428_v7  ;;  %v2622_v48 = vpop.f32.mrf.mxu2 }
 0x3e1   :  { %v2558_v40 = vadd.f32 %v2557_v54, %v2493_v42 }
 0x3e3   :  { %v2623_v10 = vadd.f32 %v2622_v48, %v2558_v40 }
 0x3e4   :  { %v2430_v16 = vpop.f32.mrf.mxu3  ;;  %v2560_v47 = vpop.f32.mrf.mxu1 }
 0x3e5   :  { %v2648_v17 = vmax.f32 %v2623_v10, 0.0  ;;  %v2431_v23 = vadd.f32 %v2430_v16, %v5742_v39 }
 0x3e6   :  { %v2498_v37 = vpop.f32.mrf.mxu0 }
 0x3e7   :  { %2665 = vst.msk [vmem:[%s5863_s3 + $0x58] sm:$0xff] %vm2653_vm0, %v2648_v17  ;;  %v2496_v58 = vadd.f32 %v2495_v8, %v2431_v23  ;;  %v2625_v28 = vpop.f32.mrf.mxu2 }
 0x3e9   :  { %v2561_v34 = vadd.f32 %v2560_v47, %v2496_v58 }
 0x3eb   :  { %v2626_v35 = vadd.f32 %v2625_v28, %v2561_v34 }
 0x3ec   :  { %v2433_v1 = vpop.f32.mrf.mxu3  ;;  %v2563_v38 = vpop.f32.mrf.mxu1 }
 0x3ed   :  { %v2649_v15 = vmax.f32 %v2626_v35, 0.0  ;;  %v2434_v41 = vadd.f32 %v2433_v1, %v5757_v50 }
 0x3ee   :  { %v2501_v45 = vpop.f32.mrf.mxu0 }
 0x3ef   :  { %2666 = vst.msk [vmem:[%s5863_s3 + $0x60] sm:$0xff] %vm2653_vm0, %v2649_v15  ;;  %v2499_v39 = vadd.f32 %v2498_v37, %v2434_v41  ;;  %v2628_v44 = vpop.f32.mrf.mxu2 }
 0x3f1   :  { %v2564_v43 = vadd.f32 %v2563_v38, %v2499_v39 }
 0x3f3   :  { %v2629_v49 = vadd.f32 %v2628_v44, %v2564_v43 }
 0x3f4   :  { %v2436_v63 = vpop.f32.mrf.mxu3  ;;  %v2566_v6 = vpop.f32.mrf.mxu1 }
 0x3f5   :  { %v2650_v51 = vmax.f32 %v2629_v49, 0.0  ;;  %v2437_v36 = vadd.f32 %v2436_v63, %v5772_v9 }
 0x3f6   :  { %v2504_v55 = vpop.f32.mrf.mxu0 }
 0x3f7   :  { %2667 = vst.msk [vmem:[%s5863_s3 + $0x68] sm:$0xff] %vm2653_vm0, %v2650_v51  ;;  %v2502_v50 = vadd.f32 %v2501_v45, %v2437_v36  ;;  %v2631_v52 = vpop.f32.mrf.mxu2 }
 0x3f9   :  { %v2567_v2 = vadd.f32 %v2566_v6, %v2502_v50 }
 0x3fb   :  { %v2632_v25 = vadd.f32 %v2631_v52, %v2567_v2 }
 0x3fc   :  { %v2439_v3 = vpop.f32.mrf.mxu3  ;;  %v2569_v29 = vpop.f32.mrf.mxu1 }
 0x3fd   :  { %v2651_v56 = vmax.f32 %v2632_v25, 0.0  ;;  %v2440_v12 = vadd.f32 %v2439_v3, %v5778_v31 }
 0x3ff   :  { %2668 = vst.msk [vmem:[%s5863_s3 + $0x70] sm:$0xff] %vm2653_vm0, %v2651_v56  ;;  %v2505_v9 = vadd.f32 %v2504_v55, %v2440_v12  ;;  %v2634_v22 = vpop.f32.mrf.mxu2 }
 0x401   :  { %v2570_v61 = vadd.f32 %v2569_v29, %v2505_v9 }
 0x403   :  { %v2635_v53 = vadd.f32 %v2634_v22, %v2570_v61 }
 0x405   :  { %v2652_v20 = vmax.f32 %v2635_v53, 0.0 }
 0x407   :  { %2669 = vst.msk [vmem:[%s5863_s3 + $0x78] sm:$0xff] %vm2653_vm0, %v2652_v20 }

// kernel: segmentation_decoder_forward.11
= control target key start
LH: loop header
LB: loop body
LE: loop exit
PB: predicated region body
PF: predicated region fallthrough
CT: control target
= control target key end

     0   :  { %7 = vsyncpa [#allocation3], 0  ;;  %s1326_s0 = inlined_call_operand.vmem [shape: f32[256,32], index: 0, kind: input, shape index: {}]   ;;  %s1327_s1 = inlined_call_operand.vmem [shape: f32[2,4,32,256], index: 1, kind: input, shape index: {}]   ;;  %s1328_s2 = inlined_call_operand.hbm [shape: f32[2,4,256,256], index: 2, kind: output, shape index: {}]  }
   0x1   :  { %9 = vsyncpa [#allocation3 + $0x1], 0  ;;  %s973_s9 = smov 0   ;;  %s975_s10 = smov 0  }
   0x2   :  { %s977_s11 = smov 0   ;;  %s979_s12 = smov 0  }
   0x3   :  { %s981_s13 = smov 0   ;;  %s983_s14 = smov 0  }
   0x4   :  { %s985_s15 = smov 0   ;;  %s987_s16 = smov 0  }
   0x5 LB: > { %s700_s17 = sadd.s32 4294967295, %s954_s16   ;;  %s701_s18 = sadd.s32 4294967294, %s954_s16   ;;  %s954_s16 = sphi %s987_s16, %s15_s16   ;;  %s950_s15 = sphi %s985_s15, %s1337_s15   ;;  %s946_s14 = sphi %s983_s14, %s1336_s14   ;;  %s942_s13 = sphi %s981_s13, %s1335_s13   ;;  %s938_s12 = sphi %s979_s12, %s1334_s12   ;;  %s934_s11 = sphi %s977_s11, %s1333_s11   ;;  %s930_s10 = sphi %s975_s10, %s1332_s10   ;;  %s926_s9 = sphi %s973_s9, %s1331_s9  }
   0x6   : > { %s24_s19 = sadd.s32 1, %s946_s14  ;;  %s27_s20 = sadd.s32 1, %s950_s15 }
   0x7   : > { %p25_p0 = scmp.ge.s32.totalorder %s24_s19, 4  ;;  %p95_p1 = scmp.ne.s32.totalorder %s934_s11, %s930_s10 }
   0x8   : > { %p96_p2 = scmp.eq.s32.totalorder %s700_s17, 7  ;;  %p101_p5 = scmp.ne.s32.totalorder %s930_s10, %s926_s9 }
   0x9   : > { %s1339_s19 = smov (%p25_p0, %s24_s19), 0  ;;  %s1341_s20 = smov (!%p25_p0, %s27_s20), %s950_s15 }
   0xa   : > { %s81_s21 = ssub.s32 %s946_s14, %s1339_s19  ;;  %p1024_p3 = por %p96_p2, %p95_p1 }
   0xb   : > { %p29_p4 = scmp.ge.s32.totalorder %s1341_s20, 2  ;;  %p102_p6 = scmp.eq.s32.totalorder %s701_s18, 7 }
   0xc   : > { %p704_p7 = scmp.ge.s32.totalorder %s954_s16, 1  ;;  %p135_p9 = scmp.lt.s32.totalorder %s954_s16, 9 }
   0xd   : > { %s1343_s20 = smov (%p29_p4, %s1341_s20), 0  ;;  %p1033_p8 = por %p102_p6, %p101_p5 }
   0xe   : > { %s80_s24 = ssub.s32 %s950_s15, %s1343_s20  ;;  %s85_s25 = sadd.s32 1, %s934_s11 }
   0xf   : > { %s82_s26 = sor.u32 %s81_s21, %s80_s24  ;;  %p136_p10 = pnand %p704_p7, %p135_p9 }
  0x10   : > { %p83_p11 = scmp.eq.s32.totalorder %s82_s26, 0  ;;  %p161_p12 = scmp.lt.s32.totalorder (!%p136_p10), %s942_s13, 1 }
  0x11   : > { %139 = sbr.rel (%p136_p10) target bundleno = 294 (0x126), region = 28  ;;  %p163_p13 = scmp.lt.s32.totalorder (!%p136_p10), %s938_s12, 3 }
  0x12   : > { %s1042_s27 = scalar_select %p83_p11, %s934_s11, %s85_s25  }
  0x13   : > { %s158_s25 = sand.u32 (!%p136_p10), 1, %s930_s10  }
  0x14   : > { %s705_s26 = sshll.u32 (!%p136_p10), %s158_s25, 9 }
  0x16   : > { %s162_s28 = scalar_select %p161_p12, %s942_s13, 1  ;;  %v186_v8 = vld [vmem:[%s1326_s0 + $0x80] sm:$0xff]  ;;  %vm210_vm0 = vcmask 261120   ;;  %v187_v10 = vld [vmem:[%s1326_s0 + $0x88] sm:$0xff]  ;;  %v188_v12 = vld [vmem:[%s1326_s0 + $0x90] sm:$0xff] }
  0x17   : > { %s164_s29 = scalar_select %p163_p13, %s938_s12, 3  ;;  %v170_v9 = vld [vmem:[%s1326_s0] sm:$0xff]  ;;  %v171_v11 = vld [vmem:[%s1326_s0 + $0x8] sm:$0xff]  ;;  %v172_v13 = vld [vmem:[%s1326_s0 + $0x10] sm:$0xff] }
  0x18   : > { %s707_s30 = sshll.u32 %s162_s28, 5  ;;  %v189_v14 = vld [vmem:[%s1326_s0 + $0x98] sm:$0xff]  ;;  %v190_v16 = vld [vmem:[%s1326_s0 + $0xa0] sm:$0xff]  ;;  %v191_v18 = vld [vmem:[%s1326_s0 + $0xa8] sm:$0xff]  ;;  %s1214_s28 = scalar_lea.vmem [#allocation2], %s705_s26 }
  0x19   : > { %s706_s3 = sshll.u32 %s164_s29, 3  ;;  %v173_v15 = vld [vmem:[%s1326_s0 + $0x18] sm:$0xff]  ;;  %v174_v17 = vld [vmem:[%s1326_s0 + $0x20] sm:$0xff]  ;;  %v175_v19 = vld [vmem:[%s1326_s0 + $0x28] sm:$0xff]  ;;  %s774_s29 = sshll.u32 %s938_s12, 6 }
  0x1a   : > { %s167_s4 = sadd.s32 %s707_s30, %s706_s3  ;;  %v192_v20 = vld [vmem:[%s1326_s0 + $0xb0] sm:$0xff]  ;;  %v193_v22 = vld [vmem:[%s1326_s0 + $0xb8] sm:$0xff]  ;;  %v194_v24 = vld [vmem:[%s1326_s0 + $0xc0] sm:$0xff]  ;;  %s775_s30 = sshll.u32 %s942_s13, 8 }
  0x1b   : > { %s708_s5 = sshll.u32 %s167_s4, 3  ;;  %v176_v21 = vld [vmem:[%s1326_s0 + $0x30] sm:$0xff]  ;;  %v177_v23 = vld [vmem:[%s1326_s0 + $0x38] sm:$0xff]  ;;  %v178_v25 = vld [vmem:[%s1326_s0 + $0x40] sm:$0xff]  ;;  %s609_s3 = sadd.s32 %s775_s30, %s774_s29 }
  0x1c   : > { %s169_s8 = scalar_lea.vmem %s1327_s1, %s708_s5  ;;  %v195_v26 = vld [vmem:[%s1326_s0 + $0xc8] sm:$0xff]  ;;  %v196_v28 = vld [vmem:[%s1326_s0 + $0xd0] sm:$0xff]  ;;  %v197_v30 = vld [vmem:[%s1326_s0 + $0xd8] sm:$0xff]  ;;  %s776_s4 = sshll.u32 %s609_s3, 3 }
  0x1d   : > { %v208_v0 = vld [vmem:[%s169_s8 + $0x30] sm:$0xff]  ;;  %v209_v1 = vld [vmem:[%s169_s8 + $0x38] sm:$0xff]  ;;  %v206_v2 = vld [vmem:[%s169_s8 + $0x20] sm:$0xff]  ;;  %s611_s13 = scalar_lea.hbm %s1328_s2, %s776_s4  ;;  %s612_s6 = sshll.u32 %s1214_s28, 4  ;;  %s613_s6 = int_to_ptr.vmem [resolvable:$true] %s612_s6 }
  0x1e   : > { %779 = vmatpush.msra.mxu2 %v208_v0  ;;  %783 = vmatpush.msra.mxu3 %v209_v1  ;;  %v207_v3 = vld [vmem:[%s169_s8 + $0x28] sm:$0xff]  ;;  %v204_v4 = vld [vmem:[%s169_s8 + $0x10] sm:$0xff]  ;;  %v205_v5 = vld [vmem:[%s169_s8 + $0x18] sm:$0xff]  ;;  %s614_s7 = sshll.u32 %s611_s13, 4  ;;  %s880_s26 = scalar_lea.hbm %s1328_s2, 4096  ;;  %s615_s7 = int_to_ptr.hbm [resolvable:$true] %s614_s7 }
  0x1f   : > { %319 = vmatpush.msra.mxu0 %v208_v0  ;;  %432 = vmatpush.msra.mxu1 %v209_v1  ;;  %v202_v6 = vld [vmem:[%s169_s8] sm:$0xff]  ;;  %v203_v7 = vld [vmem:[%s169_s8 + $0x8] sm:$0xff]  ;;  %v180_v29 = vld [vmem:[%s1326_s0 + $0x50] sm:$0xff]  ;;  %s598_s8 = scalar_lea.sflag [#allocation3], %s158_s25  ;;  %s874_s17 = sshra.s32 %s615_s7, 4  ;;  %s875_s17 = int_to_ptr.hbm [resolvable:$true] %s874_s17 }
  0x20   : > { %780 = vmatpush.msra.mxu2 %v206_v2  ;;  %784 = vmatpush.msra.mxu3 %v207_v3  ;;  %v179_v27 = vld [vmem:[%s1326_s0 + $0x48] sm:$0xff]  ;;  %v181_v31 = vld [vmem:[%s1326_s0 + $0x58] sm:$0xff]  ;;  %v198_v32 = vld [vmem:[%s1326_s0 + $0xe0] sm:$0xff]  ;;  %s876_s18 = scalar_lea.hbm %s875_s17, 512  ;;  %p881_p4 = scmp.lt.s32.totalorder %s875_s17, %s1328_s2 }
  0x21   : > { %320 = vmatpush.msra.mxu0 %v206_v2  ;;  %433 = vmatpush.msra.mxu1 %v207_v3  ;;  %v182_v33 = vld [vmem:[%s1326_s0 + $0x60] sm:$0xff]  ;;  %v199_v34 = vld [vmem:[%s1326_s0 + $0xe8] sm:$0xff]  ;;  %v200_v36 = vld [vmem:[%s1326_s0 + $0xf0] sm:$0xff]  ;;  %p877_p0 = scmp.ne.s32.totalorder %s875_s17, %s876_s18  ;;  %p882_p5 = scmp.lt.s32.totalorder %s880_s26, %s876_s18 }
  0x22   : > { %781 = vmatpush.msra.mxu2 %v204_v4  ;;  %785 = vmatpush.msra.mxu3 %v205_v5  ;;  %v183_v35 = vld [vmem:[%s1326_s0 + $0x68] sm:$0xff]  ;;  %v184_v37 = vld [vmem:[%s1326_s0 + $0x70] sm:$0xff]  ;;  %v201_v38 = vld [vmem:[%s1326_s0 + $0xf8] sm:$0xff] }
  0x23   : > { %321 = vmatpush.msra.mxu0 %v204_v4  ;;  %434 = vmatpush.msra.mxu1 %v205_v5  ;;  %v185_v39 = vld [vmem:[%s1326_s0 + $0x78] sm:$0xff]  ;;  %p878_p1 = pnand %p877_p0, %p1024_p3  ;;  %p883_p6 = por %p882_p5, %p881_p4 }
  0x24   : > { %782 = vmatpush.msra.mxu2 %v202_v6  ;;  %786 = vmatpush.msra.mxu3 %v203_v7 }
  0x25   : > { %725 = vmatmul.msk.f32.vlgmr.msra.gmra.mxu2 %vm210_vm0, %v186_v8  ;;  %757 = vmatmul.msk.f32.vlgmr.msra.gmra.mxu3 %vm210_vm0, %v186_v8  ;;  %p879_p2 = pneg %p878_p1 }
  0x26   : > { %322 = vmatpush.msra.mxu0 %v202_v6  ;;  %435 = vmatpush.msra.mxu1 %v203_v7 }
  0x27   : > { %709 = vmatmul.msk.f32.vlgmr.msra.gmra.mxu0 %vm210_vm0, %v170_v9  ;;  %741 = vmatmul.msk.f32.vlgmr.msra.gmra.mxu1 %vm210_vm0, %v170_v9  ;;  %p884_p7 = pnand %p883_p6, %p879_p2 }
  0x2d   : > { %726 = vmatmul.msk.f32.gmra.mxu2 %vm210_vm0, %v187_v10  ;;  %758 = vmatmul.msk.f32.gmra.mxu3 %vm210_vm0, %v187_v10 }
  0x2f   : > { %710 = vmatmul.msk.f32.gmra.mxu0 %vm210_vm0, %v171_v11  ;;  %742 = vmatmul.msk.f32.gmra.mxu1 %vm210_vm0, %v171_v11 }
  0x35   : > { %727 = vmatmul.msk.f32.gmra.mxu2 %vm210_vm0, %v188_v12  ;;  %759 = vmatmul.msk.f32.gmra.mxu3 %vm210_vm0, %v188_v12 }
  0x37   : > { %711 = vmatmul.msk.f32.gmra.mxu0 %vm210_vm0, %v172_v13  ;;  %743 = vmatmul.msk.f32.gmra.mxu1 %vm210_vm0, %v172_v13 }
  0x3d   : > { %728 = vmatmul.msk.f32.gmra.mxu2 %vm210_vm0, %v189_v14  ;;  %760 = vmatmul.msk.f32.gmra.mxu3 %vm210_vm0, %v189_v14 }
  0x3f   : > { %712 = vmatmul.msk.f32.gmra.mxu0 %vm210_vm0, %v173_v15  ;;  %744 = vmatmul.msk.f32.gmra.mxu1 %vm210_vm0, %v173_v15 }
  0x45   : > { %729 = vmatmul.msk.f32.gmra.mxu2 %vm210_vm0, %v190_v16  ;;  %761 = vmatmul.msk.f32.gmra.mxu3 %vm210_vm0, %v190_v16 }
  0x47   : > { %713 = vmatmul.msk.f32.gmra.mxu0 %vm210_vm0, %v174_v17  ;;  %745 = vmatmul.msk.f32.gmra.mxu1 %vm210_vm0, %v174_v17 }
  0x4d   : > { %730 = vmatmul.msk.f32.gmra.mxu2 %vm210_vm0, %v191_v18  ;;  %762 = vmatmul.msk.f32.gmra.mxu3 %vm210_vm0, %v191_v18 }
  0x4f   : > { %714 = vmatmul.msk.f32.gmra.mxu0 %vm210_vm0, %v175_v19  ;;  %746 = vmatmul.msk.f32.gmra.mxu1 %vm210_vm0, %v175_v19 }
  0x55   : > { %731 = vmatmul.msk.f32.gmra.mxu2 %vm210_vm0, %v192_v20  ;;  %763 = vmatmul.msk.f32.gmra.mxu3 %vm210_vm0, %v192_v20 }
  0x57   : > { %715 = vmatmul.msk.f32.gmra.mxu0 %vm210_vm0, %v176_v21  ;;  %747 = vmatmul.msk.f32.gmra.mxu1 %vm210_vm0, %v176_v21 }
  0x5d   : > { %732 = vmatmul.msk.f32.gmra.mxu2 %vm210_vm0, %v193_v22  ;;  %764 = vmatmul.msk.f32.gmra.mxu3 %vm210_vm0, %v193_v22 }
  0x5f   : > { %716 = vmatmul.msk.f32.gmra.mxu0 %vm210_vm0, %v177_v23  ;;  %748 = vmatmul.msk.f32.gmra.mxu1 %vm210_vm0, %v177_v23 }
  0x65   : > { %733 = vmatmul.msk.f32.gmra.mxu2 %vm210_vm0, %v194_v24  ;;  %765 = vmatmul.msk.f32.gmra.mxu3 %vm210_vm0, %v194_v24 }
  0x67   : > { %717 = vmatmul.msk.f32.gmra.mxu0 %vm210_vm0, %v178_v25  ;;  %749 = vmatmul.msk.f32.gmra.mxu1 %vm210_vm0, %v178_v25 }
  0x6d   : > { %734 = vmatmul.msk.f32.gmra.mxu2 %vm210_vm0, %v195_v26  ;;  %766 = vmatmul.msk.f32.gmra.mxu3 %vm210_vm0, %v195_v26 }
  0x6f   : > { %718 = vmatmul.msk.f32.gmra.mxu0 %vm210_vm0, %v179_v27  ;;  %750 = vmatmul.msk.f32.gmra.mxu1 %vm210_vm0, %v179_v27 }
  0x75   : > { %735 = vmatmul.msk.f32.gmra.mxu2 %vm210_vm0, %v196_v28  ;;  %767 = vmatmul.msk.f32.gmra.mxu3 %vm210_vm0, %v196_v28 }
  0x77   : > { %719 = vmatmul.msk.f32.gmra.mxu0 %vm210_vm0, %v180_v29  ;;  %751 = vmatmul.msk.f32.gmra.mxu1 %vm210_vm0, %v180_v29 }
  0x7d   : > { %736 = vmatmul.msk.f32.gmra.mxu2 %vm210_vm0, %v197_v30  ;;  %768 = vmatmul.msk.f32.gmra.mxu3 %vm210_vm0, %v197_v30 }
  0x7f   : > { %720 = vmatmul.msk.f32.gmra.mxu0 %vm210_vm0, %v181_v31  ;;  %752 = vmatmul.msk.f32.gmra.mxu1 %vm210_vm0, %v181_v31 }
  0x85   : > { %737 = vmatmul.msk.f32.gmra.mxu2 %vm210_vm0, %v198_v32  ;;  %769 = vmatmul.msk.f32.gmra.mxu3 %vm210_vm0, %v198_v32 }
  0x87   : > { %721 = vmatmul.msk.f32.gmra.mxu0 %vm210_vm0, %v182_v33  ;;  %753 = vmatmul.msk.f32.gmra.mxu1 %vm210_vm0, %v182_v33 }
  0x8d   : > { %738 = vmatmul.msk.f32.gmra.mxu2 %vm210_vm0, %v199_v34  ;;  %770 = vmatmul.msk.f32.gmra.mxu3 %vm210_vm0, %v199_v34 }
  0x8f   : > { %722 = vmatmul.msk.f32.gmra.mxu0 %vm210_vm0, %v183_v35  ;;  %754 = vmatmul.msk.f32.gmra.mxu1 %vm210_vm0, %v183_v35 }
  0x95   : > { %739 = vmatmul.msk.f32.gmra.mxu2 %vm210_vm0, %v200_v36  ;;  %771 = vmatmul.msk.f32.gmra.mxu3 %vm210_vm0, %v200_v36 }
  0x97   : > { %723 = vmatmul.msk.f32.gmra.mxu0 %vm210_vm0, %v184_v37  ;;  %755 = vmatmul.msk.f32.gmra.mxu1 %vm210_vm0, %v184_v37 }
  0x9d   : > { %740 = vmatmul.msk.f32.gmra.mxu2 %vm210_vm0, %v201_v38  ;;  %772 = vmatmul.msk.f32.gmra.mxu3 %vm210_vm0, %v201_v38 }
  0x9f   : > { %724 = vmatmul.msk.f32.gmra.mxu0 %vm210_vm0, %v185_v39  ;;  %756 = vmatmul.msk.f32.gmra.mxu1 %vm210_vm0, %v185_v39 }
  0xa4   : > { %v324_v40 = vpop.f32.mrf.mxu0  ;;  %v437_v41 = vpop.f32.mrf.mxu1 }
  0xa5   : > { %533 = vst [vmem:[%s1214_s28] sm:$0xff] %v324_v40 }
  0xa6   : > { %534 = vst [vmem:[%s1214_s28 + $0x8] sm:$0xff] %v437_v41 }
  0xa8   : > { %v372_v42 = vpop.f32.mrf.mxu2  ;;  %v485_v43 = vpop.f32.mrf.mxu3 }
  0xa9   : > { %565 = vst [vmem:[%s1214_s28 + $0x100] sm:$0xff] %v372_v42 }
  0xaa   : > { %566 = vst [vmem:[%s1214_s28 + $0x108] sm:$0xff] %v485_v43 }
  0xac   : > { %v327_v44 = vpop.f32.mrf.mxu0  ;;  %v440_v45 = vpop.f32.mrf.mxu1 }
  0xad   : > { %535 = vst [vmem:[%s1214_s28 + $0x10] sm:$0xff] %v327_v44 }
  0xae   : > { %536 = vst [vmem:[%s1214_s28 + $0x18] sm:$0xff] %v440_v45 }
  0xb0   : > { %v375_v46 = vpop.f32.mrf.mxu2  ;;  %v488_v47 = vpop.f32.mrf.mxu3 }
  0xb1   : > { %567 = vst [vmem:[%s1214_s28 + $0x110] sm:$0xff] %v375_v46 }
  0xb2   : > { %568 = vst [vmem:[%s1214_s28 + $0x118] sm:$0xff] %v488_v47 }
  0xb4   : > { %v330_v48 = vpop.f32.mrf.mxu0  ;;  %v443_v49 = vpop.f32.mrf.mxu1 }
  0xb5   : > { %537 = vst [vmem:[%s1214_s28 + $0x20] sm:$0xff] %v330_v48 }
  0xb6   : > { %538 = vst [vmem:[%s1214_s28 + $0x28] sm:$0xff] %v443_v49 }
  0xb8   : > { %v378_v50 = vpop.f32.mrf.mxu2  ;;  %v491_v51 = vpop.f32.mrf.mxu3 }
  0xb9   : > { %569 = vst [vmem:[%s1214_s28 + $0x120] sm:$0xff] %v378_v50 }
  0xba   : > { %570 = vst [vmem:[%s1214_s28 + $0x128] sm:$0xff] %v491_v51 }
  0xbc   : > { %v333_v52 = vpop.f32.mrf.mxu0  ;;  %v446_v53 = vpop.f32.mrf.mxu1 }
  0xbd   : > { %539 = vst [vmem:[%s1214_s28 + $0x30] sm:$0xff] %v333_v52 }
  0xbe   : > { %540 = vst [vmem:[%s1214_s28 + $0x38] sm:$0xff] %v446_v53 }
  0xc0   : > { %v381_v54 = vpop.f32.mrf.mxu2  ;;  %v494_v55 = vpop.f32.mrf.mxu3 }
  0xc1   : > { %571 = vst [vmem:[%s1214_s28 + $0x130] sm:$0xff] %v381_v54 }
  0xc2   : > { %572 = vst [vmem:[%s1214_s28 + $0x138] sm:$0xff] %v494_v55 }
  0xc4   : > { %v336_v56 = vpop.f32.mrf.mxu0  ;;  %v449_v57 = vpop.f32.mrf.mxu1 }
  0xc5   : > { %541 = vst [vmem:[%s1214_s28 + $0x40] sm:$0xff] %v336_v56 }
  0xc6   : > { %542 = vst [vmem:[%s1214_s28 + $0x48] sm:$0xff] %v449_v57 }
  0xc8   : > { %v384_v58 = vpop.f32.mrf.mxu2  ;;  %v497_v59 = vpop.f32.mrf.mxu3 }
  0xc9   : > { %573 = vst [vmem:[%s1214_s28 + $0x140] sm:$0xff] %v384_v58 }
  0xca   : > { %574 = vst [vmem:[%s1214_s28 + $0x148] sm:$0xff] %v497_v59 }
  0xcc   : > { %v339_v60 = vpop.f32.mrf.mxu0  ;;  %v452_v61 = vpop.f32.mrf.mxu1 }
  0xcd   : > { %543 = vst [vmem:[%s1214_s28 + $0x50] sm:$0xff] %v339_v60 }
  0xce   : > { %544 = vst [vmem:[%s1214_s28 + $0x58] sm:$0xff] %v452_v61 }
  0xd0   : > { %v387_v62 = vpop.f32.mrf.mxu2  ;;  %v500_v63 = vpop.f32.mrf.mxu3 }
  0xd1   : > { %575 = vst [vmem:[%s1214_s28 + $0x150] sm:$0xff] %v387_v62 }
  0xd2   : > { %576 = vst [vmem:[%s1214_s28 + $0x158] sm:$0xff] %v500_v63 }
  0xd4   : > { %v342_v0 = vpop.f32.mrf.mxu0  ;;  %v455_v1 = vpop.f32.mrf.mxu1 }
  0xd5   : > { %545 = vst [vmem:[%s1214_s28 + $0x60] sm:$0xff] %v342_v0 }
  0xd6   : > { %546 = vst [vmem:[%s1214_s28 + $0x68] sm:$0xff] %v455_v1 }
  0xd8   : > { %v390_v2 = vpop.f32.mrf.mxu2  ;;  %v503_v3 = vpop.f32.mrf.mxu3 }
  0xd9   : > { %577 = vst [vmem:[%s1214_s28 + $0x160] sm:$0xff] %v390_v2 }
  0xda   : > { %578 = vst [vmem:[%s1214_s28 + $0x168] sm:$0xff] %v503_v3 }
  0xdc   : > { %v345_v4 = vpop.f32.mrf.mxu0  ;;  %v458_v5 = vpop.f32.mrf.mxu1 }
  0xdd   : > { %547 = vst [vmem:[%s1214_s28 + $0x70] sm:$0xff] %v345_v4 }
  0xde   : > { %548 = vst [vmem:[%s1214_s28 + $0x78] sm:$0xff] %v458_v5 }
  0xe0   : > { %v393_v6 = vpop.f32.mrf.mxu2  ;;  %v506_v7 = vpop.f32.mrf.mxu3 }
  0xe1   : > { %579 = vst [vmem:[%s1214_s28 + $0x170] sm:$0xff] %v393_v6 }
  0xe2   : > { %580 = vst [vmem:[%s1214_s28 + $0x178] sm:$0xff] %v506_v7 }
  0xe4   : > { %v348_v8 = vpop.f32.mrf.mxu0  ;;  %v461_v9 = vpop.f32.mrf.mxu1 }
  0xe5   : > { %549 = vst [vmem:[%s1214_s28 + $0x80] sm:$0xff] %v348_v8 }
  0xe6   : > { %550 = vst [vmem:[%s1214_s28 + $0x88] sm:$0xff] %v461_v9 }
  0xe8   : > { %v396_v10 = vpop.f32.mrf.mxu2  ;;  %v509_v11 = vpop.f32.mrf.mxu3 }
  0xe9   : > { %581 = vst [vmem:[%s1214_s28 + $0x180] sm:$0xff] %v396_v10 }
  0xea   : > { %582 = vst [vmem:[%s1214_s28 + $0x188] sm:$0xff] %v509_v11 }
  0xec   : > { %v351_v12 = vpop.f32.mrf.mxu0  ;;  %v464_v13 = vpop.f32.mrf.mxu1 }
  0xed   : > { %551 = vst [vmem:[%s1214_s28 + $0x90] sm:$0xff] %v351_v12 }
  0xee   : > { %552 = vst [vmem:[%s1214_s28 + $0x98] sm:$0xff] %v464_v13 }
  0xf0   : > { %v399_v14 = vpop.f32.mrf.mxu2  ;;  %v512_v15 = vpop.f32.mrf.mxu3 }
  0xf1   : > { %583 = vst [vmem:[%s1214_s28 + $0x190] sm:$0xff] %v399_v14 }
  0xf2   : > { %584 = vst [vmem:[%s1214_s28 + $0x198] sm:$0xff] %v512_v15 }
  0xf4   : > { %v354_v16 = vpop.f32.mrf.mxu0  ;;  %v467_v17 = vpop.f32.mrf.mxu1 }
  0xf5   : > { %553 = vst [vmem:[%s1214_s28 + $0xa0] sm:$0xff] %v354_v16 }
  0xf6   : > { %554 = vst [vmem:[%s1214_s28 + $0xa8] sm:$0xff] %v467_v17 }
  0xf8   : > { %v402_v18 = vpop.f32.mrf.mxu2  ;;  %v515_v19 = vpop.f32.mrf.mxu3 }
  0xf9   : > { %585 = vst [vmem:[%s1214_s28 + $0x1a0] sm:$0xff] %v402_v18 }
  0xfa   : > { %586 = vst [vmem:[%s1214_s28 + $0x1a8] sm:$0xff] %v515_v19 }
  0xfc   : > { %v357_v20 = vpop.f32.mrf.mxu0  ;;  %v470_v21 = vpop.f32.mrf.mxu1 }
  0xfd   : > { %555 = vst [vmem:[%s1214_s28 + $0xb0] sm:$0xff] %v357_v20 }
  0xfe   : > { %556 = vst [vmem:[%s1214_s28 + $0xb8] sm:$0xff] %v470_v21 }
 0x100   : > { %v405_v22 = vpop.f32.mrf.mxu2  ;;  %v518_v23 = vpop.f32.mrf.mxu3 }
 0x101   : > { %587 = vst [vmem:[%s1214_s28 + $0x1b0] sm:$0xff] %v405_v22 }
 0x102   : > { %588 = vst [vmem:[%s1214_s28 + $0x1b8] sm:$0xff] %v518_v23 }
 0x104   : > { %v360_v24 = vpop.f32.mrf.mxu0  ;;  %v473_v25 = vpop.f32.mrf.mxu1 }
 0x105   : > { %557 = vst [vmem:[%s1214_s28 + $0xc0] sm:$0xff] %v360_v24 }
 0x106   : > { %558 = vst [vmem:[%s1214_s28 + $0xc8] sm:$0xff] %v473_v25 }
 0x108   : > { %v408_v26 = vpop.f32.mrf.mxu2  ;;  %v521_v27 = vpop.f32.mrf.mxu3 }
 0x109   : > { %589 = vst [vmem:[%s1214_s28 + $0x1c0] sm:$0xff] %v408_v26 }
 0x10a   : > { %590 = vst [vmem:[%s1214_s28 + $0x1c8] sm:$0xff] %v521_v27 }
 0x10c   : > { %v363_v28 = vpop.f32.mrf.mxu0  ;;  %v476_v29 = vpop.f32.mrf.mxu1 }
 0x10d   : > { %559 = vst [vmem:[%s1214_s28 + $0xd0] sm:$0xff] %v363_v28 }
 0x10e   : > { %560 = vst [vmem:[%s1214_s28 + $0xd8] sm:$0xff] %v476_v29 }
 0x110   : > { %v411_v30 = vpop.f32.mrf.mxu2  ;;  %v524_v31 = vpop.f32.mrf.mxu3 }
 0x111   : > { %591 = vst [vmem:[%s1214_s28 + $0x1d0] sm:$0xff] %v411_v30 }
 0x112   : > { %592 = vst [vmem:[%s1214_s28 + $0x1d8] sm:$0xff] %v524_v31 }
 0x114   : > { %v366_v32 = vpop.f32.mrf.mxu0  ;;  %v479_v33 = vpop.f32.mrf.mxu1 }
 0x115   : > { %561 = vst [vmem:[%s1214_s28 + $0xe0] sm:$0xff] %v366_v32 }
 0x116   : > { %562 = vst [vmem:[%s1214_s28 + $0xe8] sm:$0xff] %v479_v33 }
 0x118   : > { %v414_v34 = vpop.f32.mrf.mxu2  ;;  %v527_v35 = vpop.f32.mrf.mxu3 }
 0x119   : > { %593 = vst [vmem:[%s1214_s28 + $0x1e0] sm:$0xff] %v414_v34 }
 0x11a   : > { %594 = vst [vmem:[%s1214_s28 + $0x1e8] sm:$0xff] %v527_v35 }
 0x11c   : > { %v369_v36 = vpop.f32.mrf.mxu0  ;;  %v482_v37 = vpop.f32.mrf.mxu1 }
 0x11d   : > { %563 = vst [vmem:[%s1214_s28 + $0xf0] sm:$0xff] %v369_v36 }
 0x11e   : > { %564 = vst [vmem:[%s1214_s28 + $0xf8] sm:$0xff] %v482_v37 }
 0x120   : > { %v417_v38 = vpop.f32.mrf.mxu2  ;;  %v530_v39 = vpop.f32.mrf.mxu3 }
 0x121   : > { %595 = vst [vmem:[%s1214_s28 + $0x1f0] sm:$0xff] %v417_v38 }
 0x122   : > { %596 = vst [vmem:[%s1214_s28 + $0x1f8] sm:$0xff] %v530_v39 }
 0x123   : > { %887 = shalt.err (!%p884_p7)
}
 0x124   : > { %s956_s25 = smov 256   ;;  %s957_s28 = smov 16  }
 0x125   : > { %787 = dma.vmem_to_hbm [thread:$0]  (%p1024_p3), %s613_s6, 8192, %s615_s7, %s598_s8, %s956_s25, %s956_s25, %s957_s28  }
 0x126 PF: > { %p793_p9 = scmp.ge.s32.totalorder %s954_s16, 2  ;;  %s629_s3 = sand.u32 1, %s926_s9  }
 0x127   : > { %s630_s4 = scalar_lea.sflag [#allocation3], %s629_s3 }
 0x128   : > { %p790_p10 = pnand %p793_p9, %p1033_p8 }
 0x12a   : > { %p791_p11 = pneg %p790_p10 }
 0x12c   : > { %921 = dma.done.wait (%p791_p11), %s630_s4, 8192  }
 0x12d   : > { %923 = vsyncadd (%p791_p11), %s630_s4, 4294959104  ;;  %s15_s16 = sadd.s32 1, %s954_s16   ;;  %s1331_s9 = smov %s930_s10 }
 0x12e   : > { %p12_p12 = scmp.ge.s32.totalorder %s15_s16, 10   ;;  %s1332_s10 = smov %s934_s11 }
 0x12f   : > { %s1333_s11 = smov %s1042_s27  ;;  %s1334_s12 = smov %s946_s14 }
 0x130   : > { %s1335_s13 = smov %s950_s15  ;;  %s1336_s14 = smov %s1339_s19 }
 0x131   : > { %s1337_s15 = smov %s1343_s20  ;;  %14 = sbr.rel (!%p12_p12) target bundleno = 5 (0x5), region = 63 }
 0x136   :  { %636 = vsyncpa [#allocation3], 1 }
 0x137   :  { %638 = vsyncpa [#allocation3 + $0x1], 1 }

</bundles_post_ra>
